<compile_context>
chip_gen: v5e
topology: v5e:2x2
jax: 0.10.0
libtpu: 0.0.40
codegen_flags: <defaults>
</compile_context>

<pallas_src>
import jax
import jax.numpy as jnp
import numpy as np
from jax.experimental import pallas as pl
from jax.experimental.pallas import tpu as pltpu

HIDDEN = 24            # LSTM hidden size
SEQ = 24               # sequence length (state[:, 0:24])
EXTRA = 3              # passthrough features (state[:, 24:27])
HP = 128               # per-gate lane-padded width (one full vreg of lanes)
G4 = 4 * HP            # total padded gate width:  i | f | o | g
MAX_BATCH_BLOCK = 128  # batch rows per grid block


def _round_up(n, m):
    return ((n + m - 1) // m) * m


def lstm_kernel(xseq_ref, wb_ref, whhT_ref, out_ref, xwb_ref):
    """Full 24-step LSTM recurrence for one batch block.

    xseq_ref: (SEQ, BB, 1)  f32   per-timestep scalar inputs (time-major)
    wb_ref:   (2, G4)       f32   row 0 = padded W_ih row, row 1 = padded (b_ih+b_hh)
    whhT_ref: (HP, G4)      f32   padded W_hh^T (rows/cols >= HIDDEN are zero)
    out_ref:  (BB, HP)      f32   padded final hidden state (lanes >= HIDDEN are zero)
    xwb_ref:  (SEQ, BB, G4) f32   VMEM scratch: hoisted input projection + bias
    """
    BB = out_ref.shape[0]

    wih = wb_ref[0:1, :].reshape(1, 1, G4)
    bias = wb_ref[1:2, :].reshape(1, 1, G4)

    # Hoisted input projection: one vectorized pass over all timesteps, off the
    # serial dependency chain. SEQ is the leading axis so xwb_ref[t] is a plain
    # address offset, not a lane extract.
    xwb_ref[...] = xseq_ref[...] * wih + bias

    whhT = whhT_ref[...]

    h = jnp.zeros((BB, HP), jnp.float32)
    c = jnp.zeros((BB, HP), jnp.float32)

    # Statically unrolled recurrence (24 steps). Per step the critical path is
    # one MXU matmul, one fused sigmoid over i|f|o, tanh(g), tanh(c), and the
    # elementwise cell/hidden update — all on vreg-aligned 128-lane blocks.
    for t in range(SEQ):
        gates = xwb_ref[t] + jnp.dot(h, whhT, preferred_element_type=jnp.float32)
        sig = jax.nn.sigmoid(gates[:, 0:3 * HP])          # fused i | f | o
        i_g = sig[:, 0 * HP:1 * HP]
        f_g = sig[:, 1 * HP:2 * HP]
        o_g = sig[:, 2 * HP:3 * HP]
        g_g = jnp.tanh(gates[:, 3 * HP:4 * HP])
        c = f_g * c + i_g * g_g
        h = o_g * jnp.tanh(c)
        # Padded lanes [HIDDEN:HP]: weights/bias are zero there, so gate
        # pre-activations are 0, g=tanh(0)=0, c stays 0, and h = sigmoid(0)*tanh(0)=0.

    out_ref[...] = h


def prepare_lstm_params(w_ih, w_hh, b_ih, b_hh):
    """Pack/pad torch-layout LSTM params once, outside the per-call path.

    torch gate row order is (i, f, g, o); reorder to (i, f, o, g) so the sigmoid
    gates are contiguous, and pad each gate to its own 128-lane block.
      wb:   (2, G4)   row 0 = W_ih as a row (input_size=1), row 1 = b_ih + b_hh
      whhT: (HP, G4)  W_hh^T with zero padding (rows >= HIDDEN zero)
    """
    w_ih = jnp.asarray(w_ih, jnp.float32)
    w_hh = jnp.asarray(w_hh, jnp.float32)
    bias = jnp.asarray(b_ih, jnp.float32) + jnp.asarray(b_hh, jnp.float32)

    wb = jnp.zeros((2, G4), jnp.float32)
    whhT = jnp.zeros((HP, G4), jnp.float32)
    for k, src in enumerate((0, 1, 3, 2)):        # dest blocks: i, f, o, g
        rows = slice(src * HIDDEN, (src + 1) * HIDDEN)
        cols = slice(k * HP, k * HP + HIDDEN)
        wb = wb.at[0, cols].set(w_ih[rows, 0])
        wb = wb.at[1, cols].set(bias[rows])
        whhT = whhT.at[:HIDDEN, cols].set(w_hh[rows, :].T)
    return wb, whhT


def lstm_forward(state, wb, whhT):
    """Pallas forward of the Lstm module. state: (B, >=27) f32 -> (B, 27)."""
    B = state.shape[0]
    x = state[:, 0:SEQ].astype(jnp.float32)       # (B, 24)
    extra = state[:, SEQ:SEQ + EXTRA]             # (B, 3) passthrough (concat in wrapper)

    BB = min(MAX_BATCH_BLOCK, _round_up(B, 8))
    B_pad = _round_up(B, BB)
    if B_pad != B:
        x = jnp.pad(x, ((0, B_pad - B), (0, 0)))

    # Time-major (SEQ leading) with a trailing singleton lane dim so the
    # in-kernel broadcast against the (1, 1, G4) weight row is a pure lane bcast.
    xseq = x.T.reshape(SEQ, B_pad, 1)

    h_pad = pl.pallas_call(
        lstm_kernel,
        out_shape=jax.ShapeDtypeStruct((B_pad, HP), jnp.float32),
        grid_spec=pltpu.PrefetchScalarGridSpec(
            num_scalar_prefetch=0,
            grid=(B_pad // BB,),
            in_specs=[
                pl.BlockSpec((SEQ, BB, 1), lambda i: (0, i, 0)),
                pl.BlockSpec((2, G4), lambda i: (0, 0)),
                pl.BlockSpec((HP, G4), lambda i: (0, 0)),
            ],
            out_specs=pl.BlockSpec((BB, HP), lambda i: (i, 0)),
            scratch_shapes=[pltpu.VMEM((SEQ, BB, G4), jnp.float32)],
        ),
        compiler_params=pltpu.CompilerParams(
            dimension_semantics=("parallel",)),
    )(xseq, wb, whhT)

    # Kernel stores a lane-dense (BB, 128) block; slice + concat passthrough here.
    return jnp.concatenate([h_pad[:B, 0:HIDDEN], extra], axis=1)


lstm_forward_jit = jax.jit(lstm_forward)


def lstm_reference(state, w_ih, w_hh, b_ih, b_hh):
    """Pure-JAX reference matching torch.nn.LSTM semantics (gate order i,f,g,o)."""
    B = state.shape[0]
    x = state[:, 0:SEQ].reshape(B, SEQ, 1)
    h = jnp.zeros((B, HIDDEN), jnp.float32)
    c = jnp.zeros((B, HIDDEN), jnp.float32)
    for t in range(SEQ):
        gates = x[:, t, :] @ w_ih.T + h @ w_hh.T + b_ih + b_hh
        i_g = jax.nn.sigmoid(gates[:, 0 * HIDDEN:1 * HIDDEN])
        f_g = jax.nn.sigmoid(gates[:, 1 * HIDDEN:2 * HIDDEN])
        g_g = jnp.tanh(gates[:, 2 * HIDDEN:3 * HIDDEN])
        o_g = jax.nn.sigmoid(gates[:, 3 * HIDDEN:4 * HIDDEN])
        c = f_g * c + i_g * g_g
        h = o_g * jnp.tanh(c)
    return jnp.concatenate([h, state[:, SEQ:SEQ + EXTRA]], axis=1)


if __name__ == "__main__":
    key = jax.random.PRNGKey(0)
    k_state, k_wih, k_whh, k_bih, k_bhh = jax.random.split(key, 5)

    B = 8
    state = jax.random.normal(k_state, (B, 27), dtype=jnp.float32)

    # Deterministic PyTorch-style init: U(-1/sqrt(hidden), 1/sqrt(hidden)).
    bound = 1.0 / np.sqrt(HIDDEN)
    w_ih = jax.random.uniform(k_wih, (4 * HIDDEN, 1), jnp.float32, -bound, bound)
    w_hh = jax.random.uniform(k_whh, (4 * HIDDEN, HIDDEN), jnp.float32, -bound, bound)
    b_ih = jax.random.uniform(k_bih, (4 * HIDDEN,), jnp.float32, -bound, bound)
    b_hh = jax.random.uniform(k_bhh, (4 * HIDDEN,), jnp.float32, -bound, bound)

    # Weight packing done once, outside the per-call path.
    wb, whhT = prepare_lstm_params(w_ih, w_hh, b_ih, b_hh)
    wb, whhT = jax.block_until_ready((wb, whhT))

    out = lstm_forward_jit(state, wb, whhT)
    out = jax.block_until_ready(out)

    ref = lstm_reference(state, w_ih, w_hh, b_ih, b_hh)
    np.testing.assert_allclose(np.asarray(out), np.asarray(ref), rtol=1e-5, atol=2e-5)

    print("KERNEL_OK")
</pallas_src>

<mosaic_0001>
module attributes {stable_mosaic.version = 11 : i64} {
  func.func @lstm_kernel(%arg0: i32, %arg1: memref<24x8x1xf32, #tpu.memory_space<vmem>>, %arg2: memref<2x512xf32, #tpu.memory_space<vmem>>, %arg3: memref<128x512xf32, #tpu.memory_space<vmem>>, %arg4: memref<8x128xf32, #tpu.memory_space<vmem>>, %arg5: memref<24x8x512xf32, #tpu.memory_space<vmem>>) attributes {dimension_semantics = [#tpu.dimension_semantics<parallel>], iteration_bounds = array<i64: 1>, scalar_prefetch = 0 : i64, scratch_operands = 1 : i64, tpu.core_type = #tpu.core_type<tc>, window_params = [{transform_indices = @transform_0, window_bounds = array<i64: 24, 8, 1>}, {pipeline_mode = #tpu.pipeline_mode<synchronous>, transform_indices = @transform_1, window_bounds = array<i64: 2, 512>}, {pipeline_mode = #tpu.pipeline_mode<synchronous>, transform_indices = @transform_2, window_bounds = array<i64: 128, 512>}, {transform_indices = @transform_3, window_bounds = array<i64: 8, 128>}]} {
    %c0 = arith.constant 0 : index
    %c0_0 = arith.constant 0 : index
    %0 = vector.load %arg2[%c0, %c0_0] : memref<2x512xf32, #tpu.memory_space<vmem>>, vector<1x512xf32>
    %1 = vector.shape_cast %0 : vector<1x512xf32> to vector<1x1x512xf32>
    %c1 = arith.constant 1 : index
    %c0_1 = arith.constant 0 : index
    %2 = vector.load %arg2[%c1, %c0_1] : memref<2x512xf32, #tpu.memory_space<vmem>>, vector<1x512xf32>
    %3 = vector.shape_cast %2 : vector<1x512xf32> to vector<1x1x512xf32>
    %c0_2 = arith.constant 0 : index
    %c0_3 = arith.constant 0 : index
    %c0_4 = arith.constant 0 : index
    %4 = vector.load %arg1[%c0_2, %c0_3, %c0_4] : memref<24x8x1xf32, #tpu.memory_space<vmem>>, vector<24x8x1xf32>
    %5 = vector.broadcast %4 : vector<24x8x1xf32> to vector<24x8x512xf32>
    %6 = vector.broadcast %1 : vector<1x1x512xf32> to vector<24x8x512xf32>
    %7 = arith.mulf %5, %6 : vector<24x8x512xf32>
    %8 = vector.broadcast %3 : vector<1x1x512xf32> to vector<24x8x512xf32>
    %9 = arith.addf %7, %8 : vector<24x8x512xf32>
    %c0_5 = arith.constant 0 : index
    %c0_6 = arith.constant 0 : index
    %c0_7 = arith.constant 0 : index
    %10 = vector.load %arg5[%c0_5, %c0_6, %c0_7] : memref<24x8x512xf32, #tpu.memory_space<vmem>>, vector<24x8x512xf32>
    tpu.vector_store %arg5[%c0_5, %c0_6, %c0_7], %9 {strides = array<i32>} : memref<24x8x512xf32, #tpu.memory_space<vmem>>, vector<24x8x512xf32>,
    %c0_8 = arith.constant 0 : index
    %c0_9 = arith.constant 0 : index
    %11 = vector.load %arg3[%c0_8, %c0_9] : memref<128x512xf32, #tpu.memory_space<vmem>>, vector<128x512xf32>
    %cst = arith.constant 0.000000e+00 : f32
    %12 = vector.broadcast %cst : f32 to vector<8x128xf32>
    %cst_10 = arith.constant 0.000000e+00 : f32
    %13 = vector.broadcast %cst_10 : f32 to vector<8x128xf32>
    %c0_11 = arith.constant 0 : index
    %c0_12 = arith.constant 0 : index
    %c0_13 = arith.constant 0 : index
    %14 = vector.load %arg5[%c0_11, %c0_12, %c0_13] : memref<24x8x512xf32, #tpu.memory_space<vmem>>, vector<1x8x512xf32>
    %15 = vector.shape_cast %14 : vector<1x8x512xf32> to vector<8x512xf32>
    %cst_14 = arith.constant dense<0.000000e+00> : vector<8x512xf32>
    %16 = tpu.matmul %12, %11, %cst_14 {dimension_numbers = #tpu.dot_dimension_numbers<[1], [0], [0], [1], [0, 0, 1, 1], [], []>} : vector<8x128xf32>, vector<128x512xf32>, vector<8x512xf32> -> vector<8x512xf32>
    %17 = arith.addf %15, %16 : vector<8x512xf32>
    %18 = vector.extract_strided_slice %17 {offsets = [0, 0], sizes = [8, 384], strides = [1, 1]} : vector<8x512xf32> to vector<8x384xf32>
    %19 = arith.negf %18 : vector<8x384xf32>
    %20 = math.exp %19 : vector<8x384xf32>
    %cst_15 = arith.constant 1.000000e+00 : f32
    %21 = vector.broadcast %cst_15 : f32 to vector<8x384xf32>
    %22 = arith.addf %21, %20 : vector<8x384xf32>
    %23 = arith.divf %21, %22 : vector<8x384xf32>
    %24 = vector.extract_strided_slice %23 {offsets = [0, 0], sizes = [8, 128], strides = [1, 1]} : vector<8x384xf32> to vector<8x128xf32>
    %25 = vector.extract_strided_slice %23 {offsets = [0, 128], sizes = [8, 128], strides = [1, 1]} : vector<8x384xf32> to vector<8x128xf32>
    %26 = vector.extract_strided_slice %23 {offsets = [0, 256], sizes = [8, 128], strides = [1, 1]} : vector<8x384xf32> to vector<8x128xf32>
    %27 = vector.extract_strided_slice %17 {offsets = [0, 384], sizes = [8, 128], strides = [1, 1]} : vector<8x512xf32> to vector<8x128xf32>
    %28 = math.tanh %27 : vector<8x128xf32>
    %29 = arith.mulf %25, %13 : vector<8x128xf32>
    %30 = arith.mulf %24, %28 : vector<8x128xf32>
    %31 = arith.addf %29, %30 : vector<8x128xf32>
    %32 = math.tanh %31 : vector<8x128xf32>
    %33 = arith.mulf %26, %32 : vector<8x128xf32>
    %c1_16 = arith.constant 1 : index
    %c0_17 = arith.constant 0 : index
    %c0_18 = arith.constant 0 : index
    %34 = vector.load %arg5[%c1_16, %c0_17, %c0_18] : memref<24x8x512xf32, #tpu.memory_space<vmem>>, vector<1x8x512xf32>
    %35 = vector.shape_cast %34 : vector<1x8x512xf32> to vector<8x512xf32>
    %cst_19 = arith.constant dense<0.000000e+00> : vector<8x512xf32>
    %36 = tpu.matmul %33, %11, %cst_19 {dimension_numbers = #tpu.dot_dimension_numbers<[1], [0], [0], [1], [0, 0, 1, 1], [], []>} : vector<8x128xf32>, vector<128x512xf32>, vector<8x512xf32> -> vector<8x512xf32>
    %37 = arith.addf %35, %36 : vector<8x512xf32>
    %38 = vector.extract_strided_slice %37 {offsets = [0, 0], sizes = [8, 384], strides = [1, 1]} : vector<8x512xf32> to vector<8x384xf32>
    %39 = arith.negf %38 : vector<8x384xf32>
    %40 = math.exp %39 : vector<8x384xf32>
    %cst_20 = arith.constant 1.000000e+00 : f32
    %41 = vector.broadcast %cst_20 : f32 to vector<8x384xf32>
    %42 = arith.addf %41, %40 : vector<8x384xf32>
    %43 = arith.divf %41, %42 : vector<8x384xf32>
    %44 = vector.extract_strided_slice %43 {offsets = [0, 0], sizes = [8, 128], strides = [1, 1]} : vector<8x384xf32> to vector<8x128xf32>
    %45 = vector.extract_strided_slice %43 {offsets = [0, 128], sizes = [8, 128], strides = [1, 1]} : vector<8x384xf32> to vector<8x128xf32>
    %46 = vector.extract_strided_slice %43 {offsets = [0, 256], sizes = [8, 128], strides = [1, 1]} : vector<8x384xf32> to vector<8x128xf32>
    %47 = vector.extract_strided_slice %37 {offsets = [0, 384], sizes = [8, 128], strides = [1, 1]} : vector<8x512xf32> to vector<8x128xf32>
    %48 = math.tanh %47 : vector<8x128xf32>
    %49 = arith.mulf %45, %31 : vector<8x128xf32>
    %50 = arith.mulf %44, %48 : vector<8x128xf32>
    %51 = arith.addf %49, %50 : vector<8x128xf32>
    %52 = math.tanh %51 : vector<8x128xf32>
    %53 = arith.mulf %46, %52 : vector<8x128xf32>
    %c2 = arith.constant 2 : index
    %c0_21 = arith.constant 0 : index
    %c0_22 = arith.constant 0 : index
    %54 = vector.load %arg5[%c2, %c0_21, %c0_22] : memref<24x8x512xf32, #tpu.memory_space<vmem>>, vector<1x8x512xf32>
    %55 = vector.shape_cast %54 : vector<1x8x512xf32> to vector<8x512xf32>
    %cst_23 = arith.constant dense<0.000000e+00> : vector<8x512xf32>
    %56 = tpu.matmul %53, %11, %cst_23 {dimension_numbers = #tpu.dot_dimension_numbers<[1], [0], [0], [1], [0, 0, 1, 1], [], []>} : vector<8x128xf32>, vector<128x512xf32>, vector<8x512xf32> -> vector<8x512xf32>
    %57 = arith.addf %55, %56 : vector<8x512xf32>
    %58 = vector.extract_strided_slice %57 {offsets = [0, 0], sizes = [8, 384], strides = [1, 1]} : vector<8x512xf32> to vector<8x384xf32>
    %59 = arith.negf %58 : vector<8x384xf32>
    %60 = math.exp %59 : vector<8x384xf32>
    %cst_24 = arith.constant 1.000000e+00 : f32
    %61 = vector.broadcast %cst_24 : f32 to vector<8x384xf32>
    %62 = arith.addf %61, %60 : vector<8x384xf32>
    %63 = arith.divf %61, %62 : vector<8x384xf32>
    %64 = vector.extract_strided_slice %63 {offsets = [0, 0], sizes = [8, 128], strides = [1, 1]} : vector<8x384xf32> to vector<8x128xf32>
    %65 = vector.extract_strided_slice %63 {offsets = [0, 128], sizes = [8, 128], strides = [1, 1]} : vector<8x384xf32> to vector<8x128xf32>
    %66 = vector.extract_strided_slice %63 {offsets = [0, 256], sizes = [8, 128], strides = [1, 1]} : vector<8x384xf32> to vector<8x128xf32>
    %67 = vector.extract_strided_slice %57 {offsets = [0, 384], sizes = [8, 128], strides = [1, 1]} : vector<8x512xf32> to vector<8x128xf32>
    %68 = math.tanh %67 : vector<8x128xf32>
    %69 = arith.mulf %65, %51 : vector<8x128xf32>
    %70 = arith.mulf %64, %68 : vector<8x128xf32>
    %71 = arith.addf %69, %70 : vector<8x128xf32>
    %72 = math.tanh %71 : vector<8x128xf32>
    %73 = arith.mulf %66, %72 : vector<8x128xf32>
    %c3 = arith.constant 3 : index
    %c0_25 = arith.constant 0 : index
    %c0_26 = arith.constant 0 : index
    %74 = vector.load %arg5[%c3, %c0_25, %c0_26] : memref<24x8x512xf32, #tpu.memory_space<vmem>>, vector<1x8x512xf32>
    %75 = vector.shape_cast %74 : vector<1x8x512xf32> to vector<8x512xf32>
    %cst_27 = arith.constant dense<0.000000e+00> : vector<8x512xf32>
    %76 = tpu.matmul %73, %11, %cst_27 {dimension_numbers = #tpu.dot_dimension_numbers<[1], [0], [0], [1], [0, 0, 1, 1], [], []>} : vector<8x128xf32>, vector<128x512xf32>, vector<8x512xf32> -> vector<8x512xf32>
    %77 = arith.addf %75, %76 : vector<8x512xf32>
    %78 = vector.extract_strided_slice %77 {offsets = [0, 0], sizes = [8, 384], strides = [1, 1]} : vector<8x512xf32> to vector<8x384xf32>
    %79 = arith.negf %78 : vector<8x384xf32>
    %80 = math.exp %79 : vector<8x384xf32>
    %cst_28 = arith.constant 1.000000e+00 : f32
    %81 = vector.broadcast %cst_28 : f32 to vector<8x384xf32>
    %82 = arith.addf %81, %80 : vector<8x384xf32>
    %83 = arith.divf %81, %82 : vector<8x384xf32>
    %84 = vector.extract_strided_slice %83 {offsets = [0, 0], sizes = [8, 128], strides = [1, 1]} : vector<8x384xf32> to vector<8x128xf32>
    %85 = vector.extract_strided_slice %83 {offsets = [0, 128], sizes = [8, 128], strides = [1, 1]} : vector<8x384xf32> to vector<8x128xf32>
    %86 = vector.extract_strided_slice %83 {offsets = [0, 256], sizes = [8, 128], strides = [1, 1]} : vector<8x384xf32> to vector<8x128xf32>
    %87 = vector.extract_strided_slice %77 {offsets = [0, 384], sizes = [8, 128], strides = [1, 1]} : vector<8x512xf32> to vector<8x128xf32>
    %88 = math.tanh %87 : vector<8x128xf32>
    %89 = arith.mulf %85, %71 : vector<8x128xf32>
    %90 = arith.mulf %84, %88 : vector<8x128xf32>
    %91 = arith.addf %89, %90 : vector<8x128xf32>
    %92 = math.tanh %91 : vector<8x128xf32>
    %93 = arith.mulf %86, %92 : vector<8x128xf32>
    %c4 = arith.constant 4 : index
    %c0_29 = arith.constant 0 : index
    %c0_30 = arith.constant 0 : index
    %94 = vector.load %arg5[%c4, %c0_29, %c0_30] : memref<24x8x512xf32, #tpu.memory_space<vmem>>, vector<1x8x512xf32>
    %95 = vector.shape_cast %94 : vector<1x8x512xf32> to vector<8x512xf32>
    %cst_31 = arith.constant dense<0.000000e+00> : vector<8x512xf32>
    %96 = tpu.matmul %93, %11, %cst_31 {dimension_numbers = #tpu.dot_dimension_numbers<[1], [0], [0], [1], [0, 0, 1, 1], [], []>} : vector<8x128xf32>, vector<128x512xf32>, vector<8x512xf32> -> vector<8x512xf32>
    %97 = arith.addf %95, %96 : vector<8x512xf32>
    %98 = vector.extract_strided_slice %97 {offsets = [0, 0], sizes = [8, 384], strides = [1, 1]} : vector<8x512xf32> to vector<8x384xf32>
    %99 = arith.negf %98 : vector<8x384xf32>
    %100 = math.exp %99 : vector<8x384xf32>
    %cst_32 = arith.constant 1.000000e+00 : f32
    %101 = vector.broadcast %cst_32 : f32 to vector<8x384xf32>
    %102 = arith.addf %101, %100 : vector<8x384xf32>
    %103 = arith.divf %101, %102 : vector<8x384xf32>
    %104 = vector.extract_strided_slice %103 {offsets = [0, 0], sizes = [8, 128], strides = [1, 1]} : vector<8x384xf32> to vector<8x128xf32>
    %105 = vector.extract_strided_slice %103 {offsets = [0, 128], sizes = [8, 128], strides = [1, 1]} : vector<8x384xf32> to vector<8x128xf32>
    %106 = vector.extract_strided_slice %103 {offsets = [0, 256], sizes = [8, 128], strides = [1, 1]} : vector<8x384xf32> to vector<8x128xf32>
    %107 = vector.extract_strided_slice %97 {offsets = [0, 384], sizes = [8, 128], strides = [1, 1]} : vector<8x512xf32> to vector<8x128xf32>
    %108 = math.tanh %107 : vector<8x128xf32>
    %109 = arith.mulf %105, %91 : vector<8x128xf32>
    %110 = arith.mulf %104, %108 : vector<8x128xf32>
    %111 = arith.addf %109, %110 : vector<8x128xf32>
    %112 = math.tanh %111 : vector<8x128xf32>
    %113 = arith.mulf %106, %112 : vector<8x128xf32>
    %c5 = arith.constant 5 : index
    %c0_33 = arith.constant 0 : index
    %c0_34 = arith.constant 0 : index
    %114 = vector.load %arg5[%c5, %c0_33, %c0_34] : memref<24x8x512xf32, #tpu.memory_space<vmem>>, vector<1x8x512xf32>
    %115 = vector.shape_cast %114 : vector<1x8x512xf32> to vector<8x512xf32>
    %cst_35 = arith.constant dense<0.000000e+00> : vector<8x512xf32>
    %116 = tpu.matmul %113, %11, %cst_35 {dimension_numbers = #tpu.dot_dimension_numbers<[1], [0], [0], [1], [0, 0, 1, 1], [], []>} : vector<8x128xf32>, vector<128x512xf32>, vector<8x512xf32> -> vector<8x512xf32>
    %117 = arith.addf %115, %116 : vector<8x512xf32>
    %118 = vector.extract_strided_slice %117 {offsets = [0, 0], sizes = [8, 384], strides = [1, 1]} : vector<8x512xf32> to vector<8x384xf32>
    %119 = arith.negf %118 : vector<8x384xf32>
    %120 = math.exp %119 : vector<8x384xf32>
    %cst_36 = arith.constant 1.000000e+00 : f32
    %121 = vector.broadcast %cst_36 : f32 to vector<8x384xf32>
    %122 = arith.addf %121, %120 : vector<8x384xf32>
    %123 = arith.divf %121, %122 : vector<8x384xf32>
    %124 = vector.extract_strided_slice %123 {offsets = [0, 0], sizes = [8, 128], strides = [1, 1]} : vector<8x384xf32> to vector<8x128xf32>
    %125 = vector.extract_strided_slice %123 {offsets = [0, 128], sizes = [8, 128], strides = [1, 1]} : vector<8x384xf32> to vector<8x128xf32>
    %126 = vector.extract_strided_slice %123 {offsets = [0, 256], sizes = [8, 128], strides = [1, 1]} : vector<8x384xf32> to vector<8x128xf32>
    %127 = vector.extract_strided_slice %117 {offsets = [0, 384], sizes = [8, 128], strides = [1, 1]} : vector<8x512xf32> to vector<8x128xf32>
    %128 = math.tanh %127 : vector<8x128xf32>
    %129 = arith.mulf %125, %111 : vector<8x128xf32>
    %130 = arith.mulf %124, %128 : vector<8x128xf32>
    %131 = arith.addf %129, %130 : vector<8x128xf32>
    %132 = math.tanh %131 : vector<8x128xf32>
    %133 = arith.mulf %126, %132 : vector<8x128xf32>
    %c6 = arith.constant 6 : index
    %c0_37 = arith.constant 0 : index
    %c0_38 = arith.constant 0 : index
    %134 = vector.load %arg5[%c6, %c0_37, %c0_38] : memref<24x8x512xf32, #tpu.memory_space<vmem>>, vector<1x8x512xf32>
    %135 = vector.shape_cast %134 : vector<1x8x512xf32> to vector<8x512xf32>
    %cst_39 = arith.constant dense<0.000000e+00> : vector<8x512xf32>
    %136 = tpu.matmul %133, %11, %cst_39 {dimension_numbers = #tpu.dot_dimension_numbers<[1], [0], [0], [1], [0, 0, 1, 1], [], []>} : vector<8x128xf32>, vector<128x512xf32>, vector<8x512xf32> -> vector<8x512xf32>
    %137 = arith.addf %135, %136 : vector<8x512xf32>
    %138 = vector.extract_strided_slice %137 {offsets = [0, 0], sizes = [8, 384], strides = [1, 1]} : vector<8x512xf32> to vector<8x384xf32>
    %139 = arith.negf %138 : vector<8x384xf32>
    %140 = math.exp %139 : vector<8x384xf32>
    %cst_40 = arith.constant 1.000000e+00 : f32
    %141 = vector.broadcast %cst_40 : f32 to vector<8x384xf32>
    %142 = arith.addf %141, %140 : vector<8x384xf32>
    %143 = arith.divf %141, %142 : vector<8x384xf32>
    %144 = vector.extract_strided_slice %143 {offsets = [0, 0], sizes = [8, 128], strides = [1, 1]} : vector<8x384xf32> to vector<8x128xf32>
    %145 = vector.extract_strided_slice %143 {offsets = [0, 128], sizes = [8, 128], strides = [1, 1]} : vector<8x384xf32> to vector<8x128xf32>
    %146 = vector.extract_strided_slice %143 {offsets = [0, 256], sizes = [8, 128], strides = [1, 1]} : vector<8x384xf32> to vector<8x128xf32>
    %147 = vector.extract_strided_slice %137 {offsets = [0, 384], sizes = [8, 128], strides = [1, 1]} : vector<8x512xf32> to vector<8x128xf32>
    %148 = math.tanh %147 : vector<8x128xf32>
    %149 = arith.mulf %145, %131 : vector<8x128xf32>
    %150 = arith.mulf %144, %148 : vector<8x128xf32>
    %151 = arith.addf %149, %150 : vector<8x128xf32>
    %152 = math.tanh %151 : vector<8x128xf32>
    %153 = arith.mulf %146, %152 : vector<8x128xf32>
    %c7 = arith.constant 7 : index
    %c0_41 = arith.constant 0 : index
    %c0_42 = arith.constant 0 : index
    %154 = vector.load %arg5[%c7, %c0_41, %c0_42] : memref<24x8x512xf32, #tpu.memory_space<vmem>>, vector<1x8x512xf32>
    %155 = vector.shape_cast %154 : vector<1x8x512xf32> to vector<8x512xf32>
    %cst_43 = arith.constant dense<0.000000e+00> : vector<8x512xf32>
    %156 = tpu.matmul %153, %11, %cst_43 {dimension_numbers = #tpu.dot_dimension_numbers<[1], [0], [0], [1], [0, 0, 1, 1], [], []>} : vector<8x128xf32>, vector<128x512xf32>, vector<8x512xf32> -> vector<8x512xf32>
    %157 = arith.addf %155, %156 : vector<8x512xf32>
    %158 = vector.extract_strided_slice %157 {offsets = [0, 0], sizes = [8, 384], strides = [1, 1]} : vector<8x512xf32> to vector<8x384xf32>
    %159 = arith.negf %158 : vector<8x384xf32>
    %160 = math.exp %159 : vector<8x384xf32>
    %cst_44 = arith.constant 1.000000e+00 : f32
    %161 = vector.broadcast %cst_44 : f32 to vector<8x384xf32>
    %162 = arith.addf %161, %160 : vector<8x384xf32>
    %163 = arith.divf %161, %162 : vector<8x384xf32>
    %164 = vector.extract_strided_slice %163 {offsets = [0, 0], sizes = [8, 128], strides = [1, 1]} : vector<8x384xf32> to vector<8x128xf32>
    %165 = vector.extract_strided_slice %163 {offsets = [0, 128], sizes = [8, 128], strides = [1, 1]} : vector<8x384xf32> to vector<8x128xf32>
    %166 = vector.extract_strided_slice %163 {offsets = [0, 256], sizes = [8, 128], strides = [1, 1]} : vector<8x384xf32> to vector<8x128xf32>
    %167 = vector.extract_strided_slice %157 {offsets = [0, 384], sizes = [8, 128], strides = [1, 1]} : vector<8x512xf32> to vector<8x128xf32>
    %168 = math.tanh %167 : vector<8x128xf32>
    %169 = arith.mulf %165, %151 : vector<8x128xf32>
    %170 = arith.mulf %164, %168 : vector<8x128xf32>
    %171 = arith.addf %169, %170 : vector<8x128xf32>
    %172 = math.tanh %171 : vector<8x128xf32>
    %173 = arith.mulf %166, %172 : vector<8x128xf32>
    %c8 = arith.constant 8 : index
    %c0_45 = arith.constant 0 : index
    %c0_46 = arith.constant 0 : index
    %174 = vector.load %arg5[%c8, %c0_45, %c0_46] : memref<24x8x512xf32, #tpu.memory_space<vmem>>, vector<1x8x512xf32>
    %175 = vector.shape_cast %174 : vector<1x8x512xf32> to vector<8x512xf32>
    %cst_47 = arith.constant dense<0.000000e+00> : vector<8x512xf32>
    %176 = tpu.matmul %173, %11, %cst_47 {dimension_numbers = #tpu.dot_dimension_numbers<[1], [0], [0], [1], [0, 0, 1, 1], [], []>} : vector<8x128xf32>, vector<128x512xf32>, vector<8x512xf32> -> vector<8x512xf32>
    %177 = arith.addf %175, %176 : vector<8x512xf32>
    %178 = vector.extract_strided_slice %177 {offsets = [0, 0], sizes = [8, 384], strides = [1, 1]} : vector<8x512xf32> to vector<8x384xf32>
    %179 = arith.negf %178 : vector<8x384xf32>
    %180 = math.exp %179 : vector<8x384xf32>
    %cst_48 = arith.constant 1.000000e+00 : f32
    %181 = vector.broadcast %cst_48 : f32 to vector<8x384xf32>
    %182 = arith.addf %181, %180 : vector<8x384xf32>
    %183 = arith.divf %181, %182 : vector<8x384xf32>
    %184 = vector.extract_strided_slice %183 {offsets = [0, 0], sizes = [8, 128], strides = [1, 1]} : vector<8x384xf32> to vector<8x128xf32>
    %185 = vector.extract_strided_slice %183 {offsets = [0, 128], sizes = [8, 128], strides = [1, 1]} : vector<8x384xf32> to vector<8x128xf32>
    %186 = vector.extract_strided_slice %183 {offsets = [0, 256], sizes = [8, 128], strides = [1, 1]} : vector<8x384xf32> to vector<8x128xf32>
    %187 = vector.extract_strided_slice %177 {offsets = [0, 384], sizes = [8, 128], strides = [1, 1]} : vector<8x512xf32> to vector<8x128xf32>
    %188 = math.tanh %187 : vector<8x128xf32>
    %189 = arith.mulf %185, %171 : vector<8x128xf32>
    %190 = arith.mulf %184, %188 : vector<8x128xf32>
    %191 = arith.addf %189, %190 : vector<8x128xf32>
    %192 = math.tanh %191 : vector<8x128xf32>
    %193 = arith.mulf %186, %192 : vector<8x128xf32>
    %c9 = arith.constant 9 : index
    %c0_49 = arith.constant 0 : index
    %c0_50 = arith.constant 0 : index
    %194 = vector.load %arg5[%c9, %c0_49, %c0_50] : memref<24x8x512xf32, #tpu.memory_space<vmem>>, vector<1x8x512xf32>
    %195 = vector.shape_cast %194 : vector<1x8x512xf32> to vector<8x512xf32>
    %cst_51 = arith.constant dense<0.000000e+00> : vector<8x512xf32>
    %196 = tpu.matmul %193, %11, %cst_51 {dimension_numbers = #tpu.dot_dimension_numbers<[1], [0], [0], [1], [0, 0, 1, 1], [], []>} : vector<8x128xf32>, vector<128x512xf32>, vector<8x512xf32> -> vector<8x512xf32>
    %197 = arith.addf %195, %196 : vector<8x512xf32>
    %198 = vector.extract_strided_slice %197 {offsets = [0, 0], sizes = [8, 384], strides = [1, 1]} : vector<8x512xf32> to vector<8x384xf32>
    %199 = arith.negf %198 : vector<8x384xf32>
    %200 = math.exp %199 : vector<8x384xf32>
    %cst_52 = arith.constant 1.000000e+00 : f32
    %201 = vector.broadcast %cst_52 : f32 to vector<8x384xf32>
    %202 = arith.addf %201, %200 : vector<8x384xf32>
    %203 = arith.divf %201, %202 : vector<8x384xf32>
    %204 = vector.extract_strided_slice %203 {offsets = [0, 0], sizes = [8, 128], strides = [1, 1]} : vector<8x384xf32> to vector<8x128xf32>
    %205 = vector.extract_strided_slice %203 {offsets = [0, 128], sizes = [8, 128], strides = [1, 1]} : vector<8x384xf32> to vector<8x128xf32>
    %206 = vector.extract_strided_slice %203 {offsets = [0, 256], sizes = [8, 128], strides = [1, 1]} : vector<8x384xf32> to vector<8x128xf32>
    %207 = vector.extract_strided_slice %197 {offsets = [0, 384], sizes = [8, 128], strides = [1, 1]} : vector<8x512xf32> to vector<8x128xf32>
    %208 = math.tanh %207 : vector<8x128xf32>
    %209 = arith.mulf %205, %191 : vector<8x128xf32>
    %210 = arith.mulf %204, %208 : vector<8x128xf32>
    %211 = arith.addf %209, %210 : vector<8x128xf32>
    %212 = math.tanh %211 : vector<8x128xf32>
    %213 = arith.mulf %206, %212 : vector<8x128xf32>
    %c10 = arith.constant 10 : index
    %c0_53 = arith.constant 0 : index
    %c0_54 = arith.constant 0 : index
    %214 = vector.load %arg5[%c10, %c0_53, %c0_54] : memref<24x8x512xf32, #tpu.memory_space<vmem>>, vector<1x8x512xf32>
    %215 = vector.shape_cast %214 : vector<1x8x512xf32> to vector<8x512xf32>
    %cst_55 = arith.constant dense<0.000000e+00> : vector<8x512xf32>
    %216 = tpu.matmul %213, %11, %cst_55 {dimension_numbers = #tpu.dot_dimension_numbers<[1], [0], [0], [1], [0, 0, 1, 1], [], []>} : vector<8x128xf32>, vector<128x512xf32>, vector<8x512xf32> -> vector<8x512xf32>
    %217 = arith.addf %215, %216 : vector<8x512xf32>
    %218 = vector.extract_strided_slice %217 {offsets = [0, 0], sizes = [8, 384], strides = [1, 1]} : vector<8x512xf32> to vector<8x384xf32>
    %219 = arith.negf %218 : vector<8x384xf32>
    %220 = math.exp %219 : vector<8x384xf32>
    %cst_56 = arith.constant 1.000000e+00 : f32
    %221 = vector.broadcast %cst_56 : f32 to vector<8x384xf32>
    %222 = arith.addf %221, %220 : vector<8x384xf32>
    %223 = arith.divf %221, %222 : vector<8x384xf32>
    %224 = vector.extract_strided_slice %223 {offsets = [0, 0], sizes = [8, 128], strides = [1, 1]} : vector<8x384xf32> to vector<8x128xf32>
    %225 = vector.extract_strided_slice %223 {offsets = [0, 128], sizes = [8, 128], strides = [1, 1]} : vector<8x384xf32> to vector<8x128xf32>
    %226 = vector.extract_strided_slice %223 {offsets = [0, 256], sizes = [8, 128], strides = [1, 1]} : vector<8x384xf32> to vector<8x128xf32>
    %227 = vector.extract_strided_slice %217 {offsets = [0, 384], sizes = [8, 128], strides = [1, 1]} : vector<8x512xf32> to vector<8x128xf32>
    %228 = math.tanh %227 : vector<8x128xf32>
    %229 = arith.mulf %225, %211 : vector<8x128xf32>
    %230 = arith.mulf %224, %228 : vector<8x128xf32>
    %231 = arith.addf %229, %230 : vector<8x128xf32>
    %232 = math.tanh %231 : vector<8x128xf32>
    %233 = arith.mulf %226, %232 : vector<8x128xf32>
    %c11 = arith.constant 11 : index
    %c0_57 = arith.constant 0 : index
    %c0_58 = arith.constant 0 : index
    %234 = vector.load %arg5[%c11, %c0_57, %c0_58] : memref<24x8x512xf32, #tpu.memory_space<vmem>>, vector<1x8x512xf32>
    %235 = vector.shape_cast %234 : vector<1x8x512xf32> to vector<8x512xf32>
    %cst_59 = arith.constant dense<0.000000e+00> : vector<8x512xf32>
    %236 = tpu.matmul %233, %11, %cst_59 {dimension_numbers = #tpu.dot_dimension_numbers<[1], [0], [0], [1], [0, 0, 1, 1], [], []>} : vector<8x128xf32>, vector<128x512xf32>, vector<8x512xf32> -> vector<8x512xf32>
    %237 = arith.addf %235, %236 : vector<8x512xf32>
    %238 = vector.extract_strided_slice %237 {offsets = [0, 0], sizes = [8, 384], strides = [1, 1]} : vector<8x512xf32> to vector<8x384xf32>
    %239 = arith.negf %238 : vector<8x384xf32>
    %240 = math.exp %239 : vector<8x384xf32>
    %cst_60 = arith.constant 1.000000e+00 : f32
    %241 = vector.broadcast %cst_60 : f32 to vector<8x384xf32>
    %242 = arith.addf %241, %240 : vector<8x384xf32>
    %243 = arith.divf %241, %242 : vector<8x384xf32>
    %244 = vector.extract_strided_slice %243 {offsets = [0, 0], sizes = [8, 128], strides = [1, 1]} : vector<8x384xf32> to vector<8x128xf32>
    %245 = vector.extract_strided_slice %243 {offsets = [0, 128], sizes = [8, 128], strides = [1, 1]} : vector<8x384xf32> to vector<8x128xf32>
    %246 = vector.extract_strided_slice %243 {offsets = [0, 256], sizes = [8, 128], strides = [1, 1]} : vector<8x384xf32> to vector<8x128xf32>
    %247 = vector.extract_strided_slice %237 {offsets = [0, 384], sizes = [8, 128], strides = [1, 1]} : vector<8x512xf32> to vector<8x128xf32>
    %248 = math.tanh %247 : vector<8x128xf32>
    %249 = arith.mulf %245, %231 : vector<8x128xf32>
    %250 = arith.mulf %244, %248 : vector<8x128xf32>
    %251 = arith.addf %249, %250 : vector<8x128xf32>
    %252 = math.tanh %251 : vector<8x128xf32>
    %253 = arith.mulf %246, %252 : vector<8x128xf32>
    %c12 = arith.constant 12 : index
    %c0_61 = arith.constant 0 : index
    %c0_62 = arith.constant 0 : index
    %254 = vector.load %arg5[%c12, %c0_61, %c0_62] : memref<24x8x512xf32, #tpu.memory_space<vmem>>, vector<1x8x512xf32>
    %255 = vector.shape_cast %254 : vector<1x8x512xf32> to vector<8x512xf32>
    %cst_63 = arith.constant dense<0.000000e+00> : vector<8x512xf32>
    %256 = tpu.matmul %253, %11, %cst_63 {dimension_numbers = #tpu.dot_dimension_numbers<[1], [0], [0], [1], [0, 0, 1, 1], [], []>} : vector<8x128xf32>, vector<128x512xf32>, vector<8x512xf32> -> vector<8x512xf32>
    %257 = arith.addf %255, %256 : vector<8x512xf32>
    %258 = vector.extract_strided_slice %257 {offsets = [0, 0], sizes = [8, 384], strides = [1, 1]} : vector<8x512xf32> to vector<8x384xf32>
    %259 = arith.negf %258 : vector<8x384xf32>
    %260 = math.exp %259 : vector<8x384xf32>
    %cst_64 = arith.constant 1.000000e+00 : f32
    %261 = vector.broadcast %cst_64 : f32 to vector<8x384xf32>
    %262 = arith.addf %261, %260 : vector<8x384xf32>
    %263 = arith.divf %261, %262 : vector<8x384xf32>
    %264 = vector.extract_strided_slice %263 {offsets = [0, 0], sizes = [8, 128], strides = [1, 1]} : vector<8x384xf32> to vector<8x128xf32>
    %265 = vector.extract_strided_slice %263 {offsets = [0, 128], sizes = [8, 128], strides = [1, 1]} : vector<8x384xf32> to vector<8x128xf32>
    %266 = vector.extract_strided_slice %263 {offsets = [0, 256], sizes = [8, 128], strides = [1, 1]} : vector<8x384xf32> to vector<8x128xf32>
    %267 = vector.extract_strided_slice %257 {offsets = [0, 384], sizes = [8, 128], strides = [1, 1]} : vector<8x512xf32> to vector<8x128xf32>
    %268 = math.tanh %267 : vector<8x128xf32>
    %269 = arith.mulf %265, %251 : vector<8x128xf32>
    %270 = arith.mulf %264, %268 : vector<8x128xf32>
    %271 = arith.addf %269, %270 : vector<8x128xf32>
    %272 = math.tanh %271 : vector<8x128xf32>
    %273 = arith.mulf %266, %272 : vector<8x128xf32>
    %c13 = arith.constant 13 : index
    %c0_65 = arith.constant 0 : index
    %c0_66 = arith.constant 0 : index
    %274 = vector.load %arg5[%c13, %c0_65, %c0_66] : memref<24x8x512xf32, #tpu.memory_space<vmem>>, vector<1x8x512xf32>
    %275 = vector.shape_cast %274 : vector<1x8x512xf32> to vector<8x512xf32>
    %cst_67 = arith.constant dense<0.000000e+00> : vector<8x512xf32>
    %276 = tpu.matmul %273, %11, %cst_67 {dimension_numbers = #tpu.dot_dimension_numbers<[1], [0], [0], [1], [0, 0, 1, 1], [], []>} : vector<8x128xf32>, vector<128x512xf32>, vector<8x512xf32> -> vector<8x512xf32>
    %277 = arith.addf %275, %276 : vector<8x512xf32>
    %278 = vector.extract_strided_slice %277 {offsets = [0, 0], sizes = [8, 384], strides = [1, 1]} : vector<8x512xf32> to vector<8x384xf32>
    %279 = arith.negf %278 : vector<8x384xf32>
    %280 = math.exp %279 : vector<8x384xf32>
    %cst_68 = arith.constant 1.000000e+00 : f32
    %281 = vector.broadcast %cst_68 : f32 to vector<8x384xf32>
    %282 = arith.addf %281, %280 : vector<8x384xf32>
    %283 = arith.divf %281, %282 : vector<8x384xf32>
    %284 = vector.extract_strided_slice %283 {offsets = [0, 0], sizes = [8, 128], strides = [1, 1]} : vector<8x384xf32> to vector<8x128xf32>
    %285 = vector.extract_strided_slice %283 {offsets = [0, 128], sizes = [8, 128], strides = [1, 1]} : vector<8x384xf32> to vector<8x128xf32>
    %286 = vector.extract_strided_slice %283 {offsets = [0, 256], sizes = [8, 128], strides = [1, 1]} : vector<8x384xf32> to vector<8x128xf32>
    %287 = vector.extract_strided_slice %277 {offsets = [0, 384], sizes = [8, 128], strides = [1, 1]} : vector<8x512xf32> to vector<8x128xf32>
    %288 = math.tanh %287 : vector<8x128xf32>
    %289 = arith.mulf %285, %271 : vector<8x128xf32>
    %290 = arith.mulf %284, %288 : vector<8x128xf32>
    %291 = arith.addf %289, %290 : vector<8x128xf32>
    %292 = math.tanh %291 : vector<8x128xf32>
    %293 = arith.mulf %286, %292 : vector<8x128xf32>
    %c14 = arith.constant 14 : index
    %c0_69 = arith.constant 0 : index
    %c0_70 = arith.constant 0 : index
    %294 = vector.load %arg5[%c14, %c0_69, %c0_70] : memref<24x8x512xf32, #tpu.memory_space<vmem>>, vector<1x8x512xf32>
    %295 = vector.shape_cast %294 : vector<1x8x512xf32> to vector<8x512xf32>
    %cst_71 = arith.constant dense<0.000000e+00> : vector<8x512xf32>
    %296 = tpu.matmul %293, %11, %cst_71 {dimension_numbers = #tpu.dot_dimension_numbers<[1], [0], [0], [1], [0, 0, 1, 1], [], []>} : vector<8x128xf32>, vector<128x512xf32>, vector<8x512xf32> -> vector<8x512xf32>
    %297 = arith.addf %295, %296 : vector<8x512xf32>
    %298 = vector.extract_strided_slice %297 {offsets = [0, 0], sizes = [8, 384], strides = [1, 1]} : vector<8x512xf32> to vector<8x384xf32>
    %299 = arith.negf %298 : vector<8x384xf32>
    %300 = math.exp %299 : vector<8x384xf32>
    %cst_72 = arith.constant 1.000000e+00 : f32
    %301 = vector.broadcast %cst_72 : f32 to vector<8x384xf32>
    %302 = arith.addf %301, %300 : vector<8x384xf32>
    %303 = arith.divf %301, %302 : vector<8x384xf32>
    %304 = vector.extract_strided_slice %303 {offsets = [0, 0], sizes = [8, 128], strides = [1, 1]} : vector<8x384xf32> to vector<8x128xf32>
    %305 = vector.extract_strided_slice %303 {offsets = [0, 128], sizes = [8, 128], strides = [1, 1]} : vector<8x384xf32> to vector<8x128xf32>
    %306 = vector.extract_strided_slice %303 {offsets = [0, 256], sizes = [8, 128], strides = [1, 1]} : vector<8x384xf32> to vector<8x128xf32>
    %307 = vector.extract_strided_slice %297 {offsets = [0, 384], sizes = [8, 128], strides = [1, 1]} : vector<8x512xf32> to vector<8x128xf32>
    %308 = math.tanh %307 : vector<8x128xf32>
    %309 = arith.mulf %305, %291 : vector<8x128xf32>
    %310 = arith.mulf %304, %308 : vector<8x128xf32>
    %311 = arith.addf %309, %310 : vector<8x128xf32>
    %312 = math.tanh %311 : vector<8x128xf32>
    %313 = arith.mulf %306, %312 : vector<8x128xf32>
    %c15 = arith.constant 15 : index
    %c0_73 = arith.constant 0 : index
    %c0_74 = arith.constant 0 : index
    %314 = vector.load %arg5[%c15, %c0_73, %c0_74] : memref<24x8x512xf32, #tpu.memory_space<vmem>>, vector<1x8x512xf32>
    %315 = vector.shape_cast %314 : vector<1x8x512xf32> to vector<8x512xf32>
    %cst_75 = arith.constant dense<0.000000e+00> : vector<8x512xf32>
    %316 = tpu.matmul %313, %11, %cst_75 {dimension_numbers = #tpu.dot_dimension_numbers<[1], [0], [0], [1], [0, 0, 1, 1], [], []>} : vector<8x128xf32>, vector<128x512xf32>, vector<8x512xf32> -> vector<8x512xf32>
    %317 = arith.addf %315, %316 : vector<8x512xf32>
    %318 = vector.extract_strided_slice %317 {offsets = [0, 0], sizes = [8, 384], strides = [1, 1]} : vector<8x512xf32> to vector<8x384xf32>
    %319 = arith.negf %318 : vector<8x384xf32>
    %320 = math.exp %319 : vector<8x384xf32>
    %cst_76 = arith.constant 1.000000e+00 : f32
    %321 = vector.broadcast %cst_76 : f32 to vector<8x384xf32>
    %322 = arith.addf %321, %320 : vector<8x384xf32>
    %323 = arith.divf %321, %322 : vector<8x384xf32>
    %324 = vector.extract_strided_slice %323 {offsets = [0, 0], sizes = [8, 128], strides = [1, 1]} : vector<8x384xf32> to vector<8x128xf32>
    %325 = vector.extract_strided_slice %323 {offsets = [0, 128], sizes = [8, 128], strides = [1, 1]} : vector<8x384xf32> to vector<8x128xf32>
    %326 = vector.extract_strided_slice %323 {offsets = [0, 256], sizes = [8, 128], strides = [1, 1]} : vector<8x384xf32> to vector<8x128xf32>
    %327 = vector.extract_strided_slice %317 {offsets = [0, 384], sizes = [8, 128], strides = [1, 1]} : vector<8x512xf32> to vector<8x128xf32>
    %328 = math.tanh %327 : vector<8x128xf32>
    %329 = arith.mulf %325, %311 : vector<8x128xf32>
    %330 = arith.mulf %324, %328 : vector<8x128xf32>
    %331 = arith.addf %329, %330 : vector<8x128xf32>
    %332 = math.tanh %331 : vector<8x128xf32>
    %333 = arith.mulf %326, %332 : vector<8x128xf32>
    %c16 = arith.constant 16 : index
    %c0_77 = arith.constant 0 : index
    %c0_78 = arith.constant 0 : index
    %334 = vector.load %arg5[%c16, %c0_77, %c0_78] : memref<24x8x512xf32, #tpu.memory_space<vmem>>, vector<1x8x512xf32>
    %335 = vector.shape_cast %334 : vector<1x8x512xf32> to vector<8x512xf32>
    %cst_79 = arith.constant dense<0.000000e+00> : vector<8x512xf32>
    %336 = tpu.matmul %333, %11, %cst_79 {dimension_numbers = #tpu.dot_dimension_numbers<[1], [0], [0], [1], [0, 0, 1, 1], [], []>} : vector<8x128xf32>, vector<128x512xf32>, vector<8x512xf32> -> vector<8x512xf32>
    %337 = arith.addf %335, %336 : vector<8x512xf32>
    %338 = vector.extract_strided_slice %337 {offsets = [0, 0], sizes = [8, 384], strides = [1, 1]} : vector<8x512xf32> to vector<8x384xf32>
    %339 = arith.negf %338 : vector<8x384xf32>
    %340 = math.exp %339 : vector<8x384xf32>
    %cst_80 = arith.constant 1.000000e+00 : f32
    %341 = vector.broadcast %cst_80 : f32 to vector<8x384xf32>
    %342 = arith.addf %341, %340 : vector<8x384xf32>
    %343 = arith.divf %341, %342 : vector<8x384xf32>
    %344 = vector.extract_strided_slice %343 {offsets = [0, 0], sizes = [8, 128], strides = [1, 1]} : vector<8x384xf32> to vector<8x128xf32>
    %345 = vector.extract_strided_slice %343 {offsets = [0, 128], sizes = [8, 128], strides = [1, 1]} : vector<8x384xf32> to vector<8x128xf32>
    %346 = vector.extract_strided_slice %343 {offsets = [0, 256], sizes = [8, 128], strides = [1, 1]} : vector<8x384xf32> to vector<8x128xf32>
    %347 = vector.extract_strided_slice %337 {offsets = [0, 384], sizes = [8, 128], strides = [1, 1]} : vector<8x512xf32> to vector<8x128xf32>
    %348 = math.tanh %347 : vector<8x128xf32>
    %349 = arith.mulf %345, %331 : vector<8x128xf32>
    %350 = arith.mulf %344, %348 : vector<8x128xf32>
    %351 = arith.addf %349, %350 : vector<8x128xf32>
    %352 = math.tanh %351 : vector<8x128xf32>
    %353 = arith.mulf %346, %352 : vector<8x128xf32>
    %c17 = arith.constant 17 : index
    %c0_81 = arith.constant 0 : index
    %c0_82 = arith.constant 0 : index
    %354 = vector.load %arg5[%c17, %c0_81, %c0_82] : memref<24x8x512xf32, #tpu.memory_space<vmem>>, vector<1x8x512xf32>
    %355 = vector.shape_cast %354 : vector<1x8x512xf32> to vector<8x512xf32>
    %cst_83 = arith.constant dense<0.000000e+00> : vector<8x512xf32>
    %356 = tpu.matmul %353, %11, %cst_83 {dimension_numbers = #tpu.dot_dimension_numbers<[1], [0], [0], [1], [0, 0, 1, 1], [], []>} : vector<8x128xf32>, vector<128x512xf32>, vector<8x512xf32> -> vector<8x512xf32>
    %357 = arith.addf %355, %356 : vector<8x512xf32>
    %358 = vector.extract_strided_slice %357 {offsets = [0, 0], sizes = [8, 384], strides = [1, 1]} : vector<8x512xf32> to vector<8x384xf32>
    %359 = arith.negf %358 : vector<8x384xf32>
    %360 = math.exp %359 : vector<8x384xf32>
    %cst_84 = arith.constant 1.000000e+00 : f32
    %361 = vector.broadcast %cst_84 : f32 to vector<8x384xf32>
    %362 = arith.addf %361, %360 : vector<8x384xf32>
    %363 = arith.divf %361, %362 : vector<8x384xf32>
    %364 = vector.extract_strided_slice %363 {offsets = [0, 0], sizes = [8, 128], strides = [1, 1]} : vector<8x384xf32> to vector<8x128xf32>
    %365 = vector.extract_strided_slice %363 {offsets = [0, 128], sizes = [8, 128], strides = [1, 1]} : vector<8x384xf32> to vector<8x128xf32>
    %366 = vector.extract_strided_slice %363 {offsets = [0, 256], sizes = [8, 128], strides = [1, 1]} : vector<8x384xf32> to vector<8x128xf32>
    %367 = vector.extract_strided_slice %357 {offsets = [0, 384], sizes = [8, 128], strides = [1, 1]} : vector<8x512xf32> to vector<8x128xf32>
    %368 = math.tanh %367 : vector<8x128xf32>
    %369 = arith.mulf %365, %351 : vector<8x128xf32>
    %370 = arith.mulf %364, %368 : vector<8x128xf32>
    %371 = arith.addf %369, %370 : vector<8x128xf32>
    %372 = math.tanh %371 : vector<8x128xf32>
    %373 = arith.mulf %366, %372 : vector<8x128xf32>
    %c18 = arith.constant 18 : index
    %c0_85 = arith.constant 0 : index
    %c0_86 = arith.constant 0 : index
    %374 = vector.load %arg5[%c18, %c0_85, %c0_86] : memref<24x8x512xf32, #tpu.memory_space<vmem>>, vector<1x8x512xf32>
    %375 = vector.shape_cast %374 : vector<1x8x512xf32> to vector<8x512xf32>
    %cst_87 = arith.constant dense<0.000000e+00> : vector<8x512xf32>
    %376 = tpu.matmul %373, %11, %cst_87 {dimension_numbers = #tpu.dot_dimension_numbers<[1], [0], [0], [1], [0, 0, 1, 1], [], []>} : vector<8x128xf32>, vector<128x512xf32>, vector<8x512xf32> -> vector<8x512xf32>
    %377 = arith.addf %375, %376 : vector<8x512xf32>
    %378 = vector.extract_strided_slice %377 {offsets = [0, 0], sizes = [8, 384], strides = [1, 1]} : vector<8x512xf32> to vector<8x384xf32>
    %379 = arith.negf %378 : vector<8x384xf32>
    %380 = math.exp %379 : vector<8x384xf32>
    %cst_88 = arith.constant 1.000000e+00 : f32
    %381 = vector.broadcast %cst_88 : f32 to vector<8x384xf32>
    %382 = arith.addf %381, %380 : vector<8x384xf32>
    %383 = arith.divf %381, %382 : vector<8x384xf32>
    %384 = vector.extract_strided_slice %383 {offsets = [0, 0], sizes = [8, 128], strides = [1, 1]} : vector<8x384xf32> to vector<8x128xf32>
    %385 = vector.extract_strided_slice %383 {offsets = [0, 128], sizes = [8, 128], strides = [1, 1]} : vector<8x384xf32> to vector<8x128xf32>
    %386 = vector.extract_strided_slice %383 {offsets = [0, 256], sizes = [8, 128], strides = [1, 1]} : vector<8x384xf32> to vector<8x128xf32>
    %387 = vector.extract_strided_slice %377 {offsets = [0, 384], sizes = [8, 128], strides = [1, 1]} : vector<8x512xf32> to vector<8x128xf32>
    %388 = math.tanh %387 : vector<8x128xf32>
    %389 = arith.mulf %385, %371 : vector<8x128xf32>
    %390 = arith.mulf %384, %388 : vector<8x128xf32>
    %391 = arith.addf %389, %390 : vector<8x128xf32>
    %392 = math.tanh %391 : vector<8x128xf32>
    %393 = arith.mulf %386, %392 : vector<8x128xf32>
    %c19 = arith.constant 19 : index
    %c0_89 = arith.constant 0 : index
    %c0_90 = arith.constant 0 : index
    %394 = vector.load %arg5[%c19, %c0_89, %c0_90] : memref<24x8x512xf32, #tpu.memory_space<vmem>>, vector<1x8x512xf32>
    %395 = vector.shape_cast %394 : vector<1x8x512xf32> to vector<8x512xf32>
    %cst_91 = arith.constant dense<0.000000e+00> : vector<8x512xf32>
    %396 = tpu.matmul %393, %11, %cst_91 {dimension_numbers = #tpu.dot_dimension_numbers<[1], [0], [0], [1], [0, 0, 1, 1], [], []>} : vector<8x128xf32>, vector<128x512xf32>, vector<8x512xf32> -> vector<8x512xf32>
    %397 = arith.addf %395, %396 : vector<8x512xf32>
    %398 = vector.extract_strided_slice %397 {offsets = [0, 0], sizes = [8, 384], strides = [1, 1]} : vector<8x512xf32> to vector<8x384xf32>
    %399 = arith.negf %398 : vector<8x384xf32>
    %400 = math.exp %399 : vector<8x384xf32>
    %cst_92 = arith.constant 1.000000e+00 : f32
    %401 = vector.broadcast %cst_92 : f32 to vector<8x384xf32>
    %402 = arith.addf %401, %400 : vector<8x384xf32>
    %403 = arith.divf %401, %402 : vector<8x384xf32>
    %404 = vector.extract_strided_slice %403 {offsets = [0, 0], sizes = [8, 128], strides = [1, 1]} : vector<8x384xf32> to vector<8x128xf32>
    %405 = vector.extract_strided_slice %403 {offsets = [0, 128], sizes = [8, 128], strides = [1, 1]} : vector<8x384xf32> to vector<8x128xf32>
    %406 = vector.extract_strided_slice %403 {offsets = [0, 256], sizes = [8, 128], strides = [1, 1]} : vector<8x384xf32> to vector<8x128xf32>
    %407 = vector.extract_strided_slice %397 {offsets = [0, 384], sizes = [8, 128], strides = [1, 1]} : vector<8x512xf32> to vector<8x128xf32>
    %408 = math.tanh %407 : vector<8x128xf32>
    %409 = arith.mulf %405, %391 : vector<8x128xf32>
    %410 = arith.mulf %404, %408 : vector<8x128xf32>
    %411 = arith.addf %409, %410 : vector<8x128xf32>
    %412 = math.tanh %411 : vector<8x128xf32>
    %413 = arith.mulf %406, %412 : vector<8x128xf32>
    %c20 = arith.constant 20 : index
    %c0_93 = arith.constant 0 : index
    %c0_94 = arith.constant 0 : index
    %414 = vector.load %arg5[%c20, %c0_93, %c0_94] : memref<24x8x512xf32, #tpu.memory_space<vmem>>, vector<1x8x512xf32>
    %415 = vector.shape_cast %414 : vector<1x8x512xf32> to vector<8x512xf32>
    %cst_95 = arith.constant dense<0.000000e+00> : vector<8x512xf32>
    %416 = tpu.matmul %413, %11, %cst_95 {dimension_numbers = #tpu.dot_dimension_numbers<[1], [0], [0], [1], [0, 0, 1, 1], [], []>} : vector<8x128xf32>, vector<128x512xf32>, vector<8x512xf32> -> vector<8x512xf32>
    %417 = arith.addf %415, %416 : vector<8x512xf32>
    %418 = vector.extract_strided_slice %417 {offsets = [0, 0], sizes = [8, 384], strides = [1, 1]} : vector<8x512xf32> to vector<8x384xf32>
    %419 = arith.negf %418 : vector<8x384xf32>
    %420 = math.exp %419 : vector<8x384xf32>
    %cst_96 = arith.constant 1.000000e+00 : f32
    %421 = vector.broadcast %cst_96 : f32 to vector<8x384xf32>
    %422 = arith.addf %421, %420 : vector<8x384xf32>
    %423 = arith.divf %421, %422 : vector<8x384xf32>
    %424 = vector.extract_strided_slice %423 {offsets = [0, 0], sizes = [8, 128], strides = [1, 1]} : vector<8x384xf32> to vector<8x128xf32>
    %425 = vector.extract_strided_slice %423 {offsets = [0, 128], sizes = [8, 128], strides = [1, 1]} : vector<8x384xf32> to vector<8x128xf32>
    %426 = vector.extract_strided_slice %423 {offsets = [0, 256], sizes = [8, 128], strides = [1, 1]} : vector<8x384xf32> to vector<8x128xf32>
    %427 = vector.extract_strided_slice %417 {offsets = [0, 384], sizes = [8, 128], strides = [1, 1]} : vector<8x512xf32> to vector<8x128xf32>
    %428 = math.tanh %427 : vector<8x128xf32>
    %429 = arith.mulf %425, %411 : vector<8x128xf32>
    %430 = arith.mulf %424, %428 : vector<8x128xf32>
    %431 = arith.addf %429, %430 : vector<8x128xf32>
    %432 = math.tanh %431 : vector<8x128xf32>
    %433 = arith.mulf %426, %432 : vector<8x128xf32>
    %c21 = arith.constant 21 : index
    %c0_97 = arith.constant 0 : index
    %c0_98 = arith.constant 0 : index
    %434 = vector.load %arg5[%c21, %c0_97, %c0_98] : memref<24x8x512xf32, #tpu.memory_space<vmem>>, vector<1x8x512xf32>
    %435 = vector.shape_cast %434 : vector<1x8x512xf32> to vector<8x512xf32>
    %cst_99 = arith.constant dense<0.000000e+00> : vector<8x512xf32>
    %436 = tpu.matmul %433, %11, %cst_99 {dimension_numbers = #tpu.dot_dimension_numbers<[1], [0], [0], [1], [0, 0, 1, 1], [], []>} : vector<8x128xf32>, vector<128x512xf32>, vector<8x512xf32> -> vector<8x512xf32>
    %437 = arith.addf %435, %436 : vector<8x512xf32>
    %438 = vector.extract_strided_slice %437 {offsets = [0, 0], sizes = [8, 384], strides = [1, 1]} : vector<8x512xf32> to vector<8x384xf32>
    %439 = arith.negf %438 : vector<8x384xf32>
    %440 = math.exp %439 : vector<8x384xf32>
    %cst_100 = arith.constant 1.000000e+00 : f32
    %441 = vector.broadcast %cst_100 : f32 to vector<8x384xf32>
    %442 = arith.addf %441, %440 : vector<8x384xf32>
    %443 = arith.divf %441, %442 : vector<8x384xf32>
    %444 = vector.extract_strided_slice %443 {offsets = [0, 0], sizes = [8, 128], strides = [1, 1]} : vector<8x384xf32> to vector<8x128xf32>
    %445 = vector.extract_strided_slice %443 {offsets = [0, 128], sizes = [8, 128], strides = [1, 1]} : vector<8x384xf32> to vector<8x128xf32>
    %446 = vector.extract_strided_slice %443 {offsets = [0, 256], sizes = [8, 128], strides = [1, 1]} : vector<8x384xf32> to vector<8x128xf32>
    %447 = vector.extract_strided_slice %437 {offsets = [0, 384], sizes = [8, 128], strides = [1, 1]} : vector<8x512xf32> to vector<8x128xf32>
    %448 = math.tanh %447 : vector<8x128xf32>
    %449 = arith.mulf %445, %431 : vector<8x128xf32>
    %450 = arith.mulf %444, %448 : vector<8x128xf32>
    %451 = arith.addf %449, %450 : vector<8x128xf32>
    %452 = math.tanh %451 : vector<8x128xf32>
    %453 = arith.mulf %446, %452 : vector<8x128xf32>
    %c22 = arith.constant 22 : index
    %c0_101 = arith.constant 0 : index
    %c0_102 = arith.constant 0 : index
    %454 = vector.load %arg5[%c22, %c0_101, %c0_102] : memref<24x8x512xf32, #tpu.memory_space<vmem>>, vector<1x8x512xf32>
    %455 = vector.shape_cast %454 : vector<1x8x512xf32> to vector<8x512xf32>
    %cst_103 = arith.constant dense<0.000000e+00> : vector<8x512xf32>
    %456 = tpu.matmul %453, %11, %cst_103 {dimension_numbers = #tpu.dot_dimension_numbers<[1], [0], [0], [1], [0, 0, 1, 1], [], []>} : vector<8x128xf32>, vector<128x512xf32>, vector<8x512xf32> -> vector<8x512xf32>
    %457 = arith.addf %455, %456 : vector<8x512xf32>
    %458 = vector.extract_strided_slice %457 {offsets = [0, 0], sizes = [8, 384], strides = [1, 1]} : vector<8x512xf32> to vector<8x384xf32>
    %459 = arith.negf %458 : vector<8x384xf32>
    %460 = math.exp %459 : vector<8x384xf32>
    %cst_104 = arith.constant 1.000000e+00 : f32
    %461 = vector.broadcast %cst_104 : f32 to vector<8x384xf32>
    %462 = arith.addf %461, %460 : vector<8x384xf32>
    %463 = arith.divf %461, %462 : vector<8x384xf32>
    %464 = vector.extract_strided_slice %463 {offsets = [0, 0], sizes = [8, 128], strides = [1, 1]} : vector<8x384xf32> to vector<8x128xf32>
    %465 = vector.extract_strided_slice %463 {offsets = [0, 128], sizes = [8, 128], strides = [1, 1]} : vector<8x384xf32> to vector<8x128xf32>
    %466 = vector.extract_strided_slice %463 {offsets = [0, 256], sizes = [8, 128], strides = [1, 1]} : vector<8x384xf32> to vector<8x128xf32>
    %467 = vector.extract_strided_slice %457 {offsets = [0, 384], sizes = [8, 128], strides = [1, 1]} : vector<8x512xf32> to vector<8x128xf32>
    %468 = math.tanh %467 : vector<8x128xf32>
    %469 = arith.mulf %465, %451 : vector<8x128xf32>
    %470 = arith.mulf %464, %468 : vector<8x128xf32>
    %471 = arith.addf %469, %470 : vector<8x128xf32>
    %472 = math.tanh %471 : vector<8x128xf32>
    %473 = arith.mulf %466, %472 : vector<8x128xf32>
    %c23 = arith.constant 23 : index
    %c0_105 = arith.constant 0 : index
    %c0_106 = arith.constant 0 : index
    %474 = vector.load %arg5[%c23, %c0_105, %c0_106] : memref<24x8x512xf32, #tpu.memory_space<vmem>>, vector<1x8x512xf32>
    %475 = vector.shape_cast %474 : vector<1x8x512xf32> to vector<8x512xf32>
    %cst_107 = arith.constant dense<0.000000e+00> : vector<8x512xf32>
    %476 = tpu.matmul %473, %11, %cst_107 {dimension_numbers = #tpu.dot_dimension_numbers<[1], [0], [0], [1], [0, 0, 1, 1], [], []>} : vector<8x128xf32>, vector<128x512xf32>, vector<8x512xf32> -> vector<8x512xf32>
    %477 = arith.addf %475, %476 : vector<8x512xf32>
    %478 = vector.extract_strided_slice %477 {offsets = [0, 0], sizes = [8, 384], strides = [1, 1]} : vector<8x512xf32> to vector<8x384xf32>
    %479 = arith.negf %478 : vector<8x384xf32>
    %480 = math.exp %479 : vector<8x384xf32>
    %cst_108 = arith.constant 1.000000e+00 : f32
    %481 = vector.broadcast %cst_108 : f32 to vector<8x384xf32>
    %482 = arith.addf %481, %480 : vector<8x384xf32>
    %483 = arith.divf %481, %482 : vector<8x384xf32>
    %484 = vector.extract_strided_slice %483 {offsets = [0, 0], sizes = [8, 128], strides = [1, 1]} : vector<8x384xf32> to vector<8x128xf32>
    %485 = vector.extract_strided_slice %483 {offsets = [0, 128], sizes = [8, 128], strides = [1, 1]} : vector<8x384xf32> to vector<8x128xf32>
    %486 = vector.extract_strided_slice %483 {offsets = [0, 256], sizes = [8, 128], strides = [1, 1]} : vector<8x384xf32> to vector<8x128xf32>
    %487 = vector.extract_strided_slice %477 {offsets = [0, 384], sizes = [8, 128], strides = [1, 1]} : vector<8x512xf32> to vector<8x128xf32>
    %488 = math.tanh %487 : vector<8x128xf32>
    %489 = arith.mulf %485, %471 : vector<8x128xf32>
    %490 = arith.mulf %484, %488 : vector<8x128xf32>
    %491 = arith.addf %489, %490 : vector<8x128xf32>
    %492 = math.tanh %491 : vector<8x128xf32>
    %493 = arith.mulf %486, %492 : vector<8x128xf32>
    %c0_109 = arith.constant 0 : index
    %c0_110 = arith.constant 0 : index
    %494 = vector.load %arg4[%c0_109, %c0_110] : memref<8x128xf32, #tpu.memory_space<vmem>>, vector<8x128xf32>
    tpu.vector_store %arg4[%c0_109, %c0_110], %493 {strides = array<i32>} : memref<8x128xf32, #tpu.memory_space<vmem>>, vector<8x128xf32>,
    return
  }
  func.func @transform_0(%arg0: i32) -> (i32, i32, i32) {
    %c0_i32 = arith.constant 0 : i32
    %c0_i32_0 = arith.constant 0 : i32
    %c0_i32_1 = arith.constant 0 : i32
    return %c0_i32, %arg0, %c0_i32_0 : i32, i32, i32
  }
  func.func @transform_1(%arg0: i32) -> (i32, i32) {
    %c0_i32 = arith.constant 0 : i32
    %c0_i32_0 = arith.constant 0 : i32
    %c0_i32_1 = arith.constant 0 : i32
    return %c0_i32, %c0_i32_0 : i32, i32
  }
  func.func @transform_2(%arg0: i32) -> (i32, i32) {
    %c0_i32 = arith.constant 0 : i32
    %c0_i32_0 = arith.constant 0 : i32
    %c0_i32_1 = arith.constant 0 : i32
    return %c0_i32, %c0_i32_0 : i32, i32
  }
  func.func @transform_3(%arg0: i32) -> (i32, i32) {
    %c0_i32 = arith.constant 0 : i32
    %c0_i32_0 = arith.constant 0 : i32
    return %arg0, %c0_i32 : i32, i32
  }
}

</mosaic_0001>

<bundles_post_ra>
// kernel: lstm_forward.1
= control target key start
LH: loop header
LB: loop body
LE: loop exit
PB: predicated region body
PF: predicated region fallthrough
CT: control target
= control target key end

     0   :  { %8 = vsyncpa [#allocation4], 0  ;;  %s5011_s15 = smov [#allocation3]   ;;  %s5012_s17 = smov 512   ;;  %s7724_s0 = inlined_call_operand.vmem [shape: f32[24,8,1], index: 0, kind: input, shape index: {}]   ;;  %s7725_s1 = inlined_call_operand.vmem [shape: f32[2,512], index: 1, kind: input, shape index: {}]   ;;  %s7726_s2 = inlined_call_operand.hbm [shape: f32[128,512], index: 2, kind: input, shape index: {}]   ;;  %s7727_s3 = inlined_call_operand.vmem [shape: f32[8,128], index: 3, kind: output, shape index: {}]  }
   0x1   :  { %s17_s14 = sshll.u32 %s7726_s2, 4  ;;  %s19_s16 = sshll.u32 %s5011_s15, 4  ;;  %s18_s14 = int_to_ptr.hbm [resolvable:$true] %s17_s14  ;;  %s20_s16 = int_to_ptr.vmem [resolvable:$true] %s19_s16 }
   0x2   :  { %s5013_s18 = smov 32  }
   0x3   :  { %25 = dma.hbm_to_vmem [thread:$0]  %s18_s14, 8192, %s20_s16, [#allocation4], %s5012_s17, %s5012_s17, %s5013_s18  }
   0x4   :  { %5009 = dma.done.wait [#allocation4], 8192  }
   0x5   :  { %5010 = vsyncadd [#allocation4], 4294959104  ;;  %v5014_v0 = vmov 0   ;;  %v5039_v1 = vld [vmem:[#allocation3 + $0x1e0] sm:$0xff]  ;;  %v5041_v2 = vld [vmem:[#allocation3 + $0x1e8] sm:$0xff] }
   0x6   :  { %4278 = vset.pattern.permute.xlu0 %v5014_v0  ;;  %4279 = vset.pattern.permute.xlu1 %v5014_v0  ;;  %v5043_v3 = vld [vmem:[#allocation3 + $0x1f0] sm:$0xff]  ;;  %v5047_v4 = vld [vmem:[#allocation3 + $0x1f8] sm:$0xff]  ;;  %v33_v5 = vld [vmem:[%s7724_s0] sm:$0xff] }
   0x7   :  { %4280 = vset.pattern.permute.xlu2 %v5014_v0  ;;  %551 = vmatpush.msra.mxu0 %v5039_v1  ;;  %v5052_v6 = vld [vmem:[#allocation3 + $0x1c0] sm:$0xff]  ;;  %v5056_v7 = vld [vmem:[#allocation3 + $0x1c8] sm:$0xff]  ;;  %v5058_v8 = vld [vmem:[#allocation3 + $0x1d0] sm:$0xff] }
   0x8   :  { %571 = vmatpush.msra.mxu1 %v5041_v2  ;;  %591 = vmatpush.msra.mxu2 %v5043_v3  ;;  %v5060_v9 = vld [vmem:[#allocation3 + $0x1d8] sm:$0xff]  ;;  %v5063_v10 = vld [vmem:[#allocation3 + $0x1a0] sm:$0xff]  ;;  %v5065_v11 = vld [vmem:[#allocation3 + $0x1a8] sm:$0xff] }
   0x9   :  { %611 = vmatpush.msra.mxu3 %v5047_v4  ;;  %59 = vperm.xlu0 %4278, %v33_v5   ;;  %v5067_v12 = vld [vmem:[#allocation3 + $0x1b0] sm:$0xff]  ;;  %v5071_v13 = vld [vmem:[#allocation3 + $0x1b8] sm:$0xff]  ;;  %v5073_v14 = vld [vmem:[#allocation3 + $0x180] sm:$0xff] }
   0xa   :  { %552 = vmatpush.msra.mxu0 %v5052_v6  ;;  %572 = vmatpush.msra.mxu1 %v5056_v7  ;;  %v5077_v15 = vld [vmem:[#allocation3 + $0x188] sm:$0xff]  ;;  %v5079_v16 = vld [vmem:[#allocation3 + $0x190] sm:$0xff]  ;;  %v5083_v17 = vld [vmem:[#allocation3 + $0x198] sm:$0xff] }
   0xb   :  { %592 = vmatpush.msra.mxu2 %v5058_v8  ;;  %612 = vmatpush.msra.mxu3 %v5060_v9  ;;  %v5085_v18 = vld [vmem:[#allocation3 + $0x160] sm:$0xff]  ;;  %v5089_v19 = vld [vmem:[#allocation3 + $0x168] sm:$0xff]  ;;  %v5091_v20 = vld [vmem:[#allocation3 + $0x170] sm:$0xff] }
   0xc   :  { %553 = vmatpush.msra.mxu0 %v5063_v10  ;;  %573 = vmatpush.msra.mxu1 %v5065_v11  ;;  %v5095_v21 = vld [vmem:[#allocation3 + $0x178] sm:$0xff]  ;;  %v34_v22 = vld [vmem:[%s7724_s0 + $0x8] sm:$0xff]  ;;  %v5102_v23 = vld [vmem:[#allocation3 + $0x140] sm:$0xff] }
   0xd   :  { %593 = vmatpush.msra.mxu2 %v5067_v12  ;;  %613 = vmatpush.msra.mxu3 %v5071_v13  ;;  %v5104_v24 = vld [vmem:[#allocation3 + $0x148] sm:$0xff]  ;;  %v5108_v25 = vld [vmem:[#allocation3 + $0x150] sm:$0xff]  ;;  %v5110_v26 = vld [vmem:[#allocation3 + $0x158] sm:$0xff] }
   0xe   :  { %554 = vmatpush.msra.mxu0 %v5073_v14  ;;  %574 = vmatpush.msra.mxu1 %v5077_v15  ;;  %v5113_v27 = vld [vmem:[#allocation3 + $0x120] sm:$0xff]  ;;  %v5115_v28 = vld [vmem:[#allocation3 + $0x128] sm:$0xff]  ;;  %v5119_v29 = vld [vmem:[#allocation3 + $0x130] sm:$0xff] }
   0xf   :  { %594 = vmatpush.msra.mxu2 %v5079_v16  ;;  %614 = vmatpush.msra.mxu3 %v5083_v17  ;;  %v5121_v30 = vld [vmem:[#allocation3 + $0x138] sm:$0xff]  ;;  %v5125_v31 = vld [vmem:[#allocation3 + $0x100] sm:$0xff]  ;;  %v5127_v32 = vld [vmem:[#allocation3 + $0x108] sm:$0xff] }
  0x10   :  { %555 = vmatpush.msra.mxu0 %v5085_v18  ;;  %575 = vmatpush.msra.mxu1 %v5089_v19  ;;  %v5131_v33 = vld [vmem:[#allocation3 + $0x110] sm:$0xff]  ;;  %v5133_v34 = vld [vmem:[#allocation3 + $0x118] sm:$0xff]  ;;  %v5137_v35 = vld [vmem:[#allocation3 + $0xe0] sm:$0xff] }
  0x11   :  { %595 = vmatpush.msra.mxu2 %v5091_v20  ;;  %615 = vmatpush.msra.mxu3 %v5095_v21  ;;  %v5139_v36 = vld [vmem:[#allocation3 + $0xe8] sm:$0xff]  ;;  %v5143_v37 = vld [vmem:[#allocation3 + $0xf0] sm:$0xff]  ;;  %v5145_v38 = vld [vmem:[#allocation3 + $0xf8] sm:$0xff] }
  0x12   :  { %64 = vperm.xlu0 %4278, %v34_v22   ;;  %556 = vmatpush.msra.mxu0 %v5102_v23  ;;  %v39_v39 = vld [vmem:[%s7724_s0 + $0x30] sm:$0xff]  ;;  %v5152_v40 = vld [vmem:[#allocation3 + $0xc0] sm:$0xff]  ;;  %v5156_v41 = vld [vmem:[#allocation3 + $0xc8] sm:$0xff] }
  0x13   :  { %576 = vmatpush.msra.mxu1 %v5104_v24  ;;  %596 = vmatpush.msra.mxu2 %v5108_v25  ;;  %v5158_v42 = vld [vmem:[#allocation3 + $0xd0] sm:$0xff]  ;;  %v5162_v43 = vld [vmem:[#allocation3 + $0xd8] sm:$0xff]  ;;  %v5164_v44 = vld [vmem:[#allocation3 + $0xa0] sm:$0xff] }
  0x14   :  { %616 = vmatpush.msra.mxu3 %v5110_v26  ;;  %557 = vmatpush.msra.mxu0 %v5113_v27  ;;  %8128 = vst [vmem:[#allocation6_spill] sm:$0xff] %v5158_v42  ;;  %v5167_v45 = vld [vmem:[#allocation3 + $0xa8] sm:$0xff]  ;;  %v5169_v46 = vld [vmem:[#allocation3 + $0xb0] sm:$0xff]  ;;  %v5173_v47 = vld [vmem:[#allocation3 + $0xb8] sm:$0xff] }
  0x15   :  { %577 = vmatpush.msra.mxu1 %v5115_v28  ;;  %597 = vmatpush.msra.mxu2 %v5119_v29  ;;  %8129 = vst [vmem:[#allocation7_spill] sm:$0xff] %v5162_v43  ;;  %v5175_v48 = vld [vmem:[#allocation3 + $0x80] sm:$0xff]  ;;  %v5179_v49 = vld [vmem:[#allocation3 + $0x88] sm:$0xff]  ;;  %v5181_v50 = vld [vmem:[#allocation3 + $0x90] sm:$0xff] }
  0x16   :  { %617 = vmatpush.msra.mxu3 %v5121_v30  ;;  %558 = vmatpush.msra.mxu0 %v5125_v31  ;;  %8130 = vst [vmem:[#allocation8_spill] sm:$0xff] %v5164_v44  ;;  %v5185_v51 = vld [vmem:[#allocation3 + $0x98] sm:$0xff]  ;;  %v5187_v52 = vld [vmem:[#allocation3 + $0x60] sm:$0xff]  ;;  %v5191_v53 = vld [vmem:[#allocation3 + $0x68] sm:$0xff] }
  0x17   :  { %578 = vmatpush.msra.mxu1 %v5127_v32  ;;  %598 = vmatpush.msra.mxu2 %v5131_v33  ;;  %8131 = vst [vmem:[#allocation9_spill] sm:$0xff] %v5167_v45  ;;  %v5193_v54 = vld [vmem:[#allocation3 + $0x70] sm:$0xff]  ;;  %v5197_v55 = vld [vmem:[#allocation3 + $0x78] sm:$0xff]  ;;  %v42_v56 = vld [vmem:[%s7724_s0 + $0x48] sm:$0xff] }
  0x18   :  { %618 = vmatpush.msra.mxu3 %v5133_v34  ;;  %559 = vmatpush.msra.mxu0 %v5137_v35  ;;  %8132 = vst [vmem:[#allocation10_spill] sm:$0xff] %v5169_v46  ;;  %v5204_v57 = vld [vmem:[#allocation3 + $0x40] sm:$0xff]  ;;  %v5206_v58 = vld [vmem:[#allocation3 + $0x48] sm:$0xff]  ;;  %v5210_v59 = vld [vmem:[#allocation3 + $0x50] sm:$0xff] }
  0x19   :  { %579 = vmatpush.msra.mxu1 %v5139_v36  ;;  %599 = vmatpush.msra.mxu2 %v5143_v37  ;;  %8133 = vst [vmem:[#allocation11_spill] sm:$0xff] %v5173_v47  ;;  %v5212_v60 = vld [vmem:[#allocation3 + $0x58] sm:$0xff]  ;;  %v5215_v61 = vld [vmem:[#allocation3 + $0x20] sm:$0xff]  ;;  %v5217_v62 = vld [vmem:[#allocation3 + $0x28] sm:$0xff] }
  0x1a   :  { %619 = vmatpush.msra.mxu3 %v5145_v38  ;;  %89 = vperm.xlu0 %4278, %v39_v39   ;;  %8134 = vst [vmem:[#allocation12_spill] sm:$0xff] %v5175_v48  ;;  %v5221_v63 = vld [vmem:[#allocation3 + $0x30] sm:$0xff]  ;;  %v5223_v0 = vld [vmem:[#allocation3 + $0x38] sm:$0xff]  ;;  %v5227_v5 = vld [vmem:[#allocation3] sm:$0xff] }
  0x1b   :  { %560 = vmatpush.msra.mxu0 %v5152_v40  ;;  %580 = vmatpush.msra.mxu1 %v5156_v41  ;;  %8135 = vst [vmem:[#allocation13_spill] sm:$0xff] %v5179_v49  ;;  %v5229_v22 = vld [vmem:[#allocation3 + $0x8] sm:$0xff]  ;;  %v5233_v39 = vld [vmem:[#allocation3 + $0x10] sm:$0xff] }
  0x1c   :  { %600 = vmatpush.msra.mxu2 %v5158_v42  ;;  %620 = vmatpush.msra.mxu3 %v5162_v43  ;;  %8136 = vst [vmem:[#allocation14_spill] sm:$0xff] %v5181_v50 }
  0x1d   :  { %561 = vmatpush.msra.mxu0 %v5164_v44  ;;  %581 = vmatpush.msra.mxu1 %v5167_v45  ;;  %8137 = vst [vmem:[#allocation15_spill] sm:$0xff] %v5185_v51 }
  0x1e   :  { %601 = vmatpush.msra.mxu2 %v5169_v46  ;;  %8138 = vst [vmem:[#allocation16_spill] sm:$0xff] %v5187_v52  ;;  %621 = vmatpush.msra.mxu3 %v5173_v47 }
  0x1f   :  { %562 = vmatpush.msra.mxu0 %v5175_v48  ;;  %8139 = vst [vmem:[#allocation17_spill] sm:$0xff] %v5191_v53  ;;  %582 = vmatpush.msra.mxu1 %v5179_v49 }
  0x20   :  { %8140 = vst [vmem:[#allocation18_spill] sm:$0xff] %v5193_v54  ;;  %602 = vmatpush.msra.mxu2 %v5181_v50  ;;  %622 = vmatpush.msra.mxu3 %v5185_v51 }
  0x21   :  { %8141 = vst [vmem:[#allocation19_spill] sm:$0xff] %v5197_v55  ;;  %563 = vmatpush.msra.mxu0 %v5187_v52  ;;  %583 = vmatpush.msra.mxu1 %v5191_v53 }
  0x22   :  { %8142 = vst [vmem:[#allocation20_spill] sm:$0xff] %v5204_v57  ;;  %603 = vmatpush.msra.mxu2 %v5193_v54  ;;  %623 = vmatpush.msra.mxu3 %v5197_v55 }
  0x23   :  { %8143 = vst [vmem:[#allocation21_spill] sm:$0xff] %v5206_v58  ;;  %104 = vperm.xlu0 %4278, %v42_v56   ;;  %564 = vmatpush.msra.mxu0 %v5204_v57  ;;  %v5235_v56 = vld [vmem:[#allocation3 + $0x18] sm:$0xff] }
  0x24   :  { %8144 = vst [vmem:[#allocation22_spill] sm:$0xff] %v5210_v59  ;;  %584 = vmatpush.msra.mxu1 %v5206_v58  ;;  %604 = vmatpush.msra.mxu2 %v5210_v59 }
  0x25   :  { %8145 = vst [vmem:[#allocation23_spill] sm:$0xff] %v5212_v60  ;;  %624 = vmatpush.msra.mxu3 %v5212_v60  ;;  %565 = vmatpush.msra.mxu0 %v5215_v61 }
  0x26   :  { %8146 = vst [vmem:[#allocation24_spill] sm:$0xff] %v5215_v61  ;;  %585 = vmatpush.msra.mxu1 %v5217_v62  ;;  %605 = vmatpush.msra.mxu2 %v5221_v63  ;;  %v5015_v61 = vmov 0.0  }
  0x27   :  { %8147 = vst [vmem:[#allocation25_spill] sm:$0xff] %v5217_v62  ;;  %625 = vmatpush.msra.mxu3 %v5223_v0  ;;  %566 = vmatpush.msra.mxu0 %v5227_v5  ;;  %v45_v62 = vld [vmem:[%s7724_s0 + $0x60] sm:$0xff] }
  0x28   :  { %8148 = vst [vmem:[#allocation26_spill] sm:$0xff] %v5221_v63  ;;  %586 = vmatpush.msra.mxu1 %v5229_v22  ;;  %606 = vmatpush.msra.mxu2 %v5233_v39 }
  0x29   :  { %8149 = vst [vmem:[#allocation27_spill] sm:$0xff] %v5223_v0  ;;  %626 = vmatpush.msra.mxu3 %v5235_v56  ;;  %567 = vmatmul.f32.vlgmr.msra.gmra.mxu0 %v5015_v61 }
  0x2a   :  { %8150 = vst [vmem:[#allocation28_spill] sm:$0xff] %v5227_v5  ;;  %587 = vmatmul.f32.vlgmr.msra.gmra.mxu1 %v5015_v61  ;;  %607 = vmatmul.f32.vlgmr.msra.gmra.mxu2 %v5015_v61 }
  0x2b   :  { %8151 = vst [vmem:[#allocation29_spill] sm:$0xff] %v5229_v22  ;;  %627 = vmatmul.f32.vlgmr.msra.gmra.mxu3 %v5015_v61  ;;  %119 = vperm.xlu0 %4278, %v45_v62   ;;  %v48_v61 = vld [vmem:[%s7724_s0 + $0x78] sm:$0xff]  ;;  %v51_v62 = vld [vmem:[%s7724_s0 + $0x90] sm:$0xff] }
  0x2c   :  { %8152 = vst [vmem:[#allocation30_spill] sm:$0xff] %v5233_v39  ;;  %703 = vmatpush.msrb.mxu0 %v5039_v1  ;;  %723 = vmatpush.msrb.mxu1 %v5041_v2 }
  0x2d   :  { %8153 = vst [vmem:[#allocation31_spill] sm:$0xff] %v5235_v56  ;;  %743 = vmatpush.msrb.mxu2 %v5043_v3  ;;  %763 = vmatpush.msrb.mxu3 %v5047_v4 }
  0x2e   :  { %704 = vmatpush.msrb.mxu0 %v5052_v6  ;;  %724 = vmatpush.msrb.mxu1 %v5056_v7 }
  0x2f   :  { %744 = vmatpush.msrb.mxu2 %v5058_v8  ;;  %764 = vmatpush.msrb.mxu3 %v5060_v9 }
  0x30   :  { %705 = vmatpush.msrb.mxu0 %v5063_v10  ;;  %725 = vmatpush.msrb.mxu1 %v5065_v11 }
  0x31   :  { %745 = vmatpush.msrb.mxu2 %v5067_v12  ;;  %765 = vmatpush.msrb.mxu3 %v5071_v13 }
  0x32   :  { %706 = vmatpush.msrb.mxu0 %v5073_v14  ;;  %726 = vmatpush.msrb.mxu1 %v5077_v15 }
  0x33   :  { %746 = vmatpush.msrb.mxu2 %v5079_v16  ;;  %134 = vperm.xlu0 %4278, %v48_v61   ;;  %v54_v61 = vld [vmem:[%s7724_s0 + $0xa8] sm:$0xff] }
  0x34   :  { %766 = vmatpush.msrb.mxu3 %v5083_v17  ;;  %707 = vmatpush.msrb.mxu0 %v5085_v18 }
  0x35   :  { %727 = vmatpush.msrb.mxu1 %v5089_v19  ;;  %747 = vmatpush.msrb.mxu2 %v5091_v20 }
  0x36   :  { %767 = vmatpush.msrb.mxu3 %v5095_v21  ;;  %708 = vmatpush.msrb.mxu0 %v5102_v23 }
  0x37   :  { %728 = vmatpush.msrb.mxu1 %v5104_v24  ;;  %748 = vmatpush.msrb.mxu2 %v5108_v25 }
  0x38   :  { %768 = vmatpush.msrb.mxu3 %v5110_v26  ;;  %709 = vmatpush.msrb.mxu0 %v5113_v27 }
  0x39   :  { %729 = vmatpush.msrb.mxu1 %v5115_v28  ;;  %749 = vmatpush.msrb.mxu2 %v5119_v29 }
  0x3a   :  { %769 = vmatpush.msrb.mxu3 %v5121_v30  ;;  %710 = vmatpush.msrb.mxu0 %v5125_v31 }
  0x3b   :  { %730 = vmatpush.msrb.mxu1 %v5127_v32  ;;  %149 = vperm.xlu0 %4278, %v51_v62   ;;  %v8154_v62 = vld [vmem:[#allocation24_spill] sm:$0xff] }
  0x3c   :  { %750 = vmatpush.msrb.mxu2 %v5131_v33  ;;  %770 = vmatpush.msrb.mxu3 %v5133_v34 }
  0x3d   :  { %711 = vmatpush.msrb.mxu0 %v5137_v35  ;;  %731 = vmatpush.msrb.mxu1 %v5139_v36 }
  0x3e   :  { %751 = vmatpush.msrb.mxu2 %v5143_v37  ;;  %771 = vmatpush.msrb.mxu3 %v5145_v38 }
  0x3f   :  { %712 = vmatpush.msrb.mxu0 %v5152_v40  ;;  %732 = vmatpush.msrb.mxu1 %v5156_v41 }
  0x40   :  { %752 = vmatpush.msrb.mxu2 %v5158_v42  ;;  %772 = vmatpush.msrb.mxu3 %v5162_v43 }
  0x41   :  { %713 = vmatpush.msrb.mxu0 %v5164_v44  ;;  %733 = vmatpush.msrb.mxu1 %v5167_v45 }
  0x42   :  { %753 = vmatpush.msrb.mxu2 %v5169_v46  ;;  %773 = vmatpush.msrb.mxu3 %v5173_v47 }
  0x43   :  { %714 = vmatpush.msrb.mxu0 %v5175_v48  ;;  %164 = vperm.xlu0 %4278, %v54_v61   ;;  %v8155_v61 = vld [vmem:[#allocation25_spill] sm:$0xff] }
  0x44   :  { %734 = vmatpush.msrb.mxu1 %v5179_v49  ;;  %754 = vmatpush.msrb.mxu2 %v5181_v50 }
  0x45   :  { %774 = vmatpush.msrb.mxu3 %v5185_v51  ;;  %715 = vmatpush.msrb.mxu0 %v5187_v52 }
  0x46   :  { %735 = vmatpush.msrb.mxu1 %v5191_v53  ;;  %755 = vmatpush.msrb.mxu2 %v5193_v54 }
  0x47   :  { %775 = vmatpush.msrb.mxu3 %v5197_v55  ;;  %716 = vmatpush.msrb.mxu0 %v5204_v57 }
  0x48   :  { %736 = vmatpush.msrb.mxu1 %v5206_v58  ;;  %756 = vmatpush.msrb.mxu2 %v5210_v59 }
  0x49   :  { %776 = vmatpush.msrb.mxu3 %v5212_v60  ;;  %717 = vmatpush.msrb.mxu0 %v8154_v62 }
  0x4a   :  { %737 = vmatpush.msrb.mxu1 %v8155_v61  ;;  %757 = vmatpush.msrb.mxu2 %v5221_v63 }
  0x4b   :  { %777 = vmatpush.msrb.mxu3 %v5223_v0  ;;  %718 = vmatpush.msrb.mxu0 %v5227_v5 }
  0x4c   :  { %738 = vmatpush.msrb.mxu1 %v5229_v22  ;;  %758 = vmatpush.msrb.mxu2 %v5233_v39 }
  0x4d   :  { %778 = vmatpush.msrb.mxu3 %v5235_v56  ;;  %855 = vmatpush.msra.mxu0 %v5039_v1 }
  0x4e   :  { %875 = vmatpush.msra.mxu1 %v5041_v2  ;;  %895 = vmatpush.msra.mxu2 %v5043_v3 }
  0x4f   :  { %915 = vmatpush.msra.mxu3 %v5047_v4  ;;  %856 = vmatpush.msra.mxu0 %v5052_v6 }
  0x50   :  { %876 = vmatpush.msra.mxu1 %v5056_v7  ;;  %896 = vmatpush.msra.mxu2 %v5058_v8 }
  0x51   :  { %916 = vmatpush.msra.mxu3 %v5060_v9  ;;  %857 = vmatpush.msra.mxu0 %v5063_v10 }
  0x52   :  { %877 = vmatpush.msra.mxu1 %v5065_v11  ;;  %897 = vmatpush.msra.mxu2 %v5067_v12 }
  0x53   :  { %917 = vmatpush.msra.mxu3 %v5071_v13  ;;  %858 = vmatpush.msra.mxu0 %v5073_v14 }
  0x54   :  { %878 = vmatpush.msra.mxu1 %v5077_v15  ;;  %898 = vmatpush.msra.mxu2 %v5079_v16 }
  0x55   :  { %918 = vmatpush.msra.mxu3 %v5083_v17  ;;  %859 = vmatpush.msra.mxu0 %v5085_v18 }
  0x56   :  { %879 = vmatpush.msra.mxu1 %v5089_v19  ;;  %899 = vmatpush.msra.mxu2 %v5091_v20 }
  0x57   :  { %919 = vmatpush.msra.mxu3 %v5095_v21  ;;  %860 = vmatpush.msra.mxu0 %v5102_v23 }
  0x58   :  { %880 = vmatpush.msra.mxu1 %v5104_v24  ;;  %900 = vmatpush.msra.mxu2 %v5108_v25 }
  0x59   :  { %920 = vmatpush.msra.mxu3 %v5110_v26  ;;  %861 = vmatpush.msra.mxu0 %v5113_v27 }
  0x5a   :  { %881 = vmatpush.msra.mxu1 %v5115_v28  ;;  %901 = vmatpush.msra.mxu2 %v5119_v29 }
  0x5b   :  { %921 = vmatpush.msra.mxu3 %v5121_v30  ;;  %862 = vmatpush.msra.mxu0 %v5125_v31 }
  0x5c   :  { %882 = vmatpush.msra.mxu1 %v5127_v32  ;;  %902 = vmatpush.msra.mxu2 %v5131_v33 }
  0x5d   :  { %922 = vmatpush.msra.mxu3 %v5133_v34  ;;  %863 = vmatpush.msra.mxu0 %v5137_v35 }
  0x5e   :  { %883 = vmatpush.msra.mxu1 %v5139_v36  ;;  %903 = vmatpush.msra.mxu2 %v5143_v37 }
  0x5f   :  { %923 = vmatpush.msra.mxu3 %v5145_v38  ;;  %864 = vmatpush.msra.mxu0 %v5152_v40 }
  0x60   :  { %884 = vmatpush.msra.mxu1 %v5156_v41  ;;  %904 = vmatpush.msra.mxu2 %v5158_v42 }
  0x61   :  { %924 = vmatpush.msra.mxu3 %v5162_v43  ;;  %865 = vmatpush.msra.mxu0 %v5164_v44 }
  0x62   :  { %885 = vmatpush.msra.mxu1 %v5167_v45  ;;  %905 = vmatpush.msra.mxu2 %v5169_v46 }
  0x63   :  { %925 = vmatpush.msra.mxu3 %v5173_v47  ;;  %866 = vmatpush.msra.mxu0 %v5175_v48 }
  0x64   :  { %886 = vmatpush.msra.mxu1 %v5179_v49  ;;  %906 = vmatpush.msra.mxu2 %v5181_v50 }
  0x65   :  { %926 = vmatpush.msra.mxu3 %v5185_v51  ;;  %867 = vmatpush.msra.mxu0 %v5187_v52 }
  0x66   :  { %887 = vmatpush.msra.mxu1 %v5191_v53  ;;  %907 = vmatpush.msra.mxu2 %v5193_v54 }
  0x67   :  { %927 = vmatpush.msra.mxu3 %v5197_v55  ;;  %868 = vmatpush.msra.mxu0 %v5204_v57 }
  0x68   :  { %888 = vmatpush.msra.mxu1 %v5206_v58  ;;  %908 = vmatpush.msra.mxu2 %v5210_v59 }
  0x69   :  { %928 = vmatpush.msra.mxu3 %v5212_v60  ;;  %869 = vmatpush.msra.mxu0 %v8154_v62  ;;  %v30_v60 = vld [vmem:[%s7725_s1] ss:$2 sm:$0xf] }
  0x6a   :  { %889 = vmatpush.msra.mxu1 %v8155_v61  ;;  %909 = vmatpush.msra.mxu2 %v5221_v63  ;;  %v5386_v59 = vperm.slane %v30_v60, 0  ;;  %v5388_v62 = vperm.slane %v30_v60, 1  ;;  %v5401_v57 = vperm.slane %v30_v60, 2 }
  0x6b   :  { %929 = vmatpush.msra.mxu3 %v5223_v0  ;;  %870 = vmatpush.msra.mxu0 %v5227_v5  ;;  %v4200_v0 = vld [vmem:[%s7725_s1 + $0x1] ss:$2 sm:$0xf] }
  0x6c   :  { %890 = vmatpush.msra.mxu1 %v5229_v22  ;;  %910 = vmatpush.msra.mxu2 %v5233_v39  ;;  %8156 = vst [vmem:[#allocation32_spill] sm:$0xff] %v5386_v59  ;;  %v5394_v22 = vperm.slane %v4200_v0, 0  ;;  %v5404_v50 = vperm.slane %v4200_v0, 2 }
  0x6d   :  { %930 = vmatpush.msra.mxu3 %v5235_v56  ;;  %8157 = vst [vmem:[#allocation33_spill] sm:$0xff] %v5388_v62  ;;  %v5397_v56 = vperm.slane %v4200_v0, 1 }
  0x6e   :  { %8158 = vst [vmem:[#allocation34_spill] sm:$0xff] %v5394_v22 }
  0x6f   :  { %8159 = vst [vmem:[#allocation35_spill] sm:$0xff] %v5397_v56 }
  0x70   :  { %8160 = vst [vmem:[#allocation36_spill] sm:$0xff] %v5401_v57 }
  0x71   :  { %8161 = vst [vmem:[#allocation37_spill] sm:$0xff] %v5404_v50 }
  0x7b   :  { %v60_v63 = vpop.permute.xlu0 %59 }
  0x7c   :  { %v186_v5 = vmul.f32 %v5386_v59, %v60_v63  ;;  %v187_v39 = vmul.f32 %v5388_v62, %v60_v63  ;;  %v188_v51 = vmul.f32 %v5401_v57, %v60_v63 }
  0x7e   :  { %v291_v61 = vadd.f32 %v5394_v22, %v186_v5  ;;  %v292_v58 = vadd.f32 %v5397_v56, %v187_v39  ;;  %v293_v62 = vadd.f32 %v5404_v50, %v188_v51  ;;  %v5407_v39 = vperm.slane %v30_v60, 3 }
  0x80   :  { %8162 = vst [vmem:[#allocation38_spill] sm:$0xff] %v5407_v39 }
  0xa6   :  { %v568_v55 = vpop.f32.mrf.mxu0 }
  0xa7   :  { %v588_v54 = vpop.f32.mrf.mxu1  ;;  %v631_v53 = vadd.f32 %v568_v55, %v291_v61  ;;  %v189_v55 = vmul.f32 %v5407_v39, %v60_v63 }
  0xa8   :  { %v632_v52 = vadd.f32 %v588_v54, %v292_v58  ;;  %v5410_v58 = vperm.slane %v4200_v0, 3 }
  0xa9   :  { %v4201_v59 = vmul.f32 -1.442695, %v631_v53 }
  0xaa   :  { %v4202_v49 = vmul.f32 -1.442695, %v632_v52  ;;  %8163 = vst [vmem:[#allocation39_spill] sm:$0xff] %v5410_v58  ;;  %v294_v52 = vadd.f32 %v5410_v58, %v189_v55 }
  0xab   :  { %4281 = vpow2.f32 %v4201_v59 }
  0xac   :  { %4283 = vpow2.f32 %v4202_v49  ;;  %v35_v49 = vld [vmem:[%s7724_s0 + $0x10] sm:$0xff] }
  0xad   :  { %v608_v48 = vpop.f32.mrf.mxu2  ;;  %69 = vperm.xlu1 %4279, %v35_v49  }
  0xae   :  { %v633_v5 = vadd.f32 %v608_v48, %v293_v62  ;;  %v628_v48 = vpop.f32.mrf.mxu3 }
  0xaf   :  { %v634_v60 = vadd.f32 %v628_v48, %v294_v52 }
  0xb0   :  { %v4203_v22 = vmul.f32 -1.442695, %v633_v5 }
  0xb1   :  { %v4282_v56 = vpop.eup %4281 }
  0xb2   :  { %v4284_v47 = vpop.eup %4283  ;;  %v644_v46 = vadd.f32 1.0, %v4282_v56  ;;  %4285 = vpow2.f32 %v4203_v22 }
  0xb3   :  { %v645_v54 = vadd.f32 1.0, %v4284_v47 }
  0xb4   :  { %4287 = vrcp.f32 %v644_v46  ;;  %v658_v62 = vand.u32 2147483648, %v644_v46  ;;  %v656_v39 = vand.u32 2147483647, %v644_v46  ;;  %vm652_vm2 = vweird.f32 %v644_v46 }
  0xb5   :  { %4289 = vrcp.f32 %v645_v54  ;;  %v673_v61 = vand.u32 2147483648, %v645_v54  ;;  %v671_v50 = vand.u32 2147483647, %v645_v54  ;;  %vm667_vm3 = vweird.f32 %v645_v54 }
  0xb6   :  { %vm657_vm5 = vcmp.eq.f32.partialorder %v656_v39, 8.507059e+37 }
  0xb7   :  { %v674_v58 = vor.u32 1.1754944e-38, %v673_v61  ;;  %vm672_vm7 = vcmp.eq.f32.partialorder %v671_v50, 8.507059e+37 }
  0xb8   :  { %v4286_v51 = vpop.eup %4285 }
  0xb9   :  { %v646_v53 = vadd.f32 1.0, %v4286_v51  ;;  %v659_v51 = vor.u32 1.1754944e-38, %v658_v62 }
  0xba   :  { %v4288_v59 = vpop.eup %4287 }
  0xbb   :  { %v4290_v22 = vpop.eup %4289  ;;  %v648_v47 = vmul.f32 %v4288_v59, %v644_v46  ;;  %4291 = vrcp.f32 %v646_v53  ;;  %vm653_vm0 = vweird.f32 %v4288_v59  ;;  %vm682_vm9 = vweird.f32 %v646_v53 }
  0xbc   :  { %v663_v56 = vmul.f32 %v4290_v22, %v645_v54  ;;  %4293 = vtanh.f32 %v634_v60  ;;  %vm668_vm1 = vweird.f32 %v4290_v22  ;;  %vm654_vm4 = vmor %vm652_vm2, %vm653_vm0  ;;  %v688_v54 = vand.u32 2147483648, %v646_v53 }
  0xbd   :  { %v649_v63 = vsub.f32 1.0, %v648_v47  ;;  %vm669_vm6 = vmor %vm667_vm3, %vm668_vm1 }
  0xbe   :  { %v664_v0 = vsub.f32 1.0, %v663_v56  ;;  %v689_v62 = vor.u32 1.1754944e-38, %v688_v54 }
  0xbf   :  { %v650_v5 = vmul.f32 %v4288_v59, %v649_v63 }
  0xc0   :  { %v665_v49 = vmul.f32 %v4290_v22, %v664_v0 }
  0xc1   :  { %v4292_v57 = vpop.eup %4291  ;;  %v651_v55 = vadd.f32 %v4288_v59, %v650_v5 }
  0xc2   :  { %v678_v48 = vmul.f32 %v4292_v57, %v646_v53  ;;  %v666_v52 = vadd.f32 %v4290_v22, %v665_v49  ;;  %v4294_v60 = vpop.eup %4293  ;;  %vm683_vm8 = vweird.f32 %v4292_v57  ;;  %v8192_v49 = vld [vmem:[#allocation34_spill] sm:$0xff] }
  0xc3   :  { %v655_v47 = vsel %vm654_vm4, %v4288_v59, %v651_v55  ;;  %v686_v59 = vand.u32 2147483647, %v646_v53  ;;  %vm684_vm10 = vmor %vm682_vm9, %vm683_vm8  ;;  %v46_v53 = vld [vmem:[%s7724_s0 + $0x68] sm:$0xff] }
  0xc4   :  { %v679_v56 = vsub.f32 1.0, %v678_v48  ;;  %v660_v63 = vsel %vm657_vm5, %v659_v51, %v655_v47  ;;  %v670_v45 = vsel %vm669_vm6, %v4290_v22, %v666_v52  ;;  %v8193_v48 = vld [vmem:[#allocation35_spill] sm:$0xff] }
  0xc5   :  { %v675_v0 = vsel %vm672_vm7, %v674_v58, %v670_v45  ;;  %v694_v44 = vmul.f32 %v4294_v60, %v660_v63  ;;  %vm687_vm11 = vcmp.eq.f32.partialorder %v686_v59, 8.507059e+37  ;;  %v8194_v63 = vld [vmem:[#allocation36_spill] sm:$0xff]  ;;  %v49_v59 = vld [vmem:[%s7724_s0 + $0x80] sm:$0xff] }
  0xc6   :  { %v693_v43 = vmul.f32 0.0, %v675_v0  ;;  %v680_v42 = vmul.f32 %v4292_v57, %v679_v56 }
  0xc8   :  { %v5416_v5 = vadd.f32 %v694_v44, %v693_v43  ;;  %v681_v46 = vadd.f32 %v4292_v57, %v680_v42  ;;  %v43_v42 = vld [vmem:[%s7724_s0 + $0x50] sm:$0xff]  ;;  %v65_v43 = vpop.permute.xlu0 %64 }
  0xc9   :  { %v8190_v44 = vld [vmem:[#allocation32_spill] sm:$0xff]  ;;  %v192_v0 = vmul.f32 %v8194_v63, %v65_v43 }
  0xca   :  { %4295 = vtanh.f32 %v5416_v5  ;;  %v685_v39 = vsel %vm684_vm10, %v4292_v57, %v681_v46  ;;  %v190_v45 = vmul.f32 %v8190_v44, %v65_v43  ;;  %v8191_v57 = vld [vmem:[#allocation33_spill] sm:$0xff] }
  0xcb   :  { %v690_v22 = vsel %vm687_vm11, %v689_v62, %v685_v39  ;;  %v191_v58 = vmul.f32 %v8191_v57, %v65_v43  ;;  %v8195_v39 = vld [vmem:[#allocation37_spill] sm:$0xff] }
  0xcc   :  { %v295_v55 = vadd.f32 %v8192_v49, %v190_v45  ;;  %v297_v62 = vadd.f32 %v8195_v39, %v192_v0 }
  0xcd   :  { %v296_v51 = vadd.f32 %v8193_v48, %v191_v58 }
  0xd0   :  { %v4296_v61 = vpop.eup %4295 }
  0xd1   :  { %v697_v50 = vmul.f32 %v4296_v61, %v690_v22 }
  0xd3   :  { %719 = vmatmul.f32.vlgmr.msrb.gmra.mxu0 %v697_v50  ;;  %739 = vmatmul.f32.vlgmr.msrb.gmra.mxu1 %v697_v50 }
  0xd4   :  { %759 = vmatmul.f32.vlgmr.msrb.gmra.mxu2 %v697_v50  ;;  %779 = vmatmul.f32.vlgmr.msrb.gmra.mxu3 %v697_v50 }
  0xd5   :  { %1007 = vmatpush.msrb.mxu0 %v5039_v1  ;;  %1027 = vmatpush.msrb.mxu1 %v5041_v2  ;;  %v8164_v1 = vld [vmem:[#allocation6_spill] sm:$0xff]  ;;  %v8165_v2 = vld [vmem:[#allocation7_spill] sm:$0xff] }
  0xd6   :  { %1047 = vmatpush.msrb.mxu2 %v5043_v3  ;;  %1067 = vmatpush.msrb.mxu3 %v5047_v4  ;;  %v8166_v3 = vld [vmem:[#allocation8_spill] sm:$0xff]  ;;  %v8167_v4 = vld [vmem:[#allocation9_spill] sm:$0xff] }
  0xd7   :  { %1008 = vmatpush.msrb.mxu0 %v5052_v6  ;;  %1028 = vmatpush.msrb.mxu1 %v5056_v7  ;;  %v8168_v6 = vld [vmem:[#allocation10_spill] sm:$0xff]  ;;  %v8169_v7 = vld [vmem:[#allocation11_spill] sm:$0xff] }
  0xd8   :  { %1048 = vmatpush.msrb.mxu2 %v5058_v8  ;;  %1068 = vmatpush.msrb.mxu3 %v5060_v9  ;;  %v8170_v8 = vld [vmem:[#allocation12_spill] sm:$0xff]  ;;  %v8171_v9 = vld [vmem:[#allocation13_spill] sm:$0xff] }
  0xd9   :  { %1009 = vmatpush.msrb.mxu0 %v5063_v10  ;;  %1029 = vmatpush.msrb.mxu1 %v5065_v11  ;;  %v8172_v10 = vld [vmem:[#allocation14_spill] sm:$0xff]  ;;  %v8173_v11 = vld [vmem:[#allocation15_spill] sm:$0xff] }
  0xda   :  { %1049 = vmatpush.msrb.mxu2 %v5067_v12  ;;  %1069 = vmatpush.msrb.mxu3 %v5071_v13  ;;  %v8174_v12 = vld [vmem:[#allocation16_spill] sm:$0xff]  ;;  %v8175_v13 = vld [vmem:[#allocation17_spill] sm:$0xff] }
  0xdb   :  { %1010 = vmatpush.msrb.mxu0 %v5073_v14  ;;  %1030 = vmatpush.msrb.mxu1 %v5077_v15  ;;  %v8176_v14 = vld [vmem:[#allocation18_spill] sm:$0xff]  ;;  %v8177_v15 = vld [vmem:[#allocation19_spill] sm:$0xff] }
  0xdc   :  { %1050 = vmatpush.msrb.mxu2 %v5079_v16  ;;  %1070 = vmatpush.msrb.mxu3 %v5083_v17  ;;  %v8178_v16 = vld [vmem:[#allocation20_spill] sm:$0xff]  ;;  %v8179_v17 = vld [vmem:[#allocation21_spill] sm:$0xff] }
  0xdd   :  { %1011 = vmatpush.msrb.mxu0 %v5085_v18  ;;  %1031 = vmatpush.msrb.mxu1 %v5089_v19  ;;  %v8180_v18 = vld [vmem:[#allocation22_spill] sm:$0xff]  ;;  %v8181_v19 = vld [vmem:[#allocation23_spill] sm:$0xff] }
  0xde   :  { %1051 = vmatpush.msrb.mxu2 %v5091_v20  ;;  %1071 = vmatpush.msrb.mxu3 %v5095_v21  ;;  %v8182_v20 = vld [vmem:[#allocation24_spill] sm:$0xff]  ;;  %v8183_v21 = vld [vmem:[#allocation25_spill] sm:$0xff] }
  0xdf   :  { %1012 = vmatpush.msrb.mxu0 %v5102_v23  ;;  %1032 = vmatpush.msrb.mxu1 %v5104_v24  ;;  %v8184_v23 = vld [vmem:[#allocation26_spill] sm:$0xff]  ;;  %v8185_v24 = vld [vmem:[#allocation27_spill] sm:$0xff] }
  0xe0   :  { %1052 = vmatpush.msrb.mxu2 %v5108_v25  ;;  %1072 = vmatpush.msrb.mxu3 %v5110_v26  ;;  %v8186_v25 = vld [vmem:[#allocation28_spill] sm:$0xff]  ;;  %v8187_v26 = vld [vmem:[#allocation29_spill] sm:$0xff] }
  0xe1   :  { %1013 = vmatpush.msrb.mxu0 %v5113_v27  ;;  %1033 = vmatpush.msrb.mxu1 %v5115_v28  ;;  %v8188_v27 = vld [vmem:[#allocation30_spill] sm:$0xff]  ;;  %v8189_v28 = vld [vmem:[#allocation31_spill] sm:$0xff] }
  0xe2   :  { %1053 = vmatpush.msrb.mxu2 %v5119_v29  ;;  %1073 = vmatpush.msrb.mxu3 %v5121_v30  ;;  %v36_v29 = vld [vmem:[%s7724_s0 + $0x18] sm:$0xff] }
  0xe3   :  { %1014 = vmatpush.msrb.mxu0 %v5125_v31  ;;  %1034 = vmatpush.msrb.mxu1 %v5127_v32  ;;  %v40_v30 = vld [vmem:[%s7724_s0 + $0x38] sm:$0xff] }
  0xe4   :  { %1054 = vmatpush.msrb.mxu2 %v5131_v33  ;;  %1074 = vmatpush.msrb.mxu3 %v5133_v34 }
  0xe5   :  { %1015 = vmatpush.msrb.mxu0 %v5137_v35  ;;  %1035 = vmatpush.msrb.mxu1 %v5139_v36 }
  0xe6   :  { %1055 = vmatpush.msrb.mxu2 %v5143_v37  ;;  %1075 = vmatpush.msrb.mxu3 %v5145_v38 }
  0xe7   :  { %1016 = vmatpush.msrb.mxu0 %v5152_v40  ;;  %1036 = vmatpush.msrb.mxu1 %v5156_v41 }
  0xe8   :  { %1056 = vmatpush.msrb.mxu2 %v8164_v1  ;;  %1076 = vmatpush.msrb.mxu3 %v8165_v2 }
  0xe9   :  { %1017 = vmatpush.msrb.mxu0 %v8166_v3  ;;  %1037 = vmatpush.msrb.mxu1 %v8167_v4 }
  0xea   :  { %1057 = vmatpush.msrb.mxu2 %v8168_v6  ;;  %1077 = vmatpush.msrb.mxu3 %v8169_v7 }
  0xeb   :  { %1018 = vmatpush.msrb.mxu0 %v8170_v8  ;;  %1038 = vmatpush.msrb.mxu1 %v8171_v9 }
  0xec   :  { %1058 = vmatpush.msrb.mxu2 %v8172_v10  ;;  %1078 = vmatpush.msrb.mxu3 %v8173_v11 }
  0xed   :  { %1019 = vmatpush.msrb.mxu0 %v8174_v12  ;;  %1039 = vmatpush.msrb.mxu1 %v8175_v13 }
  0xee   :  { %1059 = vmatpush.msrb.mxu2 %v8176_v14  ;;  %1079 = vmatpush.msrb.mxu3 %v8177_v15 }
  0xef   :  { %1020 = vmatpush.msrb.mxu0 %v8178_v16  ;;  %1040 = vmatpush.msrb.mxu1 %v8179_v17 }
  0xf0   :  { %1060 = vmatpush.msrb.mxu2 %v8180_v18  ;;  %1080 = vmatpush.msrb.mxu3 %v8181_v19 }
  0xf1   :  { %1021 = vmatpush.msrb.mxu0 %v8182_v20  ;;  %1041 = vmatpush.msrb.mxu1 %v8183_v21 }
  0xf2   :  { %1061 = vmatpush.msrb.mxu2 %v8184_v23  ;;  %1081 = vmatpush.msrb.mxu3 %v8185_v24 }
  0xf3   :  { %1022 = vmatpush.msrb.mxu0 %v8186_v25  ;;  %1042 = vmatpush.msrb.mxu1 %v8187_v26 }
  0xf4   :  { %1062 = vmatpush.msrb.mxu2 %v8188_v27  ;;  %1082 = vmatpush.msrb.mxu3 %v8189_v28 }
  0xf5   :  { %74 = vperm.xlu1 %4279, %v36_v29   ;;  %v52_v29 = vld [vmem:[%s7724_s0 + $0x98] sm:$0xff] }
  0xfd   :  { %94 = vperm.xlu1 %4279, %v40_v30  }
 0x105   :  { %109 = vperm.xlu1 %4279, %v43_v42  }
 0x10d   :  { %124 = vperm.xlu1 %4279, %v46_v53   ;;  %v8196_v53 = vld [vmem:[#allocation38_spill] sm:$0xff] }
 0x115   :  { %139 = vperm.xlu1 %4279, %v49_v59  }
 0x11d   :  { %154 = vperm.xlu1 %4279, %v52_v29  }
 0x150   :  { %v720_v52 = vpop.f32.mrf.mxu0  ;;  %v740_v47 = vpop.f32.mrf.mxu1 }
 0x151   :  { %v783_v60 = vadd.f32 %v720_v52, %v295_v55  ;;  %v784_v56 = vadd.f32 %v740_v47, %v296_v51  ;;  %v193_v55 = vmul.f32 %v8196_v53, %v65_v43  ;;  %v8197_v47 = vld [vmem:[#allocation39_spill] sm:$0xff] }
 0x153   :  { %v4204_v46 = vmul.f32 -1.442695, %v783_v60  ;;  %v4205_v54 = vmul.f32 -1.442695, %v784_v56  ;;  %v298_v60 = vadd.f32 %v8197_v47, %v193_v55  ;;  %v55_v56 = vld [vmem:[%s7724_s0 + $0xb0] sm:$0xff] }
 0x154   :  { %169 = vperm.xlu1 %4279, %v55_v56  }
 0x155   :  { %4297 = vpow2.f32 %v4204_v46 }
 0x156   :  { %4299 = vpow2.f32 %v4205_v54 }
 0x157   :  { %v760_v61 = vpop.f32.mrf.mxu2  ;;  %v780_v51 = vpop.f32.mrf.mxu3 }
 0x158   :  { %v785_v22 = vadd.f32 %v760_v61, %v297_v62  ;;  %v786_v54 = vadd.f32 %v780_v51, %v298_v60 }
 0x15a   :  { %v4206_v50 = vmul.f32 -1.442695, %v785_v22 }
 0x15b   :  { %v4298_v30 = vpop.eup %4297 }
 0x15c   :  { %v4300_v42 = vpop.eup %4299  ;;  %v796_v45 = vadd.f32 1.0, %v4298_v30  ;;  %4301 = vpow2.f32 %v4206_v50 }
 0x15d   :  { %v797_v58 = vadd.f32 1.0, %v4300_v42 }
 0x15e   :  { %4303 = vrcp.f32 %v796_v45  ;;  %v810_v43 = vand.u32 2147483648, %v796_v45  ;;  %v808_v42 = vand.u32 2147483647, %v796_v45  ;;  %vm804_vm14 = vweird.f32 %v796_v45 }
 0x15f   :  { %4305 = vrcp.f32 %v797_v58  ;;  %v825_v29 = vand.u32 2147483648, %v797_v58  ;;  %v823_v47 = vand.u32 2147483647, %v797_v58  ;;  %vm819_vm15 = vweird.f32 %v797_v58 }
 0x160   :  { %v811_v60 = vor.u32 1.1754944e-38, %v810_v43  ;;  %vm809_vm2 = vcmp.eq.f32.partialorder %v808_v42, 8.507059e+37 }
 0x161   :  { %vm824_vm3 = vcmp.eq.f32.partialorder %v823_v47, 8.507059e+37 }
 0x162   :  { %v4302_v52 = vpop.eup %4301 }
 0x163   :  { %v798_v0 = vadd.f32 1.0, %v4302_v52 }
 0x164   :  { %v4304_v46 = vpop.eup %4303 }
 0x165   :  { %v4306_v59 = vpop.eup %4305  ;;  %v800_v62 = vmul.f32 %v4304_v46, %v796_v45  ;;  %4307 = vrcp.f32 %v798_v0  ;;  %vm805_vm12 = vweird.f32 %v4304_v46  ;;  %v840_v43 = vand.u32 2147483648, %v798_v0 }
 0x166   :  { %v815_v61 = vmul.f32 %v4306_v59, %v797_v58  ;;  %4309 = vtanh.f32 %v786_v54  ;;  %vm820_vm13 = vweird.f32 %v4306_v59  ;;  %vm806_vm0 = vmor %vm804_vm14, %vm805_vm12  ;;  %vm834_vm5 = vweird.f32 %v798_v0 }
 0x167   :  { %v801_v22 = vsub.f32 1.0, %v800_v62  ;;  %vm821_vm1 = vmor %vm819_vm15, %vm820_vm13  ;;  %v826_v62 = vor.u32 1.1754944e-38, %v825_v29  ;;  %v841_v42 = vor.u32 1.1754944e-38, %v840_v43  ;;  %v5570_v43 = vld [vmem:[#allocation3 + $0x170] sm:$0xff] }
 0x168   :  { %v816_v50 = vsub.f32 1.0, %v815_v61 }
 0x169   :  { %v802_v30 = vmul.f32 %v4304_v46, %v801_v22 }
 0x16a   :  { %v817_v55 = vmul.f32 %v4306_v59, %v816_v50 }
 0x16b   :  { %v4308_v53 = vpop.eup %4307  ;;  %v803_v52 = vadd.f32 %v4304_v46, %v802_v30 }
 0x16c   :  { %v830_v51 = vmul.f32 %v4308_v53, %v798_v0  ;;  %v818_v56 = vadd.f32 %v4306_v59, %v817_v55  ;;  %v4310_v54 = vpop.eup %4309  ;;  %vm835_vm4 = vweird.f32 %v4308_v53  ;;  %v5534_v55 = vld [vmem:[#allocation3 + $0x1d0] sm:$0xff] }
 0x16d   :  { %v807_v61 = vsel %vm806_vm0, %v4304_v46, %v803_v52  ;;  %v838_v46 = vand.u32 2147483647, %v798_v0  ;;  %vm836_vm6 = vmor %vm834_vm5, %vm835_vm4  ;;  %v5531_v0 = vld [vmem:[#allocation3 + $0x1c8] sm:$0xff]  ;;  %v5537_v52 = vld [vmem:[#allocation3 + $0x1d8] sm:$0xff] }
 0x16e   :  { %v831_v39 = vsub.f32 1.0, %v830_v51  ;;  %v812_v22 = vsel %vm809_vm2, %v811_v60, %v807_v61  ;;  %v822_v63 = vsel %vm821_vm1, %v4306_v59, %v818_v56  ;;  %v5540_v51 = vld [vmem:[#allocation3 + $0x1a0] sm:$0xff]  ;;  %v5543_v60 = vld [vmem:[#allocation3 + $0x1a8] sm:$0xff]  ;;  %v5546_v56 = vld [vmem:[#allocation3 + $0x1b0] sm:$0xff] }
 0x16f   :  { %v827_v50 = vsel %vm824_vm3, %v826_v62, %v822_v63  ;;  %v846_v48 = vmul.f32 %v4310_v54, %v812_v22  ;;  %vm839_vm7 = vcmp.eq.f32.partialorder %v838_v46, 8.507059e+37  ;;  %v5549_v62 = vld [vmem:[#allocation3 + $0x1b8] sm:$0xff]  ;;  %v5552_v61 = vld [vmem:[#allocation3 + $0x180] sm:$0xff]  ;;  %v5555_v54 = vld [vmem:[#allocation3 + $0x188] sm:$0xff] }
 0x170   :  { %v845_v49 = vmul.f32 %v827_v50, %v5416_v5  ;;  %v832_v30 = vmul.f32 %v4308_v53, %v831_v39  ;;  %v5516_v5 = vld [vmem:[#allocation3 + $0x1e0] sm:$0xff]  ;;  %v5525_v39 = vld [vmem:[#allocation3 + $0x1f8] sm:$0xff]  ;;  %v5558_v22 = vld [vmem:[#allocation3 + $0x190] sm:$0xff] }
 0x171   :  { %v5561_v50 = vld [vmem:[#allocation3 + $0x198] sm:$0xff] }
 0x172   :  { %v5513_v45 = vadd.f32 %v846_v48, %v845_v49  ;;  %v833_v58 = vadd.f32 %v4308_v53, %v832_v30  ;;  %v5519_v49 = vld [vmem:[#allocation3 + $0x1e8] sm:$0xff]  ;;  %v5522_v48 = vld [vmem:[#allocation3 + $0x1f0] sm:$0xff]  ;;  %v5564_v30 = vld [vmem:[#allocation3 + $0x160] sm:$0xff] }
 0x173   :  { %v5573_v46 = vld [vmem:[#allocation3 + $0x178] sm:$0xff] }
 0x174   :  { %4311 = vtanh.f32 %v5513_v45  ;;  %v837_v29 = vsel %vm836_vm6, %v4308_v53, %v833_v58  ;;  %v5528_v53 = vld [vmem:[#allocation3 + $0x1c0] sm:$0xff]  ;;  %v5567_v58 = vld [vmem:[#allocation3 + $0x168] sm:$0xff]  ;;  %8198 = vst [vmem:[#allocation6_spill] sm:$0xff] %v5573_v46 }
 0x175   :  { %v842_v47 = vsel %vm839_vm7, %v841_v42, %v837_v29  ;;  %v5576_v29 = vld [vmem:[#allocation3 + $0x140] sm:$0xff]  ;;  %v5579_v42 = vld [vmem:[#allocation3 + $0x148] sm:$0xff] }
 0x176   :  { %8199 = vst [vmem:[#allocation7_spill] sm:$0xff] %v5576_v29 }
 0x177   :  { %8200 = vst [vmem:[#allocation8_spill] sm:$0xff] %v5579_v42 }
 0x17a   :  { %v4312_v59 = vpop.eup %4311 }
 0x17b   :  { %v849_v63 = vmul.f32 %v4312_v59, %v842_v47  ;;  %v5582_v59 = vld [vmem:[#allocation3 + $0x150] sm:$0xff]  ;;  %v5585_v47 = vld [vmem:[#allocation3 + $0x158] sm:$0xff] }
 0x17d   :  { %871 = vmatmul.f32.vlgmr.msra.gmra.mxu0 %v849_v63  ;;  %891 = vmatmul.f32.vlgmr.msra.gmra.mxu1 %v849_v63 }
 0x17e   :  { %911 = vmatmul.f32.vlgmr.msra.gmra.mxu2 %v849_v63  ;;  %931 = vmatmul.f32.vlgmr.msra.gmra.mxu3 %v849_v63  ;;  %v5588_v63 = vld [vmem:[#allocation3 + $0x120] sm:$0xff] }
 0x17f   :  { %1159 = vmatpush.msra.mxu0 %v5516_v5  ;;  %1179 = vmatpush.msra.mxu1 %v5519_v49 }
 0x180   :  { %1199 = vmatpush.msra.mxu2 %v5522_v48  ;;  %1219 = vmatpush.msra.mxu3 %v5525_v39 }
 0x181   :  { %1160 = vmatpush.msra.mxu0 %v5528_v53  ;;  %1180 = vmatpush.msra.mxu1 %v5531_v0 }
 0x182   :  { %1200 = vmatpush.msra.mxu2 %v5534_v55  ;;  %1220 = vmatpush.msra.mxu3 %v5537_v52 }
 0x183   :  { %1161 = vmatpush.msra.mxu0 %v5540_v51  ;;  %1181 = vmatpush.msra.mxu1 %v5543_v60 }
 0x184   :  { %1201 = vmatpush.msra.mxu2 %v5546_v56  ;;  %1221 = vmatpush.msra.mxu3 %v5549_v62 }
 0x185   :  { %1162 = vmatpush.msra.mxu0 %v5552_v61  ;;  %1182 = vmatpush.msra.mxu1 %v5555_v54 }
 0x186   :  { %1202 = vmatpush.msra.mxu2 %v5558_v22  ;;  %1222 = vmatpush.msra.mxu3 %v5561_v50 }
 0x187   :  { %1163 = vmatpush.msra.mxu0 %v5564_v30  ;;  %1183 = vmatpush.msra.mxu1 %v5567_v58 }
 0x188   :  { %1203 = vmatpush.msra.mxu2 %v5570_v43  ;;  %1223 = vmatpush.msra.mxu3 %v5573_v46  ;;  %v5591_v46 = vld [vmem:[#allocation3 + $0x128] sm:$0xff] }
 0x189   :  { %1164 = vmatpush.msra.mxu0 %v5576_v29  ;;  %1184 = vmatpush.msra.mxu1 %v5579_v42  ;;  %v5594_v29 = vld [vmem:[#allocation3 + $0x130] sm:$0xff]  ;;  %v5597_v42 = vld [vmem:[#allocation3 + $0x138] sm:$0xff] }
 0x18a   :  { %1204 = vmatpush.msra.mxu2 %v5582_v59  ;;  %1224 = vmatpush.msra.mxu3 %v5585_v47 }
 0x18b   :  { %1165 = vmatpush.msra.mxu0 %v5588_v63  ;;  %1185 = vmatpush.msra.mxu1 %v5591_v46 }
 0x18c   :  { %1205 = vmatpush.msra.mxu2 %v5594_v29  ;;  %1225 = vmatpush.msra.mxu3 %v5597_v42 }
 0x18d   :  { %1166 = vmatpush.msra.mxu0 %v5125_v31  ;;  %1186 = vmatpush.msra.mxu1 %v5127_v32  ;;  %v70_v31 = vpop.permute.xlu1 %69 }
 0x18e   :  { %1206 = vmatpush.msra.mxu2 %v5131_v33  ;;  %1226 = vmatpush.msra.mxu3 %v5133_v34  ;;  %v194_v32 = vmul.f32 %v8190_v44, %v70_v31  ;;  %v195_v33 = vmul.f32 %v8191_v57, %v70_v31  ;;  %v8201_v34 = vld [vmem:[#allocation34_spill] sm:$0xff] }
 0x18f   :  { %1167 = vmatpush.msra.mxu0 %v5137_v35  ;;  %1187 = vmatpush.msra.mxu1 %v5139_v36  ;;  %v8202_v36 = vld [vmem:[#allocation35_spill] sm:$0xff] }
 0x190   :  { %1207 = vmatpush.msra.mxu2 %v5143_v37  ;;  %1227 = vmatpush.msra.mxu3 %v5145_v38  ;;  %v299_v35 = vadd.f32 %v8201_v34, %v194_v32  ;;  %v300_v37 = vadd.f32 %v8202_v36, %v195_v33 }
 0x191   :  { %1168 = vmatpush.msra.mxu0 %v5152_v40  ;;  %1188 = vmatpush.msra.mxu1 %v5156_v41 }
 0x192   :  { %1208 = vmatpush.msra.mxu2 %v8164_v1  ;;  %1228 = vmatpush.msra.mxu3 %v8165_v2  ;;  %v8203_v2 = vld [vmem:[#allocation36_spill] sm:$0xff] }
 0x193   :  { %1169 = vmatpush.msra.mxu0 %v8166_v3  ;;  %1189 = vmatpush.msra.mxu1 %v8167_v4  ;;  %v196_v3 = vmul.f32 %v8203_v2, %v70_v31 }
 0x194   :  { %1209 = vmatpush.msra.mxu2 %v8168_v6  ;;  %1229 = vmatpush.msra.mxu3 %v8169_v7  ;;  %v8204_v7 = vld [vmem:[#allocation37_spill] sm:$0xff] }
 0x195   :  { %1170 = vmatpush.msra.mxu0 %v8170_v8  ;;  %1190 = vmatpush.msra.mxu1 %v8171_v9  ;;  %v301_v8 = vadd.f32 %v8204_v7, %v196_v3 }
 0x196   :  { %1210 = vmatpush.msra.mxu2 %v8172_v10  ;;  %1230 = vmatpush.msra.mxu3 %v8173_v11 }
 0x197   :  { %1171 = vmatpush.msra.mxu0 %v8174_v12  ;;  %1191 = vmatpush.msra.mxu1 %v8175_v13 }
 0x198   :  { %1211 = vmatpush.msra.mxu2 %v8176_v14  ;;  %1231 = vmatpush.msra.mxu3 %v8177_v15 }
 0x199   :  { %1172 = vmatpush.msra.mxu0 %v8178_v16  ;;  %1192 = vmatpush.msra.mxu1 %v8179_v17  ;;  %v8205_v16 = vld [vmem:[#allocation38_spill] sm:$0xff] }
 0x19a   :  { %1212 = vmatpush.msra.mxu2 %v8180_v18  ;;  %1232 = vmatpush.msra.mxu3 %v8181_v19  ;;  %v197_v17 = vmul.f32 %v8205_v16, %v70_v31 }
 0x19b   :  { %1173 = vmatpush.msra.mxu0 %v8182_v20  ;;  %1193 = vmatpush.msra.mxu1 %v8183_v21  ;;  %v8206_v20 = vld [vmem:[#allocation39_spill] sm:$0xff] }
 0x19c   :  { %1213 = vmatpush.msra.mxu2 %v8184_v23  ;;  %1233 = vmatpush.msra.mxu3 %v8185_v24  ;;  %v302_v21 = vadd.f32 %v8206_v20, %v197_v17 }
 0x19d   :  { %1174 = vmatpush.msra.mxu0 %v8186_v25  ;;  %1194 = vmatpush.msra.mxu1 %v8187_v26 }
 0x19e   :  { %1214 = vmatpush.msra.mxu2 %v8188_v27  ;;  %1234 = vmatpush.msra.mxu3 %v8189_v28 }
 0x1fa   :  { %v872_v38 = vpop.f32.mrf.mxu0  ;;  %v892_v40 = vpop.f32.mrf.mxu1 }
 0x1fb   :  { %v935_v41 = vadd.f32 %v872_v38, %v299_v35  ;;  %v936_v1 = vadd.f32 %v892_v40, %v300_v37 }
 0x1fd   :  { %v4207_v4 = vmul.f32 -1.442695, %v935_v41  ;;  %v4208_v6 = vmul.f32 -1.442695, %v936_v1 }
 0x1ff   :  { %4313 = vpow2.f32 %v4207_v4 }
 0x200   :  { %4315 = vpow2.f32 %v4208_v6 }
 0x201   :  { %v912_v9 = vpop.f32.mrf.mxu2  ;;  %v932_v18 = vpop.f32.mrf.mxu3 }
 0x202   :  { %v937_v10 = vadd.f32 %v912_v9, %v301_v8  ;;  %v938_v25 = vadd.f32 %v932_v18, %v302_v21 }
 0x204   :  { %v4209_v11 = vmul.f32 -1.442695, %v937_v10 }
 0x205   :  { %v4314_v12 = vpop.eup %4313 }
 0x206   :  { %v4316_v13 = vpop.eup %4315  ;;  %v948_v14 = vadd.f32 1.0, %v4314_v12  ;;  %4317 = vpow2.f32 %v4209_v11 }
 0x207   :  { %v949_v15 = vadd.f32 1.0, %v4316_v13 }
 0x208   :  { %4319 = vrcp.f32 %v948_v14  ;;  %v962_v35 = vand.u32 2147483648, %v948_v14  ;;  %v960_v31 = vand.u32 2147483647, %v948_v14  ;;  %vm956_vm10 = vweird.f32 %v948_v14 }
 0x209   :  { %4321 = vrcp.f32 %v949_v15  ;;  %v977_v37 = vand.u32 2147483648, %v949_v15  ;;  %v975_v41 = vand.u32 2147483647, %v949_v15  ;;  %vm971_vm11 = vweird.f32 %v949_v15 }
 0x20a   :  { %v963_v6 = vor.u32 1.1754944e-38, %v962_v35  ;;  %vm961_vm14 = vcmp.eq.f32.partialorder %v960_v31, 8.507059e+37  ;;  %v5679_v31 = vld [vmem:[#allocation3 + $0x108] sm:$0xff] }
 0x20b   :  { %v978_v9 = vor.u32 1.1754944e-38, %v977_v37  ;;  %vm976_vm15 = vcmp.eq.f32.partialorder %v975_v41, 8.507059e+37  ;;  %v8209_v37 = vld [vmem:[#allocation8_spill] sm:$0xff]  ;;  %v5685_v41 = vld [vmem:[#allocation3 + $0x118] sm:$0xff] }
 0x20c   :  { %v4318_v19 = vpop.eup %4317 }
 0x20d   :  { %v950_v23 = vadd.f32 1.0, %v4318_v19 }
 0x20e   :  { %v4320_v24 = vpop.eup %4319 }
 0x20f   :  { %v4322_v26 = vpop.eup %4321  ;;  %v952_v27 = vmul.f32 %v4320_v24, %v948_v14  ;;  %4323 = vrcp.f32 %v950_v23  ;;  %vm957_vm8 = vweird.f32 %v4320_v24  ;;  %vm986_vm1 = vweird.f32 %v950_v23 }
 0x210   :  { %v967_v28 = vmul.f32 %v4322_v26, %v949_v15  ;;  %4325 = vtanh.f32 %v938_v25  ;;  %vm972_vm9 = vweird.f32 %v4322_v26  ;;  %vm958_vm12 = vmor %vm956_vm10, %vm957_vm8 }
 0x211   :  { %v953_v32 = vsub.f32 1.0, %v952_v27  ;;  %vm973_vm13 = vmor %vm971_vm11, %vm972_vm9  ;;  %v992_v27 = vand.u32 2147483648, %v950_v23 }
 0x212   :  { %v968_v33 = vsub.f32 1.0, %v967_v28 }
 0x213   :  { %v954_v38 = vmul.f32 %v4320_v24, %v953_v32  ;;  %v993_v32 = vor.u32 1.1754944e-38, %v992_v27  ;;  %v5736_v27 = vld [vmem:[#allocation3 + $0x60] sm:$0xff] }
 0x214   :  { %v969_v40 = vmul.f32 %v4322_v26, %v968_v33  ;;  %8220 = vst [vmem:[#allocation19_spill] sm:$0xff] %v5736_v27 }
 0x215   :  { %v4324_v1 = vpop.eup %4323  ;;  %v955_v3 = vadd.f32 %v4320_v24, %v954_v38  ;;  %v5676_v38 = vld [vmem:[#allocation3 + $0x100] sm:$0xff] }
 0x216   :  { %v982_v4 = vmul.f32 %v4324_v1, %v950_v23  ;;  %v970_v8 = vadd.f32 %v4322_v26, %v969_v40  ;;  %v4326_v11 = vpop.eup %4325  ;;  %vm987_vm0 = vweird.f32 %v4324_v1  ;;  %v5682_v40 = vld [vmem:[#allocation3 + $0x110] sm:$0xff] }
 0x217   :  { %v959_v10 = vsel %vm958_vm12, %v4320_v24, %v955_v3  ;;  %v990_v24 = vand.u32 2147483647, %v950_v23  ;;  %vm988_vm2 = vmor %vm986_vm1, %vm987_vm0  ;;  %v8208_v23 = vld [vmem:[#allocation7_spill] sm:$0xff] }
 0x218   :  { %v983_v12 = vsub.f32 1.0, %v982_v4  ;;  %v964_v13 = vsel %vm961_vm14, %v963_v6, %v959_v10  ;;  %v974_v17 = vsel %vm973_vm13, %v4322_v26, %v970_v8  ;;  %v5691_v3 = vld [vmem:[#allocation3 + $0xe8] sm:$0xff]  ;;  %v5694_v4 = vld [vmem:[#allocation3 + $0xf0] sm:$0xff]  ;;  %v5697_v6 = vld [vmem:[#allocation3 + $0xf8] sm:$0xff] }
 0x219   :  { %v979_v18 = vsel %vm976_vm15, %v978_v9, %v974_v17  ;;  %v998_v19 = vmul.f32 %v4326_v11, %v964_v13  ;;  %vm991_vm3 = vcmp.eq.f32.partialorder %v990_v24, 8.507059e+37  ;;  %v5700_v8 = vld [vmem:[#allocation3 + $0xc0] sm:$0xff]  ;;  %v5703_v9 = vld [vmem:[#allocation3 + $0xc8] sm:$0xff]  ;;  %v5706_v10 = vld [vmem:[#allocation3 + $0xd0] sm:$0xff] }
 0x21a   :  { %v997_v21 = vmul.f32 %v979_v18, %v5513_v45  ;;  %v984_v25 = vmul.f32 %v4324_v1, %v983_v12  ;;  %v8207_v45 = vld [vmem:[#allocation6_spill] sm:$0xff]  ;;  %8210 = vst [vmem:[#allocation9_spill] sm:$0xff] %v5706_v10  ;;  %v5709_v11 = vld [vmem:[#allocation3 + $0xd8] sm:$0xff]  ;;  %v5715_v13 = vld [vmem:[#allocation3 + $0xa8] sm:$0xff] }
 0x21b   :  { %8211 = vst [vmem:[#allocation10_spill] sm:$0xff] %v5709_v11  ;;  %v5712_v12 = vld [vmem:[#allocation3 + $0xa0] sm:$0xff]  ;;  %v5718_v17 = vld [vmem:[#allocation3 + $0xb0] sm:$0xff]  ;;  %v5721_v18 = vld [vmem:[#allocation3 + $0xb8] sm:$0xff] }
 0x21c   :  { %v5645_v14 = vadd.f32 %v998_v19, %v997_v21  ;;  %v985_v15 = vadd.f32 %v4324_v1, %v984_v25  ;;  %8212 = vst [vmem:[#allocation11_spill] sm:$0xff] %v5712_v12  ;;  %v5724_v19 = vld [vmem:[#allocation3 + $0x80] sm:$0xff]  ;;  %v5727_v21 = vld [vmem:[#allocation3 + $0x88] sm:$0xff]  ;;  %v5730_v25 = vld [vmem:[#allocation3 + $0x90] sm:$0xff] }
 0x21d   :  { %8213 = vst [vmem:[#allocation12_spill] sm:$0xff] %v5715_v13  ;;  %v5739_v24 = vld [vmem:[#allocation3 + $0x68] sm:$0xff] }
 0x21e   :  { %4327 = vtanh.f32 %v5645_v14  ;;  %v989_v28 = vsel %vm988_vm2, %v4324_v1, %v985_v15  ;;  %v5688_v1 = vld [vmem:[#allocation3 + $0xe0] sm:$0xff]  ;;  %8214 = vst [vmem:[#allocation13_spill] sm:$0xff] %v5718_v17  ;;  %v5733_v15 = vld [vmem:[#allocation3 + $0x98] sm:$0xff] }
 0x21f   :  { %v994_v33 = vsel %vm991_vm3, %v993_v32, %v989_v28  ;;  %8215 = vst [vmem:[#allocation14_spill] sm:$0xff] %v5721_v18  ;;  %v5742_v28 = vld [vmem:[#allocation3 + $0x70] sm:$0xff]  ;;  %v5745_v32 = vld [vmem:[#allocation3 + $0x78] sm:$0xff] }
 0x220   :  { %8216 = vst [vmem:[#allocation15_spill] sm:$0xff] %v5724_v19 }
 0x221   :  { %8217 = vst [vmem:[#allocation16_spill] sm:$0xff] %v5727_v21 }
 0x222   :  { %8218 = vst [vmem:[#allocation17_spill] sm:$0xff] %v5730_v25 }
 0x223   :  { %8219 = vst [vmem:[#allocation18_spill] sm:$0xff] %v5733_v15 }
 0x224   :  { %v4328_v26 = vpop.eup %4327  ;;  %8221 = vst [vmem:[#allocation20_spill] sm:$0xff] %v5739_v24 }
 0x225   :  { %v1001_v35 = vmul.f32 %v4328_v26, %v994_v33  ;;  %8222 = vst [vmem:[#allocation21_spill] sm:$0xff] %v5742_v28  ;;  %v5748_v26 = vld [vmem:[#allocation3 + $0x40] sm:$0xff]  ;;  %v5751_v33 = vld [vmem:[#allocation3 + $0x48] sm:$0xff] }
 0x226   :  { %8223 = vst [vmem:[#allocation22_spill] sm:$0xff] %v5745_v32 }
 0x227   :  { %1023 = vmatmul.f32.vlgmr.msrb.gmra.mxu0 %v1001_v35  ;;  %1043 = vmatmul.f32.vlgmr.msrb.gmra.mxu1 %v1001_v35  ;;  %8224 = vst [vmem:[#allocation23_spill] sm:$0xff] %v5748_v26 }
 0x228   :  { %1063 = vmatmul.f32.vlgmr.msrb.gmra.mxu2 %v1001_v35  ;;  %1083 = vmatmul.f32.vlgmr.msrb.gmra.mxu3 %v1001_v35  ;;  %8225 = vst [vmem:[#allocation24_spill] sm:$0xff] %v5751_v33  ;;  %v5754_v35 = vld [vmem:[#allocation3 + $0x50] sm:$0xff] }
 0x229   :  { %1311 = vmatpush.msrb.mxu0 %v5516_v5  ;;  %1331 = vmatpush.msrb.mxu1 %v5519_v49  ;;  %8226 = vst [vmem:[#allocation25_spill] sm:$0xff] %v5754_v35 }
 0x22a   :  { %1351 = vmatpush.msrb.mxu2 %v5522_v48  ;;  %1371 = vmatpush.msrb.mxu3 %v5525_v39 }
 0x22b   :  { %1312 = vmatpush.msrb.mxu0 %v5528_v53  ;;  %1332 = vmatpush.msrb.mxu1 %v5531_v0 }
 0x22c   :  { %1352 = vmatpush.msrb.mxu2 %v5534_v55  ;;  %1372 = vmatpush.msrb.mxu3 %v5537_v52 }
 0x22d   :  { %1313 = vmatpush.msrb.mxu0 %v5540_v51  ;;  %1333 = vmatpush.msrb.mxu1 %v5543_v60 }
 0x22e   :  { %1353 = vmatpush.msrb.mxu2 %v5546_v56  ;;  %1373 = vmatpush.msrb.mxu3 %v5549_v62 }
 0x22f   :  { %1314 = vmatpush.msrb.mxu0 %v5552_v61  ;;  %1334 = vmatpush.msrb.mxu1 %v5555_v54 }
 0x230   :  { %1354 = vmatpush.msrb.mxu2 %v5558_v22  ;;  %1374 = vmatpush.msrb.mxu3 %v5561_v50 }
 0x231   :  { %1315 = vmatpush.msrb.mxu0 %v5564_v30  ;;  %1335 = vmatpush.msrb.mxu1 %v5567_v58 }
 0x232   :  { %1355 = vmatpush.msrb.mxu2 %v5570_v43  ;;  %1375 = vmatpush.msrb.mxu3 %v8207_v45 }
 0x233   :  { %1316 = vmatpush.msrb.mxu0 %v8208_v23  ;;  %1336 = vmatpush.msrb.mxu1 %v8209_v37 }
 0x234   :  { %1356 = vmatpush.msrb.mxu2 %v5582_v59  ;;  %1376 = vmatpush.msrb.mxu3 %v5585_v47 }
 0x235   :  { %1317 = vmatpush.msrb.mxu0 %v5588_v63  ;;  %1337 = vmatpush.msrb.mxu1 %v5591_v46 }
 0x236   :  { %1357 = vmatpush.msrb.mxu2 %v5594_v29  ;;  %1377 = vmatpush.msrb.mxu3 %v5597_v42 }
 0x237   :  { %1318 = vmatpush.msrb.mxu0 %v5676_v38  ;;  %1338 = vmatpush.msrb.mxu1 %v5679_v31 }
 0x238   :  { %1358 = vmatpush.msrb.mxu2 %v5682_v40  ;;  %1378 = vmatpush.msrb.mxu3 %v5685_v41 }
 0x239   :  { %1319 = vmatpush.msrb.mxu0 %v5688_v1  ;;  %1339 = vmatpush.msrb.mxu1 %v5691_v3 }
 0x23a   :  { %1359 = vmatpush.msrb.mxu2 %v5694_v4  ;;  %1379 = vmatpush.msrb.mxu3 %v5697_v6 }
 0x23b   :  { %1320 = vmatpush.msrb.mxu0 %v5700_v8  ;;  %1340 = vmatpush.msrb.mxu1 %v5703_v9 }
 0x23c   :  { %1360 = vmatpush.msrb.mxu2 %v5706_v10  ;;  %1380 = vmatpush.msrb.mxu3 %v5709_v11 }
 0x23d   :  { %1321 = vmatpush.msrb.mxu0 %v5712_v12  ;;  %1341 = vmatpush.msrb.mxu1 %v5715_v13 }
 0x23e   :  { %1361 = vmatpush.msrb.mxu2 %v5718_v17  ;;  %1381 = vmatpush.msrb.mxu3 %v5721_v18 }
 0x23f   :  { %1322 = vmatpush.msrb.mxu0 %v5724_v19  ;;  %1342 = vmatpush.msrb.mxu1 %v5727_v21 }
 0x240   :  { %1362 = vmatpush.msrb.mxu2 %v5730_v25  ;;  %1382 = vmatpush.msrb.mxu3 %v5733_v15 }
 0x241   :  { %1323 = vmatpush.msrb.mxu0 %v5736_v27  ;;  %1343 = vmatpush.msrb.mxu1 %v5739_v24  ;;  %v5757_v24 = vld [vmem:[#allocation3 + $0x58] sm:$0xff] }
 0x242   :  { %1363 = vmatpush.msrb.mxu2 %v5742_v28  ;;  %1383 = vmatpush.msrb.mxu3 %v5745_v32  ;;  %8227 = vst [vmem:[#allocation26_spill] sm:$0xff] %v5757_v24  ;;  %v5760_v28 = vld [vmem:[#allocation3 + $0x20] sm:$0xff]  ;;  %v5763_v32 = vld [vmem:[#allocation3 + $0x28] sm:$0xff] }
 0x243   :  { %1324 = vmatpush.msrb.mxu0 %v5748_v26  ;;  %1344 = vmatpush.msrb.mxu1 %v5751_v33  ;;  %8228 = vst [vmem:[#allocation27_spill] sm:$0xff] %v5760_v28  ;;  %v5766_v26 = vld [vmem:[#allocation3 + $0x30] sm:$0xff]  ;;  %v5769_v33 = vld [vmem:[#allocation3 + $0x38] sm:$0xff] }
 0x244   :  { %1364 = vmatpush.msrb.mxu2 %v5754_v35  ;;  %1384 = vmatpush.msrb.mxu3 %v5757_v24  ;;  %8229 = vst [vmem:[#allocation28_spill] sm:$0xff] %v5763_v32  ;;  %v5772_v35 = vld [vmem:[#allocation3] sm:$0xff]  ;;  %v5775_v24 = vld [vmem:[#allocation3 + $0x8] sm:$0xff] }
 0x245   :  { %1325 = vmatpush.msrb.mxu0 %v5760_v28  ;;  %1345 = vmatpush.msrb.mxu1 %v5763_v32  ;;  %8230 = vst [vmem:[#allocation29_spill] sm:$0xff] %v5766_v26  ;;  %v5778_v28 = vld [vmem:[#allocation3 + $0x10] sm:$0xff]  ;;  %v5781_v32 = vld [vmem:[#allocation3 + $0x18] sm:$0xff] }
 0x246   :  { %1365 = vmatpush.msrb.mxu2 %v5766_v26  ;;  %8231 = vst [vmem:[#allocation30_spill] sm:$0xff] %v5769_v33  ;;  %1385 = vmatpush.msrb.mxu3 %v5769_v33  ;;  %v37_v33 = vld [vmem:[%s7724_s0 + $0x20] sm:$0xff]  ;;  %v75_v26 = vpop.permute.xlu1 %74 }
 0x247   :  { %8232 = vst [vmem:[#allocation31_spill] sm:$0xff] %v5772_v35  ;;  %1326 = vmatpush.msrb.mxu0 %v5772_v35  ;;  %1346 = vmatpush.msrb.mxu1 %v5775_v24  ;;  %v198_v35 = vmul.f32 %v8190_v44, %v75_v26  ;;  %v199_v27 = vmul.f32 %v8191_v57, %v75_v26  ;;  %v41_v57 = vld [vmem:[%s7724_s0 + $0x40] sm:$0xff] }
 0x248   :  { %8233 = vst [vmem:[#allocation6_spill] sm:$0xff] %v5775_v24  ;;  %1366 = vmatpush.msrb.mxu2 %v5778_v28  ;;  %1386 = vmatpush.msrb.mxu3 %v5781_v32  ;;  %v38_v24 = vld [vmem:[%s7724_s0 + $0x28] sm:$0xff] }
 0x249   :  { %8234 = vst [vmem:[#allocation7_spill] sm:$0xff] %v5778_v28  ;;  %79 = vperm.xlu2 %4280, %v37_v33   ;;  %v303_v28 = vadd.f32 %v8201_v34, %v198_v35  ;;  %v304_v15 = vadd.f32 %v8202_v36, %v199_v27  ;;  %v200_v33 = vmul.f32 %v8203_v2, %v75_v26  ;;  %v44_v27 = vld [vmem:[%s7724_s0 + $0x58] sm:$0xff] }
 0x24a   :  { %8235 = vst [vmem:[#allocation8_spill] sm:$0xff] %v5781_v32 }
 0x251   :  { %84 = vperm.xlu2 %4280, %v38_v24   ;;  %v305_v24 = vadd.f32 %v8204_v7, %v200_v33 }
 0x259   :  { %99 = vperm.xlu2 %4280, %v41_v57   ;;  %v201_v57 = vmul.f32 %v8205_v16, %v75_v26 }
 0x25b   :  { %v306_v33 = vadd.f32 %v8206_v20, %v201_v57  ;;  %v50_v57 = vld [vmem:[%s7724_s0 + $0x88] sm:$0xff] }
 0x261   :  { %114 = vperm.xlu2 %4280, %v44_v27  }
 0x2a4   :  { %v1024_v32 = vpop.f32.mrf.mxu0  ;;  %v1044_v25 = vpop.f32.mrf.mxu1 }
 0x2a5   :  { %v1087_v21 = vadd.f32 %v1024_v32, %v303_v28  ;;  %v1088_v19 = vadd.f32 %v1044_v25, %v304_v15 }
 0x2a7   :  { %v4210_v18 = vmul.f32 -1.442695, %v1087_v21  ;;  %v4211_v17 = vmul.f32 -1.442695, %v1088_v19 }
 0x2a9   :  { %4329 = vpow2.f32 %v4210_v18  ;;  %v47_v18 = vld [vmem:[%s7724_s0 + $0x70] sm:$0xff] }
 0x2aa   :  { %4331 = vpow2.f32 %v4211_v17  ;;  %129 = vperm.xlu2 %4280, %v47_v18  }
 0x2ab   :  { %v1064_v35 = vpop.f32.mrf.mxu2  ;;  %v1084_v17 = vpop.f32.mrf.mxu3 }
 0x2ac   :  { %v1089_v34 = vadd.f32 %v1064_v35, %v305_v24  ;;  %v1090_v35 = vadd.f32 %v1084_v17, %v306_v33 }
 0x2ae   :  { %v4212_v25 = vmul.f32 -1.442695, %v1089_v34 }
 0x2af   :  { %v4330_v15 = vpop.eup %4329 }
 0x2b0   :  { %v4332_v28 = vpop.eup %4331  ;;  %v1100_v21 = vadd.f32 1.0, %v4330_v15  ;;  %4333 = vpow2.f32 %v4212_v25 }
 0x2b1   :  { %v1101_v19 = vadd.f32 1.0, %v4332_v28 }
 0x2b2   :  { %4335 = vrcp.f32 %v1100_v21  ;;  %v1114_v26 = vand.u32 2147483648, %v1100_v21  ;;  %v1112_v36 = vand.u32 2147483647, %v1100_v21  ;;  %vm1108_vm6 = vweird.f32 %v1100_v21  ;;  %144 = vperm.xlu2 %4280, %v50_v57  }
 0x2b3   :  { %4337 = vrcp.f32 %v1101_v19  ;;  %v1129_v16 = vand.u32 2147483648, %v1101_v19  ;;  %v1127_v17 = vand.u32 2147483647, %v1101_v19  ;;  %vm1123_vm7 = vweird.f32 %v1101_v19 }
 0x2b4   :  { %vm1113_vm10 = vcmp.eq.f32.partialorder %v1112_v36, 8.507059e+37 }
 0x2b5   :  { %vm1128_vm11 = vcmp.eq.f32.partialorder %v1127_v17, 8.507059e+37  ;;  %v8241_v17 = vld [vmem:[#allocation14_spill] sm:$0xff] }
 0x2b6   :  { %v4334_v32 = vpop.eup %4333 }
 0x2b7   :  { %v1102_v24 = vadd.f32 1.0, %v4334_v32 }
 0x2b8   :  { %v4336_v34 = vpop.eup %4335 }
 0x2b9   :  { %v4338_v15 = vpop.eup %4337  ;;  %v1104_v25 = vmul.f32 %v4336_v34, %v1100_v21  ;;  %4339 = vrcp.f32 %v1102_v24  ;;  %vm1109_vm4 = vweird.f32 %v4336_v34  ;;  %v1144_v36 = vand.u32 2147483648, %v1102_v24 }
 0x2ba   :  { %v1119_v27 = vmul.f32 %v4338_v15, %v1101_v19  ;;  %4341 = vtanh.f32 %v1090_v35  ;;  %vm1124_vm5 = vweird.f32 %v4338_v15  ;;  %vm1110_vm8 = vmor %vm1108_vm6, %vm1109_vm4  ;;  %v1130_v35 = vor.u32 1.1754944e-38, %v1129_v16  ;;  %v53_v19 = vld [vmem:[%s7724_s0 + $0xa0] sm:$0xff] }
 0x2bb   :  { %v1105_v28 = vsub.f32 1.0, %v1104_v25  ;;  %v1115_v25 = vor.u32 1.1754944e-38, %v1114_v26  ;;  %vm1125_vm9 = vmor %vm1123_vm7, %vm1124_vm5  ;;  %159 = vperm.xlu2 %4280, %v53_v19   ;;  %vm1138_vm13 = vweird.f32 %v1102_v24  ;;  %v1142_v16 = vand.u32 2147483647, %v1102_v24  ;;  %v8251_v19 = vld [vmem:[#allocation24_spill] sm:$0xff] }
 0x2bc   :  { %v1120_v7 = vsub.f32 1.0, %v1119_v27 }
 0x2bd   :  { %v1106_v2 = vmul.f32 %v4336_v34, %v1105_v28  ;;  %vm1143_vm15 = vcmp.eq.f32.partialorder %v1142_v16, 8.507059e+37  ;;  %v8254_v16 = vld [vmem:[#allocation27_spill] sm:$0xff] }
 0x2be   :  { %v1121_v32 = vmul.f32 %v4338_v15, %v1120_v7 }
 0x2bf   :  { %v4340_v18 = vpop.eup %4339  ;;  %v1107_v33 = vadd.f32 %v4336_v34, %v1106_v2 }
 0x2c0   :  { %v1134_v20 = vmul.f32 %v4340_v18, %v1102_v24  ;;  %v1122_v27 = vadd.f32 %v4338_v15, %v1121_v32  ;;  %v4342_v44 = vpop.eup %4341  ;;  %vm1139_vm12 = vweird.f32 %v4340_v18  ;;  %v8237_v24 = vld [vmem:[#allocation10_spill] sm:$0xff]  ;;  %v8240_v32 = vld [vmem:[#allocation13_spill] sm:$0xff] }
 0x2c1   :  { %v1111_v28 = vsel %vm1110_vm8, %v4336_v34, %v1107_v33  ;;  %vm1140_vm14 = vmor %vm1138_vm13, %vm1139_vm12  ;;  %v8238_v34 = vld [vmem:[#allocation11_spill] sm:$0xff]  ;;  %v8243_v33 = vld [vmem:[#allocation16_spill] sm:$0xff] }
 0x2c2   :  { %v1135_v13 = vsub.f32 1.0, %v1134_v20  ;;  %v1116_v12 = vsel %vm1113_vm10, %v1115_v25, %v1111_v28  ;;  %v1126_v11 = vsel %vm1125_vm9, %v4338_v15, %v1122_v27  ;;  %v8239_v15 = vld [vmem:[#allocation12_spill] sm:$0xff]  ;;  %v8244_v25 = vld [vmem:[#allocation17_spill] sm:$0xff]  ;;  %v8245_v27 = vld [vmem:[#allocation18_spill] sm:$0xff] }
 0x2c3   :  { %v1131_v7 = vsel %vm1128_vm11, %v1130_v35, %v1126_v11  ;;  %v1150_v10 = vmul.f32 %v4342_v44, %v1116_v12  ;;  %v1145_v44 = vor.u32 1.1754944e-38, %v1144_v36  ;;  %v8246_v35 = vld [vmem:[#allocation19_spill] sm:$0xff]  ;;  %v8247_v28 = vld [vmem:[#allocation20_spill] sm:$0xff]  ;;  %v8253_v36 = vld [vmem:[#allocation26_spill] sm:$0xff] }
 0x2c4   :  { %v1149_v2 = vmul.f32 %v1131_v7, %v5645_v14  ;;  %v1136_v21 = vmul.f32 %v4340_v18, %v1135_v13  ;;  %v56_v14 = vld [vmem:[%s7724_s0 + $0xb8] sm:$0xff] }
 0x2c5   :  { %174 = vperm.xlu2 %4280, %v56_v14   ;;  %v8236_v13 = vld [vmem:[#allocation9_spill] sm:$0xff]  ;;  %v8257_v14 = vld [vmem:[#allocation30_spill] sm:$0xff] }
 0x2c6   :  { %v5814_v26 = vadd.f32 %v1150_v10, %v1149_v2  ;;  %v1137_v57 = vadd.f32 %v4340_v18, %v1136_v21  ;;  %v8248_v7 = vld [vmem:[#allocation21_spill] sm:$0xff]  ;;  %v8249_v2 = vld [vmem:[#allocation22_spill] sm:$0xff]  ;;  %v8250_v21 = vld [vmem:[#allocation23_spill] sm:$0xff] }
 0x2c8   :  { %4343 = vtanh.f32 %v5814_v26  ;;  %v1141_v20 = vsel %vm1140_vm14, %v4340_v18, %v1137_v57  ;;  %v8242_v18 = vld [vmem:[#allocation15_spill] sm:$0xff]  ;;  %v8252_v57 = vld [vmem:[#allocation25_spill] sm:$0xff] }
 0x2c9   :  { %v1146_v12 = vsel %vm1143_vm15, %v1145_v44, %v1141_v20  ;;  %v8255_v20 = vld [vmem:[#allocation28_spill] sm:$0xff]  ;;  %v8256_v44 = vld [vmem:[#allocation29_spill] sm:$0xff] }
 0x2ce   :  { %v4344_v11 = vpop.eup %4343 }
 0x2cf   :  { %v1153_v10 = vmul.f32 %v4344_v11, %v1146_v12  ;;  %v8258_v11 = vld [vmem:[#allocation31_spill] sm:$0xff]  ;;  %v8259_v12 = vld [vmem:[#allocation6_spill] sm:$0xff] }
 0x2d1   :  { %1175 = vmatmul.f32.vlgmr.msra.gmra.mxu0 %v1153_v10  ;;  %1195 = vmatmul.f32.vlgmr.msra.gmra.mxu1 %v1153_v10 }
 0x2d2   :  { %1215 = vmatmul.f32.vlgmr.msra.gmra.mxu2 %v1153_v10  ;;  %1235 = vmatmul.f32.vlgmr.msra.gmra.mxu3 %v1153_v10  ;;  %v8260_v10 = vld [vmem:[#allocation7_spill] sm:$0xff] }
 0x2d3   :  { %1463 = vmatpush.msra.mxu0 %v5516_v5  ;;  %1483 = vmatpush.msra.mxu1 %v5519_v49 }
 0x2d4   :  { %1503 = vmatpush.msra.mxu2 %v5522_v48  ;;  %1523 = vmatpush.msra.mxu3 %v5525_v39 }
 0x2d5   :  { %1464 = vmatpush.msra.mxu0 %v5528_v53  ;;  %1484 = vmatpush.msra.mxu1 %v5531_v0 }
 0x2d6   :  { %1504 = vmatpush.msra.mxu2 %v5534_v55  ;;  %1524 = vmatpush.msra.mxu3 %v5537_v52 }
 0x2d7   :  { %1465 = vmatpush.msra.mxu0 %v5540_v51  ;;  %1485 = vmatpush.msra.mxu1 %v5543_v60 }
 0x2d8   :  { %1505 = vmatpush.msra.mxu2 %v5546_v56  ;;  %1525 = vmatpush.msra.mxu3 %v5549_v62 }
 0x2d9   :  { %1466 = vmatpush.msra.mxu0 %v5552_v61  ;;  %1486 = vmatpush.msra.mxu1 %v5555_v54 }
 0x2da   :  { %1506 = vmatpush.msra.mxu2 %v5558_v22  ;;  %1526 = vmatpush.msra.mxu3 %v5561_v50 }
 0x2db   :  { %1467 = vmatpush.msra.mxu0 %v5564_v30  ;;  %1487 = vmatpush.msra.mxu1 %v5567_v58 }
 0x2dc   :  { %1507 = vmatpush.msra.mxu2 %v5570_v43  ;;  %1527 = vmatpush.msra.mxu3 %v8207_v45 }
 0x2dd   :  { %1468 = vmatpush.msra.mxu0 %v8208_v23  ;;  %1488 = vmatpush.msra.mxu1 %v8209_v37 }
 0x2de   :  { %1508 = vmatpush.msra.mxu2 %v5582_v59  ;;  %1528 = vmatpush.msra.mxu3 %v5585_v47 }
 0x2df   :  { %1469 = vmatpush.msra.mxu0 %v5588_v63  ;;  %1489 = vmatpush.msra.mxu1 %v5591_v46 }
 0x2e0   :  { %1509 = vmatpush.msra.mxu2 %v5594_v29  ;;  %1529 = vmatpush.msra.mxu3 %v5597_v42 }
 0x2e1   :  { %1470 = vmatpush.msra.mxu0 %v5676_v38  ;;  %1490 = vmatpush.msra.mxu1 %v5679_v31 }
 0x2e2   :  { %1510 = vmatpush.msra.mxu2 %v5682_v40  ;;  %1530 = vmatpush.msra.mxu3 %v5685_v41 }
 0x2e3   :  { %1471 = vmatpush.msra.mxu0 %v5688_v1  ;;  %1491 = vmatpush.msra.mxu1 %v5691_v3 }
 0x2e4   :  { %1511 = vmatpush.msra.mxu2 %v5694_v4  ;;  %1531 = vmatpush.msra.mxu3 %v5697_v6 }
 0x2e5   :  { %1472 = vmatpush.msra.mxu0 %v5700_v8  ;;  %1492 = vmatpush.msra.mxu1 %v5703_v9 }
 0x2e6   :  { %1512 = vmatpush.msra.mxu2 %v8236_v13  ;;  %1532 = vmatpush.msra.mxu3 %v8237_v24 }
 0x2e7   :  { %1473 = vmatpush.msra.mxu0 %v8238_v34  ;;  %1493 = vmatpush.msra.mxu1 %v8239_v15 }
 0x2e8   :  { %1513 = vmatpush.msra.mxu2 %v8240_v32  ;;  %1533 = vmatpush.msra.mxu3 %v8241_v17 }
 0x2e9   :  { %1474 = vmatpush.msra.mxu0 %v8242_v18  ;;  %1494 = vmatpush.msra.mxu1 %v8243_v33 }
 0x2ea   :  { %1514 = vmatpush.msra.mxu2 %v8244_v25  ;;  %1534 = vmatpush.msra.mxu3 %v8245_v27 }
 0x2eb   :  { %1475 = vmatpush.msra.mxu0 %v8246_v35  ;;  %1495 = vmatpush.msra.mxu1 %v8247_v28 }
 0x2ec   :  { %1515 = vmatpush.msra.mxu2 %v8248_v7  ;;  %1535 = vmatpush.msra.mxu3 %v8249_v2 }
 0x2ed   :  { %1476 = vmatpush.msra.mxu0 %v8250_v21  ;;  %1496 = vmatpush.msra.mxu1 %v8251_v19  ;;  %v8261_v21 = vld [vmem:[#allocation8_spill] sm:$0xff]  ;;  %v80_v19 = vpop.permute.xlu2 %79 }
 0x2ee   :  { %1516 = vmatpush.msra.mxu2 %v8252_v57  ;;  %1536 = vmatpush.msra.mxu3 %v8253_v36  ;;  %v8262_v57 = vld [vmem:[#allocation32_spill] sm:$0xff]  ;;  %v8263_v36 = vld [vmem:[#allocation33_spill] sm:$0xff] }
 0x2ef   :  { %1477 = vmatpush.msra.mxu0 %v8254_v16  ;;  %1497 = vmatpush.msra.mxu1 %v8255_v20  ;;  %v202_v2 = vmul.f32 %v8262_v57, %v80_v19  ;;  %v203_v7 = vmul.f32 %v8263_v36, %v80_v19  ;;  %v8264_v16 = vld [vmem:[#allocation34_spill] sm:$0xff]  ;;  %v8265_v20 = vld [vmem:[#allocation35_spill] sm:$0xff] }
 0x2f0   :  { %1517 = vmatpush.msra.mxu2 %v8256_v44  ;;  %1537 = vmatpush.msra.mxu3 %v8257_v14 }
 0x2f1   :  { %1478 = vmatpush.msra.mxu0 %v8258_v11  ;;  %1498 = vmatpush.msra.mxu1 %v8259_v12  ;;  %v307_v28 = vadd.f32 %v8264_v16, %v202_v2  ;;  %v308_v35 = vadd.f32 %v8265_v20, %v203_v7  ;;  %v8266_v11 = vld [vmem:[#allocation36_spill] sm:$0xff]  ;;  %v8268_v20 = vld [vmem:[#allocation38_spill] sm:$0xff] }
 0x2f2   :  { %1518 = vmatpush.msra.mxu2 %v8260_v10  ;;  %1538 = vmatpush.msra.mxu3 %v8261_v21  ;;  %v204_v33 = vmul.f32 %v8266_v11, %v80_v19  ;;  %v8267_v21 = vld [vmem:[#allocation37_spill] sm:$0xff] }
 0x2f4   :  { %v309_v10 = vadd.f32 %v8267_v21, %v204_v33 }
 0x34e   :  { %v1176_v44 = vpop.f32.mrf.mxu0  ;;  %v1196_v27 = vpop.f32.mrf.mxu1 }
 0x34f   :  { %v1239_v14 = vadd.f32 %v1176_v44, %v307_v28  ;;  %v1240_v25 = vadd.f32 %v1196_v27, %v308_v35  ;;  %v205_v28 = vmul.f32 %v8268_v20, %v80_v19  ;;  %v8269_v44 = vld [vmem:[#allocation39_spill] sm:$0xff] }
 0x351   :  { %v4213_v12 = vmul.f32 -1.442695, %v1239_v14  ;;  %v4214_v18 = vmul.f32 -1.442695, %v1240_v25  ;;  %v310_v25 = vadd.f32 %v8269_v44, %v205_v28 }
 0x353   :  { %4345 = vpow2.f32 %v4213_v12 }
 0x354   :  { %4347 = vpow2.f32 %v4214_v18 }
 0x355   :  { %v1216_v17 = vpop.f32.mrf.mxu2  ;;  %v1236_v27 = vpop.f32.mrf.mxu3 }
 0x356   :  { %v1241_v57 = vadd.f32 %v1216_v17, %v309_v10  ;;  %v1242_v12 = vadd.f32 %v1236_v27, %v310_v25 }
 0x358   :  { %v4215_v32 = vmul.f32 -1.442695, %v1241_v57 }
 0x359   :  { %v4346_v36 = vpop.eup %4345 }
 0x35a   :  { %v4348_v15 = vpop.eup %4347  ;;  %v1252_v2 = vadd.f32 1.0, %v4346_v36  ;;  %4349 = vpow2.f32 %v4215_v32 }
 0x35b   :  { %v1253_v7 = vadd.f32 1.0, %v4348_v15 }
 0x35c   :  { %4351 = vrcp.f32 %v1252_v2  ;;  %v1266_v36 = vand.u32 2147483648, %v1252_v2  ;;  %v1264_v19 = vand.u32 2147483647, %v1252_v2  ;;  %vm1260_vm2 = vweird.f32 %v1252_v2 }
 0x35d   :  { %4353 = vrcp.f32 %v1253_v7  ;;  %v1281_v15 = vand.u32 2147483648, %v1253_v7  ;;  %v1279_v11 = vand.u32 2147483647, %v1253_v7  ;;  %vm1275_vm3 = vweird.f32 %v1253_v7 }
 0x35e   :  { %vm1265_vm6 = vcmp.eq.f32.partialorder %v1264_v19, 8.507059e+37 }
 0x35f   :  { %vm1280_vm7 = vcmp.eq.f32.partialorder %v1279_v11, 8.507059e+37 }
 0x360   :  { %v4350_v35 = vpop.eup %4349 }
 0x361   :  { %v1254_v14 = vadd.f32 1.0, %v4350_v35  ;;  %v1267_v35 = vor.u32 1.1754944e-38, %v1266_v36 }
 0x362   :  { %v4352_v18 = vpop.eup %4351 }
 0x363   :  { %v4354_v33 = vpop.eup %4353  ;;  %v1256_v21 = vmul.f32 %v4352_v18, %v1252_v2  ;;  %4355 = vrcp.f32 %v1254_v14  ;;  %vm1261_vm0 = vweird.f32 %v4352_v18  ;;  %vm1290_vm9 = vweird.f32 %v1254_v14 }
 0x364   :  { %v1271_v17 = vmul.f32 %v4354_v33, %v1253_v7  ;;  %4357 = vtanh.f32 %v1242_v12  ;;  %vm1276_vm1 = vweird.f32 %v4354_v33  ;;  %vm1262_vm4 = vmor %vm1260_vm2, %vm1261_vm0 }
 0x365   :  { %v1257_v57 = vsub.f32 1.0, %v1256_v21  ;;  %vm1277_vm5 = vmor %vm1275_vm3, %vm1276_vm1  ;;  %v1282_v21 = vor.u32 1.1754944e-38, %v1281_v15 }
 0x366   :  { %v1272_v10 = vsub.f32 1.0, %v1271_v17 }
 0x367   :  { %v1258_v32 = vmul.f32 %v4352_v18, %v1257_v57 }
 0x368   :  { %v1273_v20 = vmul.f32 %v4354_v33, %v1272_v10 }
 0x369   :  { %v4356_v16 = vpop.eup %4355  ;;  %v1259_v28 = vadd.f32 %v4352_v18, %v1258_v32 }
 0x36a   :  { %v1286_v27 = vmul.f32 %v4356_v16, %v1254_v14  ;;  %v1274_v25 = vadd.f32 %v4354_v33, %v1273_v20  ;;  %v4358_v12 = vpop.eup %4357  ;;  %vm1291_vm8 = vweird.f32 %v4356_v16  ;;  %v1296_v20 = vand.u32 2147483648, %v1254_v14 }
 0x36b   :  { %v1263_v17 = vsel %vm1262_vm4, %v4352_v18, %v1259_v28  ;;  %v1294_v18 = vand.u32 2147483647, %v1254_v14  ;;  %vm1292_vm10 = vmor %vm1290_vm9, %vm1291_vm8  ;;  %v8299_v14 = vld [vmem:[#allocation35_spill] sm:$0xff] }
 0x36c   :  { %v1287_v44 = vsub.f32 1.0, %v1286_v27  ;;  %v1268_v57 = vsel %vm1265_vm6, %v1267_v35, %v1263_v17  ;;  %v1278_v34 = vsel %vm1277_vm5, %v4354_v33, %v1274_v25  ;;  %v1297_v15 = vor.u32 1.1754944e-38, %v1296_v20 }
 0x36d   :  { %v1283_v10 = vsel %vm1280_vm7, %v1282_v21, %v1278_v34  ;;  %v1302_v24 = vmul.f32 %v4358_v12, %v1268_v57  ;;  %vm1295_vm11 = vcmp.eq.f32.partialorder %v1294_v18, 8.507059e+37  ;;  %v8300_v21 = vld [vmem:[#allocation36_spill] sm:$0xff] }
 0x36e   :  { %v1301_v13 = vmul.f32 %v1283_v10, %v5814_v26  ;;  %v1288_v32 = vmul.f32 %v4356_v16, %v1287_v44  ;;  %v8301_v10 = vld [vmem:[#allocation37_spill] sm:$0xff] }
 0x370   :  { %v5893_v2 = vadd.f32 %v1302_v24, %v1301_v13  ;;  %v1289_v7 = vadd.f32 %v4356_v16, %v1288_v32  ;;  %v8297_v13 = vld [vmem:[#allocation33_spill] sm:$0xff] }
 0x372   :  { %4359 = vtanh.f32 %v5893_v2  ;;  %v1293_v36 = vsel %vm1292_vm10, %v4356_v16, %v1289_v7  ;;  %v8298_v16 = vld [vmem:[#allocation34_spill] sm:$0xff] }
 0x373   :  { %v1298_v11 = vsel %vm1295_vm11, %v1297_v15, %v1293_v36 }
 0x378   :  { %v4360_v33 = vpop.eup %4359 }
 0x379   :  { %v1305_v34 = vmul.f32 %v4360_v33, %v1298_v11 }
 0x37b   :  { %1327 = vmatmul.f32.vlgmr.msrb.gmra.mxu0 %v1305_v34  ;;  %1347 = vmatmul.f32.vlgmr.msrb.gmra.mxu1 %v1305_v34 }
 0x37c   :  { %1367 = vmatmul.f32.vlgmr.msrb.gmra.mxu2 %v1305_v34  ;;  %1387 = vmatmul.f32.vlgmr.msrb.gmra.mxu3 %v1305_v34  ;;  %v8302_v34 = vld [vmem:[#allocation38_spill] sm:$0xff] }
 0x37d   :  { %1615 = vmatpush.msrb.mxu0 %v5516_v5  ;;  %1635 = vmatpush.msrb.mxu1 %v5519_v49  ;;  %v8270_v5 = vld [vmem:[#allocation9_spill] sm:$0xff]  ;;  %v8271_v49 = vld [vmem:[#allocation10_spill] sm:$0xff] }
 0x37e   :  { %1655 = vmatpush.msrb.mxu2 %v5522_v48  ;;  %1675 = vmatpush.msrb.mxu3 %v5525_v39  ;;  %v8272_v48 = vld [vmem:[#allocation11_spill] sm:$0xff]  ;;  %v8273_v39 = vld [vmem:[#allocation12_spill] sm:$0xff] }
 0x37f   :  { %1616 = vmatpush.msrb.mxu0 %v5528_v53  ;;  %1636 = vmatpush.msrb.mxu1 %v5531_v0  ;;  %v8274_v53 = vld [vmem:[#allocation13_spill] sm:$0xff]  ;;  %v8275_v0 = vld [vmem:[#allocation14_spill] sm:$0xff] }
 0x380   :  { %1656 = vmatpush.msrb.mxu2 %v5534_v55  ;;  %1676 = vmatpush.msrb.mxu3 %v5537_v52  ;;  %v8276_v55 = vld [vmem:[#allocation15_spill] sm:$0xff]  ;;  %v8277_v52 = vld [vmem:[#allocation16_spill] sm:$0xff] }
 0x381   :  { %1617 = vmatpush.msrb.mxu0 %v5540_v51  ;;  %1637 = vmatpush.msrb.mxu1 %v5543_v60  ;;  %v8278_v51 = vld [vmem:[#allocation17_spill] sm:$0xff]  ;;  %v8279_v60 = vld [vmem:[#allocation18_spill] sm:$0xff] }
 0x382   :  { %1657 = vmatpush.msrb.mxu2 %v5546_v56  ;;  %1677 = vmatpush.msrb.mxu3 %v5549_v62  ;;  %v8280_v56 = vld [vmem:[#allocation19_spill] sm:$0xff]  ;;  %v8281_v62 = vld [vmem:[#allocation20_spill] sm:$0xff] }
 0x383   :  { %1618 = vmatpush.msrb.mxu0 %v5552_v61  ;;  %1638 = vmatpush.msrb.mxu1 %v5555_v54  ;;  %v8282_v61 = vld [vmem:[#allocation21_spill] sm:$0xff]  ;;  %v8283_v54 = vld [vmem:[#allocation22_spill] sm:$0xff] }
 0x384   :  { %1658 = vmatpush.msrb.mxu2 %v5558_v22  ;;  %1678 = vmatpush.msrb.mxu3 %v5561_v50  ;;  %v8284_v22 = vld [vmem:[#allocation23_spill] sm:$0xff]  ;;  %v8285_v50 = vld [vmem:[#allocation24_spill] sm:$0xff] }
 0x385   :  { %1619 = vmatpush.msrb.mxu0 %v5564_v30  ;;  %1639 = vmatpush.msrb.mxu1 %v5567_v58  ;;  %v8286_v30 = vld [vmem:[#allocation25_spill] sm:$0xff]  ;;  %v8287_v58 = vld [vmem:[#allocation26_spill] sm:$0xff] }
 0x386   :  { %1659 = vmatpush.msrb.mxu2 %v5570_v43  ;;  %1679 = vmatpush.msrb.mxu3 %v8207_v45  ;;  %v8288_v43 = vld [vmem:[#allocation27_spill] sm:$0xff]  ;;  %v8295_v45 = vld [vmem:[#allocation8_spill] sm:$0xff] }
 0x387   :  { %1620 = vmatpush.msrb.mxu0 %v8208_v23  ;;  %1640 = vmatpush.msrb.mxu1 %v8209_v37  ;;  %v85_v23 = vpop.permute.xlu2 %84  ;;  %v8296_v37 = vld [vmem:[#allocation32_spill] sm:$0xff] }
 0x388   :  { %1660 = vmatpush.msrb.mxu2 %v5582_v59  ;;  %1680 = vmatpush.msrb.mxu3 %v5585_v47  ;;  %v8292_v59 = vld [vmem:[#allocation31_spill] sm:$0xff]  ;;  %v8293_v47 = vld [vmem:[#allocation6_spill] sm:$0xff]  ;;  %v206_v26 = vmul.f32 %v8296_v37, %v85_v23  ;;  %v207_v24 = vmul.f32 %v8297_v13, %v85_v23  ;;  %v208_v17 = vmul.f32 %v8300_v21, %v85_v23 }
 0x389   :  { %1621 = vmatpush.msrb.mxu0 %v5588_v63  ;;  %1641 = vmatpush.msrb.mxu1 %v5591_v46  ;;  %v8289_v46 = vld [vmem:[#allocation28_spill] sm:$0xff]  ;;  %v8294_v63 = vld [vmem:[#allocation7_spill] sm:$0xff] }
 0x38a   :  { %1661 = vmatpush.msrb.mxu2 %v5594_v29  ;;  %1681 = vmatpush.msrb.mxu3 %v5597_v42  ;;  %v8290_v29 = vld [vmem:[#allocation29_spill] sm:$0xff]  ;;  %v8291_v42 = vld [vmem:[#allocation30_spill] sm:$0xff]  ;;  %v311_v44 = vadd.f32 %v8298_v16, %v206_v26  ;;  %v312_v19 = vadd.f32 %v8299_v14, %v207_v24  ;;  %v313_v32 = vadd.f32 %v8301_v10, %v208_v17 }
 0x38b   :  { %1622 = vmatpush.msrb.mxu0 %v5676_v38  ;;  %1642 = vmatpush.msrb.mxu1 %v5679_v31  ;;  %v209_v26 = vmul.f32 %v8302_v34, %v85_v23 }
 0x38c   :  { %1662 = vmatpush.msrb.mxu2 %v5682_v40  ;;  %1682 = vmatpush.msrb.mxu3 %v5685_v41 }
 0x38d   :  { %1623 = vmatpush.msrb.mxu0 %v5688_v1  ;;  %1643 = vmatpush.msrb.mxu1 %v5691_v3 }
 0x38e   :  { %1663 = vmatpush.msrb.mxu2 %v5694_v4  ;;  %1683 = vmatpush.msrb.mxu3 %v5697_v6 }
 0x38f   :  { %1624 = vmatpush.msrb.mxu0 %v5700_v8  ;;  %1644 = vmatpush.msrb.mxu1 %v5703_v9 }
 0x390   :  { %1664 = vmatpush.msrb.mxu2 %v8270_v5  ;;  %1684 = vmatpush.msrb.mxu3 %v8271_v49 }
 0x391   :  { %1625 = vmatpush.msrb.mxu0 %v8272_v48  ;;  %1645 = vmatpush.msrb.mxu1 %v8273_v39 }
 0x392   :  { %1665 = vmatpush.msrb.mxu2 %v8274_v53  ;;  %1685 = vmatpush.msrb.mxu3 %v8275_v0 }
 0x393   :  { %1626 = vmatpush.msrb.mxu0 %v8276_v55  ;;  %1646 = vmatpush.msrb.mxu1 %v8277_v52 }
 0x394   :  { %1666 = vmatpush.msrb.mxu2 %v8278_v51  ;;  %1686 = vmatpush.msrb.mxu3 %v8279_v60 }
 0x395   :  { %1627 = vmatpush.msrb.mxu0 %v8280_v56  ;;  %1647 = vmatpush.msrb.mxu1 %v8281_v62 }
 0x396   :  { %1667 = vmatpush.msrb.mxu2 %v8282_v61  ;;  %1687 = vmatpush.msrb.mxu3 %v8283_v54 }
 0x397   :  { %1628 = vmatpush.msrb.mxu0 %v8284_v22  ;;  %1648 = vmatpush.msrb.mxu1 %v8285_v50 }
 0x398   :  { %1668 = vmatpush.msrb.mxu2 %v8286_v30  ;;  %1688 = vmatpush.msrb.mxu3 %v8287_v58 }
 0x399   :  { %1629 = vmatpush.msrb.mxu0 %v8288_v43  ;;  %1649 = vmatpush.msrb.mxu1 %v8289_v46 }
 0x39a   :  { %1669 = vmatpush.msrb.mxu2 %v8290_v29  ;;  %1689 = vmatpush.msrb.mxu3 %v8291_v42 }
 0x39b   :  { %1630 = vmatpush.msrb.mxu0 %v8292_v59  ;;  %1650 = vmatpush.msrb.mxu1 %v8293_v47 }
 0x39c   :  { %1670 = vmatpush.msrb.mxu2 %v8294_v63  ;;  %1690 = vmatpush.msrb.mxu3 %v8295_v45 }
 0x3f8   :  { %v1328_v28 = vpop.f32.mrf.mxu0  ;;  %v1348_v27 = vpop.f32.mrf.mxu1 }
 0x3f9   :  { %v1391_v35 = vadd.f32 %v1328_v28, %v311_v44  ;;  %v1392_v25 = vadd.f32 %v1348_v27, %v312_v19  ;;  %v8303_v19 = vld [vmem:[#allocation39_spill] sm:$0xff] }
 0x3fa   :  { %v314_v28 = vadd.f32 %v8303_v19, %v209_v26 }
 0x3fb   :  { %v4216_v12 = vmul.f32 -1.442695, %v1391_v35  ;;  %v4217_v57 = vmul.f32 -1.442695, %v1392_v25 }
 0x3fd   :  { %4361 = vpow2.f32 %v4216_v12 }
 0x3fe   :  { %4363 = vpow2.f32 %v4217_v57 }
 0x3ff   :  { %v1368_v7 = vpop.f32.mrf.mxu2  ;;  %v1388_v24 = vpop.f32.mrf.mxu3 }
 0x400   :  { %v1393_v20 = vadd.f32 %v1368_v7, %v313_v32  ;;  %v1394_v25 = vadd.f32 %v1388_v24, %v314_v28 }
 0x402   :  { %v4218_v18 = vmul.f32 -1.442695, %v1393_v20 }
 0x403   :  { %v4362_v36 = vpop.eup %4361 }
 0x404   :  { %v4364_v15 = vpop.eup %4363  ;;  %v1404_v33 = vadd.f32 1.0, %v4362_v36  ;;  %4365 = vpow2.f32 %v4218_v18 }
 0x405   :  { %v1405_v11 = vadd.f32 1.0, %v4364_v15 }
 0x406   :  { %4367 = vrcp.f32 %v1404_v33  ;;  %v1418_v20 = vand.u32 2147483648, %v1404_v33  ;;  %v1416_v23 = vand.u32 2147483647, %v1404_v33  ;;  %vm1412_vm14 = vweird.f32 %v1404_v33 }
 0x407   :  { %4369 = vrcp.f32 %v1405_v11  ;;  %v1433_v18 = vand.u32 2147483648, %v1405_v11  ;;  %v1431_v34 = vand.u32 2147483647, %v1405_v11  ;;  %vm1427_vm15 = vweird.f32 %v1405_v11 }
 0x408   :  { %vm1417_vm2 = vcmp.eq.f32.partialorder %v1416_v23, 8.507059e+37 }
 0x409   :  { %vm1432_vm3 = vcmp.eq.f32.partialorder %v1431_v34, 8.507059e+37 }
 0x40a   :  { %v4366_v44 = vpop.eup %4365 }
 0x40b   :  { %v1406_v27 = vadd.f32 1.0, %v4366_v44  ;;  %v1419_v44 = vor.u32 1.1754944e-38, %v1418_v20 }
 0x40c   :  { %v4368_v35 = vpop.eup %4367 }
 0x40d   :  { %v4370_v17 = vpop.eup %4369  ;;  %v1408_v12 = vmul.f32 %v4368_v35, %v1404_v33  ;;  %4371 = vrcp.f32 %v1406_v27  ;;  %vm1413_vm12 = vweird.f32 %v4368_v35  ;;  %v1448_v20 = vand.u32 2147483648, %v1406_v27 }
 0x40e   :  { %v1423_v57 = vmul.f32 %v4370_v17, %v1405_v11  ;;  %4373 = vtanh.f32 %v1394_v25  ;;  %vm1428_vm13 = vweird.f32 %v4370_v17  ;;  %vm1414_vm0 = vmor %vm1412_vm14, %vm1413_vm12  ;;  %vm1442_vm5 = vweird.f32 %v1406_v27 }
 0x40f   :  { %v1409_v32 = vsub.f32 1.0, %v1408_v12  ;;  %vm1429_vm1 = vmor %vm1427_vm15, %vm1428_vm13  ;;  %v1434_v12 = vor.u32 1.1754944e-38, %v1433_v18  ;;  %v1449_v23 = vor.u32 1.1754944e-38, %v1448_v20  ;;  %v6026_v20 = vld [vmem:[#allocation3 + $0x170] sm:$0xff] }
 0x410   :  { %v1424_v7 = vsub.f32 1.0, %v1423_v57 }
 0x411   :  { %v1410_v36 = vmul.f32 %v4368_v35, %v1409_v32 }
 0x412   :  { %v1425_v15 = vmul.f32 %v4370_v17, %v1424_v7 }
 0x413   :  { %v4372_v10 = vpop.eup %4371  ;;  %v1411_v26 = vadd.f32 %v4368_v35, %v1410_v36 }
 0x414   :  { %v1438_v24 = vmul.f32 %v4372_v10, %v1406_v27  ;;  %v1426_v28 = vadd.f32 %v4370_v17, %v1425_v15  ;;  %v4374_v25 = vpop.eup %4373  ;;  %vm1443_vm4 = vweird.f32 %v4372_v10  ;;  %v5990_v15 = vld [vmem:[#allocation3 + $0x1d0] sm:$0xff] }
 0x415   :  { %v1415_v57 = vsel %vm1414_vm0, %v4368_v35, %v1411_v26  ;;  %v1446_v35 = vand.u32 2147483647, %v1406_v27  ;;  %vm1444_vm6 = vmor %vm1442_vm5, %vm1443_vm4  ;;  %v5987_v27 = vld [vmem:[#allocation3 + $0x1c8] sm:$0xff]  ;;  %v5993_v26 = vld [vmem:[#allocation3 + $0x1d8] sm:$0xff] }
 0x416   :  { %v1439_v19 = vsub.f32 1.0, %v1438_v24  ;;  %v1420_v32 = vsel %vm1417_vm2, %v1419_v44, %v1415_v57  ;;  %v1430_v21 = vsel %vm1429_vm1, %v4370_v17, %v1426_v28  ;;  %v5996_v24 = vld [vmem:[#allocation3 + $0x1a0] sm:$0xff]  ;;  %v5999_v44 = vld [vmem:[#allocation3 + $0x1a8] sm:$0xff]  ;;  %v6002_v28 = vld [vmem:[#allocation3 + $0x1b0] sm:$0xff] }
 0x417   :  { %v1435_v7 = vsel %vm1432_vm3, %v1434_v12, %v1430_v21  ;;  %v1454_v14 = vmul.f32 %v4374_v25, %v1420_v32  ;;  %vm1447_vm7 = vcmp.eq.f32.partialorder %v1446_v35, 8.507059e+37  ;;  %v6005_v12 = vld [vmem:[#allocation3 + $0x1b8] sm:$0xff]  ;;  %v6008_v57 = vld [vmem:[#allocation3 + $0x180] sm:$0xff]  ;;  %v6011_v25 = vld [vmem:[#allocation3 + $0x188] sm:$0xff] }
 0x418   :  { %v1453_v16 = vmul.f32 %v1435_v7, %v5893_v2  ;;  %v1440_v36 = vmul.f32 %v4372_v10, %v1439_v19  ;;  %v5972_v2 = vld [vmem:[#allocation3 + $0x1e0] sm:$0xff]  ;;  %v6014_v32 = vld [vmem:[#allocation3 + $0x190] sm:$0xff]  ;;  %v6017_v7 = vld [vmem:[#allocation3 + $0x198] sm:$0xff] }
 0x419   :  { %v5984_v19 = vld [vmem:[#allocation3 + $0x1c0] sm:$0xff]  ;;  %v6029_v35 = vld [vmem:[#allocation3 + $0x178] sm:$0xff] }
 0x41a   :  { %v5969_v33 = vadd.f32 %v1454_v14, %v1453_v16  ;;  %v1441_v11 = vadd.f32 %v4372_v10, %v1440_v36  ;;  %v5975_v16 = vld [vmem:[#allocation3 + $0x1e8] sm:$0xff]  ;;  %v5978_v14 = vld [vmem:[#allocation3 + $0x1f0] sm:$0xff]  ;;  %v6020_v36 = vld [vmem:[#allocation3 + $0x160] sm:$0xff]  ;;  %8304 = vst [vmem:[#allocation9_spill] sm:$0xff] %v6029_v35 }
 0x41c   :  { %4375 = vtanh.f32 %v5969_v33  ;;  %v1445_v18 = vsel %vm1444_vm6, %v4372_v10, %v1441_v11  ;;  %v5981_v10 = vld [vmem:[#allocation3 + $0x1f8] sm:$0xff]  ;;  %v6023_v11 = vld [vmem:[#allocation3 + $0x168] sm:$0xff] }
 0x41d   :  { %v1450_v34 = vsel %vm1447_vm7, %v1449_v23, %v1445_v18  ;;  %v6032_v18 = vld [vmem:[#allocation3 + $0x140] sm:$0xff]  ;;  %v6035_v23 = vld [vmem:[#allocation3 + $0x148] sm:$0xff] }
 0x41e   :  { %8305 = vst [vmem:[#allocation10_spill] sm:$0xff] %v6032_v18 }
 0x41f   :  { %8306 = vst [vmem:[#allocation11_spill] sm:$0xff] %v6035_v23 }
 0x422   :  { %v4376_v17 = vpop.eup %4375 }
 0x423   :  { %v1457_v21 = vmul.f32 %v4376_v17, %v1450_v34  ;;  %v6038_v17 = vld [vmem:[#allocation3 + $0x150] sm:$0xff]  ;;  %v6041_v34 = vld [vmem:[#allocation3 + $0x158] sm:$0xff] }
 0x425   :  { %1479 = vmatmul.f32.vlgmr.msra.gmra.mxu0 %v1457_v21  ;;  %1499 = vmatmul.f32.vlgmr.msra.gmra.mxu1 %v1457_v21 }
 0x426   :  { %1519 = vmatmul.f32.vlgmr.msra.gmra.mxu2 %v1457_v21  ;;  %1539 = vmatmul.f32.vlgmr.msra.gmra.mxu3 %v1457_v21  ;;  %v6044_v21 = vld [vmem:[#allocation3 + $0x120] sm:$0xff] }
 0x427   :  { %1767 = vmatpush.msra.mxu0 %v5972_v2  ;;  %1787 = vmatpush.msra.mxu1 %v5975_v16 }
 0x428   :  { %1807 = vmatpush.msra.mxu2 %v5978_v14  ;;  %1827 = vmatpush.msra.mxu3 %v5981_v10 }
 0x429   :  { %1768 = vmatpush.msra.mxu0 %v5984_v19  ;;  %1788 = vmatpush.msra.mxu1 %v5987_v27 }
 0x42a   :  { %1808 = vmatpush.msra.mxu2 %v5990_v15  ;;  %1828 = vmatpush.msra.mxu3 %v5993_v26 }
 0x42b   :  { %1769 = vmatpush.msra.mxu0 %v5996_v24  ;;  %1789 = vmatpush.msra.mxu1 %v5999_v44 }
 0x42c   :  { %1809 = vmatpush.msra.mxu2 %v6002_v28  ;;  %1829 = vmatpush.msra.mxu3 %v6005_v12 }
 0x42d   :  { %1770 = vmatpush.msra.mxu0 %v6008_v57  ;;  %1790 = vmatpush.msra.mxu1 %v6011_v25 }
 0x42e   :  { %1810 = vmatpush.msra.mxu2 %v6014_v32  ;;  %1830 = vmatpush.msra.mxu3 %v6017_v7 }
 0x42f   :  { %1771 = vmatpush.msra.mxu0 %v6020_v36  ;;  %1791 = vmatpush.msra.mxu1 %v6023_v11 }
 0x430   :  { %1811 = vmatpush.msra.mxu2 %v6026_v20  ;;  %1831 = vmatpush.msra.mxu3 %v6029_v35  ;;  %v6047_v35 = vld [vmem:[#allocation3 + $0x128] sm:$0xff] }
 0x431   :  { %1772 = vmatpush.msra.mxu0 %v6032_v18  ;;  %1792 = vmatpush.msra.mxu1 %v6035_v23  ;;  %v6050_v18 = vld [vmem:[#allocation3 + $0x130] sm:$0xff]  ;;  %v6053_v23 = vld [vmem:[#allocation3 + $0x138] sm:$0xff] }
 0x432   :  { %1812 = vmatpush.msra.mxu2 %v6038_v17  ;;  %1832 = vmatpush.msra.mxu3 %v6041_v34 }
 0x433   :  { %1773 = vmatpush.msra.mxu0 %v6044_v21  ;;  %1793 = vmatpush.msra.mxu1 %v6047_v35 }
 0x434   :  { %1813 = vmatpush.msra.mxu2 %v6050_v18  ;;  %1833 = vmatpush.msra.mxu3 %v6053_v23 }
 0x435   :  { %1774 = vmatpush.msra.mxu0 %v5676_v38  ;;  %1794 = vmatpush.msra.mxu1 %v5679_v31  ;;  %v90_v38 = vpop.permute.xlu0 %89 }
 0x436   :  { %1814 = vmatpush.msra.mxu2 %v5682_v40  ;;  %1834 = vmatpush.msra.mxu3 %v5685_v41  ;;  %v210_v31 = vmul.f32 %v8296_v37, %v90_v38  ;;  %v211_v40 = vmul.f32 %v8297_v13, %v90_v38  ;;  %v8307_v41 = vld [vmem:[#allocation34_spill] sm:$0xff] }
 0x437   :  { %1775 = vmatpush.msra.mxu0 %v5688_v1  ;;  %1795 = vmatpush.msra.mxu1 %v5691_v3  ;;  %v8308_v3 = vld [vmem:[#allocation35_spill] sm:$0xff] }
 0x438   :  { %1815 = vmatpush.msra.mxu2 %v5694_v4  ;;  %1835 = vmatpush.msra.mxu3 %v5697_v6  ;;  %v315_v1 = vadd.f32 %v8307_v41, %v210_v31  ;;  %v316_v4 = vadd.f32 %v8308_v3, %v211_v40 }
 0x439   :  { %1776 = vmatpush.msra.mxu0 %v5700_v8  ;;  %1796 = vmatpush.msra.mxu1 %v5703_v9 }
 0x43a   :  { %1816 = vmatpush.msra.mxu2 %v8270_v5  ;;  %1836 = vmatpush.msra.mxu3 %v8271_v49  ;;  %v8309_v49 = vld [vmem:[#allocation36_spill] sm:$0xff] }
 0x43b   :  { %1777 = vmatpush.msra.mxu0 %v8272_v48  ;;  %1797 = vmatpush.msra.mxu1 %v8273_v39  ;;  %v212_v48 = vmul.f32 %v8309_v49, %v90_v38 }
 0x43c   :  { %1817 = vmatpush.msra.mxu2 %v8274_v53  ;;  %1837 = vmatpush.msra.mxu3 %v8275_v0  ;;  %v8310_v0 = vld [vmem:[#allocation37_spill] sm:$0xff] }
 0x43d   :  { %1778 = vmatpush.msra.mxu0 %v8276_v55  ;;  %1798 = vmatpush.msra.mxu1 %v8277_v52  ;;  %v317_v55 = vadd.f32 %v8310_v0, %v212_v48 }
 0x43e   :  { %1818 = vmatpush.msra.mxu2 %v8278_v51  ;;  %1838 = vmatpush.msra.mxu3 %v8279_v60 }
 0x43f   :  { %1779 = vmatpush.msra.mxu0 %v8280_v56  ;;  %1799 = vmatpush.msra.mxu1 %v8281_v62 }
 0x440   :  { %1819 = vmatpush.msra.mxu2 %v8282_v61  ;;  %1839 = vmatpush.msra.mxu3 %v8283_v54 }
 0x441   :  { %1780 = vmatpush.msra.mxu0 %v8284_v22  ;;  %1800 = vmatpush.msra.mxu1 %v8285_v50  ;;  %v8311_v22 = vld [vmem:[#allocation38_spill] sm:$0xff] }
 0x442   :  { %1820 = vmatpush.msra.mxu2 %v8286_v30  ;;  %1840 = vmatpush.msra.mxu3 %v8287_v58  ;;  %v213_v50 = vmul.f32 %v8311_v22, %v90_v38 }
 0x443   :  { %1781 = vmatpush.msra.mxu0 %v8288_v43  ;;  %1801 = vmatpush.msra.mxu1 %v8289_v46  ;;  %v8312_v43 = vld [vmem:[#allocation39_spill] sm:$0xff] }
 0x444   :  { %1821 = vmatpush.msra.mxu2 %v8290_v29  ;;  %1841 = vmatpush.msra.mxu3 %v8291_v42  ;;  %v318_v46 = vadd.f32 %v8312_v43, %v213_v50 }
 0x445   :  { %1782 = vmatpush.msra.mxu0 %v8292_v59  ;;  %1802 = vmatpush.msra.mxu1 %v8293_v47 }
 0x446   :  { %1822 = vmatpush.msra.mxu2 %v8294_v63  ;;  %1842 = vmatpush.msra.mxu3 %v8295_v45 }
 0x4a2   :  { %v1480_v6 = vpop.f32.mrf.mxu0  ;;  %v1500_v8 = vpop.f32.mrf.mxu1 }
 0x4a3   :  { %v1543_v9 = vadd.f32 %v1480_v6, %v315_v1  ;;  %v1544_v5 = vadd.f32 %v1500_v8, %v316_v4 }
 0x4a5   :  { %v4219_v39 = vmul.f32 -1.442695, %v1543_v9  ;;  %v4220_v53 = vmul.f32 -1.442695, %v1544_v5 }
 0x4a7   :  { %4377 = vpow2.f32 %v4219_v39 }
 0x4a8   :  { %4379 = vpow2.f32 %v4220_v53 }
 0x4a9   :  { %v1520_v52 = vpop.f32.mrf.mxu2  ;;  %v1540_v30 = vpop.f32.mrf.mxu3 }
 0x4aa   :  { %v1545_v51 = vadd.f32 %v1520_v52, %v317_v55  ;;  %v1546_v59 = vadd.f32 %v1540_v30, %v318_v46 }
 0x4ac   :  { %v4221_v60 = vmul.f32 -1.442695, %v1545_v51 }
 0x4ad   :  { %v4378_v56 = vpop.eup %4377 }
 0x4ae   :  { %v4380_v62 = vpop.eup %4379  ;;  %v1556_v61 = vadd.f32 1.0, %v4378_v56  ;;  %4381 = vpow2.f32 %v4221_v60 }
 0x4af   :  { %v1557_v54 = vadd.f32 1.0, %v4380_v62 }
 0x4b0   :  { %4383 = vrcp.f32 %v1556_v61  ;;  %v1570_v1 = vand.u32 2147483648, %v1556_v61  ;;  %v1568_v38 = vand.u32 2147483647, %v1556_v61  ;;  %vm1564_vm10 = vweird.f32 %v1556_v61 }
 0x4b1   :  { %4385 = vrcp.f32 %v1557_v54  ;;  %v1585_v4 = vand.u32 2147483648, %v1557_v54  ;;  %v1583_v9 = vand.u32 2147483647, %v1557_v54  ;;  %vm1579_vm11 = vweird.f32 %v1557_v54 }
 0x4b2   :  { %v1571_v53 = vor.u32 1.1754944e-38, %v1570_v1  ;;  %vm1569_vm14 = vcmp.eq.f32.partialorder %v1568_v38, 8.507059e+37  ;;  %v6135_v38 = vld [vmem:[#allocation3 + $0x108] sm:$0xff] }
 0x4b3   :  { %v1586_v52 = vor.u32 1.1754944e-38, %v1585_v4  ;;  %vm1584_vm15 = vcmp.eq.f32.partialorder %v1583_v9, 8.507059e+37  ;;  %v8315_v4 = vld [vmem:[#allocation11_spill] sm:$0xff]  ;;  %v6141_v9 = vld [vmem:[#allocation3 + $0x118] sm:$0xff] }
 0x4b4   :  { %v4382_v58 = vpop.eup %4381 }
 0x4b5   :  { %v1558_v29 = vadd.f32 1.0, %v4382_v58 }
 0x4b6   :  { %v4384_v42 = vpop.eup %4383 }
 0x4b7   :  { %v4386_v47 = vpop.eup %4385  ;;  %v1560_v63 = vmul.f32 %v4384_v42, %v1556_v61  ;;  %4387 = vrcp.f32 %v1558_v29  ;;  %vm1565_vm8 = vweird.f32 %v4384_v42  ;;  %vm1594_vm1 = vweird.f32 %v1558_v29 }
 0x4b8   :  { %v1575_v45 = vmul.f32 %v4386_v47, %v1557_v54  ;;  %4389 = vtanh.f32 %v1546_v59  ;;  %vm1580_vm9 = vweird.f32 %v4386_v47  ;;  %vm1566_vm12 = vmor %vm1564_vm10, %vm1565_vm8 }
 0x4b9   :  { %v1561_v31 = vsub.f32 1.0, %v1560_v63  ;;  %vm1581_vm13 = vmor %vm1579_vm11, %vm1580_vm9  ;;  %v1600_v63 = vand.u32 2147483648, %v1558_v29 }
 0x4ba   :  { %v1576_v40 = vsub.f32 1.0, %v1575_v45 }
 0x4bb   :  { %v1562_v6 = vmul.f32 %v4384_v42, %v1561_v31  ;;  %v1601_v31 = vor.u32 1.1754944e-38, %v1600_v63  ;;  %v6192_v63 = vld [vmem:[#allocation3 + $0x60] sm:$0xff] }
 0x4bc   :  { %v1577_v8 = vmul.f32 %v4386_v47, %v1576_v40  ;;  %8326 = vst [vmem:[#allocation22_spill] sm:$0xff] %v6192_v63 }
 0x4bd   :  { %v4388_v5 = vpop.eup %4387  ;;  %v1563_v48 = vadd.f32 %v4384_v42, %v1562_v6  ;;  %v6132_v6 = vld [vmem:[#allocation3 + $0x100] sm:$0xff] }
 0x4be   :  { %v1590_v39 = vmul.f32 %v4388_v5, %v1558_v29  ;;  %v1578_v55 = vadd.f32 %v4386_v47, %v1577_v8  ;;  %v4390_v60 = vpop.eup %4389  ;;  %vm1595_vm0 = vweird.f32 %v4388_v5  ;;  %v6138_v8 = vld [vmem:[#allocation3 + $0x110] sm:$0xff] }
 0x4bf   :  { %v1567_v51 = vsel %vm1566_vm12, %v4384_v42, %v1563_v48  ;;  %v1598_v42 = vand.u32 2147483647, %v1558_v29  ;;  %vm1596_vm2 = vmor %vm1594_vm1, %vm1595_vm0  ;;  %v8314_v29 = vld [vmem:[#allocation10_spill] sm:$0xff]  ;;  %v6147_v48 = vld [vmem:[#allocation3 + $0xe8] sm:$0xff] }
 0x4c0   :  { %v1591_v56 = vsub.f32 1.0, %v1590_v39  ;;  %v1572_v62 = vsel %vm1569_vm14, %v1571_v53, %v1567_v51  ;;  %v1582_v50 = vsel %vm1581_vm13, %v4386_v47, %v1578_v55  ;;  %v6150_v39 = vld [vmem:[#allocation3 + $0xf0] sm:$0xff]  ;;  %v6153_v53 = vld [vmem:[#allocation3 + $0xf8] sm:$0xff]  ;;  %v6156_v55 = vld [vmem:[#allocation3 + $0xc0] sm:$0xff] }
 0x4c1   :  { %v1587_v30 = vsel %vm1584_vm15, %v1586_v52, %v1582_v50  ;;  %v1606_v58 = vmul.f32 %v4390_v60, %v1572_v62  ;;  %vm1599_vm3 = vcmp.eq.f32.partialorder %v1598_v42, 8.507059e+37  ;;  %v6159_v52 = vld [vmem:[#allocation3 + $0xc8] sm:$0xff]  ;;  %v6162_v51 = vld [vmem:[#allocation3 + $0xd0] sm:$0xff]  ;;  %v6165_v60 = vld [vmem:[#allocation3 + $0xd8] sm:$0xff] }
 0x4c2   :  { %v1605_v46 = vmul.f32 %v1587_v30, %v5969_v33  ;;  %v1592_v59 = vmul.f32 %v4388_v5, %v1591_v56  ;;  %v8313_v33 = vld [vmem:[#allocation9_spill] sm:$0xff]  ;;  %8316 = vst [vmem:[#allocation12_spill] sm:$0xff] %v6162_v51  ;;  %v6168_v56 = vld [vmem:[#allocation3 + $0xa0] sm:$0xff]  ;;  %v6171_v62 = vld [vmem:[#allocation3 + $0xa8] sm:$0xff] }
 0x4c3   :  { %8317 = vst [vmem:[#allocation13_spill] sm:$0xff] %v6165_v60  ;;  %v6174_v50 = vld [vmem:[#allocation3 + $0xb0] sm:$0xff]  ;;  %v6177_v30 = vld [vmem:[#allocation3 + $0xb8] sm:$0xff]  ;;  %v6195_v42 = vld [vmem:[#allocation3 + $0x68] sm:$0xff] }
 0x4c4   :  { %v6101_v61 = vadd.f32 %v1606_v58, %v1605_v46  ;;  %v1593_v54 = vadd.f32 %v4388_v5, %v1592_v59  ;;  %8318 = vst [vmem:[#allocation14_spill] sm:$0xff] %v6168_v56  ;;  %v6180_v58 = vld [vmem:[#allocation3 + $0x80] sm:$0xff]  ;;  %v6183_v46 = vld [vmem:[#allocation3 + $0x88] sm:$0xff]  ;;  %v6186_v59 = vld [vmem:[#allocation3 + $0x90] sm:$0xff] }
 0x4c5   :  { %8319 = vst [vmem:[#allocation15_spill] sm:$0xff] %v6171_v62 }
 0x4c6   :  { %4391 = vtanh.f32 %v6101_v61  ;;  %v1597_v45 = vsel %vm1596_vm2, %v4388_v5, %v1593_v54  ;;  %v6144_v5 = vld [vmem:[#allocation3 + $0xe0] sm:$0xff]  ;;  %8320 = vst [vmem:[#allocation16_spill] sm:$0xff] %v6174_v50  ;;  %v6189_v54 = vld [vmem:[#allocation3 + $0x98] sm:$0xff] }
 0x4c7   :  { %v1602_v40 = vsel %vm1599_vm3, %v1601_v31, %v1597_v45  ;;  %8321 = vst [vmem:[#allocation17_spill] sm:$0xff] %v6177_v30  ;;  %v6198_v45 = vld [vmem:[#allocation3 + $0x70] sm:$0xff]  ;;  %v6201_v31 = vld [vmem:[#allocation3 + $0x78] sm:$0xff] }
 0x4c8   :  { %8322 = vst [vmem:[#allocation18_spill] sm:$0xff] %v6180_v58 }
 0x4c9   :  { %8323 = vst [vmem:[#allocation19_spill] sm:$0xff] %v6183_v46 }
 0x4ca   :  { %8324 = vst [vmem:[#allocation20_spill] sm:$0xff] %v6186_v59 }
 0x4cb   :  { %8325 = vst [vmem:[#allocation21_spill] sm:$0xff] %v6189_v54 }
 0x4cc   :  { %v4392_v47 = vpop.eup %4391  ;;  %8327 = vst [vmem:[#allocation23_spill] sm:$0xff] %v6195_v42 }
 0x4cd   :  { %v1609_v1 = vmul.f32 %v4392_v47, %v1602_v40  ;;  %8328 = vst [vmem:[#allocation24_spill] sm:$0xff] %v6198_v45  ;;  %v6204_v47 = vld [vmem:[#allocation3 + $0x40] sm:$0xff]  ;;  %v6207_v40 = vld [vmem:[#allocation3 + $0x48] sm:$0xff] }
 0x4ce   :  { %8329 = vst [vmem:[#allocation25_spill] sm:$0xff] %v6201_v31 }
 0x4cf   :  { %1631 = vmatmul.f32.vlgmr.msrb.gmra.mxu0 %v1609_v1  ;;  %1651 = vmatmul.f32.vlgmr.msrb.gmra.mxu1 %v1609_v1  ;;  %8330 = vst [vmem:[#allocation26_spill] sm:$0xff] %v6204_v47 }
 0x4d0   :  { %1671 = vmatmul.f32.vlgmr.msrb.gmra.mxu2 %v1609_v1  ;;  %1691 = vmatmul.f32.vlgmr.msrb.gmra.mxu3 %v1609_v1  ;;  %8331 = vst [vmem:[#allocation27_spill] sm:$0xff] %v6207_v40  ;;  %v6210_v1 = vld [vmem:[#allocation3 + $0x50] sm:$0xff] }
 0x4d1   :  { %1919 = vmatpush.msrb.mxu0 %v5972_v2  ;;  %1939 = vmatpush.msrb.mxu1 %v5975_v16  ;;  %8332 = vst [vmem:[#allocation28_spill] sm:$0xff] %v6210_v1 }
 0x4d2   :  { %1959 = vmatpush.msrb.mxu2 %v5978_v14  ;;  %1979 = vmatpush.msrb.mxu3 %v5981_v10 }
 0x4d3   :  { %1920 = vmatpush.msrb.mxu0 %v5984_v19  ;;  %1940 = vmatpush.msrb.mxu1 %v5987_v27 }
 0x4d4   :  { %1960 = vmatpush.msrb.mxu2 %v5990_v15  ;;  %1980 = vmatpush.msrb.mxu3 %v5993_v26 }
 0x4d5   :  { %1921 = vmatpush.msrb.mxu0 %v5996_v24  ;;  %1941 = vmatpush.msrb.mxu1 %v5999_v44 }
 0x4d6   :  { %1961 = vmatpush.msrb.mxu2 %v6002_v28  ;;  %1981 = vmatpush.msrb.mxu3 %v6005_v12 }
 0x4d7   :  { %1922 = vmatpush.msrb.mxu0 %v6008_v57  ;;  %1942 = vmatpush.msrb.mxu1 %v6011_v25 }
 0x4d8   :  { %1962 = vmatpush.msrb.mxu2 %v6014_v32  ;;  %1982 = vmatpush.msrb.mxu3 %v6017_v7 }
 0x4d9   :  { %1923 = vmatpush.msrb.mxu0 %v6020_v36  ;;  %1943 = vmatpush.msrb.mxu1 %v6023_v11 }
 0x4da   :  { %1963 = vmatpush.msrb.mxu2 %v6026_v20  ;;  %1983 = vmatpush.msrb.mxu3 %v8313_v33 }
 0x4db   :  { %1924 = vmatpush.msrb.mxu0 %v8314_v29  ;;  %1944 = vmatpush.msrb.mxu1 %v8315_v4 }
 0x4dc   :  { %1964 = vmatpush.msrb.mxu2 %v6038_v17  ;;  %1984 = vmatpush.msrb.mxu3 %v6041_v34 }
 0x4dd   :  { %1925 = vmatpush.msrb.mxu0 %v6044_v21  ;;  %1945 = vmatpush.msrb.mxu1 %v6047_v35 }
 0x4de   :  { %1965 = vmatpush.msrb.mxu2 %v6050_v18  ;;  %1985 = vmatpush.msrb.mxu3 %v6053_v23 }
 0x4df   :  { %1926 = vmatpush.msrb.mxu0 %v6132_v6  ;;  %1946 = vmatpush.msrb.mxu1 %v6135_v38 }
 0x4e0   :  { %1966 = vmatpush.msrb.mxu2 %v6138_v8  ;;  %1986 = vmatpush.msrb.mxu3 %v6141_v9 }
 0x4e1   :  { %1927 = vmatpush.msrb.mxu0 %v6144_v5  ;;  %1947 = vmatpush.msrb.mxu1 %v6147_v48 }
 0x4e2   :  { %1967 = vmatpush.msrb.mxu2 %v6150_v39  ;;  %1987 = vmatpush.msrb.mxu3 %v6153_v53 }
 0x4e3   :  { %1928 = vmatpush.msrb.mxu0 %v6156_v55  ;;  %1948 = vmatpush.msrb.mxu1 %v6159_v52 }
 0x4e4   :  { %1968 = vmatpush.msrb.mxu2 %v6162_v51  ;;  %1988 = vmatpush.msrb.mxu3 %v6165_v60 }
 0x4e5   :  { %1929 = vmatpush.msrb.mxu0 %v6168_v56  ;;  %1949 = vmatpush.msrb.mxu1 %v6171_v62 }
 0x4e6   :  { %1969 = vmatpush.msrb.mxu2 %v6174_v50  ;;  %1989 = vmatpush.msrb.mxu3 %v6177_v30 }
 0x4e7   :  { %1930 = vmatpush.msrb.mxu0 %v6180_v58  ;;  %1950 = vmatpush.msrb.mxu1 %v6183_v46 }
 0x4e8   :  { %1970 = vmatpush.msrb.mxu2 %v6186_v59  ;;  %1990 = vmatpush.msrb.mxu3 %v6189_v54 }
 0x4e9   :  { %1931 = vmatpush.msrb.mxu0 %v6192_v63  ;;  %1951 = vmatpush.msrb.mxu1 %v6195_v42  ;;  %v6213_v42 = vld [vmem:[#allocation3 + $0x58] sm:$0xff] }
 0x4ea   :  { %1971 = vmatpush.msrb.mxu2 %v6198_v45  ;;  %1991 = vmatpush.msrb.mxu3 %v6201_v31  ;;  %8333 = vst [vmem:[#allocation29_spill] sm:$0xff] %v6213_v42  ;;  %v6216_v45 = vld [vmem:[#allocation3 + $0x20] sm:$0xff]  ;;  %v6219_v31 = vld [vmem:[#allocation3 + $0x28] sm:$0xff] }
 0x4eb   :  { %1932 = vmatpush.msrb.mxu0 %v6204_v47  ;;  %1952 = vmatpush.msrb.mxu1 %v6207_v40  ;;  %8334 = vst [vmem:[#allocation30_spill] sm:$0xff] %v6216_v45  ;;  %v6222_v47 = vld [vmem:[#allocation3 + $0x30] sm:$0xff]  ;;  %v6225_v40 = vld [vmem:[#allocation3 + $0x38] sm:$0xff] }
 0x4ec   :  { %1972 = vmatpush.msrb.mxu2 %v6210_v1  ;;  %1992 = vmatpush.msrb.mxu3 %v6213_v42  ;;  %8335 = vst [vmem:[#allocation31_spill] sm:$0xff] %v6219_v31  ;;  %v6228_v1 = vld [vmem:[#allocation3] sm:$0xff]  ;;  %v6231_v42 = vld [vmem:[#allocation3 + $0x8] sm:$0xff] }
 0x4ed   :  { %1933 = vmatpush.msrb.mxu0 %v6216_v45  ;;  %1953 = vmatpush.msrb.mxu1 %v6219_v31  ;;  %8336 = vst [vmem:[#allocation6_spill] sm:$0xff] %v6222_v47  ;;  %v6234_v45 = vld [vmem:[#allocation3 + $0x10] sm:$0xff]  ;;  %v6237_v31 = vld [vmem:[#allocation3 + $0x18] sm:$0xff] }
 0x4ee   :  { %1973 = vmatpush.msrb.mxu2 %v6222_v47  ;;  %8337 = vst [vmem:[#allocation7_spill] sm:$0xff] %v6225_v40  ;;  %1993 = vmatpush.msrb.mxu3 %v6225_v40  ;;  %v95_v47 = vpop.permute.xlu1 %94 }
 0x4ef   :  { %8338 = vst [vmem:[#allocation8_spill] sm:$0xff] %v6228_v1  ;;  %1934 = vmatpush.msrb.mxu0 %v6228_v1  ;;  %1954 = vmatpush.msrb.mxu1 %v6231_v42  ;;  %v214_v63 = vmul.f32 %v8296_v37, %v95_v47  ;;  %v215_v40 = vmul.f32 %v8297_v13, %v95_v47 }
 0x4f0   :  { %8339 = vst [vmem:[#allocation9_spill] sm:$0xff] %v6231_v42  ;;  %1974 = vmatpush.msrb.mxu2 %v6234_v45  ;;  %1994 = vmatpush.msrb.mxu3 %v6237_v31  ;;  %v216_v30 = vmul.f32 %v8309_v49, %v95_v47 }
 0x4f1   :  { %8340 = vst [vmem:[#allocation10_spill] sm:$0xff] %v6234_v45  ;;  %v319_v54 = vadd.f32 %v8307_v41, %v214_v63  ;;  %v320_v1 = vadd.f32 %v8308_v3, %v215_v40 }
 0x4f2   :  { %8341 = vst [vmem:[#allocation11_spill] sm:$0xff] %v6237_v31  ;;  %v321_v31 = vadd.f32 %v8310_v0, %v216_v30 }
 0x54c   :  { %v1632_v59 = vpop.f32.mrf.mxu0  ;;  %v1652_v46 = vpop.f32.mrf.mxu1 }
 0x54d   :  { %v1695_v42 = vadd.f32 %v1632_v59, %v319_v54  ;;  %v1696_v58 = vadd.f32 %v1652_v46, %v320_v1  ;;  %v217_v59 = vmul.f32 %v8311_v22, %v95_v47 }
 0x54f   :  { %v4222_v45 = vmul.f32 -1.442695, %v1695_v42  ;;  %v4223_v50 = vmul.f32 -1.442695, %v1696_v58  ;;  %v322_v58 = vadd.f32 %v8312_v43, %v217_v59 }
 0x551   :  { %4393 = vpow2.f32 %v4222_v45 }
 0x552   :  { %4395 = vpow2.f32 %v4223_v50 }
 0x553   :  { %v1672_v62 = vpop.f32.mrf.mxu2  ;;  %v1692_v46 = vpop.f32.mrf.mxu3 }
 0x554   :  { %v1697_v37 = vadd.f32 %v1672_v62, %v321_v31  ;;  %v1698_v45 = vadd.f32 %v1692_v46, %v322_v58 }
 0x556   :  { %v4224_v56 = vmul.f32 -1.442695, %v1697_v37 }
 0x557   :  { %v4394_v13 = vpop.eup %4393 }
 0x558   :  { %v4396_v60 = vpop.eup %4395  ;;  %v1708_v63 = vadd.f32 1.0, %v4394_v13  ;;  %4397 = vpow2.f32 %v4224_v56 }
 0x559   :  { %v1709_v40 = vadd.f32 1.0, %v4396_v60 }
 0x55a   :  { %4399 = vrcp.f32 %v1708_v63  ;;  %v1722_v13 = vand.u32 2147483648, %v1708_v63  ;;  %v1720_v47 = vand.u32 2147483647, %v1708_v63  ;;  %vm1716_vm6 = vweird.f32 %v1708_v63 }
 0x55b   :  { %4401 = vrcp.f32 %v1709_v40  ;;  %v1737_v60 = vand.u32 2147483648, %v1709_v40  ;;  %v1735_v0 = vand.u32 2147483647, %v1709_v40  ;;  %vm1731_vm7 = vweird.f32 %v1709_v40 }
 0x55c   :  { %vm1721_vm10 = vcmp.eq.f32.partialorder %v1720_v47, 8.507059e+37  ;;  %v8348_v47 = vld [vmem:[#allocation18_spill] sm:$0xff] }
 0x55d   :  { %vm1736_vm11 = vcmp.eq.f32.partialorder %v1735_v0, 8.507059e+37 }
 0x55e   :  { %v4398_v54 = vpop.eup %4397 }
 0x55f   :  { %v1710_v42 = vadd.f32 1.0, %v4398_v54  ;;  %v1723_v54 = vor.u32 1.1754944e-38, %v1722_v13 }
 0x560   :  { %v4400_v50 = vpop.eup %4399 }
 0x561   :  { %v4402_v30 = vpop.eup %4401  ;;  %v1712_v1 = vmul.f32 %v4400_v50, %v1708_v63  ;;  %4403 = vrcp.f32 %v1710_v42  ;;  %vm1717_vm4 = vweird.f32 %v4400_v50  ;;  %vm1746_vm13 = vweird.f32 %v1710_v42 }
 0x562   :  { %v1727_v37 = vmul.f32 %v4402_v30, %v1709_v40  ;;  %4405 = vtanh.f32 %v1698_v45  ;;  %vm1732_vm5 = vweird.f32 %v4402_v30  ;;  %vm1718_vm8 = vmor %vm1716_vm6, %vm1717_vm4 }
 0x563   :  { %v1713_v62 = vsub.f32 1.0, %v1712_v1  ;;  %vm1733_vm9 = vmor %vm1731_vm7, %vm1732_vm5  ;;  %v1738_v1 = vor.u32 1.1754944e-38, %v1737_v60 }
 0x564   :  { %v1728_v31 = vsub.f32 1.0, %v1727_v37 }
 0x565   :  { %v1714_v56 = vmul.f32 %v4400_v50, %v1713_v62 }
 0x566   :  { %v1729_v22 = vmul.f32 %v4402_v30, %v1728_v31 }
 0x567   :  { %v4404_v49 = vpop.eup %4403  ;;  %v1715_v59 = vadd.f32 %v4400_v50, %v1714_v56 }
 0x568   :  { %v1742_v46 = vmul.f32 %v4404_v49, %v1710_v42  ;;  %v1730_v58 = vadd.f32 %v4402_v30, %v1729_v22  ;;  %v4406_v45 = vpop.eup %4405  ;;  %vm1747_vm12 = vweird.f32 %v4404_v49  ;;  %v1752_v22 = vand.u32 2147483648, %v1710_v42 }
 0x569   :  { %v1719_v37 = vsel %vm1718_vm8, %v4400_v50, %v1715_v59  ;;  %v1750_v50 = vand.u32 2147483647, %v1710_v42  ;;  %vm1748_vm14 = vmor %vm1746_vm13, %vm1747_vm12  ;;  %v8347_v42 = vld [vmem:[#allocation17_spill] sm:$0xff]  ;;  %v8349_v59 = vld [vmem:[#allocation19_spill] sm:$0xff] }
 0x56a   :  { %v1743_v43 = vsub.f32 1.0, %v1742_v46  ;;  %v1724_v62 = vsel %vm1721_vm10, %v1723_v54, %v1719_v37  ;;  %v1734_v3 = vsel %vm1733_vm9, %v4402_v30, %v1730_v58  ;;  %v1753_v60 = vor.u32 1.1754944e-38, %v1752_v22  ;;  %v8350_v46 = vld [vmem:[#allocation20_spill] sm:$0xff]  ;;  %v8351_v54 = vld [vmem:[#allocation21_spill] sm:$0xff]  ;;  %v8352_v58 = vld [vmem:[#allocation22_spill] sm:$0xff] }
 0x56b   :  { %v1739_v31 = vsel %vm1736_vm11, %v1738_v1, %v1734_v3  ;;  %v1758_v41 = vmul.f32 %v4406_v45, %v1724_v62  ;;  %vm1751_vm15 = vcmp.eq.f32.partialorder %v1750_v50, 8.507059e+37  ;;  %v8353_v1 = vld [vmem:[#allocation23_spill] sm:$0xff]  ;;  %v8354_v37 = vld [vmem:[#allocation24_spill] sm:$0xff]  ;;  %v8355_v45 = vld [vmem:[#allocation25_spill] sm:$0xff] }
 0x56c   :  { %v1757_v51 = vmul.f32 %v1739_v31, %v6101_v61  ;;  %v1744_v56 = vmul.f32 %v4404_v49, %v1743_v43  ;;  %v8344_v43 = vld [vmem:[#allocation14_spill] sm:$0xff]  ;;  %v8345_v61 = vld [vmem:[#allocation15_spill] sm:$0xff] }
 0x56d   :  { %v8356_v62 = vld [vmem:[#allocation26_spill] sm:$0xff]  ;;  %v8357_v31 = vld [vmem:[#allocation27_spill] sm:$0xff] }
 0x56e   :  { %v6249_v63 = vadd.f32 %v1758_v41, %v1757_v51  ;;  %v1745_v40 = vadd.f32 %v4404_v49, %v1744_v56  ;;  %v8342_v41 = vld [vmem:[#allocation12_spill] sm:$0xff]  ;;  %v8360_v22 = vld [vmem:[#allocation30_spill] sm:$0xff]  ;;  %v8361_v50 = vld [vmem:[#allocation31_spill] sm:$0xff] }
 0x56f   :  { %v8346_v51 = vld [vmem:[#allocation16_spill] sm:$0xff] }
 0x570   :  { %4407 = vtanh.f32 %v6249_v63  ;;  %v1749_v13 = vsel %vm1748_vm14, %v4404_v49, %v1745_v40  ;;  %v8343_v49 = vld [vmem:[#allocation13_spill] sm:$0xff]  ;;  %v8358_v56 = vld [vmem:[#allocation28_spill] sm:$0xff] }
 0x571   :  { %v1754_v0 = vsel %vm1751_vm15, %v1753_v60, %v1749_v13  ;;  %v8359_v40 = vld [vmem:[#allocation29_spill] sm:$0xff]  ;;  %v8362_v13 = vld [vmem:[#allocation6_spill] sm:$0xff]  ;;  %v8363_v60 = vld [vmem:[#allocation7_spill] sm:$0xff] }
 0x576   :  { %v4408_v30 = vpop.eup %4407 }
 0x577   :  { %v1761_v3 = vmul.f32 %v4408_v30, %v1754_v0  ;;  %v8364_v30 = vld [vmem:[#allocation8_spill] sm:$0xff]  ;;  %v8365_v0 = vld [vmem:[#allocation9_spill] sm:$0xff] }
 0x579   :  { %1783 = vmatmul.f32.vlgmr.msra.gmra.mxu0 %v1761_v3  ;;  %1803 = vmatmul.f32.vlgmr.msra.gmra.mxu1 %v1761_v3 }
 0x57a   :  { %1823 = vmatmul.f32.vlgmr.msra.gmra.mxu2 %v1761_v3  ;;  %1843 = vmatmul.f32.vlgmr.msra.gmra.mxu3 %v1761_v3  ;;  %v8366_v3 = vld [vmem:[#allocation10_spill] sm:$0xff] }
 0x57b   :  { %2071 = vmatpush.msra.mxu0 %v5972_v2  ;;  %2091 = vmatpush.msra.mxu1 %v5975_v16 }
 0x57c   :  { %2111 = vmatpush.msra.mxu2 %v5978_v14  ;;  %2131 = vmatpush.msra.mxu3 %v5981_v10 }
 0x57d   :  { %2072 = vmatpush.msra.mxu0 %v5984_v19  ;;  %2092 = vmatpush.msra.mxu1 %v5987_v27 }
 0x57e   :  { %2112 = vmatpush.msra.mxu2 %v5990_v15  ;;  %2132 = vmatpush.msra.mxu3 %v5993_v26 }
 0x57f   :  { %2073 = vmatpush.msra.mxu0 %v5996_v24  ;;  %2093 = vmatpush.msra.mxu1 %v5999_v44 }
 0x580   :  { %2113 = vmatpush.msra.mxu2 %v6002_v28  ;;  %2133 = vmatpush.msra.mxu3 %v6005_v12 }
 0x581   :  { %2074 = vmatpush.msra.mxu0 %v6008_v57  ;;  %2094 = vmatpush.msra.mxu1 %v6011_v25 }
 0x582   :  { %2114 = vmatpush.msra.mxu2 %v6014_v32  ;;  %2134 = vmatpush.msra.mxu3 %v6017_v7 }
 0x583   :  { %2075 = vmatpush.msra.mxu0 %v6020_v36  ;;  %2095 = vmatpush.msra.mxu1 %v6023_v11 }
 0x584   :  { %2115 = vmatpush.msra.mxu2 %v6026_v20  ;;  %2135 = vmatpush.msra.mxu3 %v8313_v33 }
 0x585   :  { %2076 = vmatpush.msra.mxu0 %v8314_v29  ;;  %2096 = vmatpush.msra.mxu1 %v8315_v4 }
 0x586   :  { %2116 = vmatpush.msra.mxu2 %v6038_v17  ;;  %2136 = vmatpush.msra.mxu3 %v6041_v34 }
 0x587   :  { %2077 = vmatpush.msra.mxu0 %v6044_v21  ;;  %2097 = vmatpush.msra.mxu1 %v6047_v35 }
 0x588   :  { %2117 = vmatpush.msra.mxu2 %v6050_v18  ;;  %2137 = vmatpush.msra.mxu3 %v6053_v23 }
 0x589   :  { %2078 = vmatpush.msra.mxu0 %v6132_v6  ;;  %2098 = vmatpush.msra.mxu1 %v6135_v38 }
 0x58a   :  { %2118 = vmatpush.msra.mxu2 %v6138_v8  ;;  %2138 = vmatpush.msra.mxu3 %v6141_v9 }
 0x58b   :  { %2079 = vmatpush.msra.mxu0 %v6144_v5  ;;  %2099 = vmatpush.msra.mxu1 %v6147_v48 }
 0x58c   :  { %2119 = vmatpush.msra.mxu2 %v6150_v39  ;;  %2139 = vmatpush.msra.mxu3 %v6153_v53 }
 0x58d   :  { %2080 = vmatpush.msra.mxu0 %v6156_v55  ;;  %2100 = vmatpush.msra.mxu1 %v6159_v52 }
 0x58e   :  { %2120 = vmatpush.msra.mxu2 %v8342_v41  ;;  %2140 = vmatpush.msra.mxu3 %v8343_v49 }
 0x58f   :  { %2081 = vmatpush.msra.mxu0 %v8344_v43  ;;  %2101 = vmatpush.msra.mxu1 %v8345_v61 }
 0x590   :  { %2121 = vmatpush.msra.mxu2 %v8346_v51  ;;  %2141 = vmatpush.msra.mxu3 %v8347_v42 }
 0x591   :  { %2082 = vmatpush.msra.mxu0 %v8348_v47  ;;  %2102 = vmatpush.msra.mxu1 %v8349_v59 }
 0x592   :  { %2122 = vmatpush.msra.mxu2 %v8350_v46  ;;  %2142 = vmatpush.msra.mxu3 %v8351_v54 }
 0x593   :  { %2083 = vmatpush.msra.mxu0 %v8352_v58  ;;  %2103 = vmatpush.msra.mxu1 %v8353_v1 }
 0x594   :  { %2123 = vmatpush.msra.mxu2 %v8354_v37  ;;  %2143 = vmatpush.msra.mxu3 %v8355_v45 }
 0x595   :  { %2084 = vmatpush.msra.mxu0 %v8356_v62  ;;  %2104 = vmatpush.msra.mxu1 %v8357_v31  ;;  %v8367_v62 = vld [vmem:[#allocation11_spill] sm:$0xff]  ;;  %v100_v31 = vpop.permute.xlu2 %99 }
 0x596   :  { %2124 = vmatpush.msra.mxu2 %v8358_v56  ;;  %2144 = vmatpush.msra.mxu3 %v8359_v40  ;;  %v8368_v56 = vld [vmem:[#allocation32_spill] sm:$0xff]  ;;  %v8369_v40 = vld [vmem:[#allocation33_spill] sm:$0xff] }
 0x597   :  { %2085 = vmatpush.msra.mxu0 %v8360_v22  ;;  %2105 = vmatpush.msra.mxu1 %v8361_v50  ;;  %v218_v45 = vmul.f32 %v8368_v56, %v100_v31  ;;  %v219_v37 = vmul.f32 %v8369_v40, %v100_v31  ;;  %v8370_v22 = vld [vmem:[#allocation34_spill] sm:$0xff]  ;;  %v8371_v50 = vld [vmem:[#allocation35_spill] sm:$0xff] }
 0x598   :  { %2125 = vmatpush.msra.mxu2 %v8362_v13  ;;  %2145 = vmatpush.msra.mxu3 %v8363_v60 }
 0x599   :  { %2086 = vmatpush.msra.mxu0 %v8364_v30  ;;  %2106 = vmatpush.msra.mxu1 %v8365_v0  ;;  %v323_v1 = vadd.f32 %v8370_v22, %v218_v45  ;;  %v324_v58 = vadd.f32 %v8371_v50, %v219_v37  ;;  %v8372_v30 = vld [vmem:[#allocation36_spill] sm:$0xff]  ;;  %v8374_v50 = vld [vmem:[#allocation38_spill] sm:$0xff] }
 0x59a   :  { %2126 = vmatpush.msra.mxu2 %v8366_v3  ;;  %2146 = vmatpush.msra.mxu3 %v8367_v62  ;;  %v220_v59 = vmul.f32 %v8372_v30, %v100_v31  ;;  %v8373_v62 = vld [vmem:[#allocation37_spill] sm:$0xff] }
 0x59c   :  { %v325_v3 = vadd.f32 %v8373_v62, %v220_v59 }
 0x5f6   :  { %v1784_v13 = vpop.f32.mrf.mxu0  ;;  %v1804_v54 = vpop.f32.mrf.mxu1 }
 0x5f7   :  { %v1847_v60 = vadd.f32 %v1784_v13, %v323_v1  ;;  %v1848_v46 = vadd.f32 %v1804_v54, %v324_v58  ;;  %v221_v1 = vmul.f32 %v8374_v50, %v100_v31  ;;  %v8375_v13 = vld [vmem:[#allocation39_spill] sm:$0xff] }
 0x5f9   :  { %v4225_v0 = vmul.f32 -1.442695, %v1847_v60  ;;  %v4226_v47 = vmul.f32 -1.442695, %v1848_v46  ;;  %v326_v46 = vadd.f32 %v8375_v13, %v221_v1 }
 0x5fb   :  { %4409 = vpow2.f32 %v4225_v0 }
 0x5fc   :  { %4411 = vpow2.f32 %v4226_v47 }
 0x5fd   :  { %v1824_v42 = vpop.f32.mrf.mxu2  ;;  %v1844_v54 = vpop.f32.mrf.mxu3 }
 0x5fe   :  { %v1849_v56 = vadd.f32 %v1824_v42, %v325_v3  ;;  %v1850_v0 = vadd.f32 %v1844_v54, %v326_v46 }
 0x600   :  { %v4227_v51 = vmul.f32 -1.442695, %v1849_v56 }
 0x601   :  { %v4410_v40 = vpop.eup %4409 }
 0x602   :  { %v4412_v61 = vpop.eup %4411  ;;  %v1860_v45 = vadd.f32 1.0, %v4410_v40  ;;  %4413 = vpow2.f32 %v4227_v51 }
 0x603   :  { %v1861_v37 = vadd.f32 1.0, %v4412_v61 }
 0x604   :  { %4415 = vrcp.f32 %v1860_v45  ;;  %v1874_v40 = vand.u32 2147483648, %v1860_v45  ;;  %v1872_v31 = vand.u32 2147483647, %v1860_v45  ;;  %vm1868_vm2 = vweird.f32 %v1860_v45 }
 0x605   :  { %4417 = vrcp.f32 %v1861_v37  ;;  %v1889_v61 = vand.u32 2147483648, %v1861_v37  ;;  %v1887_v30 = vand.u32 2147483647, %v1861_v37  ;;  %vm1883_vm3 = vweird.f32 %v1861_v37 }
 0x606   :  { %vm1873_vm6 = vcmp.eq.f32.partialorder %v1872_v31, 8.507059e+37 }
 0x607   :  { %vm1888_vm7 = vcmp.eq.f32.partialorder %v1887_v30, 8.507059e+37 }
 0x608   :  { %v4414_v58 = vpop.eup %4413 }
 0x609   :  { %v1862_v60 = vadd.f32 1.0, %v4414_v58  ;;  %v1875_v58 = vor.u32 1.1754944e-38, %v1874_v40 }
 0x60a   :  { %v4416_v47 = vpop.eup %4415 }
 0x60b   :  { %v4418_v59 = vpop.eup %4417  ;;  %v1864_v62 = vmul.f32 %v4416_v47, %v1860_v45  ;;  %4419 = vrcp.f32 %v1862_v60  ;;  %vm1869_vm0 = vweird.f32 %v4416_v47  ;;  %vm1898_vm9 = vweird.f32 %v1862_v60 }
 0x60c   :  { %v1879_v42 = vmul.f32 %v4418_v59, %v1861_v37  ;;  %4421 = vtanh.f32 %v1850_v0  ;;  %vm1884_vm1 = vweird.f32 %v4418_v59  ;;  %vm1870_vm4 = vmor %vm1868_vm2, %vm1869_vm0 }
 0x60d   :  { %v1865_v56 = vsub.f32 1.0, %v1864_v62  ;;  %vm1885_vm5 = vmor %vm1883_vm3, %vm1884_vm1  ;;  %v1890_v62 = vor.u32 1.1754944e-38, %v1889_v61 }
 0x60e   :  { %v1880_v3 = vsub.f32 1.0, %v1879_v42 }
 0x60f   :  { %v1866_v51 = vmul.f32 %v4416_v47, %v1865_v56 }
 0x610   :  { %v1881_v50 = vmul.f32 %v4418_v59, %v1880_v3 }
 0x611   :  { %v4420_v22 = vpop.eup %4419  ;;  %v1867_v1 = vadd.f32 %v4416_v47, %v1866_v51 }
 0x612   :  { %v1894_v54 = vmul.f32 %v4420_v22, %v1862_v60  ;;  %v1882_v46 = vadd.f32 %v4418_v59, %v1881_v50  ;;  %v4422_v0 = vpop.eup %4421  ;;  %vm1899_vm8 = vweird.f32 %v4420_v22  ;;  %v1904_v50 = vand.u32 2147483648, %v1862_v60 }
 0x613   :  { %v1871_v42 = vsel %vm1870_vm4, %v4416_v47, %v1867_v1  ;;  %v1902_v47 = vand.u32 2147483647, %v1862_v60  ;;  %vm1900_vm10 = vmor %vm1898_vm9, %vm1899_vm8  ;;  %v8405_v60 = vld [vmem:[#allocation35_spill] sm:$0xff] }
 0x614   :  { %v1895_v13 = vsub.f32 1.0, %v1894_v54  ;;  %v1876_v56 = vsel %vm1873_vm6, %v1875_v58, %v1871_v42  ;;  %v1886_v43 = vsel %vm1885_vm5, %v4418_v59, %v1882_v46  ;;  %v1905_v61 = vor.u32 1.1754944e-38, %v1904_v50 }
 0x615   :  { %v1891_v3 = vsel %vm1888_vm7, %v1890_v62, %v1886_v43  ;;  %v1910_v49 = vmul.f32 %v4422_v0, %v1876_v56  ;;  %vm1903_vm11 = vcmp.eq.f32.partialorder %v1902_v47, 8.507059e+37  ;;  %v8406_v62 = vld [vmem:[#allocation36_spill] sm:$0xff] }
 0x616   :  { %v1909_v41 = vmul.f32 %v1891_v3, %v6249_v63  ;;  %v1896_v51 = vmul.f32 %v4420_v22, %v1895_v13  ;;  %v8407_v3 = vld [vmem:[#allocation37_spill] sm:$0xff] }
 0x618   :  { %v6325_v45 = vadd.f32 %v1910_v49, %v1909_v41  ;;  %v1897_v37 = vadd.f32 %v4420_v22, %v1896_v51  ;;  %v8403_v41 = vld [vmem:[#allocation33_spill] sm:$0xff] }
 0x61a   :  { %4423 = vtanh.f32 %v6325_v45  ;;  %v1901_v40 = vsel %vm1900_vm10, %v4420_v22, %v1897_v37  ;;  %v8404_v22 = vld [vmem:[#allocation34_spill] sm:$0xff] }
 0x61b   :  { %v1906_v30 = vsel %vm1903_vm11, %v1905_v61, %v1901_v40 }
 0x620   :  { %v4424_v59 = vpop.eup %4423 }
 0x621   :  { %v1913_v43 = vmul.f32 %v4424_v59, %v1906_v30 }
 0x623   :  { %1935 = vmatmul.f32.vlgmr.msrb.gmra.mxu0 %v1913_v43  ;;  %1955 = vmatmul.f32.vlgmr.msrb.gmra.mxu1 %v1913_v43 }
 0x624   :  { %1975 = vmatmul.f32.vlgmr.msrb.gmra.mxu2 %v1913_v43  ;;  %1995 = vmatmul.f32.vlgmr.msrb.gmra.mxu3 %v1913_v43  ;;  %v8408_v43 = vld [vmem:[#allocation38_spill] sm:$0xff] }
 0x625   :  { %2223 = vmatpush.msrb.mxu0 %v5972_v2  ;;  %2243 = vmatpush.msrb.mxu1 %v5975_v16  ;;  %v8376_v2 = vld [vmem:[#allocation12_spill] sm:$0xff]  ;;  %v8377_v16 = vld [vmem:[#allocation13_spill] sm:$0xff] }
 0x626   :  { %2263 = vmatpush.msrb.mxu2 %v5978_v14  ;;  %2283 = vmatpush.msrb.mxu3 %v5981_v10  ;;  %v8378_v14 = vld [vmem:[#allocation14_spill] sm:$0xff]  ;;  %v8379_v10 = vld [vmem:[#allocation15_spill] sm:$0xff] }
 0x627   :  { %2224 = vmatpush.msrb.mxu0 %v5984_v19  ;;  %2244 = vmatpush.msrb.mxu1 %v5987_v27  ;;  %v8380_v19 = vld [vmem:[#allocation16_spill] sm:$0xff]  ;;  %v8381_v27 = vld [vmem:[#allocation17_spill] sm:$0xff] }
 0x628   :  { %2264 = vmatpush.msrb.mxu2 %v5990_v15  ;;  %2284 = vmatpush.msrb.mxu3 %v5993_v26  ;;  %v8382_v15 = vld [vmem:[#allocation18_spill] sm:$0xff]  ;;  %v8383_v26 = vld [vmem:[#allocation19_spill] sm:$0xff] }
 0x629   :  { %2225 = vmatpush.msrb.mxu0 %v5996_v24  ;;  %2245 = vmatpush.msrb.mxu1 %v5999_v44  ;;  %v8384_v24 = vld [vmem:[#allocation20_spill] sm:$0xff]  ;;  %v8385_v44 = vld [vmem:[#allocation21_spill] sm:$0xff] }
 0x62a   :  { %2265 = vmatpush.msrb.mxu2 %v6002_v28  ;;  %2285 = vmatpush.msrb.mxu3 %v6005_v12  ;;  %v8386_v28 = vld [vmem:[#allocation22_spill] sm:$0xff]  ;;  %v8387_v12 = vld [vmem:[#allocation23_spill] sm:$0xff] }
 0x62b   :  { %2226 = vmatpush.msrb.mxu0 %v6008_v57  ;;  %2246 = vmatpush.msrb.mxu1 %v6011_v25  ;;  %v8388_v57 = vld [vmem:[#allocation24_spill] sm:$0xff]  ;;  %v8389_v25 = vld [vmem:[#allocation25_spill] sm:$0xff] }
 0x62c   :  { %2266 = vmatpush.msrb.mxu2 %v6014_v32  ;;  %2286 = vmatpush.msrb.mxu3 %v6017_v7  ;;  %v8390_v32 = vld [vmem:[#allocation26_spill] sm:$0xff]  ;;  %v8391_v7 = vld [vmem:[#allocation27_spill] sm:$0xff] }
 0x62d   :  { %2227 = vmatpush.msrb.mxu0 %v6020_v36  ;;  %2247 = vmatpush.msrb.mxu1 %v6023_v11  ;;  %v8392_v36 = vld [vmem:[#allocation28_spill] sm:$0xff]  ;;  %v8393_v11 = vld [vmem:[#allocation29_spill] sm:$0xff] }
 0x62e   :  { %2267 = vmatpush.msrb.mxu2 %v6026_v20  ;;  %2287 = vmatpush.msrb.mxu3 %v8313_v33  ;;  %v8394_v20 = vld [vmem:[#allocation30_spill] sm:$0xff]  ;;  %v8401_v33 = vld [vmem:[#allocation11_spill] sm:$0xff] }
 0x62f   :  { %2228 = vmatpush.msrb.mxu0 %v8314_v29  ;;  %2248 = vmatpush.msrb.mxu1 %v8315_v4  ;;  %v105_v29 = vpop.permute.xlu0 %104  ;;  %v8402_v4 = vld [vmem:[#allocation32_spill] sm:$0xff] }
 0x630   :  { %2268 = vmatpush.msrb.mxu2 %v6038_v17  ;;  %2288 = vmatpush.msrb.mxu3 %v6041_v34  ;;  %v8398_v17 = vld [vmem:[#allocation8_spill] sm:$0xff]  ;;  %v8399_v34 = vld [vmem:[#allocation9_spill] sm:$0xff]  ;;  %v222_v63 = vmul.f32 %v8402_v4, %v105_v29  ;;  %v223_v49 = vmul.f32 %v8403_v41, %v105_v29  ;;  %v224_v42 = vmul.f32 %v8406_v62, %v105_v29 }
 0x631   :  { %2229 = vmatpush.msrb.mxu0 %v6044_v21  ;;  %2249 = vmatpush.msrb.mxu1 %v6047_v35  ;;  %v8395_v35 = vld [vmem:[#allocation31_spill] sm:$0xff]  ;;  %v8400_v21 = vld [vmem:[#allocation10_spill] sm:$0xff] }
 0x632   :  { %2269 = vmatpush.msrb.mxu2 %v6050_v18  ;;  %2289 = vmatpush.msrb.mxu3 %v6053_v23  ;;  %v8396_v18 = vld [vmem:[#allocation6_spill] sm:$0xff]  ;;  %v8397_v23 = vld [vmem:[#allocation7_spill] sm:$0xff]  ;;  %v327_v13 = vadd.f32 %v8404_v22, %v222_v63  ;;  %v328_v31 = vadd.f32 %v8405_v60, %v223_v49  ;;  %v329_v51 = vadd.f32 %v8407_v3, %v224_v42 }
 0x633   :  { %2230 = vmatpush.msrb.mxu0 %v6132_v6  ;;  %2250 = vmatpush.msrb.mxu1 %v6135_v38  ;;  %v225_v63 = vmul.f32 %v8408_v43, %v105_v29 }
 0x634   :  { %2270 = vmatpush.msrb.mxu2 %v6138_v8  ;;  %2290 = vmatpush.msrb.mxu3 %v6141_v9 }
 0x635   :  { %2231 = vmatpush.msrb.mxu0 %v6144_v5  ;;  %2251 = vmatpush.msrb.mxu1 %v6147_v48 }
 0x636   :  { %2271 = vmatpush.msrb.mxu2 %v6150_v39  ;;  %2291 = vmatpush.msrb.mxu3 %v6153_v53 }
 0x637   :  { %2232 = vmatpush.msrb.mxu0 %v6156_v55  ;;  %2252 = vmatpush.msrb.mxu1 %v6159_v52 }
 0x638   :  { %2272 = vmatpush.msrb.mxu2 %v8376_v2  ;;  %2292 = vmatpush.msrb.mxu3 %v8377_v16 }
 0x639   :  { %2233 = vmatpush.msrb.mxu0 %v8378_v14  ;;  %2253 = vmatpush.msrb.mxu1 %v8379_v10 }
 0x63a   :  { %2273 = vmatpush.msrb.mxu2 %v8380_v19  ;;  %2293 = vmatpush.msrb.mxu3 %v8381_v27 }
 0x63b   :  { %2234 = vmatpush.msrb.mxu0 %v8382_v15  ;;  %2254 = vmatpush.msrb.mxu1 %v8383_v26 }
 0x63c   :  { %2274 = vmatpush.msrb.mxu2 %v8384_v24  ;;  %2294 = vmatpush.msrb.mxu3 %v8385_v44 }
 0x63d   :  { %2235 = vmatpush.msrb.mxu0 %v8386_v28  ;;  %2255 = vmatpush.msrb.mxu1 %v8387_v12 }
 0x63e   :  { %2275 = vmatpush.msrb.mxu2 %v8388_v57  ;;  %2295 = vmatpush.msrb.mxu3 %v8389_v25 }
 0x63f   :  { %2236 = vmatpush.msrb.mxu0 %v8390_v32  ;;  %2256 = vmatpush.msrb.mxu1 %v8391_v7 }
 0x640   :  { %2276 = vmatpush.msrb.mxu2 %v8392_v36  ;;  %2296 = vmatpush.msrb.mxu3 %v8393_v11 }
 0x641   :  { %2237 = vmatpush.msrb.mxu0 %v8394_v20  ;;  %2257 = vmatpush.msrb.mxu1 %v8395_v35 }
 0x642   :  { %2277 = vmatpush.msrb.mxu2 %v8396_v18  ;;  %2297 = vmatpush.msrb.mxu3 %v8397_v23 }
 0x643   :  { %2238 = vmatpush.msrb.mxu0 %v8398_v17  ;;  %2258 = vmatpush.msrb.mxu1 %v8399_v34 }
 0x644   :  { %2278 = vmatpush.msrb.mxu2 %v8400_v21  ;;  %2298 = vmatpush.msrb.mxu3 %v8401_v33 }
 0x6a0   :  { %v1936_v1 = vpop.f32.mrf.mxu0  ;;  %v1956_v54 = vpop.f32.mrf.mxu1 }
 0x6a1   :  { %v1999_v58 = vadd.f32 %v1936_v1, %v327_v13  ;;  %v2000_v46 = vadd.f32 %v1956_v54, %v328_v31  ;;  %v8409_v31 = vld [vmem:[#allocation39_spill] sm:$0xff] }
 0x6a2   :  { %v330_v1 = vadd.f32 %v8409_v31, %v225_v63 }
 0x6a3   :  { %v4228_v0 = vmul.f32 -1.442695, %v1999_v58  ;;  %v4229_v56 = vmul.f32 -1.442695, %v2000_v46 }
 0x6a5   :  { %4425 = vpow2.f32 %v4228_v0 }
 0x6a6   :  { %4427 = vpow2.f32 %v4229_v56 }
 0x6a7   :  { %v1976_v37 = vpop.f32.mrf.mxu2  ;;  %v1996_v49 = vpop.f32.mrf.mxu3 }
 0x6a8   :  { %v2001_v50 = vadd.f32 %v1976_v37, %v329_v51  ;;  %v2002_v46 = vadd.f32 %v1996_v49, %v330_v1 }
 0x6aa   :  { %v4230_v47 = vmul.f32 -1.442695, %v2001_v50 }
 0x6ab   :  { %v4426_v40 = vpop.eup %4425 }
 0x6ac   :  { %v4428_v61 = vpop.eup %4427  ;;  %v2012_v59 = vadd.f32 1.0, %v4426_v40  ;;  %4429 = vpow2.f32 %v4230_v47 }
 0x6ad   :  { %v2013_v30 = vadd.f32 1.0, %v4428_v61 }
 0x6ae   :  { %4431 = vrcp.f32 %v2012_v59  ;;  %v2026_v50 = vand.u32 2147483648, %v2012_v59  ;;  %v2024_v29 = vand.u32 2147483647, %v2012_v59  ;;  %vm2020_vm14 = vweird.f32 %v2012_v59 }
 0x6af   :  { %4433 = vrcp.f32 %v2013_v30  ;;  %v2041_v47 = vand.u32 2147483648, %v2013_v30  ;;  %v2039_v43 = vand.u32 2147483647, %v2013_v30  ;;  %vm2035_vm15 = vweird.f32 %v2013_v30 }
 0x6b0   :  { %vm2025_vm2 = vcmp.eq.f32.partialorder %v2024_v29, 8.507059e+37 }
 0x6b1   :  { %vm2040_vm3 = vcmp.eq.f32.partialorder %v2039_v43, 8.507059e+37 }
 0x6b2   :  { %v4430_v13 = vpop.eup %4429 }
 0x6b3   :  { %v2014_v54 = vadd.f32 1.0, %v4430_v13  ;;  %v2027_v13 = vor.u32 1.1754944e-38, %v2026_v50 }
 0x6b4   :  { %v4432_v58 = vpop.eup %4431 }
 0x6b5   :  { %v4434_v42 = vpop.eup %4433  ;;  %v2016_v0 = vmul.f32 %v4432_v58, %v2012_v59  ;;  %4435 = vrcp.f32 %v2014_v54  ;;  %vm2021_vm12 = vweird.f32 %v4432_v58  ;;  %v2056_v50 = vand.u32 2147483648, %v2014_v54 }
 0x6b6   :  { %v2031_v56 = vmul.f32 %v4434_v42, %v2013_v30  ;;  %4437 = vtanh.f32 %v2002_v46  ;;  %vm2036_vm13 = vweird.f32 %v4434_v42  ;;  %vm2022_vm0 = vmor %vm2020_vm14, %vm2021_vm12  ;;  %vm2050_vm5 = vweird.f32 %v2014_v54 }
 0x6b7   :  { %v2017_v51 = vsub.f32 1.0, %v2016_v0  ;;  %vm2037_vm1 = vmor %vm2035_vm15, %vm2036_vm13  ;;  %v2042_v0 = vor.u32 1.1754944e-38, %v2041_v47  ;;  %v2057_v29 = vor.u32 1.1754944e-38, %v2056_v50  ;;  %v6458_v50 = vld [vmem:[#allocation3 + $0x170] sm:$0xff] }
 0x6b8   :  { %v2032_v37 = vsub.f32 1.0, %v2031_v56 }
 0x6b9   :  { %v2018_v40 = vmul.f32 %v4432_v58, %v2017_v51 }
 0x6ba   :  { %v2033_v61 = vmul.f32 %v4434_v42, %v2032_v37 }
 0x6bb   :  { %v4436_v3 = vpop.eup %4435  ;;  %v2019_v63 = vadd.f32 %v4432_v58, %v2018_v40 }
 0x6bc   :  { %v2046_v49 = vmul.f32 %v4436_v3, %v2014_v54  ;;  %v2034_v1 = vadd.f32 %v4434_v42, %v2033_v61  ;;  %v4438_v46 = vpop.eup %4437  ;;  %vm2051_vm4 = vweird.f32 %v4436_v3  ;;  %v6422_v61 = vld [vmem:[#allocation3 + $0x1d0] sm:$0xff] }
 0x6bd   :  { %v2023_v56 = vsel %vm2022_vm0, %v4432_v58, %v2019_v63  ;;  %v2054_v58 = vand.u32 2147483647, %v2014_v54  ;;  %vm2052_vm6 = vmor %vm2050_vm5, %vm2051_vm4  ;;  %v6419_v54 = vld [vmem:[#allocation3 + $0x1c8] sm:$0xff]  ;;  %v6425_v63 = vld [vmem:[#allocation3 + $0x1d8] sm:$0xff] }
 0x6be   :  { %v2047_v31 = vsub.f32 1.0, %v2046_v49  ;;  %v2028_v51 = vsel %vm2025_vm2, %v2027_v13, %v2023_v56  ;;  %v2038_v62 = vsel %vm2037_vm1, %v4434_v42, %v2034_v1  ;;  %v6428_v49 = vld [vmem:[#allocation3 + $0x1a0] sm:$0xff]  ;;  %v6431_v13 = vld [vmem:[#allocation3 + $0x1a8] sm:$0xff]  ;;  %v6434_v1 = vld [vmem:[#allocation3 + $0x1b0] sm:$0xff] }
 0x6bf   :  { %v2043_v37 = vsel %vm2040_vm3, %v2042_v0, %v2038_v62  ;;  %v2062_v60 = vmul.f32 %v4438_v46, %v2028_v51  ;;  %vm2055_vm7 = vcmp.eq.f32.partialorder %v2054_v58, 8.507059e+37  ;;  %v6437_v0 = vld [vmem:[#allocation3 + $0x1b8] sm:$0xff]  ;;  %v6440_v56 = vld [vmem:[#allocation3 + $0x180] sm:$0xff]  ;;  %v6443_v46 = vld [vmem:[#allocation3 + $0x188] sm:$0xff] }
 0x6c0   :  { %v2061_v22 = vmul.f32 %v2043_v37, %v6325_v45  ;;  %v2048_v40 = vmul.f32 %v4436_v3, %v2047_v31  ;;  %v6404_v45 = vld [vmem:[#allocation3 + $0x1e0] sm:$0xff]  ;;  %v6446_v51 = vld [vmem:[#allocation3 + $0x190] sm:$0xff]  ;;  %v6449_v37 = vld [vmem:[#allocation3 + $0x198] sm:$0xff] }
 0x6c1   :  { %v6416_v31 = vld [vmem:[#allocation3 + $0x1c0] sm:$0xff]  ;;  %v6461_v58 = vld [vmem:[#allocation3 + $0x178] sm:$0xff] }
 0x6c2   :  { %v6401_v59 = vadd.f32 %v2062_v60, %v2061_v22  ;;  %v2049_v30 = vadd.f32 %v4436_v3, %v2048_v40  ;;  %v6407_v22 = vld [vmem:[#allocation3 + $0x1e8] sm:$0xff]  ;;  %v6410_v60 = vld [vmem:[#allocation3 + $0x1f0] sm:$0xff]  ;;  %v6452_v40 = vld [vmem:[#allocation3 + $0x160] sm:$0xff]  ;;  %8410 = vst [vmem:[#allocation12_spill] sm:$0xff] %v6461_v58 }
 0x6c4   :  { %4439 = vtanh.f32 %v6401_v59  ;;  %v2053_v47 = vsel %vm2052_vm6, %v4436_v3, %v2049_v30  ;;  %v6413_v3 = vld [vmem:[#allocation3 + $0x1f8] sm:$0xff]  ;;  %v6455_v30 = vld [vmem:[#allocation3 + $0x168] sm:$0xff] }
 0x6c5   :  { %v2058_v43 = vsel %vm2055_vm7, %v2057_v29, %v2053_v47  ;;  %v6464_v47 = vld [vmem:[#allocation3 + $0x140] sm:$0xff]  ;;  %v6467_v29 = vld [vmem:[#allocation3 + $0x148] sm:$0xff] }
 0x6c6   :  { %8411 = vst [vmem:[#allocation13_spill] sm:$0xff] %v6464_v47 }
 0x6c7   :  { %8412 = vst [vmem:[#allocation14_spill] sm:$0xff] %v6467_v29 }
 0x6ca   :  { %v4440_v42 = vpop.eup %4439 }
 0x6cb   :  { %v2065_v62 = vmul.f32 %v4440_v42, %v2058_v43  ;;  %v6470_v42 = vld [vmem:[#allocation3 + $0x150] sm:$0xff]  ;;  %v6473_v43 = vld [vmem:[#allocation3 + $0x158] sm:$0xff] }
 0x6cd   :  { %2087 = vmatmul.f32.vlgmr.msra.gmra.mxu0 %v2065_v62  ;;  %2107 = vmatmul.f32.vlgmr.msra.gmra.mxu1 %v2065_v62 }
 0x6ce   :  { %2127 = vmatmul.f32.vlgmr.msra.gmra.mxu2 %v2065_v62  ;;  %2147 = vmatmul.f32.vlgmr.msra.gmra.mxu3 %v2065_v62  ;;  %v6476_v62 = vld [vmem:[#allocation3 + $0x120] sm:$0xff] }
 0x6cf   :  { %2375 = vmatpush.msra.mxu0 %v6404_v45  ;;  %2395 = vmatpush.msra.mxu1 %v6407_v22 }
 0x6d0   :  { %2415 = vmatpush.msra.mxu2 %v6410_v60  ;;  %2435 = vmatpush.msra.mxu3 %v6413_v3 }
 0x6d1   :  { %2376 = vmatpush.msra.mxu0 %v6416_v31  ;;  %2396 = vmatpush.msra.mxu1 %v6419_v54 }
 0x6d2   :  { %2416 = vmatpush.msra.mxu2 %v6422_v61  ;;  %2436 = vmatpush.msra.mxu3 %v6425_v63 }
 0x6d3   :  { %2377 = vmatpush.msra.mxu0 %v6428_v49  ;;  %2397 = vmatpush.msra.mxu1 %v6431_v13 }
 0x6d4   :  { %2417 = vmatpush.msra.mxu2 %v6434_v1  ;;  %2437 = vmatpush.msra.mxu3 %v6437_v0 }
 0x6d5   :  { %2378 = vmatpush.msra.mxu0 %v6440_v56  ;;  %2398 = vmatpush.msra.mxu1 %v6443_v46 }
 0x6d6   :  { %2418 = vmatpush.msra.mxu2 %v6446_v51  ;;  %2438 = vmatpush.msra.mxu3 %v6449_v37 }
 0x6d7   :  { %2379 = vmatpush.msra.mxu0 %v6452_v40  ;;  %2399 = vmatpush.msra.mxu1 %v6455_v30 }
 0x6d8   :  { %2419 = vmatpush.msra.mxu2 %v6458_v50  ;;  %2439 = vmatpush.msra.mxu3 %v6461_v58  ;;  %v6479_v58 = vld [vmem:[#allocation3 + $0x128] sm:$0xff] }
 0x6d9   :  { %2380 = vmatpush.msra.mxu0 %v6464_v47  ;;  %2400 = vmatpush.msra.mxu1 %v6467_v29  ;;  %v6482_v47 = vld [vmem:[#allocation3 + $0x130] sm:$0xff]  ;;  %v6485_v29 = vld [vmem:[#allocation3 + $0x138] sm:$0xff] }
 0x6da   :  { %2420 = vmatpush.msra.mxu2 %v6470_v42  ;;  %2440 = vmatpush.msra.mxu3 %v6473_v43 }
 0x6db   :  { %2381 = vmatpush.msra.mxu0 %v6476_v62  ;;  %2401 = vmatpush.msra.mxu1 %v6479_v58 }
 0x6dc   :  { %2421 = vmatpush.msra.mxu2 %v6482_v47  ;;  %2441 = vmatpush.msra.mxu3 %v6485_v29 }
 0x6dd   :  { %2382 = vmatpush.msra.mxu0 %v6132_v6  ;;  %2402 = vmatpush.msra.mxu1 %v6135_v38  ;;  %v110_v6 = vpop.permute.xlu1 %109 }
 0x6de   :  { %2422 = vmatpush.msra.mxu2 %v6138_v8  ;;  %2442 = vmatpush.msra.mxu3 %v6141_v9  ;;  %v226_v38 = vmul.f32 %v8402_v4, %v110_v6  ;;  %v227_v8 = vmul.f32 %v8403_v41, %v110_v6  ;;  %v8413_v9 = vld [vmem:[#allocation34_spill] sm:$0xff] }
 0x6df   :  { %2383 = vmatpush.msra.mxu0 %v6144_v5  ;;  %2403 = vmatpush.msra.mxu1 %v6147_v48  ;;  %v8414_v48 = vld [vmem:[#allocation35_spill] sm:$0xff] }
 0x6e0   :  { %2423 = vmatpush.msra.mxu2 %v6150_v39  ;;  %2443 = vmatpush.msra.mxu3 %v6153_v53  ;;  %v331_v5 = vadd.f32 %v8413_v9, %v226_v38  ;;  %v332_v39 = vadd.f32 %v8414_v48, %v227_v8 }
 0x6e1   :  { %2384 = vmatpush.msra.mxu0 %v6156_v55  ;;  %2404 = vmatpush.msra.mxu1 %v6159_v52 }
 0x6e2   :  { %2424 = vmatpush.msra.mxu2 %v8376_v2  ;;  %2444 = vmatpush.msra.mxu3 %v8377_v16  ;;  %v8415_v16 = vld [vmem:[#allocation36_spill] sm:$0xff] }
 0x6e3   :  { %2385 = vmatpush.msra.mxu0 %v8378_v14  ;;  %2405 = vmatpush.msra.mxu1 %v8379_v10  ;;  %v228_v14 = vmul.f32 %v8415_v16, %v110_v6 }
 0x6e4   :  { %2425 = vmatpush.msra.mxu2 %v8380_v19  ;;  %2445 = vmatpush.msra.mxu3 %v8381_v27  ;;  %v8416_v27 = vld [vmem:[#allocation37_spill] sm:$0xff] }
 0x6e5   :  { %2386 = vmatpush.msra.mxu0 %v8382_v15  ;;  %2406 = vmatpush.msra.mxu1 %v8383_v26  ;;  %v333_v15 = vadd.f32 %v8416_v27, %v228_v14 }
 0x6e6   :  { %2426 = vmatpush.msra.mxu2 %v8384_v24  ;;  %2446 = vmatpush.msra.mxu3 %v8385_v44 }
 0x6e7   :  { %2387 = vmatpush.msra.mxu0 %v8386_v28  ;;  %2407 = vmatpush.msra.mxu1 %v8387_v12 }
 0x6e8   :  { %2427 = vmatpush.msra.mxu2 %v8388_v57  ;;  %2447 = vmatpush.msra.mxu3 %v8389_v25 }
 0x6e9   :  { %2388 = vmatpush.msra.mxu0 %v8390_v32  ;;  %2408 = vmatpush.msra.mxu1 %v8391_v7  ;;  %v8417_v32 = vld [vmem:[#allocation38_spill] sm:$0xff] }
 0x6ea   :  { %2428 = vmatpush.msra.mxu2 %v8392_v36  ;;  %2448 = vmatpush.msra.mxu3 %v8393_v11  ;;  %v229_v7 = vmul.f32 %v8417_v32, %v110_v6 }
 0x6eb   :  { %2389 = vmatpush.msra.mxu0 %v8394_v20  ;;  %2409 = vmatpush.msra.mxu1 %v8395_v35  ;;  %v8418_v20 = vld [vmem:[#allocation39_spill] sm:$0xff] }
 0x6ec   :  { %2429 = vmatpush.msra.mxu2 %v8396_v18  ;;  %2449 = vmatpush.msra.mxu3 %v8397_v23  ;;  %v334_v35 = vadd.f32 %v8418_v20, %v229_v7 }
 0x6ed   :  { %2390 = vmatpush.msra.mxu0 %v8398_v17  ;;  %2410 = vmatpush.msra.mxu1 %v8399_v34 }
 0x6ee   :  { %2430 = vmatpush.msra.mxu2 %v8400_v21  ;;  %2450 = vmatpush.msra.mxu3 %v8401_v33 }
 0x74a   :  { %v2088_v53 = vpop.f32.mrf.mxu0  ;;  %v2108_v55 = vpop.f32.mrf.mxu1 }
 0x74b   :  { %v2151_v52 = vadd.f32 %v2088_v53, %v331_v5  ;;  %v2152_v2 = vadd.f32 %v2108_v55, %v332_v39 }
 0x74d   :  { %v4231_v10 = vmul.f32 -1.442695, %v2151_v52  ;;  %v4232_v19 = vmul.f32 -1.442695, %v2152_v2 }
 0x74f   :  { %4441 = vpow2.f32 %v4231_v10 }
 0x750   :  { %4443 = vpow2.f32 %v4232_v19 }
 0x751   :  { %v2128_v26 = vpop.f32.mrf.mxu2  ;;  %v2148_v36 = vpop.f32.mrf.mxu3 }
 0x752   :  { %v2153_v24 = vadd.f32 %v2128_v26, %v333_v15  ;;  %v2154_v17 = vadd.f32 %v2148_v36, %v334_v35 }
 0x754   :  { %v4233_v44 = vmul.f32 -1.442695, %v2153_v24 }
 0x755   :  { %v4442_v28 = vpop.eup %4441 }
 0x756   :  { %v4444_v12 = vpop.eup %4443  ;;  %v2164_v57 = vadd.f32 1.0, %v4442_v28  ;;  %4445 = vpow2.f32 %v4233_v44 }
 0x757   :  { %v2165_v25 = vadd.f32 1.0, %v4444_v12 }
 0x758   :  { %4447 = vrcp.f32 %v2164_v57  ;;  %v2178_v5 = vand.u32 2147483648, %v2164_v57  ;;  %v2176_v6 = vand.u32 2147483647, %v2164_v57  ;;  %vm2172_vm10 = vweird.f32 %v2164_v57 }
 0x759   :  { %4449 = vrcp.f32 %v2165_v25  ;;  %v2193_v39 = vand.u32 2147483648, %v2165_v25  ;;  %v2191_v52 = vand.u32 2147483647, %v2165_v25  ;;  %vm2187_vm11 = vweird.f32 %v2165_v25 }
 0x75a   :  { %v2179_v19 = vor.u32 1.1754944e-38, %v2178_v5  ;;  %vm2177_vm14 = vcmp.eq.f32.partialorder %v2176_v6, 8.507059e+37  ;;  %v6567_v6 = vld [vmem:[#allocation3 + $0x108] sm:$0xff] }
 0x75b   :  { %v2194_v26 = vor.u32 1.1754944e-38, %v2193_v39  ;;  %vm2192_vm15 = vcmp.eq.f32.partialorder %v2191_v52, 8.507059e+37  ;;  %v8421_v39 = vld [vmem:[#allocation14_spill] sm:$0xff]  ;;  %v6573_v52 = vld [vmem:[#allocation3 + $0x118] sm:$0xff] }
 0x75c   :  { %v4446_v11 = vpop.eup %4445 }
 0x75d   :  { %v2166_v18 = vadd.f32 1.0, %v4446_v11 }
 0x75e   :  { %v4448_v23 = vpop.eup %4447 }
 0x75f   :  { %v4450_v34 = vpop.eup %4449  ;;  %v2168_v21 = vmul.f32 %v4448_v23, %v2164_v57  ;;  %4451 = vrcp.f32 %v2166_v18  ;;  %vm2173_vm8 = vweird.f32 %v4448_v23  ;;  %vm2202_vm1 = vweird.f32 %v2166_v18 }
 0x760   :  { %v2183_v33 = vmul.f32 %v4450_v34, %v2165_v25  ;;  %4453 = vtanh.f32 %v2154_v17  ;;  %vm2188_vm9 = vweird.f32 %v4450_v34  ;;  %vm2174_vm12 = vmor %vm2172_vm10, %vm2173_vm8 }
 0x761   :  { %v2169_v38 = vsub.f32 1.0, %v2168_v21  ;;  %vm2189_vm13 = vmor %vm2187_vm11, %vm2188_vm9  ;;  %v2208_v21 = vand.u32 2147483648, %v2166_v18 }
 0x762   :  { %v2184_v8 = vsub.f32 1.0, %v2183_v33 }
 0x763   :  { %v2170_v53 = vmul.f32 %v4448_v23, %v2169_v38  ;;  %v2209_v38 = vor.u32 1.1754944e-38, %v2208_v21  ;;  %v6624_v21 = vld [vmem:[#allocation3 + $0x60] sm:$0xff] }
 0x764   :  { %v2185_v55 = vmul.f32 %v4450_v34, %v2184_v8  ;;  %8432 = vst [vmem:[#allocation25_spill] sm:$0xff] %v6624_v21 }
 0x765   :  { %v4452_v2 = vpop.eup %4451  ;;  %v2171_v14 = vadd.f32 %v4448_v23, %v2170_v53  ;;  %v6564_v53 = vld [vmem:[#allocation3 + $0x100] sm:$0xff] }
 0x766   :  { %v2198_v10 = vmul.f32 %v4452_v2, %v2166_v18  ;;  %v2186_v15 = vadd.f32 %v4450_v34, %v2185_v55  ;;  %v4454_v44 = vpop.eup %4453  ;;  %vm2203_vm0 = vweird.f32 %v4452_v2  ;;  %v6570_v55 = vld [vmem:[#allocation3 + $0x110] sm:$0xff] }
 0x767   :  { %v2175_v24 = vsel %vm2174_vm12, %v4448_v23, %v2171_v14  ;;  %v2206_v23 = vand.u32 2147483647, %v2166_v18  ;;  %vm2204_vm2 = vmor %vm2202_vm1, %vm2203_vm0  ;;  %v8420_v18 = vld [vmem:[#allocation13_spill] sm:$0xff]  ;;  %v6579_v14 = vld [vmem:[#allocation3 + $0xe8] sm:$0xff] }
 0x768   :  { %v2199_v28 = vsub.f32 1.0, %v2198_v10  ;;  %v2180_v12 = vsel %vm2177_vm14, %v2179_v19, %v2175_v24  ;;  %v2190_v7 = vsel %vm2189_vm13, %v4450_v34, %v2186_v15  ;;  %v6582_v10 = vld [vmem:[#allocation3 + $0xf0] sm:$0xff]  ;;  %v6585_v19 = vld [vmem:[#allocation3 + $0xf8] sm:$0xff]  ;;  %v6588_v15 = vld [vmem:[#allocation3 + $0xc0] sm:$0xff] }
 0x769   :  { %v2195_v36 = vsel %vm2192_vm15, %v2194_v26, %v2190_v7  ;;  %v2214_v11 = vmul.f32 %v4454_v44, %v2180_v12  ;;  %vm2207_vm3 = vcmp.eq.f32.partialorder %v2206_v23, 8.507059e+37  ;;  %v6591_v26 = vld [vmem:[#allocation3 + $0xc8] sm:$0xff]  ;;  %v6594_v24 = vld [vmem:[#allocation3 + $0xd0] sm:$0xff]  ;;  %v6597_v44 = vld [vmem:[#allocation3 + $0xd8] sm:$0xff] }
 0x76a   :  { %v2213_v35 = vmul.f32 %v2195_v36, %v6401_v59  ;;  %v2200_v17 = vmul.f32 %v4452_v2, %v2199_v28  ;;  %v8419_v59 = vld [vmem:[#allocation12_spill] sm:$0xff]  ;;  %8422 = vst [vmem:[#allocation15_spill] sm:$0xff] %v6594_v24  ;;  %v6600_v28 = vld [vmem:[#allocation3 + $0xa0] sm:$0xff]  ;;  %v6603_v12 = vld [vmem:[#allocation3 + $0xa8] sm:$0xff] }
 0x76b   :  { %8423 = vst [vmem:[#allocation16_spill] sm:$0xff] %v6597_v44  ;;  %v6606_v7 = vld [vmem:[#allocation3 + $0xb0] sm:$0xff]  ;;  %v6609_v36 = vld [vmem:[#allocation3 + $0xb8] sm:$0xff]  ;;  %v6627_v23 = vld [vmem:[#allocation3 + $0x68] sm:$0xff] }
 0x76c   :  { %v6533_v57 = vadd.f32 %v2214_v11, %v2213_v35  ;;  %v2201_v25 = vadd.f32 %v4452_v2, %v2200_v17  ;;  %8424 = vst [vmem:[#allocation17_spill] sm:$0xff] %v6600_v28  ;;  %v6612_v11 = vld [vmem:[#allocation3 + $0x80] sm:$0xff]  ;;  %v6615_v35 = vld [vmem:[#allocation3 + $0x88] sm:$0xff]  ;;  %v6618_v17 = vld [vmem:[#allocation3 + $0x90] sm:$0xff] }
 0x76d   :  { %8425 = vst [vmem:[#allocation18_spill] sm:$0xff] %v6603_v12 }
 0x76e   :  { %4455 = vtanh.f32 %v6533_v57  ;;  %v2205_v33 = vsel %vm2204_vm2, %v4452_v2, %v2201_v25  ;;  %v6576_v2 = vld [vmem:[#allocation3 + $0xe0] sm:$0xff]  ;;  %8426 = vst [vmem:[#allocation19_spill] sm:$0xff] %v6606_v7  ;;  %v6621_v25 = vld [vmem:[#allocation3 + $0x98] sm:$0xff] }
 0x76f   :  { %v2210_v8 = vsel %vm2207_vm3, %v2209_v38, %v2205_v33  ;;  %8427 = vst [vmem:[#allocation20_spill] sm:$0xff] %v6609_v36  ;;  %v6630_v33 = vld [vmem:[#allocation3 + $0x70] sm:$0xff]  ;;  %v6633_v38 = vld [vmem:[#allocation3 + $0x78] sm:$0xff] }
 0x770   :  { %8428 = vst [vmem:[#allocation21_spill] sm:$0xff] %v6612_v11 }
 0x771   :  { %8429 = vst [vmem:[#allocation22_spill] sm:$0xff] %v6615_v35 }
 0x772   :  { %8430 = vst [vmem:[#allocation23_spill] sm:$0xff] %v6618_v17 }
 0x773   :  { %8431 = vst [vmem:[#allocation24_spill] sm:$0xff] %v6621_v25 }
 0x774   :  { %v4456_v34 = vpop.eup %4455  ;;  %8433 = vst [vmem:[#allocation26_spill] sm:$0xff] %v6627_v23 }
 0x775   :  { %v2217_v5 = vmul.f32 %v4456_v34, %v2210_v8  ;;  %8434 = vst [vmem:[#allocation27_spill] sm:$0xff] %v6630_v33  ;;  %v6636_v34 = vld [vmem:[#allocation3 + $0x40] sm:$0xff]  ;;  %v6639_v8 = vld [vmem:[#allocation3 + $0x48] sm:$0xff] }
 0x776   :  { %8435 = vst [vmem:[#allocation28_spill] sm:$0xff] %v6633_v38 }
 0x777   :  { %2239 = vmatmul.f32.vlgmr.msrb.gmra.mxu0 %v2217_v5  ;;  %2259 = vmatmul.f32.vlgmr.msrb.gmra.mxu1 %v2217_v5  ;;  %8436 = vst [vmem:[#allocation29_spill] sm:$0xff] %v6636_v34 }
 0x778   :  { %2279 = vmatmul.f32.vlgmr.msrb.gmra.mxu2 %v2217_v5  ;;  %2299 = vmatmul.f32.vlgmr.msrb.gmra.mxu3 %v2217_v5  ;;  %8437 = vst [vmem:[#allocation30_spill] sm:$0xff] %v6639_v8  ;;  %v6642_v5 = vld [vmem:[#allocation3 + $0x50] sm:$0xff] }
 0x779   :  { %2527 = vmatpush.msrb.mxu0 %v6404_v45  ;;  %2547 = vmatpush.msrb.mxu1 %v6407_v22  ;;  %8438 = vst [vmem:[#allocation31_spill] sm:$0xff] %v6642_v5 }
 0x77a   :  { %2567 = vmatpush.msrb.mxu2 %v6410_v60  ;;  %2587 = vmatpush.msrb.mxu3 %v6413_v3 }
 0x77b   :  { %2528 = vmatpush.msrb.mxu0 %v6416_v31  ;;  %2548 = vmatpush.msrb.mxu1 %v6419_v54 }
 0x77c   :  { %2568 = vmatpush.msrb.mxu2 %v6422_v61  ;;  %2588 = vmatpush.msrb.mxu3 %v6425_v63 }
 0x77d   :  { %2529 = vmatpush.msrb.mxu0 %v6428_v49  ;;  %2549 = vmatpush.msrb.mxu1 %v6431_v13 }
 0x77e   :  { %2569 = vmatpush.msrb.mxu2 %v6434_v1  ;;  %2589 = vmatpush.msrb.mxu3 %v6437_v0 }
 0x77f   :  { %2530 = vmatpush.msrb.mxu0 %v6440_v56  ;;  %2550 = vmatpush.msrb.mxu1 %v6443_v46 }
 0x780   :  { %2570 = vmatpush.msrb.mxu2 %v6446_v51  ;;  %2590 = vmatpush.msrb.mxu3 %v6449_v37 }
 0x781   :  { %2531 = vmatpush.msrb.mxu0 %v6452_v40  ;;  %2551 = vmatpush.msrb.mxu1 %v6455_v30 }
 0x782   :  { %2571 = vmatpush.msrb.mxu2 %v6458_v50  ;;  %2591 = vmatpush.msrb.mxu3 %v8419_v59 }
 0x783   :  { %2532 = vmatpush.msrb.mxu0 %v8420_v18  ;;  %2552 = vmatpush.msrb.mxu1 %v8421_v39 }
 0x784   :  { %2572 = vmatpush.msrb.mxu2 %v6470_v42  ;;  %2592 = vmatpush.msrb.mxu3 %v6473_v43 }
 0x785   :  { %2533 = vmatpush.msrb.mxu0 %v6476_v62  ;;  %2553 = vmatpush.msrb.mxu1 %v6479_v58 }
 0x786   :  { %2573 = vmatpush.msrb.mxu2 %v6482_v47  ;;  %2593 = vmatpush.msrb.mxu3 %v6485_v29 }
 0x787   :  { %2534 = vmatpush.msrb.mxu0 %v6564_v53  ;;  %2554 = vmatpush.msrb.mxu1 %v6567_v6 }
 0x788   :  { %2574 = vmatpush.msrb.mxu2 %v6570_v55  ;;  %2594 = vmatpush.msrb.mxu3 %v6573_v52 }
 0x789   :  { %2535 = vmatpush.msrb.mxu0 %v6576_v2  ;;  %2555 = vmatpush.msrb.mxu1 %v6579_v14 }
 0x78a   :  { %2575 = vmatpush.msrb.mxu2 %v6582_v10  ;;  %2595 = vmatpush.msrb.mxu3 %v6585_v19 }
 0x78b   :  { %2536 = vmatpush.msrb.mxu0 %v6588_v15  ;;  %2556 = vmatpush.msrb.mxu1 %v6591_v26 }
 0x78c   :  { %2576 = vmatpush.msrb.mxu2 %v6594_v24  ;;  %2596 = vmatpush.msrb.mxu3 %v6597_v44 }
 0x78d   :  { %2537 = vmatpush.msrb.mxu0 %v6600_v28  ;;  %2557 = vmatpush.msrb.mxu1 %v6603_v12 }
 0x78e   :  { %2577 = vmatpush.msrb.mxu2 %v6606_v7  ;;  %2597 = vmatpush.msrb.mxu3 %v6609_v36 }
 0x78f   :  { %2538 = vmatpush.msrb.mxu0 %v6612_v11  ;;  %2558 = vmatpush.msrb.mxu1 %v6615_v35 }
 0x790   :  { %2578 = vmatpush.msrb.mxu2 %v6618_v17  ;;  %2598 = vmatpush.msrb.mxu3 %v6621_v25 }
 0x791   :  { %2539 = vmatpush.msrb.mxu0 %v6624_v21  ;;  %2559 = vmatpush.msrb.mxu1 %v6627_v23  ;;  %v6645_v23 = vld [vmem:[#allocation3 + $0x58] sm:$0xff] }
 0x792   :  { %2579 = vmatpush.msrb.mxu2 %v6630_v33  ;;  %2599 = vmatpush.msrb.mxu3 %v6633_v38  ;;  %8439 = vst [vmem:[#allocation6_spill] sm:$0xff] %v6645_v23  ;;  %v6648_v33 = vld [vmem:[#allocation3 + $0x20] sm:$0xff]  ;;  %v6651_v38 = vld [vmem:[#allocation3 + $0x28] sm:$0xff] }
 0x793   :  { %2540 = vmatpush.msrb.mxu0 %v6636_v34  ;;  %2560 = vmatpush.msrb.mxu1 %v6639_v8  ;;  %8440 = vst [vmem:[#allocation7_spill] sm:$0xff] %v6648_v33  ;;  %v6654_v34 = vld [vmem:[#allocation3 + $0x30] sm:$0xff]  ;;  %v6657_v8 = vld [vmem:[#allocation3 + $0x38] sm:$0xff] }
 0x794   :  { %2580 = vmatpush.msrb.mxu2 %v6642_v5  ;;  %2600 = vmatpush.msrb.mxu3 %v6645_v23  ;;  %8441 = vst [vmem:[#allocation8_spill] sm:$0xff] %v6651_v38  ;;  %v6660_v5 = vld [vmem:[#allocation3] sm:$0xff]  ;;  %v6663_v23 = vld [vmem:[#allocation3 + $0x8] sm:$0xff] }
 0x795   :  { %2541 = vmatpush.msrb.mxu0 %v6648_v33  ;;  %2561 = vmatpush.msrb.mxu1 %v6651_v38  ;;  %8442 = vst [vmem:[#allocation9_spill] sm:$0xff] %v6654_v34  ;;  %v6666_v33 = vld [vmem:[#allocation3 + $0x10] sm:$0xff]  ;;  %v6669_v38 = vld [vmem:[#allocation3 + $0x18] sm:$0xff] }
 0x796   :  { %2581 = vmatpush.msrb.mxu2 %v6654_v34  ;;  %8443 = vst [vmem:[#allocation10_spill] sm:$0xff] %v6657_v8  ;;  %2601 = vmatpush.msrb.mxu3 %v6657_v8  ;;  %v115_v34 = vpop.permute.xlu2 %114 }
 0x797   :  { %8444 = vst [vmem:[#allocation11_spill] sm:$0xff] %v6660_v5  ;;  %2542 = vmatpush.msrb.mxu0 %v6660_v5  ;;  %2562 = vmatpush.msrb.mxu1 %v6663_v23  ;;  %v230_v21 = vmul.f32 %v8402_v4, %v115_v34  ;;  %v231_v8 = vmul.f32 %v8403_v41, %v115_v34 }
 0x798   :  { %8445 = vst [vmem:[#allocation12_spill] sm:$0xff] %v6663_v23  ;;  %2582 = vmatpush.msrb.mxu2 %v6666_v33  ;;  %2602 = vmatpush.msrb.mxu3 %v6669_v38  ;;  %v232_v36 = vmul.f32 %v8415_v16, %v115_v34 }
 0x799   :  { %8446 = vst [vmem:[#allocation13_spill] sm:$0xff] %v6666_v33  ;;  %v335_v25 = vadd.f32 %v8413_v9, %v230_v21  ;;  %v336_v5 = vadd.f32 %v8414_v48, %v231_v8 }
 0x79a   :  { %8447 = vst [vmem:[#allocation14_spill] sm:$0xff] %v6669_v38  ;;  %v337_v38 = vadd.f32 %v8416_v27, %v232_v36 }
 0x7f4   :  { %v2240_v17 = vpop.f32.mrf.mxu0  ;;  %v2260_v35 = vpop.f32.mrf.mxu1 }
 0x7f5   :  { %v2303_v23 = vadd.f32 %v2240_v17, %v335_v25  ;;  %v2304_v11 = vadd.f32 %v2260_v35, %v336_v5  ;;  %v233_v17 = vmul.f32 %v8417_v32, %v115_v34 }
 0x7f7   :  { %v4234_v33 = vmul.f32 -1.442695, %v2303_v23  ;;  %v4235_v7 = vmul.f32 -1.442695, %v2304_v11  ;;  %v338_v11 = vadd.f32 %v8418_v20, %v233_v17 }
 0x7f9   :  { %4457 = vpow2.f32 %v4234_v33 }
 0x7fa   :  { %4459 = vpow2.f32 %v4235_v7 }
 0x7fb   :  { %v2280_v12 = vpop.f32.mrf.mxu2  ;;  %v2300_v35 = vpop.f32.mrf.mxu3 }
 0x7fc   :  { %v2305_v4 = vadd.f32 %v2280_v12, %v337_v38  ;;  %v2306_v33 = vadd.f32 %v2300_v35, %v338_v11 }
 0x7fe   :  { %v4236_v28 = vmul.f32 -1.442695, %v2305_v4 }
 0x7ff   :  { %v4458_v41 = vpop.eup %4457 }
 0x800   :  { %v4460_v44 = vpop.eup %4459  ;;  %v2316_v21 = vadd.f32 1.0, %v4458_v41  ;;  %4461 = vpow2.f32 %v4236_v28 }
 0x801   :  { %v2317_v8 = vadd.f32 1.0, %v4460_v44 }
 0x802   :  { %4463 = vrcp.f32 %v2316_v21  ;;  %v2330_v41 = vand.u32 2147483648, %v2316_v21  ;;  %v2328_v34 = vand.u32 2147483647, %v2316_v21  ;;  %vm2324_vm6 = vweird.f32 %v2316_v21 }
 0x803   :  { %4465 = vrcp.f32 %v2317_v8  ;;  %v2345_v44 = vand.u32 2147483648, %v2317_v8  ;;  %v2343_v27 = vand.u32 2147483647, %v2317_v8  ;;  %vm2339_vm7 = vweird.f32 %v2317_v8 }
 0x804   :  { %vm2329_vm10 = vcmp.eq.f32.partialorder %v2328_v34, 8.507059e+37  ;;  %v8454_v34 = vld [vmem:[#allocation21_spill] sm:$0xff] }
 0x805   :  { %vm2344_vm11 = vcmp.eq.f32.partialorder %v2343_v27, 8.507059e+37 }
 0x806   :  { %v4462_v25 = vpop.eup %4461 }
 0x807   :  { %v2318_v23 = vadd.f32 1.0, %v4462_v25  ;;  %v2331_v25 = vor.u32 1.1754944e-38, %v2330_v41 }
 0x808   :  { %v4464_v7 = vpop.eup %4463 }
 0x809   :  { %v4466_v36 = vpop.eup %4465  ;;  %v2320_v5 = vmul.f32 %v4464_v7, %v2316_v21  ;;  %4467 = vrcp.f32 %v2318_v23  ;;  %vm2325_vm4 = vweird.f32 %v4464_v7  ;;  %vm2354_vm13 = vweird.f32 %v2318_v23 }
 0x80a   :  { %v2335_v4 = vmul.f32 %v4466_v36, %v2317_v8  ;;  %4469 = vtanh.f32 %v2306_v33  ;;  %vm2340_vm5 = vweird.f32 %v4466_v36  ;;  %vm2326_vm8 = vmor %vm2324_vm6, %vm2325_vm4 }
 0x80b   :  { %v2321_v12 = vsub.f32 1.0, %v2320_v5  ;;  %vm2341_vm9 = vmor %vm2339_vm7, %vm2340_vm5  ;;  %v2346_v5 = vor.u32 1.1754944e-38, %v2345_v44 }
 0x80c   :  { %v2336_v38 = vsub.f32 1.0, %v2335_v4 }
 0x80d   :  { %v2322_v28 = vmul.f32 %v4464_v7, %v2321_v12 }
 0x80e   :  { %v2337_v32 = vmul.f32 %v4466_v36, %v2336_v38 }
 0x80f   :  { %v4468_v16 = vpop.eup %4467  ;;  %v2323_v17 = vadd.f32 %v4464_v7, %v2322_v28 }
 0x810   :  { %v2350_v35 = vmul.f32 %v4468_v16, %v2318_v23  ;;  %v2338_v11 = vadd.f32 %v4466_v36, %v2337_v32  ;;  %v4470_v33 = vpop.eup %4469  ;;  %vm2355_vm12 = vweird.f32 %v4468_v16  ;;  %v2360_v32 = vand.u32 2147483648, %v2318_v23 }
 0x811   :  { %v2327_v4 = vsel %vm2326_vm8, %v4464_v7, %v2323_v17  ;;  %v2358_v7 = vand.u32 2147483647, %v2318_v23  ;;  %vm2356_vm14 = vmor %vm2354_vm13, %vm2355_vm12  ;;  %v8453_v23 = vld [vmem:[#allocation20_spill] sm:$0xff]  ;;  %v8455_v17 = vld [vmem:[#allocation22_spill] sm:$0xff] }
 0x812   :  { %v2351_v20 = vsub.f32 1.0, %v2350_v35  ;;  %v2332_v12 = vsel %vm2329_vm10, %v2331_v25, %v2327_v4  ;;  %v2342_v48 = vsel %vm2341_vm9, %v4466_v36, %v2338_v11  ;;  %v2361_v44 = vor.u32 1.1754944e-38, %v2360_v32  ;;  %v8456_v35 = vld [vmem:[#allocation23_spill] sm:$0xff]  ;;  %v8457_v25 = vld [vmem:[#allocation24_spill] sm:$0xff]  ;;  %v8458_v11 = vld [vmem:[#allocation25_spill] sm:$0xff] }
 0x813   :  { %v2347_v38 = vsel %vm2344_vm11, %v2346_v5, %v2342_v48  ;;  %v2366_v9 = vmul.f32 %v4470_v33, %v2332_v12  ;;  %vm2359_vm15 = vcmp.eq.f32.partialorder %v2358_v7, 8.507059e+37  ;;  %v8459_v5 = vld [vmem:[#allocation26_spill] sm:$0xff]  ;;  %v8460_v4 = vld [vmem:[#allocation27_spill] sm:$0xff]  ;;  %v8461_v33 = vld [vmem:[#allocation28_spill] sm:$0xff] }
 0x814   :  { %v2365_v24 = vmul.f32 %v2347_v38, %v6533_v57  ;;  %v2352_v28 = vmul.f32 %v4468_v16, %v2351_v20  ;;  %v8450_v20 = vld [vmem:[#allocation17_spill] sm:$0xff]  ;;  %v8451_v57 = vld [vmem:[#allocation18_spill] sm:$0xff]  ;;  %v8466_v32 = vld [vmem:[#allocation7_spill] sm:$0xff] }
 0x815   :  { %v8462_v12 = vld [vmem:[#allocation29_spill] sm:$0xff]  ;;  %v8463_v38 = vld [vmem:[#allocation30_spill] sm:$0xff]  ;;  %v8467_v7 = vld [vmem:[#allocation8_spill] sm:$0xff] }
 0x816   :  { %v6681_v21 = vadd.f32 %v2366_v9, %v2365_v24  ;;  %v2353_v8 = vadd.f32 %v4468_v16, %v2352_v28  ;;  %v8448_v9 = vld [vmem:[#allocation15_spill] sm:$0xff] }
 0x817   :  { %v8452_v24 = vld [vmem:[#allocation19_spill] sm:$0xff] }
 0x818   :  { %4471 = vtanh.f32 %v6681_v21  ;;  %v2357_v41 = vsel %vm2356_vm14, %v4468_v16, %v2353_v8  ;;  %v8449_v16 = vld [vmem:[#allocation16_spill] sm:$0xff]  ;;  %v8464_v28 = vld [vmem:[#allocation31_spill] sm:$0xff]  ;;  %v8465_v8 = vld [vmem:[#allocation6_spill] sm:$0xff] }
 0x819   :  { %v2362_v27 = vsel %vm2359_vm15, %v2361_v44, %v2357_v41  ;;  %v8468_v41 = vld [vmem:[#allocation9_spill] sm:$0xff]  ;;  %v8469_v44 = vld [vmem:[#allocation10_spill] sm:$0xff] }
 0x81e   :  { %v4472_v36 = vpop.eup %4471 }
 0x81f   :  { %v2369_v48 = vmul.f32 %v4472_v36, %v2362_v27  ;;  %v8470_v36 = vld [vmem:[#allocation11_spill] sm:$0xff]  ;;  %v8471_v27 = vld [vmem:[#allocation12_spill] sm:$0xff] }
 0x821   :  { %2391 = vmatmul.f32.vlgmr.msra.gmra.mxu0 %v2369_v48  ;;  %2411 = vmatmul.f32.vlgmr.msra.gmra.mxu1 %v2369_v48 }
 0x822   :  { %2431 = vmatmul.f32.vlgmr.msra.gmra.mxu2 %v2369_v48  ;;  %2451 = vmatmul.f32.vlgmr.msra.gmra.mxu3 %v2369_v48  ;;  %v8472_v48 = vld [vmem:[#allocation13_spill] sm:$0xff] }
 0x823   :  { %2679 = vmatpush.msra.mxu0 %v6404_v45  ;;  %2699 = vmatpush.msra.mxu1 %v6407_v22 }
 0x824   :  { %2719 = vmatpush.msra.mxu2 %v6410_v60  ;;  %2739 = vmatpush.msra.mxu3 %v6413_v3 }
 0x825   :  { %2680 = vmatpush.msra.mxu0 %v6416_v31  ;;  %2700 = vmatpush.msra.mxu1 %v6419_v54 }
 0x826   :  { %2720 = vmatpush.msra.mxu2 %v6422_v61  ;;  %2740 = vmatpush.msra.mxu3 %v6425_v63 }
 0x827   :  { %2681 = vmatpush.msra.mxu0 %v6428_v49  ;;  %2701 = vmatpush.msra.mxu1 %v6431_v13 }
 0x828   :  { %2721 = vmatpush.msra.mxu2 %v6434_v1  ;;  %2741 = vmatpush.msra.mxu3 %v6437_v0 }
 0x829   :  { %2682 = vmatpush.msra.mxu0 %v6440_v56  ;;  %2702 = vmatpush.msra.mxu1 %v6443_v46 }
 0x82a   :  { %2722 = vmatpush.msra.mxu2 %v6446_v51  ;;  %2742 = vmatpush.msra.mxu3 %v6449_v37 }
 0x82b   :  { %2683 = vmatpush.msra.mxu0 %v6452_v40  ;;  %2703 = vmatpush.msra.mxu1 %v6455_v30 }
 0x82c   :  { %2723 = vmatpush.msra.mxu2 %v6458_v50  ;;  %2743 = vmatpush.msra.mxu3 %v8419_v59 }
 0x82d   :  { %2684 = vmatpush.msra.mxu0 %v8420_v18  ;;  %2704 = vmatpush.msra.mxu1 %v8421_v39 }
 0x82e   :  { %2724 = vmatpush.msra.mxu2 %v6470_v42  ;;  %2744 = vmatpush.msra.mxu3 %v6473_v43 }
 0x82f   :  { %2685 = vmatpush.msra.mxu0 %v6476_v62  ;;  %2705 = vmatpush.msra.mxu1 %v6479_v58 }
 0x830   :  { %2725 = vmatpush.msra.mxu2 %v6482_v47  ;;  %2745 = vmatpush.msra.mxu3 %v6485_v29 }
 0x831   :  { %2686 = vmatpush.msra.mxu0 %v6564_v53  ;;  %2706 = vmatpush.msra.mxu1 %v6567_v6 }
 0x832   :  { %2726 = vmatpush.msra.mxu2 %v6570_v55  ;;  %2746 = vmatpush.msra.mxu3 %v6573_v52 }
 0x833   :  { %2687 = vmatpush.msra.mxu0 %v6576_v2  ;;  %2707 = vmatpush.msra.mxu1 %v6579_v14 }
 0x834   :  { %2727 = vmatpush.msra.mxu2 %v6582_v10  ;;  %2747 = vmatpush.msra.mxu3 %v6585_v19 }
 0x835   :  { %2688 = vmatpush.msra.mxu0 %v6588_v15  ;;  %2708 = vmatpush.msra.mxu1 %v6591_v26 }
 0x836   :  { %2728 = vmatpush.msra.mxu2 %v8448_v9  ;;  %2748 = vmatpush.msra.mxu3 %v8449_v16 }
 0x837   :  { %2689 = vmatpush.msra.mxu0 %v8450_v20  ;;  %2709 = vmatpush.msra.mxu1 %v8451_v57 }
 0x838   :  { %2729 = vmatpush.msra.mxu2 %v8452_v24  ;;  %2749 = vmatpush.msra.mxu3 %v8453_v23 }
 0x839   :  { %2690 = vmatpush.msra.mxu0 %v8454_v34  ;;  %2710 = vmatpush.msra.mxu1 %v8455_v17 }
 0x83a   :  { %2730 = vmatpush.msra.mxu2 %v8456_v35  ;;  %2750 = vmatpush.msra.mxu3 %v8457_v25 }
 0x83b   :  { %2691 = vmatpush.msra.mxu0 %v8458_v11  ;;  %2711 = vmatpush.msra.mxu1 %v8459_v5 }
 0x83c   :  { %2731 = vmatpush.msra.mxu2 %v8460_v4  ;;  %2751 = vmatpush.msra.mxu3 %v8461_v33 }
 0x83d   :  { %2692 = vmatpush.msra.mxu0 %v8462_v12  ;;  %2712 = vmatpush.msra.mxu1 %v8463_v38  ;;  %v8473_v12 = vld [vmem:[#allocation14_spill] sm:$0xff]  ;;  %v120_v38 = vpop.permute.xlu0 %119 }
 0x83e   :  { %2732 = vmatpush.msra.mxu2 %v8464_v28  ;;  %2752 = vmatpush.msra.mxu3 %v8465_v8  ;;  %v8474_v28 = vld [vmem:[#allocation32_spill] sm:$0xff]  ;;  %v8475_v8 = vld [vmem:[#allocation33_spill] sm:$0xff] }
 0x83f   :  { %2693 = vmatpush.msra.mxu0 %v8466_v32  ;;  %2713 = vmatpush.msra.mxu1 %v8467_v7  ;;  %v234_v33 = vmul.f32 %v8474_v28, %v120_v38  ;;  %v235_v4 = vmul.f32 %v8475_v8, %v120_v38  ;;  %v8476_v32 = vld [vmem:[#allocation34_spill] sm:$0xff]  ;;  %v8477_v7 = vld [vmem:[#allocation35_spill] sm:$0xff] }
 0x840   :  { %2733 = vmatpush.msra.mxu2 %v8468_v41  ;;  %2753 = vmatpush.msra.mxu3 %v8469_v44 }
 0x841   :  { %2694 = vmatpush.msra.mxu0 %v8470_v36  ;;  %2714 = vmatpush.msra.mxu1 %v8471_v27  ;;  %v339_v5 = vadd.f32 %v8476_v32, %v234_v33  ;;  %v340_v11 = vadd.f32 %v8477_v7, %v235_v4  ;;  %v8478_v36 = vld [vmem:[#allocation36_spill] sm:$0xff]  ;;  %v8480_v7 = vld [vmem:[#allocation38_spill] sm:$0xff] }
 0x842   :  { %2734 = vmatpush.msra.mxu2 %v8472_v48  ;;  %2754 = vmatpush.msra.mxu3 %v8473_v12  ;;  %v236_v17 = vmul.f32 %v8478_v36, %v120_v38  ;;  %v8479_v12 = vld [vmem:[#allocation37_spill] sm:$0xff] }
 0x844   :  { %v341_v48 = vadd.f32 %v8479_v12, %v236_v17 }
 0x89e   :  { %v2392_v41 = vpop.f32.mrf.mxu0  ;;  %v2412_v25 = vpop.f32.mrf.mxu1 }
 0x89f   :  { %v2455_v44 = vadd.f32 %v2392_v41, %v339_v5  ;;  %v2456_v35 = vadd.f32 %v2412_v25, %v340_v11  ;;  %v237_v5 = vmul.f32 %v8480_v7, %v120_v38  ;;  %v8481_v41 = vld [vmem:[#allocation39_spill] sm:$0xff] }
 0x8a1   :  { %v4237_v27 = vmul.f32 -1.442695, %v2455_v44  ;;  %v4238_v34 = vmul.f32 -1.442695, %v2456_v35  ;;  %v342_v35 = vadd.f32 %v8481_v41, %v237_v5 }
 0x8a3   :  { %4473 = vpow2.f32 %v4237_v27 }
 0x8a4   :  { %4475 = vpow2.f32 %v4238_v34 }
 0x8a5   :  { %v2432_v23 = vpop.f32.mrf.mxu2  ;;  %v2452_v25 = vpop.f32.mrf.mxu3 }
 0x8a6   :  { %v2457_v28 = vadd.f32 %v2432_v23, %v341_v48  ;;  %v2458_v27 = vadd.f32 %v2452_v25, %v342_v35 }
 0x8a8   :  { %v4239_v24 = vmul.f32 -1.442695, %v2457_v28 }
 0x8a9   :  { %v4474_v8 = vpop.eup %4473 }
 0x8aa   :  { %v4476_v57 = vpop.eup %4475  ;;  %v2468_v33 = vadd.f32 1.0, %v4474_v8  ;;  %4477 = vpow2.f32 %v4239_v24 }
 0x8ab   :  { %v2469_v4 = vadd.f32 1.0, %v4476_v57 }
 0x8ac   :  { %4479 = vrcp.f32 %v2468_v33  ;;  %v2482_v8 = vand.u32 2147483648, %v2468_v33  ;;  %v2480_v38 = vand.u32 2147483647, %v2468_v33  ;;  %vm2476_vm2 = vweird.f32 %v2468_v33 }
 0x8ad   :  { %4481 = vrcp.f32 %v2469_v4  ;;  %v2497_v57 = vand.u32 2147483648, %v2469_v4  ;;  %v2495_v36 = vand.u32 2147483647, %v2469_v4  ;;  %vm2491_vm3 = vweird.f32 %v2469_v4 }
 0x8ae   :  { %vm2481_vm6 = vcmp.eq.f32.partialorder %v2480_v38, 8.507059e+37 }
 0x8af   :  { %vm2496_vm7 = vcmp.eq.f32.partialorder %v2495_v36, 8.507059e+37 }
 0x8b0   :  { %v4478_v11 = vpop.eup %4477 }
 0x8b1   :  { %v2470_v44 = vadd.f32 1.0, %v4478_v11  ;;  %v2483_v11 = vor.u32 1.1754944e-38, %v2482_v8 }
 0x8b2   :  { %v4480_v34 = vpop.eup %4479 }
 0x8b3   :  { %v4482_v17 = vpop.eup %4481  ;;  %v2472_v12 = vmul.f32 %v4480_v34, %v2468_v33  ;;  %4483 = vrcp.f32 %v2470_v44  ;;  %vm2477_vm0 = vweird.f32 %v4480_v34  ;;  %vm2506_vm9 = vweird.f32 %v2470_v44 }
 0x8b4   :  { %v2487_v23 = vmul.f32 %v4482_v17, %v2469_v4  ;;  %4485 = vtanh.f32 %v2458_v27  ;;  %vm2492_vm1 = vweird.f32 %v4482_v17  ;;  %vm2478_vm4 = vmor %vm2476_vm2, %vm2477_vm0 }
 0x8b5   :  { %v2473_v28 = vsub.f32 1.0, %v2472_v12  ;;  %vm2493_vm5 = vmor %vm2491_vm3, %vm2492_vm1  ;;  %v2498_v12 = vor.u32 1.1754944e-38, %v2497_v57 }
 0x8b6   :  { %v2488_v48 = vsub.f32 1.0, %v2487_v23 }
 0x8b7   :  { %v2474_v24 = vmul.f32 %v4480_v34, %v2473_v28 }
 0x8b8   :  { %v2489_v7 = vmul.f32 %v4482_v17, %v2488_v48 }
 0x8b9   :  { %v4484_v32 = vpop.eup %4483  ;;  %v2475_v5 = vadd.f32 %v4480_v34, %v2474_v24 }
 0x8ba   :  { %v2502_v25 = vmul.f32 %v4484_v32, %v2470_v44  ;;  %v2490_v35 = vadd.f32 %v4482_v17, %v2489_v7  ;;  %v4486_v27 = vpop.eup %4485  ;;  %vm2507_vm8 = vweird.f32 %v4484_v32  ;;  %v2512_v7 = vand.u32 2147483648, %v2470_v44 }
 0x8bb   :  { %v2479_v23 = vsel %vm2478_vm4, %v4480_v34, %v2475_v5  ;;  %v2510_v34 = vand.u32 2147483647, %v2470_v44  ;;  %vm2508_vm10 = vmor %vm2506_vm9, %vm2507_vm8  ;;  %v8511_v44 = vld [vmem:[#allocation35_spill] sm:$0xff] }
 0x8bc   :  { %v2503_v41 = vsub.f32 1.0, %v2502_v25  ;;  %v2484_v28 = vsel %vm2481_vm6, %v2483_v11, %v2479_v23  ;;  %v2494_v20 = vsel %vm2493_vm5, %v4482_v17, %v2490_v35  ;;  %v2513_v57 = vor.u32 1.1754944e-38, %v2512_v7 }
 0x8bd   :  { %v2499_v48 = vsel %vm2496_vm7, %v2498_v12, %v2494_v20  ;;  %v2518_v16 = vmul.f32 %v4486_v27, %v2484_v28  ;;  %vm2511_vm11 = vcmp.eq.f32.partialorder %v2510_v34, 8.507059e+37  ;;  %v8512_v12 = vld [vmem:[#allocation36_spill] sm:$0xff] }
 0x8be   :  { %v2517_v9 = vmul.f32 %v2499_v48, %v6681_v21  ;;  %v2504_v24 = vmul.f32 %v4484_v32, %v2503_v41  ;;  %v8513_v48 = vld [vmem:[#allocation37_spill] sm:$0xff] }
 0x8c0   :  { %v6757_v33 = vadd.f32 %v2518_v16, %v2517_v9  ;;  %v2505_v4 = vadd.f32 %v4484_v32, %v2504_v24  ;;  %v8509_v9 = vld [vmem:[#allocation33_spill] sm:$0xff] }
 0x8c2   :  { %4487 = vtanh.f32 %v6757_v33  ;;  %v2509_v8 = vsel %vm2508_vm10, %v4484_v32, %v2505_v4  ;;  %v8510_v32 = vld [vmem:[#allocation34_spill] sm:$0xff] }
 0x8c3   :  { %v2514_v36 = vsel %vm2511_vm11, %v2513_v57, %v2509_v8 }
 0x8c8   :  { %v4488_v17 = vpop.eup %4487 }
 0x8c9   :  { %v2521_v20 = vmul.f32 %v4488_v17, %v2514_v36 }
 0x8cb   :  { %2543 = vmatmul.f32.vlgmr.msrb.gmra.mxu0 %v2521_v20  ;;  %2563 = vmatmul.f32.vlgmr.msrb.gmra.mxu1 %v2521_v20 }
 0x8cc   :  { %2583 = vmatmul.f32.vlgmr.msrb.gmra.mxu2 %v2521_v20  ;;  %2603 = vmatmul.f32.vlgmr.msrb.gmra.mxu3 %v2521_v20  ;;  %v8514_v20 = vld [vmem:[#allocation38_spill] sm:$0xff] }
 0x8cd   :  { %2831 = vmatpush.msrb.mxu0 %v6404_v45  ;;  %2851 = vmatpush.msrb.mxu1 %v6407_v22  ;;  %v8482_v45 = vld [vmem:[#allocation15_spill] sm:$0xff]  ;;  %v8483_v22 = vld [vmem:[#allocation16_spill] sm:$0xff] }
 0x8ce   :  { %2871 = vmatpush.msrb.mxu2 %v6410_v60  ;;  %2891 = vmatpush.msrb.mxu3 %v6413_v3  ;;  %v8484_v60 = vld [vmem:[#allocation17_spill] sm:$0xff]  ;;  %v8485_v3 = vld [vmem:[#allocation18_spill] sm:$0xff] }
 0x8cf   :  { %2832 = vmatpush.msrb.mxu0 %v6416_v31  ;;  %2852 = vmatpush.msrb.mxu1 %v6419_v54  ;;  %v8486_v31 = vld [vmem:[#allocation19_spill] sm:$0xff]  ;;  %v8487_v54 = vld [vmem:[#allocation20_spill] sm:$0xff] }
 0x8d0   :  { %2872 = vmatpush.msrb.mxu2 %v6422_v61  ;;  %2892 = vmatpush.msrb.mxu3 %v6425_v63  ;;  %v8488_v61 = vld [vmem:[#allocation21_spill] sm:$0xff]  ;;  %v8489_v63 = vld [vmem:[#allocation22_spill] sm:$0xff] }
 0x8d1   :  { %2833 = vmatpush.msrb.mxu0 %v6428_v49  ;;  %2853 = vmatpush.msrb.mxu1 %v6431_v13  ;;  %v8490_v49 = vld [vmem:[#allocation23_spill] sm:$0xff]  ;;  %v8491_v13 = vld [vmem:[#allocation24_spill] sm:$0xff] }
 0x8d2   :  { %2873 = vmatpush.msrb.mxu2 %v6434_v1  ;;  %2893 = vmatpush.msrb.mxu3 %v6437_v0  ;;  %v8492_v1 = vld [vmem:[#allocation25_spill] sm:$0xff]  ;;  %v8493_v0 = vld [vmem:[#allocation26_spill] sm:$0xff] }
 0x8d3   :  { %2834 = vmatpush.msrb.mxu0 %v6440_v56  ;;  %2854 = vmatpush.msrb.mxu1 %v6443_v46  ;;  %v8494_v56 = vld [vmem:[#allocation27_spill] sm:$0xff]  ;;  %v8495_v46 = vld [vmem:[#allocation28_spill] sm:$0xff] }
 0x8d4   :  { %2874 = vmatpush.msrb.mxu2 %v6446_v51  ;;  %2894 = vmatpush.msrb.mxu3 %v6449_v37  ;;  %v8496_v51 = vld [vmem:[#allocation29_spill] sm:$0xff]  ;;  %v8497_v37 = vld [vmem:[#allocation30_spill] sm:$0xff] }
 0x8d5   :  { %2835 = vmatpush.msrb.mxu0 %v6452_v40  ;;  %2855 = vmatpush.msrb.mxu1 %v6455_v30  ;;  %v8498_v40 = vld [vmem:[#allocation31_spill] sm:$0xff]  ;;  %v8499_v30 = vld [vmem:[#allocation6_spill] sm:$0xff] }
 0x8d6   :  { %2875 = vmatpush.msrb.mxu2 %v6458_v50  ;;  %2895 = vmatpush.msrb.mxu3 %v8419_v59  ;;  %v8500_v50 = vld [vmem:[#allocation7_spill] sm:$0xff]  ;;  %v8507_v59 = vld [vmem:[#allocation14_spill] sm:$0xff] }
 0x8d7   :  { %2836 = vmatpush.msrb.mxu0 %v8420_v18  ;;  %2856 = vmatpush.msrb.mxu1 %v8421_v39  ;;  %v125_v18 = vpop.permute.xlu1 %124  ;;  %v8508_v39 = vld [vmem:[#allocation32_spill] sm:$0xff] }
 0x8d8   :  { %2876 = vmatpush.msrb.mxu2 %v6470_v42  ;;  %2896 = vmatpush.msrb.mxu3 %v6473_v43  ;;  %v8504_v42 = vld [vmem:[#allocation11_spill] sm:$0xff]  ;;  %v8505_v43 = vld [vmem:[#allocation12_spill] sm:$0xff]  ;;  %v238_v21 = vmul.f32 %v8508_v39, %v125_v18  ;;  %v239_v16 = vmul.f32 %v8509_v9, %v125_v18  ;;  %v240_v23 = vmul.f32 %v8512_v12, %v125_v18 }
 0x8d9   :  { %2837 = vmatpush.msrb.mxu0 %v6476_v62  ;;  %2857 = vmatpush.msrb.mxu1 %v6479_v58  ;;  %v8501_v58 = vld [vmem:[#allocation8_spill] sm:$0xff]  ;;  %v8506_v62 = vld [vmem:[#allocation13_spill] sm:$0xff] }
 0x8da   :  { %2877 = vmatpush.msrb.mxu2 %v6482_v47  ;;  %2897 = vmatpush.msrb.mxu3 %v6485_v29  ;;  %v8502_v47 = vld [vmem:[#allocation9_spill] sm:$0xff]  ;;  %v8503_v29 = vld [vmem:[#allocation10_spill] sm:$0xff]  ;;  %v343_v41 = vadd.f32 %v8510_v32, %v238_v21  ;;  %v344_v38 = vadd.f32 %v8511_v44, %v239_v16  ;;  %v345_v24 = vadd.f32 %v8513_v48, %v240_v23 }
 0x8db   :  { %2838 = vmatpush.msrb.mxu0 %v6564_v53  ;;  %2858 = vmatpush.msrb.mxu1 %v6567_v6  ;;  %v241_v21 = vmul.f32 %v8514_v20, %v125_v18 }
 0x8dc   :  { %2878 = vmatpush.msrb.mxu2 %v6570_v55  ;;  %2898 = vmatpush.msrb.mxu3 %v6573_v52 }
 0x8dd   :  { %2839 = vmatpush.msrb.mxu0 %v6576_v2  ;;  %2859 = vmatpush.msrb.mxu1 %v6579_v14 }
 0x8de   :  { %2879 = vmatpush.msrb.mxu2 %v6582_v10  ;;  %2899 = vmatpush.msrb.mxu3 %v6585_v19 }
 0x8df   :  { %2840 = vmatpush.msrb.mxu0 %v6588_v15  ;;  %2860 = vmatpush.msrb.mxu1 %v6591_v26 }
 0x8e0   :  { %2880 = vmatpush.msrb.mxu2 %v8482_v45  ;;  %2900 = vmatpush.msrb.mxu3 %v8483_v22 }
 0x8e1   :  { %2841 = vmatpush.msrb.mxu0 %v8484_v60  ;;  %2861 = vmatpush.msrb.mxu1 %v8485_v3 }
 0x8e2   :  { %2881 = vmatpush.msrb.mxu2 %v8486_v31  ;;  %2901 = vmatpush.msrb.mxu3 %v8487_v54 }
 0x8e3   :  { %2842 = vmatpush.msrb.mxu0 %v8488_v61  ;;  %2862 = vmatpush.msrb.mxu1 %v8489_v63 }
 0x8e4   :  { %2882 = vmatpush.msrb.mxu2 %v8490_v49  ;;  %2902 = vmatpush.msrb.mxu3 %v8491_v13 }
 0x8e5   :  { %2843 = vmatpush.msrb.mxu0 %v8492_v1  ;;  %2863 = vmatpush.msrb.mxu1 %v8493_v0 }
 0x8e6   :  { %2883 = vmatpush.msrb.mxu2 %v8494_v56  ;;  %2903 = vmatpush.msrb.mxu3 %v8495_v46 }
 0x8e7   :  { %2844 = vmatpush.msrb.mxu0 %v8496_v51  ;;  %2864 = vmatpush.msrb.mxu1 %v8497_v37 }
 0x8e8   :  { %2884 = vmatpush.msrb.mxu2 %v8498_v40  ;;  %2904 = vmatpush.msrb.mxu3 %v8499_v30 }
 0x8e9   :  { %2845 = vmatpush.msrb.mxu0 %v8500_v50  ;;  %2865 = vmatpush.msrb.mxu1 %v8501_v58 }
 0x8ea   :  { %2885 = vmatpush.msrb.mxu2 %v8502_v47  ;;  %2905 = vmatpush.msrb.mxu3 %v8503_v29 }
 0x8eb   :  { %2846 = vmatpush.msrb.mxu0 %v8504_v42  ;;  %2866 = vmatpush.msrb.mxu1 %v8505_v43 }
 0x8ec   :  { %2886 = vmatpush.msrb.mxu2 %v8506_v62  ;;  %2906 = vmatpush.msrb.mxu3 %v8507_v59 }
 0x948   :  { %v2544_v5 = vpop.f32.mrf.mxu0  ;;  %v2564_v25 = vpop.f32.mrf.mxu1 }
 0x949   :  { %v2607_v11 = vadd.f32 %v2544_v5, %v343_v41  ;;  %v2608_v35 = vadd.f32 %v2564_v25, %v344_v38  ;;  %v8515_v38 = vld [vmem:[#allocation39_spill] sm:$0xff] }
 0x94a   :  { %v346_v5 = vadd.f32 %v8515_v38, %v241_v21 }
 0x94b   :  { %v4240_v27 = vmul.f32 -1.442695, %v2607_v11  ;;  %v4241_v28 = vmul.f32 -1.442695, %v2608_v35 }
 0x94d   :  { %4489 = vpow2.f32 %v4240_v27 }
 0x94e   :  { %4491 = vpow2.f32 %v4241_v28 }
 0x94f   :  { %v2584_v4 = vpop.f32.mrf.mxu2  ;;  %v2604_v16 = vpop.f32.mrf.mxu3 }
 0x950   :  { %v2609_v7 = vadd.f32 %v2584_v4, %v345_v24  ;;  %v2610_v35 = vadd.f32 %v2604_v16, %v346_v5 }
 0x952   :  { %v4242_v34 = vmul.f32 -1.442695, %v2609_v7 }
 0x953   :  { %v4490_v8 = vpop.eup %4489 }
 0x954   :  { %v4492_v57 = vpop.eup %4491  ;;  %v2620_v17 = vadd.f32 1.0, %v4490_v8  ;;  %4493 = vpow2.f32 %v4242_v34 }
 0x955   :  { %v2621_v36 = vadd.f32 1.0, %v4492_v57 }
 0x956   :  { %4495 = vrcp.f32 %v2620_v17  ;;  %v2634_v7 = vand.u32 2147483648, %v2620_v17  ;;  %v2632_v18 = vand.u32 2147483647, %v2620_v17  ;;  %vm2628_vm14 = vweird.f32 %v2620_v17 }
 0x957   :  { %4497 = vrcp.f32 %v2621_v36  ;;  %v2649_v34 = vand.u32 2147483648, %v2621_v36  ;;  %v2647_v20 = vand.u32 2147483647, %v2621_v36  ;;  %vm2643_vm15 = vweird.f32 %v2621_v36 }
 0x958   :  { %vm2633_vm2 = vcmp.eq.f32.partialorder %v2632_v18, 8.507059e+37 }
 0x959   :  { %vm2648_vm3 = vcmp.eq.f32.partialorder %v2647_v20, 8.507059e+37 }
 0x95a   :  { %v4494_v41 = vpop.eup %4493 }
 0x95b   :  { %v2622_v25 = vadd.f32 1.0, %v4494_v41  ;;  %v2635_v41 = vor.u32 1.1754944e-38, %v2634_v7 }
 0x95c   :  { %v4496_v11 = vpop.eup %4495 }
 0x95d   :  { %v4498_v23 = vpop.eup %4497  ;;  %v2624_v27 = vmul.f32 %v4496_v11, %v2620_v17  ;;  %4499 = vrcp.f32 %v2622_v25  ;;  %vm2629_vm12 = vweird.f32 %v4496_v11  ;;  %v2664_v7 = vand.u32 2147483648, %v2622_v25 }
 0x95e   :  { %v2639_v28 = vmul.f32 %v4498_v23, %v2621_v36  ;;  %4501 = vtanh.f32 %v2610_v35  ;;  %vm2644_vm13 = vweird.f32 %v4498_v23  ;;  %vm2630_vm0 = vmor %vm2628_vm14, %vm2629_vm12  ;;  %vm2658_vm5 = vweird.f32 %v2622_v25 }
 0x95f   :  { %v2625_v24 = vsub.f32 1.0, %v2624_v27  ;;  %vm2645_vm1 = vmor %vm2643_vm15, %vm2644_vm13  ;;  %v2650_v27 = vor.u32 1.1754944e-38, %v2649_v34  ;;  %v2665_v18 = vor.u32 1.1754944e-38, %v2664_v7  ;;  %v6890_v7 = vld [vmem:[#allocation3 + $0x170] sm:$0xff] }
 0x960   :  { %v2640_v4 = vsub.f32 1.0, %v2639_v28 }
 0x961   :  { %v2626_v8 = vmul.f32 %v4496_v11, %v2625_v24 }
 0x962   :  { %v2641_v57 = vmul.f32 %v4498_v23, %v2640_v4 }
 0x963   :  { %v4500_v48 = vpop.eup %4499  ;;  %v2627_v21 = vadd.f32 %v4496_v11, %v2626_v8 }
 0x964   :  { %v2654_v16 = vmul.f32 %v4500_v48, %v2622_v25  ;;  %v2642_v5 = vadd.f32 %v4498_v23, %v2641_v57  ;;  %v4502_v35 = vpop.eup %4501  ;;  %vm2659_vm4 = vweird.f32 %v4500_v48  ;;  %v6854_v57 = vld [vmem:[#allocation3 + $0x1d0] sm:$0xff] }
 0x965   :  { %v2631_v28 = vsel %vm2630_vm0, %v4496_v11, %v2627_v21  ;;  %v2662_v11 = vand.u32 2147483647, %v2622_v25  ;;  %vm2660_vm6 = vmor %vm2658_vm5, %vm2659_vm4  ;;  %v6851_v25 = vld [vmem:[#allocation3 + $0x1c8] sm:$0xff]  ;;  %v6857_v21 = vld [vmem:[#allocation3 + $0x1d8] sm:$0xff] }
 0x966   :  { %v2655_v38 = vsub.f32 1.0, %v2654_v16  ;;  %v2636_v24 = vsel %vm2633_vm2, %v2635_v41, %v2631_v28  ;;  %v2646_v12 = vsel %vm2645_vm1, %v4498_v23, %v2642_v5  ;;  %v6860_v16 = vld [vmem:[#allocation3 + $0x1a0] sm:$0xff]  ;;  %v6863_v41 = vld [vmem:[#allocation3 + $0x1a8] sm:$0xff]  ;;  %v6866_v5 = vld [vmem:[#allocation3 + $0x1b0] sm:$0xff] }
 0x967   :  { %v2651_v4 = vsel %vm2648_vm3, %v2650_v27, %v2646_v12  ;;  %v2670_v44 = vmul.f32 %v4502_v35, %v2636_v24  ;;  %vm2663_vm7 = vcmp.eq.f32.partialorder %v2662_v11, 8.507059e+37  ;;  %v6869_v27 = vld [vmem:[#allocation3 + $0x1b8] sm:$0xff]  ;;  %v6872_v28 = vld [vmem:[#allocation3 + $0x180] sm:$0xff]  ;;  %v6875_v35 = vld [vmem:[#allocation3 + $0x188] sm:$0xff] }
 0x968   :  { %v2669_v32 = vmul.f32 %v2651_v4, %v6757_v33  ;;  %v2656_v8 = vmul.f32 %v4500_v48, %v2655_v38  ;;  %v6836_v33 = vld [vmem:[#allocation3 + $0x1e0] sm:$0xff]  ;;  %v6878_v24 = vld [vmem:[#allocation3 + $0x190] sm:$0xff]  ;;  %v6881_v4 = vld [vmem:[#allocation3 + $0x198] sm:$0xff] }
 0x969   :  { %v6848_v38 = vld [vmem:[#allocation3 + $0x1c0] sm:$0xff]  ;;  %v6893_v11 = vld [vmem:[#allocation3 + $0x178] sm:$0xff] }
 0x96a   :  { %v6833_v17 = vadd.f32 %v2670_v44, %v2669_v32  ;;  %v2657_v36 = vadd.f32 %v4500_v48, %v2656_v8  ;;  %v6839_v32 = vld [vmem:[#allocation3 + $0x1e8] sm:$0xff]  ;;  %v6842_v44 = vld [vmem:[#allocation3 + $0x1f0] sm:$0xff]  ;;  %v6884_v8 = vld [vmem:[#allocation3 + $0x160] sm:$0xff]  ;;  %8516 = vst [vmem:[#allocation15_spill] sm:$0xff] %v6893_v11 }
 0x96c   :  { %4503 = vtanh.f32 %v6833_v17  ;;  %v2661_v34 = vsel %vm2660_vm6, %v4500_v48, %v2657_v36  ;;  %v6845_v48 = vld [vmem:[#allocation3 + $0x1f8] sm:$0xff]  ;;  %v6887_v36 = vld [vmem:[#allocation3 + $0x168] sm:$0xff] }
 0x96d   :  { %v2666_v20 = vsel %vm2663_vm7, %v2665_v18, %v2661_v34  ;;  %v6896_v34 = vld [vmem:[#allocation3 + $0x140] sm:$0xff]  ;;  %v6899_v18 = vld [vmem:[#allocation3 + $0x148] sm:$0xff] }
 0x96e   :  { %8517 = vst [vmem:[#allocation16_spill] sm:$0xff] %v6896_v34 }
 0x96f   :  { %8518 = vst [vmem:[#allocation17_spill] sm:$0xff] %v6899_v18 }
 0x972   :  { %v4504_v23 = vpop.eup %4503 }
 0x973   :  { %v2673_v12 = vmul.f32 %v4504_v23, %v2666_v20  ;;  %v6902_v23 = vld [vmem:[#allocation3 + $0x150] sm:$0xff]  ;;  %v6905_v20 = vld [vmem:[#allocation3 + $0x158] sm:$0xff] }
 0x975   :  { %2695 = vmatmul.f32.vlgmr.msra.gmra.mxu0 %v2673_v12  ;;  %2715 = vmatmul.f32.vlgmr.msra.gmra.mxu1 %v2673_v12 }
 0x976   :  { %2735 = vmatmul.f32.vlgmr.msra.gmra.mxu2 %v2673_v12  ;;  %2755 = vmatmul.f32.vlgmr.msra.gmra.mxu3 %v2673_v12  ;;  %v6908_v12 = vld [vmem:[#allocation3 + $0x120] sm:$0xff] }
 0x977   :  { %2983 = vmatpush.msra.mxu0 %v6836_v33  ;;  %3003 = vmatpush.msra.mxu1 %v6839_v32 }
 0x978   :  { %3023 = vmatpush.msra.mxu2 %v6842_v44  ;;  %3043 = vmatpush.msra.mxu3 %v6845_v48 }
 0x979   :  { %2984 = vmatpush.msra.mxu0 %v6848_v38  ;;  %3004 = vmatpush.msra.mxu1 %v6851_v25 }
 0x97a   :  { %3024 = vmatpush.msra.mxu2 %v6854_v57  ;;  %3044 = vmatpush.msra.mxu3 %v6857_v21 }
 0x97b   :  { %2985 = vmatpush.msra.mxu0 %v6860_v16  ;;  %3005 = vmatpush.msra.mxu1 %v6863_v41 }
 0x97c   :  { %3025 = vmatpush.msra.mxu2 %v6866_v5  ;;  %3045 = vmatpush.msra.mxu3 %v6869_v27 }
 0x97d   :  { %2986 = vmatpush.msra.mxu0 %v6872_v28  ;;  %3006 = vmatpush.msra.mxu1 %v6875_v35 }
 0x97e   :  { %3026 = vmatpush.msra.mxu2 %v6878_v24  ;;  %3046 = vmatpush.msra.mxu3 %v6881_v4 }
 0x97f   :  { %2987 = vmatpush.msra.mxu0 %v6884_v8  ;;  %3007 = vmatpush.msra.mxu1 %v6887_v36 }
 0x980   :  { %3027 = vmatpush.msra.mxu2 %v6890_v7  ;;  %3047 = vmatpush.msra.mxu3 %v6893_v11  ;;  %v6911_v11 = vld [vmem:[#allocation3 + $0x128] sm:$0xff] }
 0x981   :  { %2988 = vmatpush.msra.mxu0 %v6896_v34  ;;  %3008 = vmatpush.msra.mxu1 %v6899_v18  ;;  %v6914_v34 = vld [vmem:[#allocation3 + $0x130] sm:$0xff]  ;;  %v6917_v18 = vld [vmem:[#allocation3 + $0x138] sm:$0xff] }
 0x982   :  { %3028 = vmatpush.msra.mxu2 %v6902_v23  ;;  %3048 = vmatpush.msra.mxu3 %v6905_v20 }
 0x983   :  { %2989 = vmatpush.msra.mxu0 %v6908_v12  ;;  %3009 = vmatpush.msra.mxu1 %v6911_v11 }
 0x984   :  { %3029 = vmatpush.msra.mxu2 %v6914_v34  ;;  %3049 = vmatpush.msra.mxu3 %v6917_v18 }
 0x985   :  { %2990 = vmatpush.msra.mxu0 %v6564_v53  ;;  %3010 = vmatpush.msra.mxu1 %v6567_v6  ;;  %v130_v53 = vpop.permute.xlu2 %129 }
 0x986   :  { %3030 = vmatpush.msra.mxu2 %v6570_v55  ;;  %3050 = vmatpush.msra.mxu3 %v6573_v52  ;;  %v242_v6 = vmul.f32 %v8508_v39, %v130_v53  ;;  %v243_v55 = vmul.f32 %v8509_v9, %v130_v53  ;;  %v8519_v52 = vld [vmem:[#allocation34_spill] sm:$0xff] }
 0x987   :  { %2991 = vmatpush.msra.mxu0 %v6576_v2  ;;  %3011 = vmatpush.msra.mxu1 %v6579_v14  ;;  %v8520_v14 = vld [vmem:[#allocation35_spill] sm:$0xff] }
 0x988   :  { %3031 = vmatpush.msra.mxu2 %v6582_v10  ;;  %3051 = vmatpush.msra.mxu3 %v6585_v19  ;;  %v347_v2 = vadd.f32 %v8519_v52, %v242_v6  ;;  %v348_v10 = vadd.f32 %v8520_v14, %v243_v55 }
 0x989   :  { %2992 = vmatpush.msra.mxu0 %v6588_v15  ;;  %3012 = vmatpush.msra.mxu1 %v6591_v26 }
 0x98a   :  { %3032 = vmatpush.msra.mxu2 %v8482_v45  ;;  %3052 = vmatpush.msra.mxu3 %v8483_v22  ;;  %v8521_v22 = vld [vmem:[#allocation36_spill] sm:$0xff] }
 0x98b   :  { %2993 = vmatpush.msra.mxu0 %v8484_v60  ;;  %3013 = vmatpush.msra.mxu1 %v8485_v3  ;;  %v244_v60 = vmul.f32 %v8521_v22, %v130_v53 }
 0x98c   :  { %3033 = vmatpush.msra.mxu2 %v8486_v31  ;;  %3053 = vmatpush.msra.mxu3 %v8487_v54  ;;  %v8522_v54 = vld [vmem:[#allocation37_spill] sm:$0xff] }
 0x98d   :  { %2994 = vmatpush.msra.mxu0 %v8488_v61  ;;  %3014 = vmatpush.msra.mxu1 %v8489_v63  ;;  %v349_v61 = vadd.f32 %v8522_v54, %v244_v60 }
 0x98e   :  { %3034 = vmatpush.msra.mxu2 %v8490_v49  ;;  %3054 = vmatpush.msra.mxu3 %v8491_v13 }
 0x98f   :  { %2995 = vmatpush.msra.mxu0 %v8492_v1  ;;  %3015 = vmatpush.msra.mxu1 %v8493_v0 }
 0x990   :  { %3035 = vmatpush.msra.mxu2 %v8494_v56  ;;  %3055 = vmatpush.msra.mxu3 %v8495_v46 }
 0x991   :  { %2996 = vmatpush.msra.mxu0 %v8496_v51  ;;  %3016 = vmatpush.msra.mxu1 %v8497_v37  ;;  %v8523_v51 = vld [vmem:[#allocation38_spill] sm:$0xff] }
 0x992   :  { %3036 = vmatpush.msra.mxu2 %v8498_v40  ;;  %3056 = vmatpush.msra.mxu3 %v8499_v30  ;;  %v245_v37 = vmul.f32 %v8523_v51, %v130_v53 }
 0x993   :  { %2997 = vmatpush.msra.mxu0 %v8500_v50  ;;  %3017 = vmatpush.msra.mxu1 %v8501_v58  ;;  %v8524_v50 = vld [vmem:[#allocation39_spill] sm:$0xff] }
 0x994   :  { %3037 = vmatpush.msra.mxu2 %v8502_v47  ;;  %3057 = vmatpush.msra.mxu3 %v8503_v29  ;;  %v350_v58 = vadd.f32 %v8524_v50, %v245_v37 }
 0x995   :  { %2998 = vmatpush.msra.mxu0 %v8504_v42  ;;  %3018 = vmatpush.msra.mxu1 %v8505_v43 }
 0x996   :  { %3038 = vmatpush.msra.mxu2 %v8506_v62  ;;  %3058 = vmatpush.msra.mxu3 %v8507_v59 }
 0x9f2   :  { %v2696_v19 = vpop.f32.mrf.mxu0  ;;  %v2716_v15 = vpop.f32.mrf.mxu1 }
 0x9f3   :  { %v2759_v26 = vadd.f32 %v2696_v19, %v347_v2  ;;  %v2760_v45 = vadd.f32 %v2716_v15, %v348_v10 }
 0x9f5   :  { %v4243_v3 = vmul.f32 -1.442695, %v2759_v26  ;;  %v4244_v31 = vmul.f32 -1.442695, %v2760_v45 }
 0x9f7   :  { %4505 = vpow2.f32 %v4243_v3 }
 0x9f8   :  { %4507 = vpow2.f32 %v4244_v31 }
 0x9f9   :  { %v2736_v63 = vpop.f32.mrf.mxu2  ;;  %v2756_v40 = vpop.f32.mrf.mxu3 }
 0x9fa   :  { %v2761_v49 = vadd.f32 %v2736_v63, %v349_v61  ;;  %v2762_v42 = vadd.f32 %v2756_v40, %v350_v58 }
 0x9fc   :  { %v4245_v13 = vmul.f32 -1.442695, %v2761_v49 }
 0x9fd   :  { %v4506_v1 = vpop.eup %4505 }
 0x9fe   :  { %v4508_v0 = vpop.eup %4507  ;;  %v2772_v56 = vadd.f32 1.0, %v4506_v1  ;;  %4509 = vpow2.f32 %v4245_v13 }
 0x9ff   :  { %v2773_v46 = vadd.f32 1.0, %v4508_v0 }
 0xa00   :  { %4511 = vrcp.f32 %v2772_v56  ;;  %v2786_v2 = vand.u32 2147483648, %v2772_v56  ;;  %v2784_v53 = vand.u32 2147483647, %v2772_v56  ;;  %vm2780_vm10 = vweird.f32 %v2772_v56 }
 0xa01   :  { %4513 = vrcp.f32 %v2773_v46  ;;  %v2801_v10 = vand.u32 2147483648, %v2773_v46  ;;  %v2799_v26 = vand.u32 2147483647, %v2773_v46  ;;  %vm2795_vm11 = vweird.f32 %v2773_v46 }
 0xa02   :  { %v2787_v31 = vor.u32 1.1754944e-38, %v2786_v2  ;;  %vm2785_vm14 = vcmp.eq.f32.partialorder %v2784_v53, 8.507059e+37  ;;  %v6999_v53 = vld [vmem:[#allocation3 + $0x108] sm:$0xff] }
 0xa03   :  { %v2802_v63 = vor.u32 1.1754944e-38, %v2801_v10  ;;  %vm2800_vm15 = vcmp.eq.f32.partialorder %v2799_v26, 8.507059e+37  ;;  %v8527_v10 = vld [vmem:[#allocation17_spill] sm:$0xff] }
 0xa04   :  { %v4510_v30 = vpop.eup %4509  ;;  %v7005_v26 = vld [vmem:[#allocation3 + $0x118] sm:$0xff] }
 0xa05   :  { %v2774_v47 = vadd.f32 1.0, %v4510_v30 }
 0xa06   :  { %v4512_v29 = vpop.eup %4511 }
 0xa07   :  { %v4514_v43 = vpop.eup %4513  ;;  %v2776_v62 = vmul.f32 %v4512_v29, %v2772_v56  ;;  %4515 = vrcp.f32 %v2774_v47  ;;  %vm2781_vm8 = vweird.f32 %v4512_v29  ;;  %vm2810_vm1 = vweird.f32 %v2774_v47 }
 0xa08   :  { %v2791_v59 = vmul.f32 %v4514_v43, %v2773_v46  ;;  %4517 = vtanh.f32 %v2762_v42  ;;  %vm2796_vm9 = vweird.f32 %v4514_v43  ;;  %vm2782_vm12 = vmor %vm2780_vm10, %vm2781_vm8 }
 0xa09   :  { %v2777_v6 = vsub.f32 1.0, %v2776_v62  ;;  %vm2797_vm13 = vmor %vm2795_vm11, %vm2796_vm9  ;;  %v2816_v62 = vand.u32 2147483648, %v2774_v47 }
 0xa0a   :  { %v2792_v55 = vsub.f32 1.0, %v2791_v59 }
 0xa0b   :  { %v2778_v19 = vmul.f32 %v4512_v29, %v2777_v6  ;;  %v2817_v6 = vor.u32 1.1754944e-38, %v2816_v62  ;;  %v7056_v62 = vld [vmem:[#allocation3 + $0x60] sm:$0xff] }
 0xa0c   :  { %v2793_v15 = vmul.f32 %v4514_v43, %v2792_v55  ;;  %8538 = vst [vmem:[#allocation28_spill] sm:$0xff] %v7056_v62 }
 0xa0d   :  { %v4516_v45 = vpop.eup %4515  ;;  %v2779_v60 = vadd.f32 %v4512_v29, %v2778_v19  ;;  %v6996_v19 = vld [vmem:[#allocation3 + $0x100] sm:$0xff] }
 0xa0e   :  { %v2806_v3 = vmul.f32 %v4516_v45, %v2774_v47  ;;  %v2794_v61 = vadd.f32 %v4514_v43, %v2793_v15  ;;  %v4518_v13 = vpop.eup %4517  ;;  %vm2811_vm0 = vweird.f32 %v4516_v45  ;;  %v7002_v15 = vld [vmem:[#allocation3 + $0x110] sm:$0xff] }
 0xa0f   :  { %v2783_v49 = vsel %vm2782_vm12, %v4512_v29, %v2779_v60  ;;  %v2814_v29 = vand.u32 2147483647, %v2774_v47  ;;  %vm2812_vm2 = vmor %vm2810_vm1, %vm2811_vm0  ;;  %v8526_v47 = vld [vmem:[#allocation16_spill] sm:$0xff]  ;;  %v7011_v60 = vld [vmem:[#allocation3 + $0xe8] sm:$0xff] }
 0xa10   :  { %v2807_v1 = vsub.f32 1.0, %v2806_v3  ;;  %v2788_v0 = vsel %vm2785_vm14, %v2787_v31, %v2783_v49  ;;  %v2798_v37 = vsel %vm2797_vm13, %v4514_v43, %v2794_v61  ;;  %v7014_v3 = vld [vmem:[#allocation3 + $0xf0] sm:$0xff]  ;;  %v7017_v31 = vld [vmem:[#allocation3 + $0xf8] sm:$0xff]  ;;  %v7020_v61 = vld [vmem:[#allocation3 + $0xc0] sm:$0xff] }
 0xa11   :  { %v2803_v40 = vsel %vm2800_vm15, %v2802_v63, %v2798_v37  ;;  %v2822_v30 = vmul.f32 %v4518_v13, %v2788_v0  ;;  %vm2815_vm3 = vcmp.eq.f32.partialorder %v2814_v29, 8.507059e+37  ;;  %v7023_v63 = vld [vmem:[#allocation3 + $0xc8] sm:$0xff]  ;;  %v7026_v49 = vld [vmem:[#allocation3 + $0xd0] sm:$0xff]  ;;  %v7029_v13 = vld [vmem:[#allocation3 + $0xd8] sm:$0xff] }
 0xa12   :  { %v2821_v58 = vmul.f32 %v2803_v40, %v6833_v17  ;;  %v2808_v42 = vmul.f32 %v4516_v45, %v2807_v1  ;;  %v8525_v17 = vld [vmem:[#allocation15_spill] sm:$0xff]  ;;  %8528 = vst [vmem:[#allocation18_spill] sm:$0xff] %v7026_v49  ;;  %v7032_v1 = vld [vmem:[#allocation3 + $0xa0] sm:$0xff]  ;;  %v7038_v37 = vld [vmem:[#allocation3 + $0xb0] sm:$0xff] }
 0xa13   :  { %8529 = vst [vmem:[#allocation19_spill] sm:$0xff] %v7029_v13  ;;  %v7035_v0 = vld [vmem:[#allocation3 + $0xa8] sm:$0xff]  ;;  %v7041_v40 = vld [vmem:[#allocation3 + $0xb8] sm:$0xff] }
 0xa14   :  { %v6965_v56 = vadd.f32 %v2822_v30, %v2821_v58  ;;  %v2809_v46 = vadd.f32 %v4516_v45, %v2808_v42  ;;  %8530 = vst [vmem:[#allocation20_spill] sm:$0xff] %v7032_v1  ;;  %v7044_v30 = vld [vmem:[#allocation3 + $0x80] sm:$0xff]  ;;  %v7047_v58 = vld [vmem:[#allocation3 + $0x88] sm:$0xff]  ;;  %v7050_v42 = vld [vmem:[#allocation3 + $0x90] sm:$0xff] }
 0xa15   :  { %8531 = vst [vmem:[#allocation21_spill] sm:$0xff] %v7035_v0  ;;  %v7059_v29 = vld [vmem:[#allocation3 + $0x68] sm:$0xff] }
 0xa16   :  { %4519 = vtanh.f32 %v6965_v56  ;;  %v2813_v59 = vsel %vm2812_vm2, %v4516_v45, %v2809_v46  ;;  %v7008_v45 = vld [vmem:[#allocation3 + $0xe0] sm:$0xff]  ;;  %8532 = vst [vmem:[#allocation22_spill] sm:$0xff] %v7038_v37  ;;  %v7053_v46 = vld [vmem:[#allocation3 + $0x98] sm:$0xff] }
 0xa17   :  { %v2818_v55 = vsel %vm2815_vm3, %v2817_v6, %v2813_v59  ;;  %8533 = vst [vmem:[#allocation23_spill] sm:$0xff] %v7041_v40  ;;  %v7062_v59 = vld [vmem:[#allocation3 + $0x70] sm:$0xff]  ;;  %v7065_v6 = vld [vmem:[#allocation3 + $0x78] sm:$0xff] }
 0xa18   :  { %8534 = vst [vmem:[#allocation24_spill] sm:$0xff] %v7044_v30 }
 0xa19   :  { %8535 = vst [vmem:[#allocation25_spill] sm:$0xff] %v7047_v58 }
 0xa1a   :  { %8536 = vst [vmem:[#allocation26_spill] sm:$0xff] %v7050_v42 }
 0xa1b   :  { %8537 = vst [vmem:[#allocation27_spill] sm:$0xff] %v7053_v46 }
 0xa1c   :  { %v4520_v43 = vpop.eup %4519  ;;  %8539 = vst [vmem:[#allocation29_spill] sm:$0xff] %v7059_v29 }
 0xa1d   :  { %v2825_v2 = vmul.f32 %v4520_v43, %v2818_v55  ;;  %8540 = vst [vmem:[#allocation30_spill] sm:$0xff] %v7062_v59  ;;  %v7068_v43 = vld [vmem:[#allocation3 + $0x40] sm:$0xff]  ;;  %v7071_v55 = vld [vmem:[#allocation3 + $0x48] sm:$0xff] }
 0xa1e   :  { %8541 = vst [vmem:[#allocation31_spill] sm:$0xff] %v7065_v6 }
 0xa1f   :  { %2847 = vmatmul.f32.vlgmr.msrb.gmra.mxu0 %v2825_v2  ;;  %2867 = vmatmul.f32.vlgmr.msrb.gmra.mxu1 %v2825_v2  ;;  %8542 = vst [vmem:[#allocation6_spill] sm:$0xff] %v7068_v43 }
 0xa20   :  { %2887 = vmatmul.f32.vlgmr.msrb.gmra.mxu2 %v2825_v2  ;;  %2907 = vmatmul.f32.vlgmr.msrb.gmra.mxu3 %v2825_v2  ;;  %8543 = vst [vmem:[#allocation7_spill] sm:$0xff] %v7071_v55  ;;  %v7074_v2 = vld [vmem:[#allocation3 + $0x50] sm:$0xff] }
 0xa21   :  { %3135 = vmatpush.msrb.mxu0 %v6836_v33  ;;  %3155 = vmatpush.msrb.mxu1 %v6839_v32  ;;  %8544 = vst [vmem:[#allocation8_spill] sm:$0xff] %v7074_v2 }
 0xa22   :  { %3175 = vmatpush.msrb.mxu2 %v6842_v44  ;;  %3195 = vmatpush.msrb.mxu3 %v6845_v48 }
 0xa23   :  { %3136 = vmatpush.msrb.mxu0 %v6848_v38  ;;  %3156 = vmatpush.msrb.mxu1 %v6851_v25 }
 0xa24   :  { %3176 = vmatpush.msrb.mxu2 %v6854_v57  ;;  %3196 = vmatpush.msrb.mxu3 %v6857_v21 }
 0xa25   :  { %3137 = vmatpush.msrb.mxu0 %v6860_v16  ;;  %3157 = vmatpush.msrb.mxu1 %v6863_v41 }
 0xa26   :  { %3177 = vmatpush.msrb.mxu2 %v6866_v5  ;;  %3197 = vmatpush.msrb.mxu3 %v6869_v27 }
 0xa27   :  { %3138 = vmatpush.msrb.mxu0 %v6872_v28  ;;  %3158 = vmatpush.msrb.mxu1 %v6875_v35 }
 0xa28   :  { %3178 = vmatpush.msrb.mxu2 %v6878_v24  ;;  %3198 = vmatpush.msrb.mxu3 %v6881_v4 }
 0xa29   :  { %3139 = vmatpush.msrb.mxu0 %v6884_v8  ;;  %3159 = vmatpush.msrb.mxu1 %v6887_v36 }
 0xa2a   :  { %3179 = vmatpush.msrb.mxu2 %v6890_v7  ;;  %3199 = vmatpush.msrb.mxu3 %v8525_v17 }
 0xa2b   :  { %3140 = vmatpush.msrb.mxu0 %v8526_v47  ;;  %3160 = vmatpush.msrb.mxu1 %v8527_v10 }
 0xa2c   :  { %3180 = vmatpush.msrb.mxu2 %v6902_v23  ;;  %3200 = vmatpush.msrb.mxu3 %v6905_v20 }
 0xa2d   :  { %3141 = vmatpush.msrb.mxu0 %v6908_v12  ;;  %3161 = vmatpush.msrb.mxu1 %v6911_v11 }
 0xa2e   :  { %3181 = vmatpush.msrb.mxu2 %v6914_v34  ;;  %3201 = vmatpush.msrb.mxu3 %v6917_v18 }
 0xa2f   :  { %3142 = vmatpush.msrb.mxu0 %v6996_v19  ;;  %3162 = vmatpush.msrb.mxu1 %v6999_v53 }
 0xa30   :  { %3182 = vmatpush.msrb.mxu2 %v7002_v15  ;;  %3202 = vmatpush.msrb.mxu3 %v7005_v26 }
 0xa31   :  { %3143 = vmatpush.msrb.mxu0 %v7008_v45  ;;  %3163 = vmatpush.msrb.mxu1 %v7011_v60 }
 0xa32   :  { %3183 = vmatpush.msrb.mxu2 %v7014_v3  ;;  %3203 = vmatpush.msrb.mxu3 %v7017_v31 }
 0xa33   :  { %3144 = vmatpush.msrb.mxu0 %v7020_v61  ;;  %3164 = vmatpush.msrb.mxu1 %v7023_v63 }
 0xa34   :  { %3184 = vmatpush.msrb.mxu2 %v7026_v49  ;;  %3204 = vmatpush.msrb.mxu3 %v7029_v13 }
 0xa35   :  { %3145 = vmatpush.msrb.mxu0 %v7032_v1  ;;  %3165 = vmatpush.msrb.mxu1 %v7035_v0 }
 0xa36   :  { %3185 = vmatpush.msrb.mxu2 %v7038_v37  ;;  %3205 = vmatpush.msrb.mxu3 %v7041_v40 }
 0xa37   :  { %3146 = vmatpush.msrb.mxu0 %v7044_v30  ;;  %3166 = vmatpush.msrb.mxu1 %v7047_v58 }
 0xa38   :  { %3186 = vmatpush.msrb.mxu2 %v7050_v42  ;;  %3206 = vmatpush.msrb.mxu3 %v7053_v46 }
 0xa39   :  { %3147 = vmatpush.msrb.mxu0 %v7056_v62  ;;  %3167 = vmatpush.msrb.mxu1 %v7059_v29  ;;  %v7077_v29 = vld [vmem:[#allocation3 + $0x58] sm:$0xff] }
 0xa3a   :  { %3187 = vmatpush.msrb.mxu2 %v7062_v59  ;;  %3207 = vmatpush.msrb.mxu3 %v7065_v6  ;;  %8545 = vst [vmem:[#allocation9_spill] sm:$0xff] %v7077_v29  ;;  %v7080_v59 = vld [vmem:[#allocation3 + $0x20] sm:$0xff]  ;;  %v7083_v6 = vld [vmem:[#allocation3 + $0x28] sm:$0xff] }
 0xa3b   :  { %3148 = vmatpush.msrb.mxu0 %v7068_v43  ;;  %3168 = vmatpush.msrb.mxu1 %v7071_v55  ;;  %8546 = vst [vmem:[#allocation10_spill] sm:$0xff] %v7080_v59  ;;  %v7086_v43 = vld [vmem:[#allocation3 + $0x30] sm:$0xff]  ;;  %v7089_v55 = vld [vmem:[#allocation3 + $0x38] sm:$0xff] }
 0xa3c   :  { %3188 = vmatpush.msrb.mxu2 %v7074_v2  ;;  %3208 = vmatpush.msrb.mxu3 %v7077_v29  ;;  %8547 = vst [vmem:[#allocation11_spill] sm:$0xff] %v7083_v6  ;;  %v7092_v2 = vld [vmem:[#allocation3] sm:$0xff]  ;;  %v7095_v29 = vld [vmem:[#allocation3 + $0x8] sm:$0xff] }
 0xa3d   :  { %3149 = vmatpush.msrb.mxu0 %v7080_v59  ;;  %3169 = vmatpush.msrb.mxu1 %v7083_v6  ;;  %8548 = vst [vmem:[#allocation12_spill] sm:$0xff] %v7086_v43  ;;  %v7098_v59 = vld [vmem:[#allocation3 + $0x10] sm:$0xff]  ;;  %v7101_v6 = vld [vmem:[#allocation3 + $0x18] sm:$0xff] }
 0xa3e   :  { %3189 = vmatpush.msrb.mxu2 %v7086_v43  ;;  %8549 = vst [vmem:[#allocation13_spill] sm:$0xff] %v7089_v55  ;;  %3209 = vmatpush.msrb.mxu3 %v7089_v55  ;;  %v135_v43 = vpop.permute.xlu0 %134 }
 0xa3f   :  { %8550 = vst [vmem:[#allocation14_spill] sm:$0xff] %v7092_v2  ;;  %3150 = vmatpush.msrb.mxu0 %v7092_v2  ;;  %3170 = vmatpush.msrb.mxu1 %v7095_v29  ;;  %v246_v62 = vmul.f32 %v8508_v39, %v135_v43  ;;  %v247_v55 = vmul.f32 %v8509_v9, %v135_v43 }
 0xa40   :  { %8551 = vst [vmem:[#allocation15_spill] sm:$0xff] %v7095_v29  ;;  %3190 = vmatpush.msrb.mxu2 %v7098_v59  ;;  %3210 = vmatpush.msrb.mxu3 %v7101_v6  ;;  %v248_v40 = vmul.f32 %v8521_v22, %v135_v43 }
 0xa41   :  { %8552 = vst [vmem:[#allocation16_spill] sm:$0xff] %v7098_v59  ;;  %v351_v46 = vadd.f32 %v8519_v52, %v246_v62  ;;  %v352_v2 = vadd.f32 %v8520_v14, %v247_v55 }
 0xa42   :  { %8553 = vst [vmem:[#allocation17_spill] sm:$0xff] %v7101_v6  ;;  %v353_v6 = vadd.f32 %v8522_v54, %v248_v40 }
 0xa9c   :  { %v2848_v42 = vpop.f32.mrf.mxu0  ;;  %v2868_v58 = vpop.f32.mrf.mxu1 }
 0xa9d   :  { %v2911_v29 = vadd.f32 %v2848_v42, %v351_v46  ;;  %v2912_v30 = vadd.f32 %v2868_v58, %v352_v2  ;;  %v249_v42 = vmul.f32 %v8523_v51, %v135_v43 }
 0xa9f   :  { %v4246_v59 = vmul.f32 -1.442695, %v2911_v29  ;;  %v4247_v37 = vmul.f32 -1.442695, %v2912_v30  ;;  %v354_v30 = vadd.f32 %v8524_v50, %v249_v42 }
 0xaa1   :  { %4521 = vpow2.f32 %v4246_v59 }
 0xaa2   :  { %4523 = vpow2.f32 %v4247_v37 }
 0xaa3   :  { %v2888_v0 = vpop.f32.mrf.mxu2  ;;  %v2908_v58 = vpop.f32.mrf.mxu3 }
 0xaa4   :  { %v2913_v39 = vadd.f32 %v2888_v0, %v353_v6  ;;  %v2914_v59 = vadd.f32 %v2908_v58, %v354_v30 }
 0xaa6   :  { %v4248_v1 = vmul.f32 -1.442695, %v2913_v39 }
 0xaa7   :  { %v4522_v9 = vpop.eup %4521 }
 0xaa8   :  { %v4524_v13 = vpop.eup %4523  ;;  %v2924_v62 = vadd.f32 1.0, %v4522_v9  ;;  %4525 = vpow2.f32 %v4248_v1 }
 0xaa9   :  { %v2925_v55 = vadd.f32 1.0, %v4524_v13 }
 0xaaa   :  { %4527 = vrcp.f32 %v2924_v62  ;;  %v2938_v9 = vand.u32 2147483648, %v2924_v62  ;;  %v2936_v43 = vand.u32 2147483647, %v2924_v62  ;;  %vm2932_vm6 = vweird.f32 %v2924_v62 }
 0xaab   :  { %4529 = vrcp.f32 %v2925_v55  ;;  %v2953_v13 = vand.u32 2147483648, %v2925_v55  ;;  %v2951_v54 = vand.u32 2147483647, %v2925_v55  ;;  %vm2947_vm7 = vweird.f32 %v2925_v55 }
 0xaac   :  { %vm2937_vm10 = vcmp.eq.f32.partialorder %v2936_v43, 8.507059e+37  ;;  %v8560_v43 = vld [vmem:[#allocation24_spill] sm:$0xff] }
 0xaad   :  { %vm2952_vm11 = vcmp.eq.f32.partialorder %v2951_v54, 8.507059e+37 }
 0xaae   :  { %v4526_v46 = vpop.eup %4525 }
 0xaaf   :  { %v2926_v29 = vadd.f32 1.0, %v4526_v46  ;;  %v2939_v46 = vor.u32 1.1754944e-38, %v2938_v9 }
 0xab0   :  { %v4528_v37 = vpop.eup %4527 }
 0xab1   :  { %v4530_v40 = vpop.eup %4529  ;;  %v2928_v2 = vmul.f32 %v4528_v37, %v2924_v62  ;;  %4531 = vrcp.f32 %v2926_v29  ;;  %vm2933_vm4 = vweird.f32 %v4528_v37  ;;  %vm2962_vm13 = vweird.f32 %v2926_v29 }
 0xab2   :  { %v2943_v39 = vmul.f32 %v4530_v40, %v2925_v55  ;;  %4533 = vtanh.f32 %v2914_v59  ;;  %vm2948_vm5 = vweird.f32 %v4530_v40  ;;  %vm2934_vm8 = vmor %vm2932_vm6, %vm2933_vm4 }
 0xab3   :  { %v2929_v0 = vsub.f32 1.0, %v2928_v2  ;;  %vm2949_vm9 = vmor %vm2947_vm7, %vm2948_vm5  ;;  %v2954_v2 = vor.u32 1.1754944e-38, %v2953_v13 }
 0xab4   :  { %v2944_v6 = vsub.f32 1.0, %v2943_v39 }
 0xab5   :  { %v2930_v1 = vmul.f32 %v4528_v37, %v2929_v0 }
 0xab6   :  { %v2945_v51 = vmul.f32 %v4530_v40, %v2944_v6 }
 0xab7   :  { %v4532_v22 = vpop.eup %4531  ;;  %v2931_v42 = vadd.f32 %v4528_v37, %v2930_v1 }
 0xab8   :  { %v2958_v58 = vmul.f32 %v4532_v22, %v2926_v29  ;;  %v2946_v30 = vadd.f32 %v4530_v40, %v2945_v51  ;;  %v4534_v59 = vpop.eup %4533  ;;  %vm2963_vm12 = vweird.f32 %v4532_v22  ;;  %v2968_v51 = vand.u32 2147483648, %v2926_v29 }
 0xab9   :  { %v2935_v39 = vsel %vm2934_vm8, %v4528_v37, %v2931_v42  ;;  %v2966_v37 = vand.u32 2147483647, %v2926_v29  ;;  %vm2964_vm14 = vmor %vm2962_vm13, %vm2963_vm12  ;;  %v8559_v29 = vld [vmem:[#allocation23_spill] sm:$0xff]  ;;  %v8561_v42 = vld [vmem:[#allocation25_spill] sm:$0xff] }
 0xaba   :  { %v2959_v50 = vsub.f32 1.0, %v2958_v58  ;;  %v2940_v0 = vsel %vm2937_vm10, %v2939_v46, %v2935_v39  ;;  %v2950_v14 = vsel %vm2949_vm9, %v4530_v40, %v2946_v30  ;;  %v2969_v13 = vor.u32 1.1754944e-38, %v2968_v51  ;;  %v8562_v58 = vld [vmem:[#allocation26_spill] sm:$0xff]  ;;  %v8563_v46 = vld [vmem:[#allocation27_spill] sm:$0xff]  ;;  %v8564_v30 = vld [vmem:[#allocation28_spill] sm:$0xff] }
 0xabb   :  { %v2955_v6 = vsel %vm2952_vm11, %v2954_v2, %v2950_v14  ;;  %v2974_v52 = vmul.f32 %v4534_v59, %v2940_v0  ;;  %vm2967_vm15 = vcmp.eq.f32.partialorder %v2966_v37, 8.507059e+37  ;;  %v8565_v2 = vld [vmem:[#allocation29_spill] sm:$0xff]  ;;  %v8566_v39 = vld [vmem:[#allocation30_spill] sm:$0xff]  ;;  %v8567_v59 = vld [vmem:[#allocation31_spill] sm:$0xff] }
 0xabc   :  { %v2973_v49 = vmul.f32 %v2955_v6, %v6965_v56  ;;  %v2960_v1 = vmul.f32 %v4532_v22, %v2959_v50  ;;  %v8556_v50 = vld [vmem:[#allocation20_spill] sm:$0xff]  ;;  %v8557_v56 = vld [vmem:[#allocation21_spill] sm:$0xff]  ;;  %v8568_v0 = vld [vmem:[#allocation6_spill] sm:$0xff] }
 0xabd   :  { %v8569_v6 = vld [vmem:[#allocation7_spill] sm:$0xff]  ;;  %v8572_v51 = vld [vmem:[#allocation10_spill] sm:$0xff] }
 0xabe   :  { %v7113_v62 = vadd.f32 %v2974_v52, %v2973_v49  ;;  %v2961_v55 = vadd.f32 %v4532_v22, %v2960_v1  ;;  %v8554_v52 = vld [vmem:[#allocation18_spill] sm:$0xff]  ;;  %v8570_v1 = vld [vmem:[#allocation8_spill] sm:$0xff]  ;;  %v8573_v37 = vld [vmem:[#allocation11_spill] sm:$0xff] }
 0xabf   :  { %v8558_v49 = vld [vmem:[#allocation22_spill] sm:$0xff] }
 0xac0   :  { %4535 = vtanh.f32 %v7113_v62  ;;  %v2965_v9 = vsel %vm2964_vm14, %v4532_v22, %v2961_v55  ;;  %v8555_v22 = vld [vmem:[#allocation19_spill] sm:$0xff]  ;;  %v8571_v55 = vld [vmem:[#allocation9_spill] sm:$0xff] }
 0xac1   :  { %v2970_v54 = vsel %vm2967_vm15, %v2969_v13, %v2965_v9  ;;  %v8574_v9 = vld [vmem:[#allocation12_spill] sm:$0xff]  ;;  %v8575_v13 = vld [vmem:[#allocation13_spill] sm:$0xff] }
 0xac6   :  { %v4536_v40 = vpop.eup %4535 }
 0xac7   :  { %v2977_v14 = vmul.f32 %v4536_v40, %v2970_v54  ;;  %v8576_v40 = vld [vmem:[#allocation14_spill] sm:$0xff]  ;;  %v8577_v54 = vld [vmem:[#allocation15_spill] sm:$0xff] }
 0xac9   :  { %2999 = vmatmul.f32.vlgmr.msra.gmra.mxu0 %v2977_v14  ;;  %3019 = vmatmul.f32.vlgmr.msra.gmra.mxu1 %v2977_v14 }
 0xaca   :  { %3039 = vmatmul.f32.vlgmr.msra.gmra.mxu2 %v2977_v14  ;;  %3059 = vmatmul.f32.vlgmr.msra.gmra.mxu3 %v2977_v14  ;;  %v8578_v14 = vld [vmem:[#allocation16_spill] sm:$0xff] }
 0xacb   :  { %3287 = vmatpush.msra.mxu0 %v6836_v33  ;;  %3307 = vmatpush.msra.mxu1 %v6839_v32 }
 0xacc   :  { %3327 = vmatpush.msra.mxu2 %v6842_v44  ;;  %3347 = vmatpush.msra.mxu3 %v6845_v48 }
 0xacd   :  { %3288 = vmatpush.msra.mxu0 %v6848_v38  ;;  %3308 = vmatpush.msra.mxu1 %v6851_v25 }
 0xace   :  { %3328 = vmatpush.msra.mxu2 %v6854_v57  ;;  %3348 = vmatpush.msra.mxu3 %v6857_v21 }
 0xacf   :  { %3289 = vmatpush.msra.mxu0 %v6860_v16  ;;  %3309 = vmatpush.msra.mxu1 %v6863_v41 }
 0xad0   :  { %3329 = vmatpush.msra.mxu2 %v6866_v5  ;;  %3349 = vmatpush.msra.mxu3 %v6869_v27 }
 0xad1   :  { %3290 = vmatpush.msra.mxu0 %v6872_v28  ;;  %3310 = vmatpush.msra.mxu1 %v6875_v35 }
 0xad2   :  { %3330 = vmatpush.msra.mxu2 %v6878_v24  ;;  %3350 = vmatpush.msra.mxu3 %v6881_v4 }
 0xad3   :  { %3291 = vmatpush.msra.mxu0 %v6884_v8  ;;  %3311 = vmatpush.msra.mxu1 %v6887_v36 }
 0xad4   :  { %3331 = vmatpush.msra.mxu2 %v6890_v7  ;;  %3351 = vmatpush.msra.mxu3 %v8525_v17 }
 0xad5   :  { %3292 = vmatpush.msra.mxu0 %v8526_v47  ;;  %3312 = vmatpush.msra.mxu1 %v8527_v10 }
 0xad6   :  { %3332 = vmatpush.msra.mxu2 %v6902_v23  ;;  %3352 = vmatpush.msra.mxu3 %v6905_v20 }
 0xad7   :  { %3293 = vmatpush.msra.mxu0 %v6908_v12  ;;  %3313 = vmatpush.msra.mxu1 %v6911_v11 }
 0xad8   :  { %3333 = vmatpush.msra.mxu2 %v6914_v34  ;;  %3353 = vmatpush.msra.mxu3 %v6917_v18 }
 0xad9   :  { %3294 = vmatpush.msra.mxu0 %v6996_v19  ;;  %3314 = vmatpush.msra.mxu1 %v6999_v53 }
 0xada   :  { %3334 = vmatpush.msra.mxu2 %v7002_v15  ;;  %3354 = vmatpush.msra.mxu3 %v7005_v26 }
 0xadb   :  { %3295 = vmatpush.msra.mxu0 %v7008_v45  ;;  %3315 = vmatpush.msra.mxu1 %v7011_v60 }
 0xadc   :  { %3335 = vmatpush.msra.mxu2 %v7014_v3  ;;  %3355 = vmatpush.msra.mxu3 %v7017_v31 }
 0xadd   :  { %3296 = vmatpush.msra.mxu0 %v7020_v61  ;;  %3316 = vmatpush.msra.mxu1 %v7023_v63 }
 0xade   :  { %3336 = vmatpush.msra.mxu2 %v8554_v52  ;;  %3356 = vmatpush.msra.mxu3 %v8555_v22 }
 0xadf   :  { %3297 = vmatpush.msra.mxu0 %v8556_v50  ;;  %3317 = vmatpush.msra.mxu1 %v8557_v56 }
 0xae0   :  { %3337 = vmatpush.msra.mxu2 %v8558_v49  ;;  %3357 = vmatpush.msra.mxu3 %v8559_v29 }
 0xae1   :  { %3298 = vmatpush.msra.mxu0 %v8560_v43  ;;  %3318 = vmatpush.msra.mxu1 %v8561_v42 }
 0xae2   :  { %3338 = vmatpush.msra.mxu2 %v8562_v58  ;;  %3358 = vmatpush.msra.mxu3 %v8563_v46 }
 0xae3   :  { %3299 = vmatpush.msra.mxu0 %v8564_v30  ;;  %3319 = vmatpush.msra.mxu1 %v8565_v2 }
 0xae4   :  { %3339 = vmatpush.msra.mxu2 %v8566_v39  ;;  %3359 = vmatpush.msra.mxu3 %v8567_v59 }
 0xae5   :  { %3300 = vmatpush.msra.mxu0 %v8568_v0  ;;  %3320 = vmatpush.msra.mxu1 %v8569_v6  ;;  %v8579_v0 = vld [vmem:[#allocation17_spill] sm:$0xff]  ;;  %v140_v6 = vpop.permute.xlu1 %139 }
 0xae6   :  { %3340 = vmatpush.msra.mxu2 %v8570_v1  ;;  %3360 = vmatpush.msra.mxu3 %v8571_v55  ;;  %v8580_v1 = vld [vmem:[#allocation32_spill] sm:$0xff]  ;;  %v8581_v55 = vld [vmem:[#allocation33_spill] sm:$0xff] }
 0xae7   :  { %3301 = vmatpush.msra.mxu0 %v8572_v51  ;;  %3321 = vmatpush.msra.mxu1 %v8573_v37  ;;  %v250_v59 = vmul.f32 %v8580_v1, %v140_v6  ;;  %v251_v39 = vmul.f32 %v8581_v55, %v140_v6  ;;  %v8582_v51 = vld [vmem:[#allocation34_spill] sm:$0xff]  ;;  %v8583_v37 = vld [vmem:[#allocation35_spill] sm:$0xff] }
 0xae8   :  { %3341 = vmatpush.msra.mxu2 %v8574_v9  ;;  %3361 = vmatpush.msra.mxu3 %v8575_v13 }
 0xae9   :  { %3302 = vmatpush.msra.mxu0 %v8576_v40  ;;  %3322 = vmatpush.msra.mxu1 %v8577_v54  ;;  %v355_v2 = vadd.f32 %v8582_v51, %v250_v59  ;;  %v356_v30 = vadd.f32 %v8583_v37, %v251_v39  ;;  %v8584_v40 = vld [vmem:[#allocation36_spill] sm:$0xff]  ;;  %v8586_v37 = vld [vmem:[#allocation38_spill] sm:$0xff] }
 0xaea   :  { %3342 = vmatpush.msra.mxu2 %v8578_v14  ;;  %3362 = vmatpush.msra.mxu3 %v8579_v0  ;;  %v252_v42 = vmul.f32 %v8584_v40, %v140_v6  ;;  %v8585_v0 = vld [vmem:[#allocation37_spill] sm:$0xff] }
 0xaec   :  { %v357_v14 = vadd.f32 %v8585_v0, %v252_v42 }
 0xb46   :  { %v3000_v9 = vpop.f32.mrf.mxu0  ;;  %v3020_v46 = vpop.f32.mrf.mxu1 }
 0xb47   :  { %v3063_v13 = vadd.f32 %v3000_v9, %v355_v2  ;;  %v3064_v58 = vadd.f32 %v3020_v46, %v356_v30  ;;  %v253_v2 = vmul.f32 %v8586_v37, %v140_v6  ;;  %v8587_v9 = vld [vmem:[#allocation39_spill] sm:$0xff] }
 0xb49   :  { %v4249_v54 = vmul.f32 -1.442695, %v3063_v13  ;;  %v4250_v43 = vmul.f32 -1.442695, %v3064_v58  ;;  %v358_v58 = vadd.f32 %v8587_v9, %v253_v2 }
 0xb4b   :  { %4537 = vpow2.f32 %v4249_v54 }
 0xb4c   :  { %4539 = vpow2.f32 %v4250_v43 }
 0xb4d   :  { %v3040_v29 = vpop.f32.mrf.mxu2  ;;  %v3060_v46 = vpop.f32.mrf.mxu3 }
 0xb4e   :  { %v3065_v1 = vadd.f32 %v3040_v29, %v357_v14  ;;  %v3066_v54 = vadd.f32 %v3060_v46, %v358_v58 }
 0xb50   :  { %v4251_v49 = vmul.f32 -1.442695, %v3065_v1 }
 0xb51   :  { %v4538_v55 = vpop.eup %4537 }
 0xb52   :  { %v4540_v56 = vpop.eup %4539  ;;  %v3076_v59 = vadd.f32 1.0, %v4538_v55  ;;  %4541 = vpow2.f32 %v4251_v49 }
 0xb53   :  { %v3077_v39 = vadd.f32 1.0, %v4540_v56 }
 0xb54   :  { %4543 = vrcp.f32 %v3076_v59  ;;  %v3090_v55 = vand.u32 2147483648, %v3076_v59  ;;  %v3088_v6 = vand.u32 2147483647, %v3076_v59  ;;  %vm3084_vm2 = vweird.f32 %v3076_v59 }
 0xb55   :  { %4545 = vrcp.f32 %v3077_v39  ;;  %v3105_v56 = vand.u32 2147483648, %v3077_v39  ;;  %v3103_v40 = vand.u32 2147483647, %v3077_v39  ;;  %vm3099_vm3 = vweird.f32 %v3077_v39 }
 0xb56   :  { %vm3089_vm6 = vcmp.eq.f32.partialorder %v3088_v6, 8.507059e+37 }
 0xb57   :  { %vm3104_vm7 = vcmp.eq.f32.partialorder %v3103_v40, 8.507059e+37 }
 0xb58   :  { %v4542_v30 = vpop.eup %4541 }
 0xb59   :  { %v3078_v13 = vadd.f32 1.0, %v4542_v30  ;;  %v3091_v30 = vor.u32 1.1754944e-38, %v3090_v55 }
 0xb5a   :  { %v4544_v43 = vpop.eup %4543 }
 0xb5b   :  { %v4546_v42 = vpop.eup %4545  ;;  %v3080_v0 = vmul.f32 %v4544_v43, %v3076_v59  ;;  %4547 = vrcp.f32 %v3078_v13  ;;  %vm3085_vm0 = vweird.f32 %v4544_v43  ;;  %vm3114_vm9 = vweird.f32 %v3078_v13 }
 0xb5c   :  { %v3095_v29 = vmul.f32 %v4546_v42, %v3077_v39  ;;  %4549 = vtanh.f32 %v3066_v54  ;;  %vm3100_vm1 = vweird.f32 %v4546_v42  ;;  %vm3086_vm4 = vmor %vm3084_vm2, %vm3085_vm0 }
 0xb5d   :  { %v3081_v1 = vsub.f32 1.0, %v3080_v0  ;;  %vm3101_vm5 = vmor %vm3099_vm3, %vm3100_vm1  ;;  %v3106_v0 = vor.u32 1.1754944e-38, %v3105_v56 }
 0xb5e   :  { %v3096_v14 = vsub.f32 1.0, %v3095_v29 }
 0xb5f   :  { %v3082_v49 = vmul.f32 %v4544_v43, %v3081_v1 }
 0xb60   :  { %v3097_v37 = vmul.f32 %v4546_v42, %v3096_v14 }
 0xb61   :  { %v4548_v51 = vpop.eup %4547  ;;  %v3083_v2 = vadd.f32 %v4544_v43, %v3082_v49 }
 0xb62   :  { %v3110_v46 = vmul.f32 %v4548_v51, %v3078_v13  ;;  %v3098_v58 = vadd.f32 %v4546_v42, %v3097_v37  ;;  %v4550_v54 = vpop.eup %4549  ;;  %vm3115_vm8 = vweird.f32 %v4548_v51  ;;  %v3120_v37 = vand.u32 2147483648, %v3078_v13 }
 0xb63   :  { %v3087_v29 = vsel %vm3086_vm4, %v4544_v43, %v3083_v2  ;;  %v3118_v43 = vand.u32 2147483647, %v3078_v13  ;;  %vm3116_vm10 = vmor %vm3114_vm9, %vm3115_vm8  ;;  %v8617_v13 = vld [vmem:[#allocation35_spill] sm:$0xff] }
 0xb64   :  { %v3111_v9 = vsub.f32 1.0, %v3110_v46  ;;  %v3092_v1 = vsel %vm3089_vm6, %v3091_v30, %v3087_v29  ;;  %v3102_v50 = vsel %vm3101_vm5, %v4546_v42, %v3098_v58  ;;  %v3121_v56 = vor.u32 1.1754944e-38, %v3120_v37 }
 0xb65   :  { %v3107_v14 = vsel %vm3104_vm7, %v3106_v0, %v3102_v50  ;;  %v3126_v22 = vmul.f32 %v4550_v54, %v3092_v1  ;;  %vm3119_vm11 = vcmp.eq.f32.partialorder %v3118_v43, 8.507059e+37  ;;  %v8618_v0 = vld [vmem:[#allocation36_spill] sm:$0xff] }
 0xb66   :  { %v3125_v52 = vmul.f32 %v3107_v14, %v7113_v62  ;;  %v3112_v49 = vmul.f32 %v4548_v51, %v3111_v9  ;;  %v8619_v14 = vld [vmem:[#allocation37_spill] sm:$0xff] }
 0xb68   :  { %v7189_v59 = vadd.f32 %v3126_v22, %v3125_v52  ;;  %v3113_v39 = vadd.f32 %v4548_v51, %v3112_v49  ;;  %v8615_v52 = vld [vmem:[#allocation33_spill] sm:$0xff] }
 0xb6a   :  { %4551 = vtanh.f32 %v7189_v59  ;;  %v3117_v55 = vsel %vm3116_vm10, %v4548_v51, %v3113_v39  ;;  %v8616_v51 = vld [vmem:[#allocation34_spill] sm:$0xff] }
 0xb6b   :  { %v3122_v40 = vsel %vm3119_vm11, %v3121_v56, %v3117_v55 }
 0xb70   :  { %v4552_v42 = vpop.eup %4551 }
 0xb71   :  { %v3129_v50 = vmul.f32 %v4552_v42, %v3122_v40 }
 0xb73   :  { %3151 = vmatmul.f32.vlgmr.msrb.gmra.mxu0 %v3129_v50  ;;  %3171 = vmatmul.f32.vlgmr.msrb.gmra.mxu1 %v3129_v50 }
 0xb74   :  { %3191 = vmatmul.f32.vlgmr.msrb.gmra.mxu2 %v3129_v50  ;;  %3211 = vmatmul.f32.vlgmr.msrb.gmra.mxu3 %v3129_v50  ;;  %v8620_v50 = vld [vmem:[#allocation38_spill] sm:$0xff] }
 0xb75   :  { %3439 = vmatpush.msrb.mxu0 %v6836_v33  ;;  %3459 = vmatpush.msrb.mxu1 %v6839_v32  ;;  %v8588_v33 = vld [vmem:[#allocation18_spill] sm:$0xff]  ;;  %v8589_v32 = vld [vmem:[#allocation19_spill] sm:$0xff] }
 0xb76   :  { %3479 = vmatpush.msrb.mxu2 %v6842_v44  ;;  %3499 = vmatpush.msrb.mxu3 %v6845_v48  ;;  %v8590_v44 = vld [vmem:[#allocation20_spill] sm:$0xff]  ;;  %v8591_v48 = vld [vmem:[#allocation21_spill] sm:$0xff] }
 0xb77   :  { %3440 = vmatpush.msrb.mxu0 %v6848_v38  ;;  %3460 = vmatpush.msrb.mxu1 %v6851_v25  ;;  %v8592_v38 = vld [vmem:[#allocation22_spill] sm:$0xff]  ;;  %v8593_v25 = vld [vmem:[#allocation23_spill] sm:$0xff] }
 0xb78   :  { %3480 = vmatpush.msrb.mxu2 %v6854_v57  ;;  %3500 = vmatpush.msrb.mxu3 %v6857_v21  ;;  %v8594_v57 = vld [vmem:[#allocation24_spill] sm:$0xff]  ;;  %v8595_v21 = vld [vmem:[#allocation25_spill] sm:$0xff] }
 0xb79   :  { %3441 = vmatpush.msrb.mxu0 %v6860_v16  ;;  %3461 = vmatpush.msrb.mxu1 %v6863_v41  ;;  %v8596_v16 = vld [vmem:[#allocation26_spill] sm:$0xff]  ;;  %v8597_v41 = vld [vmem:[#allocation27_spill] sm:$0xff] }
 0xb7a   :  { %3481 = vmatpush.msrb.mxu2 %v6866_v5  ;;  %3501 = vmatpush.msrb.mxu3 %v6869_v27  ;;  %v8598_v5 = vld [vmem:[#allocation28_spill] sm:$0xff]  ;;  %v8599_v27 = vld [vmem:[#allocation29_spill] sm:$0xff] }
 0xb7b   :  { %3442 = vmatpush.msrb.mxu0 %v6872_v28  ;;  %3462 = vmatpush.msrb.mxu1 %v6875_v35  ;;  %v8600_v28 = vld [vmem:[#allocation30_spill] sm:$0xff]  ;;  %v8601_v35 = vld [vmem:[#allocation31_spill] sm:$0xff] }
 0xb7c   :  { %3482 = vmatpush.msrb.mxu2 %v6878_v24  ;;  %3502 = vmatpush.msrb.mxu3 %v6881_v4  ;;  %v8602_v24 = vld [vmem:[#allocation6_spill] sm:$0xff]  ;;  %v8603_v4 = vld [vmem:[#allocation7_spill] sm:$0xff] }
 0xb7d   :  { %3443 = vmatpush.msrb.mxu0 %v6884_v8  ;;  %3463 = vmatpush.msrb.mxu1 %v6887_v36  ;;  %v8604_v8 = vld [vmem:[#allocation8_spill] sm:$0xff]  ;;  %v8605_v36 = vld [vmem:[#allocation9_spill] sm:$0xff] }
 0xb7e   :  { %3483 = vmatpush.msrb.mxu2 %v6890_v7  ;;  %3503 = vmatpush.msrb.mxu3 %v8525_v17  ;;  %v8606_v7 = vld [vmem:[#allocation10_spill] sm:$0xff]  ;;  %v8613_v17 = vld [vmem:[#allocation17_spill] sm:$0xff] }
 0xb7f   :  { %3444 = vmatpush.msrb.mxu0 %v8526_v47  ;;  %3464 = vmatpush.msrb.mxu1 %v8527_v10  ;;  %v145_v47 = vpop.permute.xlu2 %144  ;;  %v8614_v10 = vld [vmem:[#allocation32_spill] sm:$0xff] }
 0xb80   :  { %3484 = vmatpush.msrb.mxu2 %v6902_v23  ;;  %3504 = vmatpush.msrb.mxu3 %v6905_v20  ;;  %v8610_v23 = vld [vmem:[#allocation14_spill] sm:$0xff]  ;;  %v8611_v20 = vld [vmem:[#allocation15_spill] sm:$0xff]  ;;  %v254_v62 = vmul.f32 %v8614_v10, %v145_v47  ;;  %v255_v22 = vmul.f32 %v8615_v52, %v145_v47  ;;  %v256_v29 = vmul.f32 %v8618_v0, %v145_v47 }
 0xb81   :  { %3445 = vmatpush.msrb.mxu0 %v6908_v12  ;;  %3465 = vmatpush.msrb.mxu1 %v6911_v11  ;;  %v8607_v11 = vld [vmem:[#allocation11_spill] sm:$0xff]  ;;  %v8612_v12 = vld [vmem:[#allocation16_spill] sm:$0xff] }
 0xb82   :  { %3485 = vmatpush.msrb.mxu2 %v6914_v34  ;;  %3505 = vmatpush.msrb.mxu3 %v6917_v18  ;;  %v8608_v34 = vld [vmem:[#allocation12_spill] sm:$0xff]  ;;  %v8609_v18 = vld [vmem:[#allocation13_spill] sm:$0xff]  ;;  %v359_v9 = vadd.f32 %v8616_v51, %v254_v62  ;;  %v360_v6 = vadd.f32 %v8617_v13, %v255_v22  ;;  %v361_v49 = vadd.f32 %v8619_v14, %v256_v29 }
 0xb83   :  { %3446 = vmatpush.msrb.mxu0 %v6996_v19  ;;  %3466 = vmatpush.msrb.mxu1 %v6999_v53  ;;  %v257_v62 = vmul.f32 %v8620_v50, %v145_v47 }
 0xb84   :  { %3486 = vmatpush.msrb.mxu2 %v7002_v15  ;;  %3506 = vmatpush.msrb.mxu3 %v7005_v26 }
 0xb85   :  { %3447 = vmatpush.msrb.mxu0 %v7008_v45  ;;  %3467 = vmatpush.msrb.mxu1 %v7011_v60 }
 0xb86   :  { %3487 = vmatpush.msrb.mxu2 %v7014_v3  ;;  %3507 = vmatpush.msrb.mxu3 %v7017_v31 }
 0xb87   :  { %3448 = vmatpush.msrb.mxu0 %v7020_v61  ;;  %3468 = vmatpush.msrb.mxu1 %v7023_v63 }
 0xb88   :  { %3488 = vmatpush.msrb.mxu2 %v8588_v33  ;;  %3508 = vmatpush.msrb.mxu3 %v8589_v32 }
 0xb89   :  { %3449 = vmatpush.msrb.mxu0 %v8590_v44  ;;  %3469 = vmatpush.msrb.mxu1 %v8591_v48 }
 0xb8a   :  { %3489 = vmatpush.msrb.mxu2 %v8592_v38  ;;  %3509 = vmatpush.msrb.mxu3 %v8593_v25 }
 0xb8b   :  { %3450 = vmatpush.msrb.mxu0 %v8594_v57  ;;  %3470 = vmatpush.msrb.mxu1 %v8595_v21 }
 0xb8c   :  { %3490 = vmatpush.msrb.mxu2 %v8596_v16  ;;  %3510 = vmatpush.msrb.mxu3 %v8597_v41 }
 0xb8d   :  { %3451 = vmatpush.msrb.mxu0 %v8598_v5  ;;  %3471 = vmatpush.msrb.mxu1 %v8599_v27 }
 0xb8e   :  { %3491 = vmatpush.msrb.mxu2 %v8600_v28  ;;  %3511 = vmatpush.msrb.mxu3 %v8601_v35 }
 0xb8f   :  { %3452 = vmatpush.msrb.mxu0 %v8602_v24  ;;  %3472 = vmatpush.msrb.mxu1 %v8603_v4 }
 0xb90   :  { %3492 = vmatpush.msrb.mxu2 %v8604_v8  ;;  %3512 = vmatpush.msrb.mxu3 %v8605_v36 }
 0xb91   :  { %3453 = vmatpush.msrb.mxu0 %v8606_v7  ;;  %3473 = vmatpush.msrb.mxu1 %v8607_v11 }
 0xb92   :  { %3493 = vmatpush.msrb.mxu2 %v8608_v34  ;;  %3513 = vmatpush.msrb.mxu3 %v8609_v18 }
 0xb93   :  { %3454 = vmatpush.msrb.mxu0 %v8610_v23  ;;  %3474 = vmatpush.msrb.mxu1 %v8611_v20 }
 0xb94   :  { %3494 = vmatpush.msrb.mxu2 %v8612_v12  ;;  %3514 = vmatpush.msrb.mxu3 %v8613_v17 }
 0xbf0   :  { %v3152_v2 = vpop.f32.mrf.mxu0  ;;  %v3172_v46 = vpop.f32.mrf.mxu1 }
 0xbf1   :  { %v3215_v30 = vadd.f32 %v3152_v2, %v359_v9  ;;  %v3216_v58 = vadd.f32 %v3172_v46, %v360_v6  ;;  %v8621_v6 = vld [vmem:[#allocation39_spill] sm:$0xff] }
 0xbf2   :  { %v362_v2 = vadd.f32 %v8621_v6, %v257_v62 }
 0xbf3   :  { %v4252_v54 = vmul.f32 -1.442695, %v3215_v30  ;;  %v4253_v1 = vmul.f32 -1.442695, %v3216_v58 }
 0xbf5   :  { %4553 = vpow2.f32 %v4252_v54 }
 0xbf6   :  { %4555 = vpow2.f32 %v4253_v1 }
 0xbf7   :  { %v3192_v39 = vpop.f32.mrf.mxu2  ;;  %v3212_v22 = vpop.f32.mrf.mxu3 }
 0xbf8   :  { %v3217_v37 = vadd.f32 %v3192_v39, %v361_v49  ;;  %v3218_v58 = vadd.f32 %v3212_v22, %v362_v2 }
 0xbfa   :  { %v4254_v43 = vmul.f32 -1.442695, %v3217_v37 }
 0xbfb   :  { %v4554_v55 = vpop.eup %4553 }
 0xbfc   :  { %v4556_v56 = vpop.eup %4555  ;;  %v3228_v42 = vadd.f32 1.0, %v4554_v55  ;;  %4557 = vpow2.f32 %v4254_v43 }
 0xbfd   :  { %v3229_v40 = vadd.f32 1.0, %v4556_v56 }
 0xbfe   :  { %4559 = vrcp.f32 %v3228_v42  ;;  %v3242_v37 = vand.u32 2147483648, %v3228_v42  ;;  %v3240_v47 = vand.u32 2147483647, %v3228_v42  ;;  %vm3236_vm14 = vweird.f32 %v3228_v42 }
 0xbff   :  { %4561 = vrcp.f32 %v3229_v40  ;;  %v3257_v43 = vand.u32 2147483648, %v3229_v40  ;;  %v3255_v50 = vand.u32 2147483647, %v3229_v40  ;;  %vm3251_vm15 = vweird.f32 %v3229_v40 }
 0xc00   :  { %vm3241_vm2 = vcmp.eq.f32.partialorder %v3240_v47, 8.507059e+37 }
 0xc01   :  { %vm3256_vm3 = vcmp.eq.f32.partialorder %v3255_v50, 8.507059e+37 }
 0xc02   :  { %v4558_v9 = vpop.eup %4557 }
 0xc03   :  { %v3230_v46 = vadd.f32 1.0, %v4558_v9  ;;  %v3243_v9 = vor.u32 1.1754944e-38, %v3242_v37 }
 0xc04   :  { %v4560_v30 = vpop.eup %4559 }
 0xc05   :  { %v4562_v29 = vpop.eup %4561  ;;  %v3232_v54 = vmul.f32 %v4560_v30, %v3228_v42  ;;  %4563 = vrcp.f32 %v3230_v46  ;;  %vm3237_vm12 = vweird.f32 %v4560_v30  ;;  %v3272_v37 = vand.u32 2147483648, %v3230_v46 }
 0xc06   :  { %v3247_v1 = vmul.f32 %v4562_v29, %v3229_v40  ;;  %4565 = vtanh.f32 %v3218_v58  ;;  %vm3252_vm13 = vweird.f32 %v4562_v29  ;;  %vm3238_vm0 = vmor %vm3236_vm14, %vm3237_vm12  ;;  %vm3266_vm5 = vweird.f32 %v3230_v46 }
 0xc07   :  { %v3233_v49 = vsub.f32 1.0, %v3232_v54  ;;  %vm3253_vm1 = vmor %vm3251_vm15, %vm3252_vm13  ;;  %v3258_v54 = vor.u32 1.1754944e-38, %v3257_v43  ;;  %v3273_v47 = vor.u32 1.1754944e-38, %v3272_v37  ;;  %v7322_v37 = vld [vmem:[#allocation3 + $0x170] sm:$0xff] }
 0xc08   :  { %v3248_v39 = vsub.f32 1.0, %v3247_v1 }
 0xc09   :  { %v3234_v55 = vmul.f32 %v4560_v30, %v3233_v49 }
 0xc0a   :  { %v3249_v56 = vmul.f32 %v4562_v29, %v3248_v39 }
 0xc0b   :  { %v4564_v14 = vpop.eup %4563  ;;  %v3235_v62 = vadd.f32 %v4560_v30, %v3234_v55 }
 0xc0c   :  { %v3262_v22 = vmul.f32 %v4564_v14, %v3230_v46  ;;  %v3250_v2 = vadd.f32 %v4562_v29, %v3249_v56  ;;  %v4566_v58 = vpop.eup %4565  ;;  %vm3267_vm4 = vweird.f32 %v4564_v14  ;;  %v7286_v56 = vld [vmem:[#allocation3 + $0x1d0] sm:$0xff] }
 0xc0d   :  { %v3239_v1 = vsel %vm3238_vm0, %v4560_v30, %v3235_v62  ;;  %v3270_v30 = vand.u32 2147483647, %v3230_v46  ;;  %vm3268_vm6 = vmor %vm3266_vm5, %vm3267_vm4  ;;  %v7283_v46 = vld [vmem:[#allocation3 + $0x1c8] sm:$0xff]  ;;  %v7289_v62 = vld [vmem:[#allocation3 + $0x1d8] sm:$0xff] }
 0xc0e   :  { %v3263_v6 = vsub.f32 1.0, %v3262_v22  ;;  %v3244_v49 = vsel %vm3241_vm2, %v3243_v9, %v3239_v1  ;;  %v3254_v0 = vsel %vm3253_vm1, %v4562_v29, %v3250_v2  ;;  %v7292_v22 = vld [vmem:[#allocation3 + $0x1a0] sm:$0xff]  ;;  %v7295_v9 = vld [vmem:[#allocation3 + $0x1a8] sm:$0xff]  ;;  %v7298_v2 = vld [vmem:[#allocation3 + $0x1b0] sm:$0xff] }
 0xc0f   :  { %v3259_v39 = vsel %vm3256_vm3, %v3258_v54, %v3254_v0  ;;  %v3278_v13 = vmul.f32 %v4566_v58, %v3244_v49  ;;  %vm3271_vm7 = vcmp.eq.f32.partialorder %v3270_v30, 8.507059e+37  ;;  %v7301_v54 = vld [vmem:[#allocation3 + $0x1b8] sm:$0xff]  ;;  %v7304_v1 = vld [vmem:[#allocation3 + $0x180] sm:$0xff]  ;;  %v7307_v58 = vld [vmem:[#allocation3 + $0x188] sm:$0xff] }
 0xc10   :  { %v3277_v51 = vmul.f32 %v3259_v39, %v7189_v59  ;;  %v3264_v55 = vmul.f32 %v4564_v14, %v3263_v6  ;;  %v7268_v59 = vld [vmem:[#allocation3 + $0x1e0] sm:$0xff]  ;;  %v7310_v49 = vld [vmem:[#allocation3 + $0x190] sm:$0xff]  ;;  %v7313_v39 = vld [vmem:[#allocation3 + $0x198] sm:$0xff] }
 0xc11   :  { %v7280_v6 = vld [vmem:[#allocation3 + $0x1c0] sm:$0xff]  ;;  %v7325_v30 = vld [vmem:[#allocation3 + $0x178] sm:$0xff] }
 0xc12   :  { %v7265_v42 = vadd.f32 %v3278_v13, %v3277_v51  ;;  %v3265_v40 = vadd.f32 %v4564_v14, %v3264_v55  ;;  %v7271_v51 = vld [vmem:[#allocation3 + $0x1e8] sm:$0xff]  ;;  %v7274_v13 = vld [vmem:[#allocation3 + $0x1f0] sm:$0xff]  ;;  %v7316_v55 = vld [vmem:[#allocation3 + $0x160] sm:$0xff]  ;;  %8622 = vst [vmem:[#allocation18_spill] sm:$0xff] %v7325_v30 }
 0xc14   :  { %4567 = vtanh.f32 %v7265_v42  ;;  %v3269_v43 = vsel %vm3268_vm6, %v4564_v14, %v3265_v40  ;;  %v7277_v14 = vld [vmem:[#allocation3 + $0x1f8] sm:$0xff]  ;;  %v7319_v40 = vld [vmem:[#allocation3 + $0x168] sm:$0xff] }
 0xc15   :  { %v3274_v50 = vsel %vm3271_vm7, %v3273_v47, %v3269_v43  ;;  %v7328_v43 = vld [vmem:[#allocation3 + $0x140] sm:$0xff]  ;;  %v7331_v47 = vld [vmem:[#allocation3 + $0x148] sm:$0xff] }
 0xc16   :  { %8623 = vst [vmem:[#allocation19_spill] sm:$0xff] %v7328_v43 }
 0xc17   :  { %8624 = vst [vmem:[#allocation20_spill] sm:$0xff] %v7331_v47 }
 0xc1a   :  { %v4568_v29 = vpop.eup %4567 }
 0xc1b   :  { %v3281_v0 = vmul.f32 %v4568_v29, %v3274_v50  ;;  %v7334_v29 = vld [vmem:[#allocation3 + $0x150] sm:$0xff]  ;;  %v7337_v50 = vld [vmem:[#allocation3 + $0x158] sm:$0xff] }
 0xc1d   :  { %3303 = vmatmul.f32.vlgmr.msra.gmra.mxu0 %v3281_v0  ;;  %3323 = vmatmul.f32.vlgmr.msra.gmra.mxu1 %v3281_v0 }
 0xc1e   :  { %3343 = vmatmul.f32.vlgmr.msra.gmra.mxu2 %v3281_v0  ;;  %3363 = vmatmul.f32.vlgmr.msra.gmra.mxu3 %v3281_v0  ;;  %v7340_v0 = vld [vmem:[#allocation3 + $0x120] sm:$0xff] }
 0xc1f   :  { %3591 = vmatpush.msra.mxu0 %v7268_v59  ;;  %3611 = vmatpush.msra.mxu1 %v7271_v51 }
 0xc20   :  { %3631 = vmatpush.msra.mxu2 %v7274_v13  ;;  %3651 = vmatpush.msra.mxu3 %v7277_v14 }
 0xc21   :  { %3592 = vmatpush.msra.mxu0 %v7280_v6  ;;  %3612 = vmatpush.msra.mxu1 %v7283_v46 }
 0xc22   :  { %3632 = vmatpush.msra.mxu2 %v7286_v56  ;;  %3652 = vmatpush.msra.mxu3 %v7289_v62 }
 0xc23   :  { %3593 = vmatpush.msra.mxu0 %v7292_v22  ;;  %3613 = vmatpush.msra.mxu1 %v7295_v9 }
 0xc24   :  { %3633 = vmatpush.msra.mxu2 %v7298_v2  ;;  %3653 = vmatpush.msra.mxu3 %v7301_v54 }
 0xc25   :  { %3594 = vmatpush.msra.mxu0 %v7304_v1  ;;  %3614 = vmatpush.msra.mxu1 %v7307_v58 }
 0xc26   :  { %3634 = vmatpush.msra.mxu2 %v7310_v49  ;;  %3654 = vmatpush.msra.mxu3 %v7313_v39 }
 0xc27   :  { %3595 = vmatpush.msra.mxu0 %v7316_v55  ;;  %3615 = vmatpush.msra.mxu1 %v7319_v40 }
 0xc28   :  { %3635 = vmatpush.msra.mxu2 %v7322_v37  ;;  %3655 = vmatpush.msra.mxu3 %v7325_v30  ;;  %v7343_v30 = vld [vmem:[#allocation3 + $0x128] sm:$0xff] }
 0xc29   :  { %3596 = vmatpush.msra.mxu0 %v7328_v43  ;;  %3616 = vmatpush.msra.mxu1 %v7331_v47  ;;  %v7346_v43 = vld [vmem:[#allocation3 + $0x130] sm:$0xff]  ;;  %v7349_v47 = vld [vmem:[#allocation3 + $0x138] sm:$0xff] }
 0xc2a   :  { %3636 = vmatpush.msra.mxu2 %v7334_v29  ;;  %3656 = vmatpush.msra.mxu3 %v7337_v50 }
 0xc2b   :  { %3597 = vmatpush.msra.mxu0 %v7340_v0  ;;  %3617 = vmatpush.msra.mxu1 %v7343_v30 }
 0xc2c   :  { %3637 = vmatpush.msra.mxu2 %v7346_v43  ;;  %3657 = vmatpush.msra.mxu3 %v7349_v47 }
 0xc2d   :  { %3598 = vmatpush.msra.mxu0 %v6996_v19  ;;  %3618 = vmatpush.msra.mxu1 %v6999_v53  ;;  %v150_v19 = vpop.permute.xlu0 %149 }
 0xc2e   :  { %3638 = vmatpush.msra.mxu2 %v7002_v15  ;;  %3658 = vmatpush.msra.mxu3 %v7005_v26  ;;  %v258_v53 = vmul.f32 %v8614_v10, %v150_v19  ;;  %v259_v15 = vmul.f32 %v8615_v52, %v150_v19  ;;  %v8625_v26 = vld [vmem:[#allocation34_spill] sm:$0xff] }
 0xc2f   :  { %3599 = vmatpush.msra.mxu0 %v7008_v45  ;;  %3619 = vmatpush.msra.mxu1 %v7011_v60  ;;  %v8626_v60 = vld [vmem:[#allocation35_spill] sm:$0xff] }
 0xc30   :  { %3639 = vmatpush.msra.mxu2 %v7014_v3  ;;  %3659 = vmatpush.msra.mxu3 %v7017_v31  ;;  %v363_v45 = vadd.f32 %v8625_v26, %v258_v53  ;;  %v364_v3 = vadd.f32 %v8626_v60, %v259_v15 }
 0xc31   :  { %3600 = vmatpush.msra.mxu0 %v7020_v61  ;;  %3620 = vmatpush.msra.mxu1 %v7023_v63 }
 0xc32   :  { %3640 = vmatpush.msra.mxu2 %v8588_v33  ;;  %3660 = vmatpush.msra.mxu3 %v8589_v32  ;;  %v8627_v32 = vld [vmem:[#allocation36_spill] sm:$0xff] }
 0xc33   :  { %3601 = vmatpush.msra.mxu0 %v8590_v44  ;;  %3621 = vmatpush.msra.mxu1 %v8591_v48  ;;  %v260_v44 = vmul.f32 %v8627_v32, %v150_v19 }
 0xc34   :  { %3641 = vmatpush.msra.mxu2 %v8592_v38  ;;  %3661 = vmatpush.msra.mxu3 %v8593_v25  ;;  %v8628_v25 = vld [vmem:[#allocation37_spill] sm:$0xff] }
 0xc35   :  { %3602 = vmatpush.msra.mxu0 %v8594_v57  ;;  %3622 = vmatpush.msra.mxu1 %v8595_v21  ;;  %v365_v57 = vadd.f32 %v8628_v25, %v260_v44 }
 0xc36   :  { %3642 = vmatpush.msra.mxu2 %v8596_v16  ;;  %3662 = vmatpush.msra.mxu3 %v8597_v41 }
 0xc37   :  { %3603 = vmatpush.msra.mxu0 %v8598_v5  ;;  %3623 = vmatpush.msra.mxu1 %v8599_v27 }
 0xc38   :  { %3643 = vmatpush.msra.mxu2 %v8600_v28  ;;  %3663 = vmatpush.msra.mxu3 %v8601_v35 }
 0xc39   :  { %3604 = vmatpush.msra.mxu0 %v8602_v24  ;;  %3624 = vmatpush.msra.mxu1 %v8603_v4  ;;  %v8629_v24 = vld [vmem:[#allocation38_spill] sm:$0xff] }
 0xc3a   :  { %3644 = vmatpush.msra.mxu2 %v8604_v8  ;;  %3664 = vmatpush.msra.mxu3 %v8605_v36  ;;  %v261_v4 = vmul.f32 %v8629_v24, %v150_v19 }
 0xc3b   :  { %3605 = vmatpush.msra.mxu0 %v8606_v7  ;;  %3625 = vmatpush.msra.mxu1 %v8607_v11  ;;  %v8630_v7 = vld [vmem:[#allocation39_spill] sm:$0xff] }
 0xc3c   :  { %3645 = vmatpush.msra.mxu2 %v8608_v34  ;;  %3665 = vmatpush.msra.mxu3 %v8609_v18  ;;  %v366_v11 = vadd.f32 %v8630_v7, %v261_v4 }
 0xc3d   :  { %3606 = vmatpush.msra.mxu0 %v8610_v23  ;;  %3626 = vmatpush.msra.mxu1 %v8611_v20 }
 0xc3e   :  { %3646 = vmatpush.msra.mxu2 %v8612_v12  ;;  %3666 = vmatpush.msra.mxu3 %v8613_v17 }
 0xc9a   :  { %v3304_v31 = vpop.f32.mrf.mxu0  ;;  %v3324_v61 = vpop.f32.mrf.mxu1 }
 0xc9b   :  { %v3367_v63 = vadd.f32 %v3304_v31, %v363_v45  ;;  %v3368_v33 = vadd.f32 %v3324_v61, %v364_v3 }
 0xc9d   :  { %v4255_v48 = vmul.f32 -1.442695, %v3367_v63  ;;  %v4256_v38 = vmul.f32 -1.442695, %v3368_v33 }
 0xc9f   :  { %4569 = vpow2.f32 %v4255_v48 }
 0xca0   :  { %4571 = vpow2.f32 %v4256_v38 }
 0xca1   :  { %v3344_v21 = vpop.f32.mrf.mxu2  ;;  %v3364_v8 = vpop.f32.mrf.mxu3 }
 0xca2   :  { %v3369_v16 = vadd.f32 %v3344_v21, %v365_v57  ;;  %v3370_v23 = vadd.f32 %v3364_v8, %v366_v11 }
 0xca4   :  { %v4257_v41 = vmul.f32 -1.442695, %v3369_v16 }
 0xca5   :  { %v4570_v5 = vpop.eup %4569 }
 0xca6   :  { %v4572_v27 = vpop.eup %4571  ;;  %v3380_v28 = vadd.f32 1.0, %v4570_v5  ;;  %4573 = vpow2.f32 %v4257_v41 }
 0xca7   :  { %v3381_v35 = vadd.f32 1.0, %v4572_v27 }
 0xca8   :  { %4575 = vrcp.f32 %v3380_v28  ;;  %v3394_v45 = vand.u32 2147483648, %v3380_v28  ;;  %v3392_v19 = vand.u32 2147483647, %v3380_v28  ;;  %vm3388_vm10 = vweird.f32 %v3380_v28 }
 0xca9   :  { %4577 = vrcp.f32 %v3381_v35  ;;  %v3409_v3 = vand.u32 2147483648, %v3381_v35  ;;  %v3407_v63 = vand.u32 2147483647, %v3381_v35  ;;  %vm3403_vm11 = vweird.f32 %v3381_v35 }
 0xcaa   :  { %v3395_v38 = vor.u32 1.1754944e-38, %v3394_v45  ;;  %vm3393_vm14 = vcmp.eq.f32.partialorder %v3392_v19, 8.507059e+37  ;;  %v7431_v19 = vld [vmem:[#allocation3 + $0x108] sm:$0xff] }
 0xcab   :  { %v3410_v21 = vor.u32 1.1754944e-38, %v3409_v3  ;;  %vm3408_vm15 = vcmp.eq.f32.partialorder %v3407_v63, 8.507059e+37  ;;  %v8633_v3 = vld [vmem:[#allocation20_spill] sm:$0xff]  ;;  %v7437_v63 = vld [vmem:[#allocation3 + $0x118] sm:$0xff] }
 0xcac   :  { %v4574_v36 = vpop.eup %4573 }
 0xcad   :  { %v3382_v34 = vadd.f32 1.0, %v4574_v36 }
 0xcae   :  { %v4576_v18 = vpop.eup %4575 }
 0xcaf   :  { %v4578_v20 = vpop.eup %4577  ;;  %v3384_v12 = vmul.f32 %v4576_v18, %v3380_v28  ;;  %4579 = vrcp.f32 %v3382_v34  ;;  %vm3389_vm8 = vweird.f32 %v4576_v18  ;;  %vm3418_vm1 = vweird.f32 %v3382_v34 }
 0xcb0   :  { %v3399_v17 = vmul.f32 %v4578_v20, %v3381_v35  ;;  %4581 = vtanh.f32 %v3370_v23  ;;  %vm3404_vm9 = vweird.f32 %v4578_v20  ;;  %vm3390_vm12 = vmor %vm3388_vm10, %vm3389_vm8 }
 0xcb1   :  { %v3385_v53 = vsub.f32 1.0, %v3384_v12  ;;  %vm3405_vm13 = vmor %vm3403_vm11, %vm3404_vm9  ;;  %v3424_v12 = vand.u32 2147483648, %v3382_v34 }
 0xcb2   :  { %v3400_v15 = vsub.f32 1.0, %v3399_v17 }
 0xcb3   :  { %v3386_v31 = vmul.f32 %v4576_v18, %v3385_v53  ;;  %v3425_v53 = vor.u32 1.1754944e-38, %v3424_v12  ;;  %v7488_v12 = vld [vmem:[#allocation3 + $0x60] sm:$0xff] }
 0xcb4   :  { %v3401_v61 = vmul.f32 %v4578_v20, %v3400_v15  ;;  %8644 = vst [vmem:[#allocation31_spill] sm:$0xff] %v7488_v12 }
 0xcb5   :  { %v4580_v33 = vpop.eup %4579  ;;  %v3387_v44 = vadd.f32 %v4576_v18, %v3386_v31  ;;  %v7428_v31 = vld [vmem:[#allocation3 + $0x100] sm:$0xff] }
 0xcb6   :  { %v3414_v48 = vmul.f32 %v4580_v33, %v3382_v34  ;;  %v3402_v57 = vadd.f32 %v4578_v20, %v3401_v61  ;;  %v4582_v41 = vpop.eup %4581  ;;  %vm3419_vm0 = vweird.f32 %v4580_v33  ;;  %v7434_v61 = vld [vmem:[#allocation3 + $0x110] sm:$0xff] }
 0xcb7   :  { %v3391_v16 = vsel %vm3390_vm12, %v4576_v18, %v3387_v44  ;;  %v3422_v18 = vand.u32 2147483647, %v3382_v34  ;;  %vm3420_vm2 = vmor %vm3418_vm1, %vm3419_vm0  ;;  %v8632_v34 = vld [vmem:[#allocation19_spill] sm:$0xff] }
 0xcb8   :  { %v3415_v5 = vsub.f32 1.0, %v3414_v48  ;;  %v3396_v27 = vsel %vm3393_vm14, %v3395_v38, %v3391_v16  ;;  %v3406_v4 = vsel %vm3405_vm13, %v4578_v20, %v3402_v57  ;;  %v7443_v44 = vld [vmem:[#allocation3 + $0xe8] sm:$0xff]  ;;  %v7446_v48 = vld [vmem:[#allocation3 + $0xf0] sm:$0xff]  ;;  %v7449_v38 = vld [vmem:[#allocation3 + $0xf8] sm:$0xff] }
 0xcb9   :  { %v3411_v8 = vsel %vm3408_vm15, %v3410_v21, %v3406_v4  ;;  %v3430_v36 = vmul.f32 %v4582_v41, %v3396_v27  ;;  %vm3423_vm3 = vcmp.eq.f32.partialorder %v3422_v18, 8.507059e+37  ;;  %v7452_v57 = vld [vmem:[#allocation3 + $0xc0] sm:$0xff]  ;;  %v7455_v21 = vld [vmem:[#allocation3 + $0xc8] sm:$0xff]  ;;  %v7458_v16 = vld [vmem:[#allocation3 + $0xd0] sm:$0xff] }
 0xcba   :  { %v3429_v11 = vmul.f32 %v3411_v8, %v7265_v42  ;;  %v3416_v23 = vmul.f32 %v4580_v33, %v3415_v5  ;;  %v8631_v42 = vld [vmem:[#allocation18_spill] sm:$0xff]  ;;  %8634 = vst [vmem:[#allocation21_spill] sm:$0xff] %v7458_v16  ;;  %v7461_v41 = vld [vmem:[#allocation3 + $0xd8] sm:$0xff]  ;;  %v7467_v27 = vld [vmem:[#allocation3 + $0xa8] sm:$0xff] }
 0xcbb   :  { %8635 = vst [vmem:[#allocation22_spill] sm:$0xff] %v7461_v41  ;;  %v7464_v5 = vld [vmem:[#allocation3 + $0xa0] sm:$0xff]  ;;  %v7470_v4 = vld [vmem:[#allocation3 + $0xb0] sm:$0xff]  ;;  %v7473_v8 = vld [vmem:[#allocation3 + $0xb8] sm:$0xff] }
 0xcbc   :  { %v7397_v28 = vadd.f32 %v3430_v36, %v3429_v11  ;;  %v3417_v35 = vadd.f32 %v4580_v33, %v3416_v23  ;;  %8636 = vst [vmem:[#allocation23_spill] sm:$0xff] %v7464_v5  ;;  %v7476_v36 = vld [vmem:[#allocation3 + $0x80] sm:$0xff]  ;;  %v7479_v11 = vld [vmem:[#allocation3 + $0x88] sm:$0xff]  ;;  %v7482_v23 = vld [vmem:[#allocation3 + $0x90] sm:$0xff] }
 0xcbd   :  { %8637 = vst [vmem:[#allocation24_spill] sm:$0xff] %v7467_v27  ;;  %v7491_v18 = vld [vmem:[#allocation3 + $0x68] sm:$0xff] }
 0xcbe   :  { %4583 = vtanh.f32 %v7397_v28  ;;  %v3421_v17 = vsel %vm3420_vm2, %v4580_v33, %v3417_v35  ;;  %v7440_v33 = vld [vmem:[#allocation3 + $0xe0] sm:$0xff]  ;;  %8638 = vst [vmem:[#allocation25_spill] sm:$0xff] %v7470_v4  ;;  %v7485_v35 = vld [vmem:[#allocation3 + $0x98] sm:$0xff] }
 0xcbf   :  { %v3426_v15 = vsel %vm3423_vm3, %v3425_v53, %v3421_v17  ;;  %8639 = vst [vmem:[#allocation26_spill] sm:$0xff] %v7473_v8  ;;  %v7494_v17 = vld [vmem:[#allocation3 + $0x70] sm:$0xff]  ;;  %v7497_v53 = vld [vmem:[#allocation3 + $0x78] sm:$0xff] }
 0xcc0   :  { %8640 = vst [vmem:[#allocation27_spill] sm:$0xff] %v7476_v36 }
 0xcc1   :  { %8641 = vst [vmem:[#allocation28_spill] sm:$0xff] %v7479_v11 }
 0xcc2   :  { %8642 = vst [vmem:[#allocation29_spill] sm:$0xff] %v7482_v23 }
 0xcc3   :  { %8643 = vst [vmem:[#allocation30_spill] sm:$0xff] %v7485_v35 }
 0xcc4   :  { %v4584_v20 = vpop.eup %4583  ;;  %8645 = vst [vmem:[#allocation6_spill] sm:$0xff] %v7491_v18 }
 0xcc5   :  { %v3433_v45 = vmul.f32 %v4584_v20, %v3426_v15  ;;  %8646 = vst [vmem:[#allocation7_spill] sm:$0xff] %v7494_v17  ;;  %v7500_v20 = vld [vmem:[#allocation3 + $0x40] sm:$0xff]  ;;  %v7503_v15 = vld [vmem:[#allocation3 + $0x48] sm:$0xff] }
 0xcc6   :  { %8647 = vst [vmem:[#allocation8_spill] sm:$0xff] %v7497_v53 }
 0xcc7   :  { %3455 = vmatmul.f32.vlgmr.msrb.gmra.mxu0 %v3433_v45  ;;  %3475 = vmatmul.f32.vlgmr.msrb.gmra.mxu1 %v3433_v45  ;;  %8648 = vst [vmem:[#allocation9_spill] sm:$0xff] %v7500_v20 }
 0xcc8   :  { %3495 = vmatmul.f32.vlgmr.msrb.gmra.mxu2 %v3433_v45  ;;  %3515 = vmatmul.f32.vlgmr.msrb.gmra.mxu3 %v3433_v45  ;;  %8649 = vst [vmem:[#allocation10_spill] sm:$0xff] %v7503_v15  ;;  %v7506_v45 = vld [vmem:[#allocation3 + $0x50] sm:$0xff] }
 0xcc9   :  { %3743 = vmatpush.msrb.mxu0 %v7268_v59  ;;  %3763 = vmatpush.msrb.mxu1 %v7271_v51  ;;  %8650 = vst [vmem:[#allocation11_spill] sm:$0xff] %v7506_v45 }
 0xcca   :  { %3783 = vmatpush.msrb.mxu2 %v7274_v13  ;;  %3803 = vmatpush.msrb.mxu3 %v7277_v14 }
 0xccb   :  { %3744 = vmatpush.msrb.mxu0 %v7280_v6  ;;  %3764 = vmatpush.msrb.mxu1 %v7283_v46 }
 0xccc   :  { %3784 = vmatpush.msrb.mxu2 %v7286_v56  ;;  %3804 = vmatpush.msrb.mxu3 %v7289_v62 }
 0xccd   :  { %3745 = vmatpush.msrb.mxu0 %v7292_v22  ;;  %3765 = vmatpush.msrb.mxu1 %v7295_v9 }
 0xcce   :  { %3785 = vmatpush.msrb.mxu2 %v7298_v2  ;;  %3805 = vmatpush.msrb.mxu3 %v7301_v54 }
 0xccf   :  { %3746 = vmatpush.msrb.mxu0 %v7304_v1  ;;  %3766 = vmatpush.msrb.mxu1 %v7307_v58 }
 0xcd0   :  { %3786 = vmatpush.msrb.mxu2 %v7310_v49  ;;  %3806 = vmatpush.msrb.mxu3 %v7313_v39 }
 0xcd1   :  { %3747 = vmatpush.msrb.mxu0 %v7316_v55  ;;  %3767 = vmatpush.msrb.mxu1 %v7319_v40 }
 0xcd2   :  { %3787 = vmatpush.msrb.mxu2 %v7322_v37  ;;  %3807 = vmatpush.msrb.mxu3 %v8631_v42 }
 0xcd3   :  { %3748 = vmatpush.msrb.mxu0 %v8632_v34  ;;  %3768 = vmatpush.msrb.mxu1 %v8633_v3 }
 0xcd4   :  { %3788 = vmatpush.msrb.mxu2 %v7334_v29  ;;  %3808 = vmatpush.msrb.mxu3 %v7337_v50 }
 0xcd5   :  { %3749 = vmatpush.msrb.mxu0 %v7340_v0  ;;  %3769 = vmatpush.msrb.mxu1 %v7343_v30 }
 0xcd6   :  { %3789 = vmatpush.msrb.mxu2 %v7346_v43  ;;  %3809 = vmatpush.msrb.mxu3 %v7349_v47 }
 0xcd7   :  { %3750 = vmatpush.msrb.mxu0 %v7428_v31  ;;  %3770 = vmatpush.msrb.mxu1 %v7431_v19 }
 0xcd8   :  { %3790 = vmatpush.msrb.mxu2 %v7434_v61  ;;  %3810 = vmatpush.msrb.mxu3 %v7437_v63 }
 0xcd9   :  { %3751 = vmatpush.msrb.mxu0 %v7440_v33  ;;  %3771 = vmatpush.msrb.mxu1 %v7443_v44 }
 0xcda   :  { %3791 = vmatpush.msrb.mxu2 %v7446_v48  ;;  %3811 = vmatpush.msrb.mxu3 %v7449_v38 }
 0xcdb   :  { %3752 = vmatpush.msrb.mxu0 %v7452_v57  ;;  %3772 = vmatpush.msrb.mxu1 %v7455_v21 }
 0xcdc   :  { %3792 = vmatpush.msrb.mxu2 %v7458_v16  ;;  %3812 = vmatpush.msrb.mxu3 %v7461_v41 }
 0xcdd   :  { %3753 = vmatpush.msrb.mxu0 %v7464_v5  ;;  %3773 = vmatpush.msrb.mxu1 %v7467_v27 }
 0xcde   :  { %3793 = vmatpush.msrb.mxu2 %v7470_v4  ;;  %3813 = vmatpush.msrb.mxu3 %v7473_v8 }
 0xcdf   :  { %3754 = vmatpush.msrb.mxu0 %v7476_v36  ;;  %3774 = vmatpush.msrb.mxu1 %v7479_v11 }
 0xce0   :  { %3794 = vmatpush.msrb.mxu2 %v7482_v23  ;;  %3814 = vmatpush.msrb.mxu3 %v7485_v35 }
 0xce1   :  { %3755 = vmatpush.msrb.mxu0 %v7488_v12  ;;  %3775 = vmatpush.msrb.mxu1 %v7491_v18  ;;  %v7509_v18 = vld [vmem:[#allocation3 + $0x58] sm:$0xff] }
 0xce2   :  { %3795 = vmatpush.msrb.mxu2 %v7494_v17  ;;  %3815 = vmatpush.msrb.mxu3 %v7497_v53  ;;  %8651 = vst [vmem:[#allocation12_spill] sm:$0xff] %v7509_v18  ;;  %v7512_v17 = vld [vmem:[#allocation3 + $0x20] sm:$0xff]  ;;  %v7515_v53 = vld [vmem:[#allocation3 + $0x28] sm:$0xff] }
 0xce3   :  { %3756 = vmatpush.msrb.mxu0 %v7500_v20  ;;  %3776 = vmatpush.msrb.mxu1 %v7503_v15  ;;  %8652 = vst [vmem:[#allocation13_spill] sm:$0xff] %v7512_v17  ;;  %v7518_v20 = vld [vmem:[#allocation3 + $0x30] sm:$0xff]  ;;  %v7521_v15 = vld [vmem:[#allocation3 + $0x38] sm:$0xff] }
 0xce4   :  { %3796 = vmatpush.msrb.mxu2 %v7506_v45  ;;  %3816 = vmatpush.msrb.mxu3 %v7509_v18  ;;  %8653 = vst [vmem:[#allocation14_spill] sm:$0xff] %v7515_v53  ;;  %v7524_v45 = vld [vmem:[#allocation3] sm:$0xff]  ;;  %v7527_v18 = vld [vmem:[#allocation3 + $0x8] sm:$0xff] }
 0xce5   :  { %3757 = vmatpush.msrb.mxu0 %v7512_v17  ;;  %3777 = vmatpush.msrb.mxu1 %v7515_v53  ;;  %8654 = vst [vmem:[#allocation15_spill] sm:$0xff] %v7518_v20  ;;  %v7530_v17 = vld [vmem:[#allocation3 + $0x10] sm:$0xff]  ;;  %v7533_v53 = vld [vmem:[#allocation3 + $0x18] sm:$0xff] }
 0xce6   :  { %3797 = vmatpush.msrb.mxu2 %v7518_v20  ;;  %8655 = vst [vmem:[#allocation16_spill] sm:$0xff] %v7521_v15  ;;  %3817 = vmatpush.msrb.mxu3 %v7521_v15  ;;  %v155_v20 = vpop.permute.xlu1 %154 }
 0xce7   :  { %8656 = vst [vmem:[#allocation17_spill] sm:$0xff] %v7524_v45  ;;  %3758 = vmatpush.msrb.mxu0 %v7524_v45  ;;  %3778 = vmatpush.msrb.mxu1 %v7527_v18  ;;  %v262_v12 = vmul.f32 %v8614_v10, %v155_v20  ;;  %v263_v15 = vmul.f32 %v8615_v52, %v155_v20 }
 0xce8   :  { %8657 = vst [vmem:[#allocation18_spill] sm:$0xff] %v7527_v18  ;;  %3798 = vmatpush.msrb.mxu2 %v7530_v17  ;;  %3818 = vmatpush.msrb.mxu3 %v7533_v53  ;;  %v264_v8 = vmul.f32 %v8627_v32, %v155_v20 }
 0xce9   :  { %8658 = vst [vmem:[#allocation19_spill] sm:$0xff] %v7530_v17  ;;  %v367_v35 = vadd.f32 %v8625_v26, %v262_v12  ;;  %v368_v45 = vadd.f32 %v8626_v60, %v263_v15 }
 0xcea   :  { %8659 = vst [vmem:[#allocation20_spill] sm:$0xff] %v7533_v53  ;;  %v369_v53 = vadd.f32 %v8628_v25, %v264_v8 }
 0xd44   :  { %v3456_v23 = vpop.f32.mrf.mxu0  ;;  %v3476_v11 = vpop.f32.mrf.mxu1 }
 0xd45   :  { %v3519_v18 = vadd.f32 %v3456_v23, %v367_v35  ;;  %v3520_v36 = vadd.f32 %v3476_v11, %v368_v45  ;;  %v265_v23 = vmul.f32 %v8629_v24, %v155_v20 }
 0xd47   :  { %v4258_v17 = vmul.f32 -1.442695, %v3519_v18  ;;  %v4259_v4 = vmul.f32 -1.442695, %v3520_v36  ;;  %v370_v36 = vadd.f32 %v8630_v7, %v265_v23 }
 0xd49   :  { %4585 = vpow2.f32 %v4258_v17 }
 0xd4a   :  { %4587 = vpow2.f32 %v4259_v4 }
 0xd4b   :  { %v3496_v27 = vpop.f32.mrf.mxu2  ;;  %v3516_v11 = vpop.f32.mrf.mxu3 }
 0xd4c   :  { %v3521_v10 = vadd.f32 %v3496_v27, %v369_v53  ;;  %v3522_v17 = vadd.f32 %v3516_v11, %v370_v36 }
 0xd4e   :  { %v4260_v5 = vmul.f32 -1.442695, %v3521_v10 }
 0xd4f   :  { %v4586_v52 = vpop.eup %4585 }
 0xd50   :  { %v4588_v41 = vpop.eup %4587  ;;  %v3532_v12 = vadd.f32 1.0, %v4586_v52  ;;  %4589 = vpow2.f32 %v4260_v5 }
 0xd51   :  { %v3533_v15 = vadd.f32 1.0, %v4588_v41 }
 0xd52   :  { %4591 = vrcp.f32 %v3532_v12  ;;  %v3546_v52 = vand.u32 2147483648, %v3532_v12  ;;  %v3544_v20 = vand.u32 2147483647, %v3532_v12  ;;  %vm3540_vm6 = vweird.f32 %v3532_v12 }
 0xd53   :  { %4593 = vrcp.f32 %v3533_v15  ;;  %v3561_v41 = vand.u32 2147483648, %v3533_v15  ;;  %v3559_v25 = vand.u32 2147483647, %v3533_v15  ;;  %vm3555_vm7 = vweird.f32 %v3533_v15 }
 0xd54   :  { %vm3545_vm10 = vcmp.eq.f32.partialorder %v3544_v20, 8.507059e+37  ;;  %v8666_v20 = vld [vmem:[#allocation27_spill] sm:$0xff] }
 0xd55   :  { %vm3560_vm11 = vcmp.eq.f32.partialorder %v3559_v25, 8.507059e+37 }
 0xd56   :  { %v4590_v35 = vpop.eup %4589 }
 0xd57   :  { %v3534_v18 = vadd.f32 1.0, %v4590_v35  ;;  %v3547_v35 = vor.u32 1.1754944e-38, %v3546_v52 }
 0xd58   :  { %v4592_v4 = vpop.eup %4591 }
 0xd59   :  { %v4594_v8 = vpop.eup %4593  ;;  %v3536_v45 = vmul.f32 %v4592_v4, %v3532_v12  ;;  %4595 = vrcp.f32 %v3534_v18  ;;  %vm3541_vm4 = vweird.f32 %v4592_v4  ;;  %vm3570_vm13 = vweird.f32 %v3534_v18 }
 0xd5a   :  { %v3551_v10 = vmul.f32 %v4594_v8, %v3533_v15  ;;  %4597 = vtanh.f32 %v3522_v17  ;;  %vm3556_vm5 = vweird.f32 %v4594_v8  ;;  %vm3542_vm8 = vmor %vm3540_vm6, %vm3541_vm4 }
 0xd5b   :  { %v3537_v27 = vsub.f32 1.0, %v3536_v45  ;;  %vm3557_vm9 = vmor %vm3555_vm7, %vm3556_vm5  ;;  %v3562_v45 = vor.u32 1.1754944e-38, %v3561_v41 }
 0xd5c   :  { %v3552_v53 = vsub.f32 1.0, %v3551_v10 }
 0xd5d   :  { %v3538_v5 = vmul.f32 %v4592_v4, %v3537_v27 }
 0xd5e   :  { %v3553_v24 = vmul.f32 %v4594_v8, %v3552_v53 }
 0xd5f   :  { %v4596_v32 = vpop.eup %4595  ;;  %v3539_v23 = vadd.f32 %v4592_v4, %v3538_v5 }
 0xd60   :  { %v3566_v11 = vmul.f32 %v4596_v32, %v3534_v18  ;;  %v3554_v36 = vadd.f32 %v4594_v8, %v3553_v24  ;;  %v4598_v17 = vpop.eup %4597  ;;  %vm3571_vm12 = vweird.f32 %v4596_v32  ;;  %v3576_v24 = vand.u32 2147483648, %v3534_v18 }
 0xd61   :  { %v3543_v10 = vsel %vm3542_vm8, %v4592_v4, %v3539_v23  ;;  %v3574_v4 = vand.u32 2147483647, %v3534_v18  ;;  %vm3572_vm14 = vmor %vm3570_vm13, %vm3571_vm12  ;;  %v8665_v18 = vld [vmem:[#allocation26_spill] sm:$0xff]  ;;  %v8667_v23 = vld [vmem:[#allocation28_spill] sm:$0xff] }
 0xd62   :  { %v3567_v7 = vsub.f32 1.0, %v3566_v11  ;;  %v3548_v27 = vsel %vm3545_vm10, %v3547_v35, %v3543_v10  ;;  %v3558_v60 = vsel %vm3557_vm9, %v4594_v8, %v3554_v36  ;;  %v3577_v41 = vor.u32 1.1754944e-38, %v3576_v24  ;;  %v8668_v11 = vld [vmem:[#allocation29_spill] sm:$0xff]  ;;  %v8669_v35 = vld [vmem:[#allocation30_spill] sm:$0xff]  ;;  %v8670_v36 = vld [vmem:[#allocation31_spill] sm:$0xff] }
 0xd63   :  { %v3563_v53 = vsel %vm3560_vm11, %v3562_v45, %v3558_v60  ;;  %v3582_v26 = vmul.f32 %v4598_v17, %v3548_v27  ;;  %vm3575_vm15 = vcmp.eq.f32.partialorder %v3574_v4, 8.507059e+37  ;;  %v8671_v45 = vld [vmem:[#allocation6_spill] sm:$0xff]  ;;  %v8672_v10 = vld [vmem:[#allocation7_spill] sm:$0xff]  ;;  %v8673_v17 = vld [vmem:[#allocation8_spill] sm:$0xff] }
 0xd64   :  { %v3581_v16 = vmul.f32 %v3563_v53, %v7397_v28  ;;  %v3568_v5 = vmul.f32 %v4596_v32, %v3567_v7  ;;  %v8662_v7 = vld [vmem:[#allocation23_spill] sm:$0xff]  ;;  %v8663_v28 = vld [vmem:[#allocation24_spill] sm:$0xff]  ;;  %v8674_v27 = vld [vmem:[#allocation9_spill] sm:$0xff] }
 0xd65   :  { %v8675_v53 = vld [vmem:[#allocation10_spill] sm:$0xff]  ;;  %v8678_v24 = vld [vmem:[#allocation13_spill] sm:$0xff] }
 0xd66   :  { %v7545_v12 = vadd.f32 %v3582_v26, %v3581_v16  ;;  %v3569_v15 = vadd.f32 %v4596_v32, %v3568_v5  ;;  %v8660_v26 = vld [vmem:[#allocation21_spill] sm:$0xff]  ;;  %v8676_v5 = vld [vmem:[#allocation11_spill] sm:$0xff]  ;;  %v8679_v4 = vld [vmem:[#allocation14_spill] sm:$0xff] }
 0xd67   :  { %v8664_v16 = vld [vmem:[#allocation25_spill] sm:$0xff] }
 0xd68   :  { %4599 = vtanh.f32 %v7545_v12  ;;  %v3573_v52 = vsel %vm3572_vm14, %v4596_v32, %v3569_v15  ;;  %v8661_v32 = vld [vmem:[#allocation22_spill] sm:$0xff]  ;;  %v8677_v15 = vld [vmem:[#allocation12_spill] sm:$0xff] }
 0xd69   :  { %v3578_v25 = vsel %vm3575_vm15, %v3577_v41, %v3573_v52  ;;  %v8680_v52 = vld [vmem:[#allocation15_spill] sm:$0xff]  ;;  %v8681_v41 = vld [vmem:[#allocation16_spill] sm:$0xff] }
 0xd6e   :  { %v4600_v8 = vpop.eup %4599 }
 0xd6f   :  { %v3585_v60 = vmul.f32 %v4600_v8, %v3578_v25  ;;  %v8682_v8 = vld [vmem:[#allocation17_spill] sm:$0xff]  ;;  %v8683_v25 = vld [vmem:[#allocation18_spill] sm:$0xff] }
 0xd71   :  { %3607 = vmatmul.f32.vlgmr.msra.gmra.mxu0 %v3585_v60  ;;  %3627 = vmatmul.f32.vlgmr.msra.gmra.mxu1 %v3585_v60 }
 0xd72   :  { %3647 = vmatmul.f32.vlgmr.msra.gmra.mxu2 %v3585_v60  ;;  %3667 = vmatmul.f32.vlgmr.msra.gmra.mxu3 %v3585_v60  ;;  %v8684_v60 = vld [vmem:[#allocation19_spill] sm:$0xff] }
 0xd73   :  { %3895 = vmatpush.msra.mxu0 %v7268_v59  ;;  %3915 = vmatpush.msra.mxu1 %v7271_v51 }
 0xd74   :  { %3935 = vmatpush.msra.mxu2 %v7274_v13  ;;  %3955 = vmatpush.msra.mxu3 %v7277_v14 }
 0xd75   :  { %3896 = vmatpush.msra.mxu0 %v7280_v6  ;;  %3916 = vmatpush.msra.mxu1 %v7283_v46 }
 0xd76   :  { %3936 = vmatpush.msra.mxu2 %v7286_v56  ;;  %3956 = vmatpush.msra.mxu3 %v7289_v62 }
 0xd77   :  { %3897 = vmatpush.msra.mxu0 %v7292_v22  ;;  %3917 = vmatpush.msra.mxu1 %v7295_v9 }
 0xd78   :  { %3937 = vmatpush.msra.mxu2 %v7298_v2  ;;  %3957 = vmatpush.msra.mxu3 %v7301_v54 }
 0xd79   :  { %3898 = vmatpush.msra.mxu0 %v7304_v1  ;;  %3918 = vmatpush.msra.mxu1 %v7307_v58 }
 0xd7a   :  { %3938 = vmatpush.msra.mxu2 %v7310_v49  ;;  %3958 = vmatpush.msra.mxu3 %v7313_v39 }
 0xd7b   :  { %3899 = vmatpush.msra.mxu0 %v7316_v55  ;;  %3919 = vmatpush.msra.mxu1 %v7319_v40 }
 0xd7c   :  { %3939 = vmatpush.msra.mxu2 %v7322_v37  ;;  %3959 = vmatpush.msra.mxu3 %v8631_v42 }
 0xd7d   :  { %3900 = vmatpush.msra.mxu0 %v8632_v34  ;;  %3920 = vmatpush.msra.mxu1 %v8633_v3 }
 0xd7e   :  { %3940 = vmatpush.msra.mxu2 %v7334_v29  ;;  %3960 = vmatpush.msra.mxu3 %v7337_v50 }
 0xd7f   :  { %3901 = vmatpush.msra.mxu0 %v7340_v0  ;;  %3921 = vmatpush.msra.mxu1 %v7343_v30 }
 0xd80   :  { %3941 = vmatpush.msra.mxu2 %v7346_v43  ;;  %3961 = vmatpush.msra.mxu3 %v7349_v47 }
 0xd81   :  { %3902 = vmatpush.msra.mxu0 %v7428_v31  ;;  %3922 = vmatpush.msra.mxu1 %v7431_v19 }
 0xd82   :  { %3942 = vmatpush.msra.mxu2 %v7434_v61  ;;  %3962 = vmatpush.msra.mxu3 %v7437_v63 }
 0xd83   :  { %3903 = vmatpush.msra.mxu0 %v7440_v33  ;;  %3923 = vmatpush.msra.mxu1 %v7443_v44 }
 0xd84   :  { %3943 = vmatpush.msra.mxu2 %v7446_v48  ;;  %3963 = vmatpush.msra.mxu3 %v7449_v38 }
 0xd85   :  { %3904 = vmatpush.msra.mxu0 %v7452_v57  ;;  %3924 = vmatpush.msra.mxu1 %v7455_v21 }
 0xd86   :  { %3944 = vmatpush.msra.mxu2 %v8660_v26  ;;  %3964 = vmatpush.msra.mxu3 %v8661_v32 }
 0xd87   :  { %3905 = vmatpush.msra.mxu0 %v8662_v7  ;;  %3925 = vmatpush.msra.mxu1 %v8663_v28 }
 0xd88   :  { %3945 = vmatpush.msra.mxu2 %v8664_v16  ;;  %3965 = vmatpush.msra.mxu3 %v8665_v18 }
 0xd89   :  { %3906 = vmatpush.msra.mxu0 %v8666_v20  ;;  %3926 = vmatpush.msra.mxu1 %v8667_v23 }
 0xd8a   :  { %3946 = vmatpush.msra.mxu2 %v8668_v11  ;;  %3966 = vmatpush.msra.mxu3 %v8669_v35 }
 0xd8b   :  { %3907 = vmatpush.msra.mxu0 %v8670_v36  ;;  %3927 = vmatpush.msra.mxu1 %v8671_v45 }
 0xd8c   :  { %3947 = vmatpush.msra.mxu2 %v8672_v10  ;;  %3967 = vmatpush.msra.mxu3 %v8673_v17 }
 0xd8d   :  { %3908 = vmatpush.msra.mxu0 %v8674_v27  ;;  %3928 = vmatpush.msra.mxu1 %v8675_v53  ;;  %v8685_v27 = vld [vmem:[#allocation20_spill] sm:$0xff]  ;;  %v160_v53 = vpop.permute.xlu2 %159 }
 0xd8e   :  { %3948 = vmatpush.msra.mxu2 %v8676_v5  ;;  %3968 = vmatpush.msra.mxu3 %v8677_v15  ;;  %v8686_v5 = vld [vmem:[#allocation32_spill] sm:$0xff]  ;;  %v8687_v15 = vld [vmem:[#allocation33_spill] sm:$0xff] }
 0xd8f   :  { %3909 = vmatpush.msra.mxu0 %v8678_v24  ;;  %3929 = vmatpush.msra.mxu1 %v8679_v4  ;;  %v266_v17 = vmul.f32 %v8686_v5, %v160_v53  ;;  %v267_v10 = vmul.f32 %v8687_v15, %v160_v53  ;;  %v8688_v24 = vld [vmem:[#allocation34_spill] sm:$0xff]  ;;  %v8689_v4 = vld [vmem:[#allocation35_spill] sm:$0xff] }
 0xd90   :  { %3949 = vmatpush.msra.mxu2 %v8680_v52  ;;  %3969 = vmatpush.msra.mxu3 %v8681_v41 }
 0xd91   :  { %3910 = vmatpush.msra.mxu0 %v8682_v8  ;;  %3930 = vmatpush.msra.mxu1 %v8683_v25  ;;  %v371_v45 = vadd.f32 %v8688_v24, %v266_v17  ;;  %v372_v36 = vadd.f32 %v8689_v4, %v267_v10  ;;  %v8690_v8 = vld [vmem:[#allocation36_spill] sm:$0xff]  ;;  %v8692_v4 = vld [vmem:[#allocation38_spill] sm:$0xff] }
 0xd92   :  { %3950 = vmatpush.msra.mxu2 %v8684_v60  ;;  %3970 = vmatpush.msra.mxu3 %v8685_v27  ;;  %v268_v23 = vmul.f32 %v8690_v8, %v160_v53  ;;  %v8691_v27 = vld [vmem:[#allocation37_spill] sm:$0xff] }
 0xd94   :  { %v373_v60 = vadd.f32 %v8691_v27, %v268_v23 }
 0xdee   :  { %v3608_v52 = vpop.f32.mrf.mxu0  ;;  %v3628_v35 = vpop.f32.mrf.mxu1 }
 0xdef   :  { %v3671_v41 = vadd.f32 %v3608_v52, %v371_v45  ;;  %v3672_v11 = vadd.f32 %v3628_v35, %v372_v36  ;;  %v269_v45 = vmul.f32 %v8692_v4, %v160_v53  ;;  %v8693_v52 = vld [vmem:[#allocation39_spill] sm:$0xff] }
 0xdf1   :  { %v4261_v25 = vmul.f32 -1.442695, %v3671_v41  ;;  %v4262_v20 = vmul.f32 -1.442695, %v3672_v11  ;;  %v374_v11 = vadd.f32 %v8693_v52, %v269_v45 }
 0xdf3   :  { %4601 = vpow2.f32 %v4261_v25 }
 0xdf4   :  { %4603 = vpow2.f32 %v4262_v20 }
 0xdf5   :  { %v3648_v18 = vpop.f32.mrf.mxu2  ;;  %v3668_v35 = vpop.f32.mrf.mxu3 }
 0xdf6   :  { %v3673_v5 = vadd.f32 %v3648_v18, %v373_v60  ;;  %v3674_v25 = vadd.f32 %v3668_v35, %v374_v11 }
 0xdf8   :  { %v4263_v16 = vmul.f32 -1.442695, %v3673_v5 }
 0xdf9   :  { %v4602_v15 = vpop.eup %4601 }
 0xdfa   :  { %v4604_v28 = vpop.eup %4603  ;;  %v3684_v17 = vadd.f32 1.0, %v4602_v15  ;;  %4605 = vpow2.f32 %v4263_v16 }
 0xdfb   :  { %v3685_v10 = vadd.f32 1.0, %v4604_v28 }
 0xdfc   :  { %4607 = vrcp.f32 %v3684_v17  ;;  %v3698_v15 = vand.u32 2147483648, %v3684_v17  ;;  %v3696_v53 = vand.u32 2147483647, %v3684_v17  ;;  %vm3692_vm2 = vweird.f32 %v3684_v17 }
 0xdfd   :  { %4609 = vrcp.f32 %v3685_v10  ;;  %v3713_v28 = vand.u32 2147483648, %v3685_v10  ;;  %v3711_v8 = vand.u32 2147483647, %v3685_v10  ;;  %vm3707_vm3 = vweird.f32 %v3685_v10 }
 0xdfe   :  { %vm3697_vm6 = vcmp.eq.f32.partialorder %v3696_v53, 8.507059e+37 }
 0xdff   :  { %vm3712_vm7 = vcmp.eq.f32.partialorder %v3711_v8, 8.507059e+37 }
 0xe00   :  { %v4606_v36 = vpop.eup %4605 }
 0xe01   :  { %v3686_v41 = vadd.f32 1.0, %v4606_v36  ;;  %v3699_v36 = vor.u32 1.1754944e-38, %v3698_v15 }
 0xe02   :  { %v4608_v20 = vpop.eup %4607 }
 0xe03   :  { %v4610_v23 = vpop.eup %4609  ;;  %v3688_v27 = vmul.f32 %v4608_v20, %v3684_v17  ;;  %4611 = vrcp.f32 %v3686_v41  ;;  %vm3693_vm0 = vweird.f32 %v4608_v20  ;;  %vm3722_vm9 = vweird.f32 %v3686_v41 }
 0xe04   :  { %v3703_v18 = vmul.f32 %v4610_v23, %v3685_v10  ;;  %4613 = vtanh.f32 %v3674_v25  ;;  %vm3708_vm1 = vweird.f32 %v4610_v23  ;;  %vm3694_vm4 = vmor %vm3692_vm2, %vm3693_vm0 }
 0xe05   :  { %v3689_v5 = vsub.f32 1.0, %v3688_v27  ;;  %vm3709_vm5 = vmor %vm3707_vm3, %vm3708_vm1  ;;  %v3714_v27 = vor.u32 1.1754944e-38, %v3713_v28 }
 0xe06   :  { %v3704_v60 = vsub.f32 1.0, %v3703_v18 }
 0xe07   :  { %v3690_v16 = vmul.f32 %v4608_v20, %v3689_v5 }
 0xe08   :  { %v3705_v4 = vmul.f32 %v4610_v23, %v3704_v60 }
 0xe09   :  { %v4612_v24 = vpop.eup %4611  ;;  %v3691_v45 = vadd.f32 %v4608_v20, %v3690_v16 }
 0xe0a   :  { %v3718_v35 = vmul.f32 %v4612_v24, %v3686_v41  ;;  %v3706_v11 = vadd.f32 %v4610_v23, %v3705_v4  ;;  %v4614_v25 = vpop.eup %4613  ;;  %vm3723_vm8 = vweird.f32 %v4612_v24  ;;  %v3728_v4 = vand.u32 2147483648, %v3686_v41 }
 0xe0b   :  { %v3695_v18 = vsel %vm3694_vm4, %v4608_v20, %v3691_v45  ;;  %v3726_v20 = vand.u32 2147483647, %v3686_v41  ;;  %vm3724_vm10 = vmor %vm3722_vm9, %vm3723_vm8  ;;  %v8725_v41 = vld [vmem:[#allocation37_spill] sm:$0xff] }
 0xe0c   :  { %v3719_v52 = vsub.f32 1.0, %v3718_v35  ;;  %v3700_v5 = vsel %vm3697_vm6, %v3699_v36, %v3695_v18  ;;  %v3710_v7 = vsel %vm3709_vm5, %v4610_v23, %v3706_v11  ;;  %v3729_v28 = vor.u32 1.1754944e-38, %v3728_v4  ;;  %v8727_v4 = vld [vmem:[#allocation39_spill] sm:$0xff] }
 0xe0d   :  { %v3715_v60 = vsel %vm3712_vm7, %v3714_v27, %v3710_v7  ;;  %v3734_v32 = vmul.f32 %v4614_v25, %v3700_v5  ;;  %vm3727_vm11 = vcmp.eq.f32.partialorder %v3726_v20, 8.507059e+37  ;;  %v8726_v5 = vld [vmem:[#allocation38_spill] sm:$0xff] }
 0xe0e   :  { %v3733_v26 = vmul.f32 %v3715_v60, %v7545_v12  ;;  %v3720_v16 = vmul.f32 %v4612_v24, %v3719_v52 }
 0xe10   :  { %v7621_v17 = vadd.f32 %v3734_v32, %v3733_v26  ;;  %v3721_v10 = vadd.f32 %v4612_v24, %v3720_v16  ;;  %v8724_v26 = vld [vmem:[#allocation36_spill] sm:$0xff] }
 0xe12   :  { %4615 = vtanh.f32 %v7621_v17  ;;  %v3725_v15 = vsel %vm3724_vm10, %v4612_v24, %v3721_v10 }
 0xe13   :  { %v3730_v8 = vsel %vm3727_vm11, %v3729_v28, %v3725_v15 }
 0xe18   :  { %v4616_v23 = vpop.eup %4615 }
 0xe19   :  { %v3737_v7 = vmul.f32 %v4616_v23, %v3730_v8 }
 0xe1b   :  { %3759 = vmatmul.f32.vlgmr.msrb.gmra.mxu0 %v3737_v7  ;;  %3779 = vmatmul.f32.vlgmr.msrb.gmra.mxu1 %v3737_v7 }
 0xe1c   :  { %3799 = vmatmul.f32.vlgmr.msrb.gmra.mxu2 %v3737_v7  ;;  %3819 = vmatmul.f32.vlgmr.msrb.gmra.mxu3 %v3737_v7 }
 0xe1d   :  { %4047 = vmatpush.msrb.mxu0 %v7268_v59  ;;  %4067 = vmatpush.msrb.mxu1 %v7271_v51  ;;  %v8694_v59 = vld [vmem:[#allocation21_spill] sm:$0xff]  ;;  %v8695_v51 = vld [vmem:[#allocation22_spill] sm:$0xff] }
 0xe1e   :  { %4087 = vmatpush.msrb.mxu2 %v7274_v13  ;;  %4107 = vmatpush.msrb.mxu3 %v7277_v14  ;;  %v8696_v13 = vld [vmem:[#allocation23_spill] sm:$0xff]  ;;  %v8697_v14 = vld [vmem:[#allocation24_spill] sm:$0xff] }
 0xe1f   :  { %4048 = vmatpush.msrb.mxu0 %v7280_v6  ;;  %4068 = vmatpush.msrb.mxu1 %v7283_v46  ;;  %v8698_v6 = vld [vmem:[#allocation25_spill] sm:$0xff]  ;;  %v8699_v46 = vld [vmem:[#allocation26_spill] sm:$0xff] }
 0xe20   :  { %4088 = vmatpush.msrb.mxu2 %v7286_v56  ;;  %4108 = vmatpush.msrb.mxu3 %v7289_v62  ;;  %v8700_v56 = vld [vmem:[#allocation27_spill] sm:$0xff]  ;;  %v8701_v62 = vld [vmem:[#allocation28_spill] sm:$0xff] }
 0xe21   :  { %4049 = vmatpush.msrb.mxu0 %v7292_v22  ;;  %4069 = vmatpush.msrb.mxu1 %v7295_v9  ;;  %v8702_v22 = vld [vmem:[#allocation29_spill] sm:$0xff]  ;;  %v8703_v9 = vld [vmem:[#allocation30_spill] sm:$0xff] }
 0xe22   :  { %4089 = vmatpush.msrb.mxu2 %v7298_v2  ;;  %4109 = vmatpush.msrb.mxu3 %v7301_v54  ;;  %v8704_v2 = vld [vmem:[#allocation31_spill] sm:$0xff]  ;;  %v8705_v54 = vld [vmem:[#allocation6_spill] sm:$0xff] }
 0xe23   :  { %4050 = vmatpush.msrb.mxu0 %v7304_v1  ;;  %4070 = vmatpush.msrb.mxu1 %v7307_v58  ;;  %v8706_v1 = vld [vmem:[#allocation7_spill] sm:$0xff]  ;;  %v8707_v58 = vld [vmem:[#allocation8_spill] sm:$0xff] }
 0xe24   :  { %4090 = vmatpush.msrb.mxu2 %v7310_v49  ;;  %4110 = vmatpush.msrb.mxu3 %v7313_v39  ;;  %v8708_v49 = vld [vmem:[#allocation9_spill] sm:$0xff]  ;;  %v8709_v39 = vld [vmem:[#allocation10_spill] sm:$0xff] }
 0xe25   :  { %4051 = vmatpush.msrb.mxu0 %v7316_v55  ;;  %4071 = vmatpush.msrb.mxu1 %v7319_v40  ;;  %v8710_v55 = vld [vmem:[#allocation11_spill] sm:$0xff]  ;;  %v8711_v40 = vld [vmem:[#allocation12_spill] sm:$0xff] }
 0xe26   :  { %4091 = vmatpush.msrb.mxu2 %v7322_v37  ;;  %4111 = vmatpush.msrb.mxu3 %v8631_v42  ;;  %v8712_v37 = vld [vmem:[#allocation13_spill] sm:$0xff]  ;;  %v8719_v42 = vld [vmem:[#allocation20_spill] sm:$0xff] }
 0xe27   :  { %4052 = vmatpush.msrb.mxu0 %v8632_v34  ;;  %4072 = vmatpush.msrb.mxu1 %v8633_v3  ;;  %v165_v34 = vpop.permute.xlu0 %164  ;;  %v8720_v3 = vld [vmem:[#allocation32_spill] sm:$0xff] }
 0xe28   :  { %4092 = vmatpush.msrb.mxu2 %v7334_v29  ;;  %4112 = vmatpush.msrb.mxu3 %v7337_v50  ;;  %v8716_v29 = vld [vmem:[#allocation17_spill] sm:$0xff]  ;;  %v8717_v50 = vld [vmem:[#allocation18_spill] sm:$0xff]  ;;  %v272_v32 = vmul.f32 %v8724_v26, %v165_v34  ;;  %v273_v60 = vmul.f32 %v8726_v5, %v165_v34 }
 0xe29   :  { %4053 = vmatpush.msrb.mxu0 %v7340_v0  ;;  %4073 = vmatpush.msrb.mxu1 %v7343_v30  ;;  %v8713_v30 = vld [vmem:[#allocation14_spill] sm:$0xff]  ;;  %v8718_v0 = vld [vmem:[#allocation19_spill] sm:$0xff] }
 0xe2a   :  { %4093 = vmatpush.msrb.mxu2 %v7346_v43  ;;  %4113 = vmatpush.msrb.mxu3 %v7349_v47  ;;  %v8714_v43 = vld [vmem:[#allocation15_spill] sm:$0xff]  ;;  %v8715_v47 = vld [vmem:[#allocation16_spill] sm:$0xff]  ;;  %v377_v53 = vadd.f32 %v8725_v41, %v272_v32  ;;  %v378_v20 = vadd.f32 %v8727_v4, %v273_v60 }
 0xe2b   :  { %4054 = vmatpush.msrb.mxu0 %v7428_v31  ;;  %4074 = vmatpush.msrb.mxu1 %v7431_v19  ;;  %v270_v31 = vmul.f32 %v8720_v3, %v165_v34  ;;  %v8721_v19 = vld [vmem:[#allocation33_spill] sm:$0xff] }
 0xe2c   :  { %4094 = vmatpush.msrb.mxu2 %v7434_v61  ;;  %4114 = vmatpush.msrb.mxu3 %v7437_v63  ;;  %v271_v61 = vmul.f32 %v8721_v19, %v165_v34  ;;  %v8722_v63 = vld [vmem:[#allocation34_spill] sm:$0xff] }
 0xe2d   :  { %4055 = vmatpush.msrb.mxu0 %v7440_v33  ;;  %4075 = vmatpush.msrb.mxu1 %v7443_v44  ;;  %v375_v33 = vadd.f32 %v8722_v63, %v270_v31  ;;  %v8723_v44 = vld [vmem:[#allocation35_spill] sm:$0xff] }
 0xe2e   :  { %4095 = vmatpush.msrb.mxu2 %v7446_v48  ;;  %4115 = vmatpush.msrb.mxu3 %v7449_v38  ;;  %v376_v48 = vadd.f32 %v8723_v44, %v271_v61 }
 0xe2f   :  { %4056 = vmatpush.msrb.mxu0 %v7452_v57  ;;  %4076 = vmatpush.msrb.mxu1 %v7455_v21 }
 0xe30   :  { %4096 = vmatpush.msrb.mxu2 %v8694_v59  ;;  %4116 = vmatpush.msrb.mxu3 %v8695_v51 }
 0xe31   :  { %4057 = vmatpush.msrb.mxu0 %v8696_v13  ;;  %4077 = vmatpush.msrb.mxu1 %v8697_v14 }
 0xe32   :  { %4097 = vmatpush.msrb.mxu2 %v8698_v6  ;;  %4117 = vmatpush.msrb.mxu3 %v8699_v46 }
 0xe33   :  { %4058 = vmatpush.msrb.mxu0 %v8700_v56  ;;  %4078 = vmatpush.msrb.mxu1 %v8701_v62 }
 0xe34   :  { %4098 = vmatpush.msrb.mxu2 %v8702_v22  ;;  %4118 = vmatpush.msrb.mxu3 %v8703_v9 }
 0xe35   :  { %4059 = vmatpush.msrb.mxu0 %v8704_v2  ;;  %4079 = vmatpush.msrb.mxu1 %v8705_v54 }
 0xe36   :  { %4099 = vmatpush.msrb.mxu2 %v8706_v1  ;;  %4119 = vmatpush.msrb.mxu3 %v8707_v58 }
 0xe37   :  { %4060 = vmatpush.msrb.mxu0 %v8708_v49  ;;  %4080 = vmatpush.msrb.mxu1 %v8709_v39 }
 0xe38   :  { %4100 = vmatpush.msrb.mxu2 %v8710_v55  ;;  %4120 = vmatpush.msrb.mxu3 %v8711_v40 }
 0xe39   :  { %4061 = vmatpush.msrb.mxu0 %v8712_v37  ;;  %4081 = vmatpush.msrb.mxu1 %v8713_v30 }
 0xe3a   :  { %4101 = vmatpush.msrb.mxu2 %v8714_v43  ;;  %4121 = vmatpush.msrb.mxu3 %v8715_v47 }
 0xe3b   :  { %4062 = vmatpush.msrb.mxu0 %v8716_v29  ;;  %4082 = vmatpush.msrb.mxu1 %v8717_v50 }
 0xe3c   :  { %4102 = vmatpush.msrb.mxu2 %v8718_v0  ;;  %4122 = vmatpush.msrb.mxu3 %v8719_v42 }
 0xe98   :  { %v3760_v38 = vpop.f32.mrf.mxu0  ;;  %v3780_v57 = vpop.f32.mrf.mxu1 }
 0xe99   :  { %v3823_v21 = vadd.f32 %v3760_v38, %v375_v33  ;;  %v3824_v12 = vadd.f32 %v3780_v57, %v376_v48 }
 0xe9b   :  { %v4264_v24 = vmul.f32 -1.442695, %v3823_v21  ;;  %v4265_v52 = vmul.f32 -1.442695, %v3824_v12 }
 0xe9d   :  { %4617 = vpow2.f32 %v4264_v24 }
 0xe9e   :  { %4619 = vpow2.f32 %v4265_v52 }
 0xe9f   :  { %v3800_v45 = vpop.f32.mrf.mxu2  ;;  %v3820_v16 = vpop.f32.mrf.mxu3 }
 0xea0   :  { %v3825_v35 = vadd.f32 %v3800_v45, %v377_v53  ;;  %v3826_v23 = vadd.f32 %v3820_v16, %v378_v20 }
 0xea2   :  { %v4266_v36 = vmul.f32 -1.442695, %v3825_v35 }
 0xea3   :  { %v4618_v11 = vpop.eup %4617 }
 0xea4   :  { %v4620_v27 = vpop.eup %4619  ;;  %v3836_v18 = vadd.f32 1.0, %v4618_v11  ;;  %4621 = vpow2.f32 %v4266_v36 }
 0xea5   :  { %v3837_v25 = vadd.f32 1.0, %v4620_v27 }
 0xea6   :  { %4623 = vrcp.f32 %v3836_v18  ;;  %v3850_v14 = vand.u32 2147483648, %v3836_v18  ;;  %v3848_v56 = vand.u32 2147483647, %v3836_v18  ;;  %vm3844_vm14 = vweird.f32 %v3836_v18 }
 0xea7   :  { %4625 = vrcp.f32 %v3837_v25  ;;  %v3865_v6 = vand.u32 2147483648, %v3837_v25  ;;  %v3863_v22 = vand.u32 2147483647, %v3837_v25  ;;  %vm3859_vm15 = vweird.f32 %v3837_v25 }
 0xea8   :  { %v3851_v1 = vor.u32 1.1754944e-38, %v3850_v14  ;;  %vm3849_vm2 = vcmp.eq.f32.partialorder %v3848_v56, 8.507059e+37 }
 0xea9   :  { %v3866_v49 = vor.u32 1.1754944e-38, %v3865_v6  ;;  %vm3864_vm3 = vcmp.eq.f32.partialorder %v3863_v22, 8.507059e+37 }
 0xeaa   :  { %v4622_v10 = vpop.eup %4621 }
 0xeab   :  { %v3838_v15 = vadd.f32 1.0, %v4622_v10 }
 0xeac   :  { %v4624_v28 = vpop.eup %4623 }
 0xead   :  { %v4626_v8 = vpop.eup %4625  ;;  %v3840_v7 = vmul.f32 %v4624_v28, %v3836_v18  ;;  %4627 = vrcp.f32 %v3838_v15  ;;  %vm3845_vm12 = vweird.f32 %v4624_v28  ;;  %v3880_v34 = vand.u32 2147483648, %v3838_v15 }
 0xeae   :  { %v3855_v59 = vmul.f32 %v4626_v8, %v3837_v25  ;;  %4629 = vtanh.f32 %v3826_v23  ;;  %vm3860_vm13 = vweird.f32 %v4626_v8  ;;  %vm3846_vm0 = vmor %vm3844_vm14, %vm3845_vm12  ;;  %vm3874_vm5 = vweird.f32 %v3838_v15 }
 0xeaf   :  { %v3841_v51 = vsub.f32 1.0, %v3840_v7  ;;  %vm3861_vm1 = vmor %vm3859_vm15, %vm3860_vm13  ;;  %v3878_v31 = vand.u32 2147483647, %v3838_v15  ;;  %v3881_v33 = vor.u32 1.1754944e-38, %v3880_v34 }
 0xeb0   :  { %v3856_v13 = vsub.f32 1.0, %v3855_v59 }
 0xeb1   :  { %v3842_v46 = vmul.f32 %v4624_v28, %v3841_v51  ;;  %vm3879_vm7 = vcmp.eq.f32.partialorder %v3878_v31, 8.507059e+37 }
 0xeb2   :  { %v3857_v62 = vmul.f32 %v4626_v8, %v3856_v13 }
 0xeb3   :  { %v4628_v9 = vpop.eup %4627  ;;  %v3843_v2 = vadd.f32 %v4624_v28, %v3842_v46 }
 0xeb4   :  { %v3870_v54 = vmul.f32 %v4628_v9, %v3838_v15  ;;  %v3858_v58 = vadd.f32 %v4626_v8, %v3857_v62  ;;  %v4630_v55 = vpop.eup %4629  ;;  %vm3875_vm4 = vweird.f32 %v4628_v9 }
 0xeb5   :  { %v3847_v39 = vsel %vm3846_vm0, %v4624_v28, %v3843_v2  ;;  %vm3876_vm6 = vmor %vm3874_vm5, %vm3875_vm4 }
 0xeb6   :  { %v3871_v40 = vsub.f32 1.0, %v3870_v54  ;;  %v3852_v37 = vsel %vm3849_vm2, %v3851_v1, %v3847_v39  ;;  %v3862_v30 = vsel %vm3861_vm1, %v4626_v8, %v3858_v58 }
 0xeb7   :  { %v3867_v43 = vsel %vm3864_vm3, %v3866_v49, %v3862_v30  ;;  %v3886_v47 = vmul.f32 %v4630_v55, %v3852_v37 }
 0xeb8   :  { %v3885_v29 = vmul.f32 %v3867_v43, %v7621_v17  ;;  %v3872_v50 = vmul.f32 %v4628_v9, %v3871_v40  ;;  %v170_v17 = vpop.permute.xlu1 %169 }
 0xeb9   :  { %v274_v21 = vmul.f32 %v8720_v3, %v170_v17  ;;  %v275_v12 = vmul.f32 %v8721_v19, %v170_v17  ;;  %v276_v36 = vmul.f32 %v8724_v26, %v170_v17  ;;  %v277_v23 = vmul.f32 %v8726_v5, %v170_v17 }
 0xeba   :  { %v7697_v0 = vadd.f32 %v3886_v47, %v3885_v29  ;;  %v3873_v42 = vadd.f32 %v4628_v9, %v3872_v50 }
 0xebb   :  { %v379_v32 = vadd.f32 %v8722_v63, %v274_v21  ;;  %v380_v24 = vadd.f32 %v8723_v44, %v275_v12  ;;  %v381_v18 = vadd.f32 %v8725_v41, %v276_v36  ;;  %v382_v59 = vadd.f32 %v8727_v4, %v277_v23 }
 0xebc   :  { %4631 = vtanh.f32 %v7697_v0  ;;  %v3877_v61 = vsel %vm3876_vm6, %v4628_v9, %v3873_v42 }
 0xebd   :  { %v3882_v38 = vsel %vm3879_vm7, %v3881_v33, %v3877_v61 }
 0xec2   :  { %v4632_v48 = vpop.eup %4631 }
 0xec3   :  { %v3889_v57 = vmul.f32 %v4632_v48, %v3882_v38 }
 0xec5   :  { %3911 = vmatmul.f32.vlgmr.msra.gmra.mxu0 %v3889_v57  ;;  %3931 = vmatmul.f32.vlgmr.msra.gmra.mxu1 %v3889_v57 }
 0xec6   :  { %3951 = vmatmul.f32.vlgmr.msra.gmra.mxu2 %v3889_v57  ;;  %3971 = vmatmul.f32.vlgmr.msra.gmra.mxu3 %v3889_v57 }
 0xf42   :  { %v3912_v52 = vpop.f32.mrf.mxu0  ;;  %v3932_v53 = vpop.f32.mrf.mxu1 }
 0xf43   :  { %v3975_v45 = vadd.f32 %v3912_v52, %v379_v32  ;;  %v3976_v35 = vadd.f32 %v3932_v53, %v380_v24 }
 0xf45   :  { %v4267_v11 = vmul.f32 -1.442695, %v3975_v45  ;;  %v4268_v27 = vmul.f32 -1.442695, %v3976_v35 }
 0xf47   :  { %4633 = vpow2.f32 %v4267_v11 }
 0xf48   :  { %4635 = vpow2.f32 %v4268_v27 }
 0xf49   :  { %v3952_v25 = vpop.f32.mrf.mxu2  ;;  %v3972_v8 = vpop.f32.mrf.mxu3 }
 0xf4a   :  { %v3977_v60 = vadd.f32 %v3952_v25, %v381_v18  ;;  %v3978_v14 = vadd.f32 %v3972_v8, %v382_v59 }
 0xf4c   :  { %v4269_v16 = vmul.f32 -1.442695, %v3977_v60 }
 0xf4d   :  { %v4634_v10 = vpop.eup %4633 }
 0xf4e   :  { %v4636_v20 = vpop.eup %4635  ;;  %v3988_v15 = vadd.f32 1.0, %v4634_v10  ;;  %4637 = vpow2.f32 %v4269_v16 }
 0xf4f   :  { %v3989_v28 = vadd.f32 1.0, %v4636_v20 }
 0xf50   :  { %4639 = vrcp.f32 %v3988_v15  ;;  %v4002_v9 = vand.u32 2147483648, %v3988_v15  ;;  %v4000_v1 = vand.u32 2147483647, %v3988_v15  ;;  %vm3996_vm10 = vweird.f32 %v3988_v15 }
 0xf51   :  { %4641 = vrcp.f32 %v3989_v28  ;;  %v4017_v2 = vand.u32 2147483648, %v3989_v28  ;;  %v4015_v49 = vand.u32 2147483647, %v3989_v28  ;;  %vm4011_vm11 = vweird.f32 %v3989_v28 }
 0xf52   :  { %v4003_v37 = vor.u32 1.1754944e-38, %v4002_v9  ;;  %vm4001_vm14 = vcmp.eq.f32.partialorder %v4000_v1, 8.507059e+37 }
 0xf53   :  { %v4018_v43 = vor.u32 1.1754944e-38, %v4017_v2  ;;  %vm4016_vm15 = vcmp.eq.f32.partialorder %v4015_v49, 8.507059e+37 }
 0xf54   :  { %v4638_v7 = vpop.eup %4637 }
 0xf55   :  { %v3990_v51 = vadd.f32 1.0, %v4638_v7 }
 0xf56   :  { %v4640_v13 = vpop.eup %4639 }
 0xf57   :  { %v4642_v6 = vpop.eup %4641  ;;  %v3992_v46 = vmul.f32 %v4640_v13, %v3988_v15  ;;  %4643 = vrcp.f32 %v3990_v51  ;;  %vm3997_vm8 = vweird.f32 %v4640_v13  ;;  %v4032_v17 = vand.u32 2147483648, %v3990_v51 }
 0xf58   :  { %v4007_v56 = vmul.f32 %v4642_v6, %v3989_v28  ;;  %4645 = vtanh.f32 %v3978_v14  ;;  %vm4012_vm9 = vweird.f32 %v4642_v6  ;;  %vm3998_vm12 = vmor %vm3996_vm10, %vm3997_vm8  ;;  %vm4026_vm1 = vweird.f32 %v3990_v51 }
 0xf59   :  { %v3993_v62 = vsub.f32 1.0, %v3992_v46  ;;  %vm4013_vm13 = vmor %vm4011_vm11, %vm4012_vm9  ;;  %v4030_v21 = vand.u32 2147483647, %v3990_v51  ;;  %v4033_v32 = vor.u32 1.1754944e-38, %v4032_v17 }
 0xf5a   :  { %v4008_v22 = vsub.f32 1.0, %v4007_v56 }
 0xf5b   :  { %v3994_v54 = vmul.f32 %v4640_v13, %v3993_v62  ;;  %vm4031_vm3 = vcmp.eq.f32.partialorder %v4030_v21, 8.507059e+37 }
 0xf5c   :  { %v4009_v58 = vmul.f32 %v4642_v6, %v4008_v22 }
 0xf5d   :  { %v4644_v39 = vpop.eup %4643  ;;  %v3995_v55 = vadd.f32 %v4640_v13, %v3994_v54 }
 0xf5e   :  { %v4022_v40 = vmul.f32 %v4644_v39, %v3990_v51  ;;  %v4010_v30 = vadd.f32 %v4642_v6, %v4009_v58  ;;  %v4646_v29 = vpop.eup %4645  ;;  %vm4027_vm0 = vweird.f32 %v4644_v39 }
 0xf5f   :  { %v3999_v47 = vsel %vm3998_vm12, %v4640_v13, %v3995_v55  ;;  %vm4028_vm2 = vmor %vm4026_vm1, %vm4027_vm0 }
 0xf60   :  { %v4023_v50 = vsub.f32 1.0, %v4022_v40  ;;  %v4004_v42 = vsel %vm4001_vm14, %v4003_v37, %v3999_v47  ;;  %v4014_v34 = vsel %vm4013_vm13, %v4642_v6, %v4010_v30 }
 0xf61   :  { %v4019_v31 = vsel %vm4016_vm15, %v4018_v43, %v4014_v34  ;;  %v4038_v61 = vmul.f32 %v4646_v29, %v4004_v42 }
 0xf62   :  { %v4037_v33 = vmul.f32 %v4019_v31, %v7697_v0  ;;  %v4024_v48 = vmul.f32 %v4644_v39, %v4023_v50  ;;  %v175_v0 = vpop.permute.xlu2 %174 }
 0xf63   :  { %v278_v45 = vmul.f32 %v8720_v3, %v175_v0  ;;  %v279_v35 = vmul.f32 %v8721_v19, %v175_v0  ;;  %v280_v16 = vmul.f32 %v8724_v26, %v175_v0  ;;  %v281_v7 = vmul.f32 %v8726_v5, %v175_v0 }
 0xf64   :  { %v7709_v38 = vadd.f32 %v4038_v61, %v4037_v33  ;;  %v4025_v57 = vadd.f32 %v4644_v39, %v4024_v48 }
 0xf65   :  { %v383_v36 = vadd.f32 %v8722_v63, %v278_v45  ;;  %v384_v11 = vadd.f32 %v8723_v44, %v279_v35  ;;  %v385_v15 = vadd.f32 %v8725_v41, %v280_v16  ;;  %v386_v51 = vadd.f32 %v8727_v4, %v281_v7 }
 0xf66   :  { %4647 = vtanh.f32 %v7709_v38  ;;  %v4029_v12 = vsel %vm4028_vm2, %v4644_v39, %v4025_v57 }
 0xf67   :  { %v4034_v52 = vsel %vm4031_vm3, %v4033_v32, %v4029_v12 }
 0xf6c   :  { %v4648_v24 = vpop.eup %4647 }
 0xf6d   :  { %v4041_v53 = vmul.f32 %v4648_v24, %v4034_v52 }
 0xf6f   :  { %4063 = vmatmul.f32.vlgmr.msrb.gmra.mxu0 %v4041_v53  ;;  %4083 = vmatmul.f32.vlgmr.msrb.gmra.mxu1 %v4041_v53 }
 0xf70   :  { %4103 = vmatmul.f32.vlgmr.msrb.gmra.mxu2 %v4041_v53  ;;  %4123 = vmatmul.f32.vlgmr.msrb.gmra.mxu3 %v4041_v53 }
 0xfec   :  { %v4064_v27 = vpop.f32.mrf.mxu0  ;;  %v4084_v18 = vpop.f32.mrf.mxu1 }
 0xfed   :  { %v4127_v25 = vadd.f32 %v4064_v27, %v383_v36  ;;  %v4128_v60 = vadd.f32 %v4084_v18, %v384_v11 }
 0xfef   :  { %v4270_v10 = vmul.f32 -1.442695, %v4127_v25  ;;  %v4271_v20 = vmul.f32 -1.442695, %v4128_v60 }
 0xff1   :  { %4649 = vpow2.f32 %v4270_v10 }
 0xff2   :  { %4651 = vpow2.f32 %v4271_v20 }
 0xff3   :  { %v4104_v28 = vpop.f32.mrf.mxu2  ;;  %v4124_v59 = vpop.f32.mrf.mxu3 }
 0xff4   :  { %v4129_v3 = vadd.f32 %v4104_v28, %v385_v15  ;;  %v4130_v6 = vadd.f32 %v4124_v59, %v386_v51 }
 0xff6   :  { %v4272_v23 = vmul.f32 -1.442695, %v4129_v3 }
 0xff7   :  { %v4650_v19 = vpop.eup %4649 }
 0xff8   :  { %v4652_v8 = vpop.eup %4651  ;;  %v4140_v63 = vadd.f32 1.0, %v4650_v19  ;;  %4653 = vpow2.f32 %v4272_v23 }
 0xff9   :  { %v4141_v44 = vadd.f32 1.0, %v4652_v8 }
 0xffa   :  { %4655 = vrcp.f32 %v4140_v63  ;;  %v4154_v9 = vand.u32 2147483648, %v4140_v63  ;;  %v4152_v5 = vand.u32 2147483647, %v4140_v63  ;;  %vm4148_vm6 = vweird.f32 %v4140_v63 }
 0xffb   :  { %4657 = vrcp.f32 %v4141_v44  ;;  %v4169_v2 = vand.u32 2147483648, %v4141_v44  ;;  %v4167_v58 = vand.u32 2147483647, %v4141_v44  ;;  %vm4163_vm7 = vweird.f32 %v4141_v44 }
 0xffc   :  { %v4155_v55 = vor.u32 1.1754944e-38, %v4154_v9  ;;  %vm4153_vm10 = vcmp.eq.f32.partialorder %v4152_v5, 8.507059e+37 }
 0xffd   :  { %v4170_v37 = vor.u32 1.1754944e-38, %v4169_v2  ;;  %vm4168_vm11 = vcmp.eq.f32.partialorder %v4167_v58, 8.507059e+37 }
 0xffe   :  { %v4654_v26 = vpop.eup %4653 }
 0xfff   :  { %v4142_v13 = vadd.f32 1.0, %v4654_v26 }
0x1000   :  { %v4656_v14 = vpop.eup %4655 }
0x1001   :  { %v4658_v41 = vpop.eup %4657  ;;  %v4144_v46 = vmul.f32 %v4656_v14, %v4140_v63  ;;  %4659 = vrcp.f32 %v4142_v13  ;;  %vm4149_vm4 = vweird.f32 %v4656_v14  ;;  %v4184_v57 = vand.u32 2147483648, %v4142_v13 }
0x1002   :  { %v4159_v56 = vmul.f32 %v4658_v41, %v4141_v44  ;;  %4661 = vtanh.f32 %v4130_v6  ;;  %vm4164_vm5 = vweird.f32 %v4658_v41  ;;  %vm4150_vm8 = vmor %vm4148_vm6, %vm4149_vm4  ;;  %vm4178_vm13 = vweird.f32 %v4142_v13 }
0x1003   :  { %v4145_v62 = vsub.f32 1.0, %v4144_v46  ;;  %vm4165_vm9 = vmor %vm4163_vm7, %vm4164_vm5  ;;  %v4182_v17 = vand.u32 2147483647, %v4142_v13  ;;  %v4185_v12 = vor.u32 1.1754944e-38, %v4184_v57 }
0x1004   :  { %v4160_v22 = vsub.f32 1.0, %v4159_v56 }
0x1005   :  { %v4146_v54 = vmul.f32 %v4656_v14, %v4145_v62  ;;  %vm4183_vm15 = vcmp.eq.f32.partialorder %v4182_v17, 8.507059e+37 }
0x1006   :  { %v4161_v1 = vmul.f32 %v4658_v41, %v4160_v22 }
0x1007   :  { %v4660_v49 = vpop.eup %4659  ;;  %v4147_v4 = vadd.f32 %v4656_v14, %v4146_v54 }
0x1008   :  { %v4174_v39 = vmul.f32 %v4660_v49, %v4142_v13  ;;  %v4162_v40 = vadd.f32 %v4658_v41, %v4161_v1  ;;  %v4662_v43 = vpop.eup %4661  ;;  %vm4179_vm12 = vweird.f32 %v4660_v49 }
0x1009   :  { %v4151_v30 = vsel %vm4150_vm8, %v4656_v14, %v4147_v4  ;;  %vm4180_vm14 = vmor %vm4178_vm13, %vm4179_vm12 }
0x100a   :  { %v4175_v47 = vsub.f32 1.0, %v4174_v39  ;;  %v4156_v29 = vsel %vm4153_vm10, %v4155_v55, %v4151_v30  ;;  %v4166_v50 = vsel %vm4165_vm9, %v4658_v41, %v4162_v40 }
0x100b   :  { %v4171_v42 = vsel %vm4168_vm11, %v4170_v37, %v4166_v50  ;;  %v4190_v34 = vmul.f32 %v4662_v43, %v4156_v29 }
0x100c   :  { %v4176_v31 = vmul.f32 %v4660_v49, %v4175_v47  ;;  %v4189_v61 = vmul.f32 %v4171_v42, %v7709_v38 }
0x100e   :  { %v4191_v33 = vadd.f32 %v4190_v34, %v4189_v61  ;;  %v4177_v48 = vadd.f32 %v4660_v49, %v4176_v31 }
0x1010   :  { %4663 = vtanh.f32 %v4191_v33  ;;  %v4181_v21 = vsel %vm4180_vm14, %v4660_v49, %v4177_v48 }
0x1011   :  { %v4186_v24 = vsel %vm4183_vm15, %v4185_v12, %v4181_v21 }
0x1016   :  { %v4664_v32 = vpop.eup %4663 }
0x1017   :  { %v4193_v52 = vmul.f32 %v4664_v32, %v4186_v24 }
0x1019   :  { %4194 = vst [vmem:[%s7727_s3] sm:$0xff] %v4193_v52 }
0x101a   :  { %4199 = vsyncpa [#allocation4], 1 }

</bundles_post_ra>
